<compile_context>
chip_gen: v7x
topology: tpu7x:2x2x1
jax: 0.10.0
libtpu: 0.0.40
codegen_flags: <defaults>
</compile_context>

<pallas_src>
import functools

import jax
import jax.numpy as jnp
from jax.experimental import pallas as pl
from jax.experimental.pallas import tpu as pltpu

LANES = 128                      # padded output-channel / feature width
VMEM_LIMIT = 32 * 1024 * 1024    # >= v5e's 16 MiB default, safe on v7x (64 MiB)

# Vertical-tap groups per conv: each group's kh_taps*kw*cin lanes must fit in
# one MXU contraction (<=128 lanes).
CONV1_GROUPS = ((0, 1, 2, 3, 4),)      # 5*5*1  = 25 lanes -> 1 dot
CONV2_GROUPS = ((0, 1, 2), (3, 4))     # 90 / 60 lanes     -> 2 dots
CONV3_GROUPS = ((0, 1), (2,))          # 96 / 48 lanes     -> 2 dots


def _round_up(x, m):
    return ((x + m - 1) // m) * m


def _batch_tile(b, cap):
    """Largest batch tile <= cap dividing b that is a multiple of 8 (or b)."""
    if b <= cap:
        return b
    t = (cap // 8) * 8
    while t > 8:
        if b % t == 0:
            return t
        t -= 8
    return 8   # caller pads b to a multiple of 8 whenever b > 8


# ---------------------------------------------------------------------------
# Pallas kernels
# ---------------------------------------------------------------------------
def _conv_bn_relu_pool_kernel(*refs, bt, H, W, n_groups, pool):
    """Fused conv (kh*kw taps packed into K) + folded-BN affine + ReLU +
    optional 2x2 max-pool for a block of `bt` images.

    refs = [x_g (bt, H*W, Kg)] * n_groups
         + [w_g (Kg, LANES)]   * n_groups
         + [scale (1, LANES), bias (1, LANES), out (bt, Mo, LANES)]
    """
    x_refs = refs[:n_groups]
    w_refs = refs[n_groups:2 * n_groups]
    scale_ref, bias_ref, o_ref = refs[2 * n_groups:]
    m = H * W

    acc = None
    for g in range(n_groups):
        xg = x_refs[g][...]
        xg = xg.reshape(bt * m, xg.shape[-1])        # flatten images into M
        c = jnp.dot(xg, w_refs[g][...], preferred_element_type=jnp.float32)
        acc = c if acc is None else acc + c          # local (register/MXU) accum

    y = jnp.maximum(acc * scale_ref[...] + bias_ref[...], 0.0)

    if pool:
        # Rows are ordered (img, h2, a, b, w2) with h = 2*h2 + a, w = 2*w2 + b,
        # so the 2x2 window is a max over 4 leading-dim slabs (lane-dense, no
        # sublane relayout needed).
        h2, w2 = H // 2, W // 2
        y = y.reshape(bt * h2, 4, w2, LANES)
        y = jnp.maximum(jnp.maximum(y[:, 0], y[:, 1]),
                        jnp.maximum(y[:, 2], y[:, 3]))
        o_ref[...] = y.reshape(bt, h2 * w2, LANES).astype(o_ref.dtype)
    else:
        o_ref[...] = y.reshape(bt, m, LANES).astype(o_ref.dtype)


def _mlp_kernel(x_ref, w1_ref, b1_ref, w2_ref, b2_ref, o_ref):
    """Fused fc1 + ReLU + (dropout = identity at inference) + fc2."""
    h = jnp.dot(x_ref[...], w1_ref[...], preferred_element_type=jnp.float32)
    h = jnp.maximum(h + b1_ref[...], 0.0)
    # TODO(synk): training-mode Dropout(0.5) mask not implemented.
    o = jnp.dot(h.astype(w2_ref.dtype), w2_ref[...],
                preferred_element_type=jnp.float32)
    o_ref[...] = o + b2_ref[...]


# ---------------------------------------------------------------------------
# Wrappers
# ---------------------------------------------------------------------------
def conv_bn_relu_pool(a, w_groups, scale, bias, *, kh, kw, i_groups, pool,
                      block_b):
    """a: (B, H, W, cin) NHWC (real channels).  Returns (B, Ho, Wo, LANES) bf16."""
    B, H, W, cin = a.shape
    ph, pw = (kh - 1) // 2, (kw - 1) // 2
    xp = jnp.pad(a, ((0, 0), (ph, ph), (pw, pw), (0, 0)))

    packed = []
    for i_list, wg in zip(i_groups, w_groups):
        # Per output pixel, pack the group's (i, j, c) taps into the lane/K dim
        # (kept compact: no pad-to-128, only round-to-16).
        taps = [xp[:, i:i + H, j:j + W, :] for i in i_list for j in range(kw)]
        xg = jnp.concatenate(taps, axis=-1)                       # (B, H, W, kg)
        if pool:
            # Reorder columns to (w-parity, w//2) so pooling in the kernel is
            # a max over 4 leading-dim slabs.
            xg = xg.reshape(B, H, W // 2, 2, xg.shape[-1]).transpose(0, 1, 3, 2, 4)
        kg = len(i_list) * kw * cin
        xg = xg.reshape(B, H * W, kg)
        kgp = wg.shape[0]
        if kgp > kg:
            xg = jnp.pad(xg, ((0, 0), (0, 0), (0, kgp - kg)))
        packed.append(xg.astype(jnp.bfloat16))

    ho, wo = (H // 2, W // 2) if pool else (H, W)
    mo = ho * wo
    bt = block_b
    n_groups = len(i_groups)
    kernel = functools.partial(_conv_bn_relu_pool_kernel,
                               bt=bt, H=H, W=W, n_groups=n_groups, pool=pool)
    in_specs = (
        [pl.BlockSpec((bt, H * W, p.shape[-1]), lambda b: (b, 0, 0)) for p in packed]
        + [pl.BlockSpec(w.shape, lambda b: (0, 0)) for w in w_groups]
        + [pl.BlockSpec((1, LANES), lambda b: (0, 0)),
           pl.BlockSpec((1, LANES), lambda b: (0, 0))]
    )
    out = pl.pallas_call(
        kernel,
        out_shape=jax.ShapeDtypeStruct((B, mo, LANES), jnp.bfloat16),
        grid_spec=pltpu.PrefetchScalarGridSpec(
            num_scalar_prefetch=0,
            grid=(B // bt,),
            in_specs=in_specs,
            out_specs=pl.BlockSpec((bt, mo, LANES), lambda b: (b, 0, 0)),
        ),
        compiler_params=pltpu.CompilerParams(
            dimension_semantics=("parallel",),
            vmem_limit_bytes=VMEM_LIMIT),
    )(*packed, *w_groups, scale, bias)
    return out.reshape(B, ho, wo, LANES)


def mlp_head(a, w1, b1, w2, b2, num_classes, *, block_b):
    """a: (B, K) bf16 -> logits (B, num_classes) f32 (fc1 + ReLU + fc2 fused)."""
    B, K = a.shape
    bt = block_b
    out = pl.pallas_call(
        _mlp_kernel,
        out_shape=jax.ShapeDtypeStruct((B, LANES), jnp.float32),
        grid_spec=pltpu.PrefetchScalarGridSpec(
            num_scalar_prefetch=0,
            grid=(B // bt,),
            in_specs=[
                pl.BlockSpec((bt, K), lambda b: (b, 0)),
                pl.BlockSpec((K, LANES), lambda b: (0, 0)),       # resident
                pl.BlockSpec((1, LANES), lambda b: (0, 0)),
                pl.BlockSpec((LANES, LANES), lambda b: (0, 0)),   # resident
                pl.BlockSpec((1, LANES), lambda b: (0, 0)),
            ],
            out_specs=pl.BlockSpec((bt, LANES), lambda b: (b, 0)),
        ),
        compiler_params=pltpu.CompilerParams(
            dimension_semantics=("parallel",),
            vmem_limit_bytes=VMEM_LIMIT),
    )(a, w1, b1, w2, b2)
    return out[:, :num_classes]


# ---------------------------------------------------------------------------
# Parameters
# ---------------------------------------------------------------------------
def init_params(key):
    """Raw parameters in PyTorch layouts (kaiming_normal fan_out / relu init)."""
    ks = jax.random.split(key, 5)

    def conv_w(k, cout, cin, kh, kw):
        std = (2.0 / (cout * kh * kw)) ** 0.5
        return std * jax.random.normal(k, (cout, cin, kh, kw), jnp.float32)

    def lin_w(k, cout, cin):
        std = (2.0 / cout) ** 0.5
        return std * jax.random.normal(k, (cout, cin), jnp.float32)

    def bn(c):
        return dict(gamma=jnp.ones((c,), jnp.float32),
                    beta=jnp.zeros((c,), jnp.float32),
                    mean=jnp.zeros((c,), jnp.float32),
                    var=jnp.ones((c,), jnp.float32))

    return {
        "conv1_w": conv_w(ks[0], 6, 1, 5, 5), "conv1_b": jnp.zeros((6,), jnp.float32), "bn1": bn(6),
        "conv2_w": conv_w(ks[1], 16, 6, 5, 5), "conv2_b": jnp.zeros((16,), jnp.float32), "bn2": bn(16),
        "conv3_w": conv_w(ks[2], 120, 16, 3, 3), "conv3_b": jnp.zeros((120,), jnp.float32), "bn3": bn(120),
        "fc1_w": lin_w(ks[3], 84, 120 * 8 * 8), "fc1_b": jnp.zeros((84,), jnp.float32),
        "fc2_w": lin_w(ks[4], 10, 84), "fc2_b": jnp.zeros((10,), jnp.float32),
    }


def prepare_params(raw, eps=1e-5):
    """One-time prep: fold BN, pack (kh, kw, cin) taps into compact K groups,
    pad N to 128, and cast MXU operands to bf16 (kept out of the forward)."""
    def fold_bn(conv_b, bn):
        inv = 1.0 / jnp.sqrt(bn["var"] + eps)
        scale = bn["gamma"] * inv
        bias = bn["beta"] + (conv_b - bn["mean"]) * scale
        return scale, bias

    def pad_row(v):
        return jnp.pad(v, (0, LANES - v.shape[0]))[None, :].astype(jnp.float32)

    def conv_prep(w, b, bn, i_groups):
        cout, cin, kh, kw = w.shape
        wt = jnp.transpose(w, (2, 3, 1, 0))           # (kh, kw, cin, cout)
        groups = []
        for i_list in i_groups:                       # contiguous vertical taps
            wg = wt[i_list[0]:i_list[-1] + 1].reshape(-1, cout)   # rows (i, j, c)
            kp = _round_up(wg.shape[0], 16)
            wg = jnp.pad(wg, ((0, kp - wg.shape[0]), (0, LANES - cout)))
            groups.append(wg.astype(jnp.bfloat16))
        scale, bias = fold_bn(b, bn)
        return tuple(groups), pad_row(scale), pad_row(bias)

    c1, c1s, c1b = conv_prep(raw["conv1_w"], raw["conv1_b"], raw["bn1"], CONV1_GROUPS)
    c2, c2s, c2b = conv_prep(raw["conv2_w"], raw["conv2_b"], raw["bn2"], CONV2_GROUPS)
    c3, c3s, c3b = conv_prep(raw["conv3_w"], raw["conv3_b"], raw["bn3"], CONV3_GROUPS)

    # fc1: torch weight (84, 120*8*8) flattens the conv output as (c, h, w);
    # our conv3 activation is flattened (h, w, c-padded-to-128).
    w1 = raw["fc1_w"].reshape(84, 120, 8, 8).transpose(2, 3, 1, 0)  # (h, w, c, out)
    w1 = jnp.pad(w1, ((0, 0), (0, 0), (0, LANES - 120), (0, LANES - 84)))
    w1 = w1.reshape(8 * 8 * LANES, LANES).astype(jnp.bfloat16)
    b1 = pad_row(raw["fc1_b"])
    w2 = jnp.pad(raw["fc2_w"].T, ((0, LANES - 84), (0, LANES - 10))).astype(jnp.bfloat16)
    b2 = pad_row(raw["fc2_b"])

    return {"c1_w": c1, "c1_s": c1s, "c1_b": c1b,
            "c2_w": c2, "c2_s": c2s, "c2_b": c2b,
            "c3_w": c3, "c3_s": c3s, "c3_b": c3b,
            "fc1_w": w1, "fc1_b": b1, "fc2_w": w2, "fc2_b": b2}


# ---------------------------------------------------------------------------
# Forward pass (mirrors LeNet5Modified.forward, inference semantics)
# ---------------------------------------------------------------------------
def lenet5_modified_forward(params, x, *, conv_block_b=8, mlp_block_b=128):
    """x: (B, 1, 32, 32) f32 NCHW -> logits (B, 10) f32.

    conv_block_b: images per conv grid step (8 is safe everywhere; 32-64 fine
    on v5e/v6e with a larger VMEM_LIMIT, keep <=16 on v7x).
    """
    p = params
    B = x.shape[0]
    b_pad = B if B <= 8 else _round_up(B, 8)      # keep batch tiles 8-aligned
    if b_pad != B:
        x = jnp.pad(x, ((0, b_pad - B), (0, 0), (0, 0), (0, 0)))

    a = jnp.transpose(x, (0, 2, 3, 1))            # boundary NCHW -> NHWC once
    bt_c = _batch_tile(b_pad, conv_block_b)
    a = conv_bn_relu_pool(a, p["c1_w"], p["c1_s"], p["c1_b"],
                          kh=5, kw=5, i_groups=CONV1_GROUPS, pool=True,
                          block_b=bt_c)                           # (B,16,16,128)
    a = conv_bn_relu_pool(a[..., :6], p["c2_w"], p["c2_s"], p["c2_b"],
                          kh=5, kw=5, i_groups=CONV2_GROUPS, pool=True,
                          block_b=bt_c)                           # (B, 8, 8,128)
    a = conv_bn_relu_pool(a[..., :16], p["c3_w"], p["c3_s"], p["c3_b"],
                          kh=3, kw=3, i_groups=CONV3_GROUPS, pool=False,
                          block_b=bt_c)                           # (B, 8, 8,128)
    a = a.reshape(b_pad, -1)                      # (B, 8*8*128), (h, w, c) order
    bt_m = _batch_tile(b_pad, mlp_block_b)
    logits = mlp_head(a, p["fc1_w"], p["fc1_b"], p["fc2_w"], p["fc2_b"], 10,
                      block_b=bt_m)
    return logits[:B]


if __name__ == "__main__":
    key = jax.random.PRNGKey(0)
    pkey, xkey = jax.random.split(key)
    params = prepare_params(init_params(pkey))
    # fc1 = Linear(120*8*8, 84) implies a 32x32 spatial input (two 2x pools -> 8x8).
    x = jax.random.normal(xkey, (2, 1, 32, 32), jnp.float32)

    out = jax.jit(lenet5_modified_forward)(params, x)
    out = jax.block_until_ready(out)
    assert out.shape == (2, 10), out.shape
    assert bool(jnp.all(jnp.isfinite(out)))
    print("KERNEL_OK")
</pallas_src>

<mosaic_0001>
module attributes {stable_mosaic.version = 11 : i64} {
  func.func @_conv_bn_relu_pool_kernel(%arg0: i32, %arg1: memref<2x1024x32xbf16, #tpu.memory_space<vmem>>, %arg2: memref<32x128xbf16, #tpu.memory_space<vmem>>, %arg3: memref<1x128xf32, #tpu.memory_space<vmem>>, %arg4: memref<1x128xf32, #tpu.memory_space<vmem>>, %arg5: memref<2x256x128xbf16, #tpu.memory_space<vmem>>) attributes {dimension_semantics = [#tpu.dimension_semantics<parallel>], iteration_bounds = array<i64: 1>, scalar_prefetch = 0 : i64, scratch_operands = 0 : i64, tpu.core_type = #tpu.core_type<tc>, window_params = [{transform_indices = @transform_0, window_bounds = array<i64: 2, 1024, 32>}, {pipeline_mode = #tpu.pipeline_mode<synchronous>, transform_indices = @transform_1, window_bounds = array<i64: 32, 128>}, {pipeline_mode = #tpu.pipeline_mode<synchronous>, transform_indices = @transform_2, window_bounds = array<i64: 1, 128>}, {pipeline_mode = #tpu.pipeline_mode<synchronous>, transform_indices = @transform_3, window_bounds = array<i64: 1, 128>}, {transform_indices = @transform_4, window_bounds = array<i64: 2, 256, 128>}]} {
    %c0 = arith.constant 0 : index
    %c0_0 = arith.constant 0 : index
    %c0_1 = arith.constant 0 : index
    %0 = vector.load %arg1[%c0, %c0_0, %c0_1] : memref<2x1024x32xbf16, #tpu.memory_space<vmem>>, vector<2x1024x32xbf16>
    %1 = vector.shape_cast %0 : vector<2x1024x32xbf16> to vector<2048x32xbf16>
    %c0_2 = arith.constant 0 : index
    %c0_3 = arith.constant 0 : index
    %2 = vector.load %arg2[%c0_2, %c0_3] : memref<32x128xbf16, #tpu.memory_space<vmem>>, vector<32x128xbf16>
    %cst = arith.constant dense<0.000000e+00> : vector<2048x128xf32>
    %3 = tpu.matmul %1, %2, %cst {dimension_numbers = #tpu.dot_dimension_numbers<[1], [0], [0], [1], [0, 0, 1, 1], [], []>} : vector<2048x32xbf16>, vector<32x128xbf16>, vector<2048x128xf32> -> vector<2048x128xf32>
    %c0_4 = arith.constant 0 : index
    %c0_5 = arith.constant 0 : index
    %4 = vector.load %arg3[%c0_4, %c0_5] : memref<1x128xf32, #tpu.memory_space<vmem>>, vector<1x128xf32>
    %5 = vector.broadcast %4 : vector<1x128xf32> to vector<2048x128xf32>
    %6 = arith.mulf %3, %5 : vector<2048x128xf32>
    %c0_6 = arith.constant 0 : index
    %c0_7 = arith.constant 0 : index
    %7 = vector.load %arg4[%c0_6, %c0_7] : memref<1x128xf32, #tpu.memory_space<vmem>>, vector<1x128xf32>
    %8 = vector.broadcast %7 : vector<1x128xf32> to vector<2048x128xf32>
    %9 = arith.addf %6, %8 : vector<2048x128xf32>
    %cst_8 = arith.constant 0.000000e+00 : f32
    %10 = vector.broadcast %cst_8 : f32 to vector<2048x128xf32>
    %11 = arith.maximumf %9, %10 : vector<2048x128xf32>
    %12 = vector.shape_cast %11 : vector<2048x128xf32> to vector<32x4x16x128xf32>
    %13 = vector.extract_strided_slice %12 {offsets = [0, 0, 0, 0], sizes = [32, 1, 16, 128], strides = [1, 1, 1, 1]} : vector<32x4x16x128xf32> to vector<32x1x16x128xf32>
    %14 = vector.shape_cast %13 : vector<32x1x16x128xf32> to vector<32x16x128xf32>
    %15 = vector.extract_strided_slice %12 {offsets = [0, 1, 0, 0], sizes = [32, 1, 16, 128], strides = [1, 1, 1, 1]} : vector<32x4x16x128xf32> to vector<32x1x16x128xf32>
    %16 = vector.shape_cast %15 : vector<32x1x16x128xf32> to vector<32x16x128xf32>
    %17 = arith.maximumf %14, %16 : vector<32x16x128xf32>
    %18 = vector.extract_strided_slice %12 {offsets = [0, 2, 0, 0], sizes = [32, 1, 16, 128], strides = [1, 1, 1, 1]} : vector<32x4x16x128xf32> to vector<32x1x16x128xf32>
    %19 = vector.shape_cast %18 : vector<32x1x16x128xf32> to vector<32x16x128xf32>
    %20 = vector.extract_strided_slice %12 {offsets = [0, 3, 0, 0], sizes = [32, 1, 16, 128], strides = [1, 1, 1, 1]} : vector<32x4x16x128xf32> to vector<32x1x16x128xf32>
    %21 = vector.shape_cast %20 : vector<32x1x16x128xf32> to vector<32x16x128xf32>
    %22 = arith.maximumf %19, %21 : vector<32x16x128xf32>
    %23 = arith.maximumf %17, %22 : vector<32x16x128xf32>
    %24 = vector.shape_cast %23 : vector<32x16x128xf32> to vector<2x256x128xf32>
    %25 = arith.truncf %24 : vector<2x256x128xf32> to vector<2x256x128xbf16>
    %c0_9 = arith.constant 0 : index
    %c0_10 = arith.constant 0 : index
    %c0_11 = arith.constant 0 : index
    %26 = vector.load %arg5[%c0_9, %c0_10, %c0_11] : memref<2x256x128xbf16, #tpu.memory_space<vmem>>, vector<2x256x128xbf16>
    tpu.vector_store %arg5[%c0_9, %c0_10, %c0_11], %25 {strides = array<i32>} : memref<2x256x128xbf16, #tpu.memory_space<vmem>>, vector<2x256x128xbf16>,
    return
  }
  func.func @transform_0(%arg0: i32) -> (i32, i32, i32) {
    %c0_i32 = arith.constant 0 : i32
    %c0_i32_0 = arith.constant 0 : i32
    %c0_i32_1 = arith.constant 0 : i32
    return %arg0, %c0_i32, %c0_i32_0 : i32, i32, i32
  }
  func.func @transform_1(%arg0: i32) -> (i32, i32) {
    %c0_i32 = arith.constant 0 : i32
    %c0_i32_0 = arith.constant 0 : i32
    %c0_i32_1 = arith.constant 0 : i32
    return %c0_i32, %c0_i32_0 : i32, i32
  }
  func.func @transform_2(%arg0: i32) -> (i32, i32) {
    %c0_i32 = arith.constant 0 : i32
    %c0_i32_0 = arith.constant 0 : i32
    %c0_i32_1 = arith.constant 0 : i32
    return %c0_i32, %c0_i32_0 : i32, i32
  }
  func.func @transform_3(%arg0: i32) -> (i32, i32) {
    %c0_i32 = arith.constant 0 : i32
    %c0_i32_0 = arith.constant 0 : i32
    %c0_i32_1 = arith.constant 0 : i32
    return %c0_i32, %c0_i32_0 : i32, i32
  }
  func.func @transform_4(%arg0: i32) -> (i32, i32, i32) {
    %c0_i32 = arith.constant 0 : i32
    %c0_i32_0 = arith.constant 0 : i32
    %c0_i32_1 = arith.constant 0 : i32
    return %arg0, %c0_i32, %c0_i32_0 : i32, i32, i32
  }
}

module attributes {stable_mosaic.version = 11 : i64} {
  func.func @_conv_bn_relu_pool_kernel(%arg0: i32, %arg1: memref<2x256x96xbf16, #tpu.memory_space<vmem>>, %arg2: memref<2x256x64xbf16, #tpu.memory_space<vmem>>, %arg3: memref<96x128xbf16, #tpu.memory_space<vmem>>, %arg4: memref<64x128xbf16, #tpu.memory_space<vmem>>, %arg5: memref<1x128xf32, #tpu.memory_space<vmem>>, %arg6: memref<1x128xf32, #tpu.memory_space<vmem>>, %arg7: memref<2x64x128xbf16, #tpu.memory_space<vmem>>) attributes {dimension_semantics = [#tpu.dimension_semantics<parallel>], iteration_bounds = array<i64: 1>, scalar_prefetch = 0 : i64, scratch_operands = 0 : i64, tpu.core_type = #tpu.core_type<tc>, window_params = [{transform_indices = @transform_0, window_bounds = array<i64: 2, 256, 96>}, {transform_indices = @transform_1, window_bounds = array<i64: 2, 256, 64>}, {pipeline_mode = #tpu.pipeline_mode<synchronous>, transform_indices = @transform_2, window_bounds = array<i64: 96, 128>}, {pipeline_mode = #tpu.pipeline_mode<synchronous>, transform_indices = @transform_3, window_bounds = array<i64: 64, 128>}, {pipeline_mode = #tpu.pipeline_mode<synchronous>, transform_indices = @transform_4, window_bounds = array<i64: 1, 128>}, {pipeline_mode = #tpu.pipeline_mode<synchronous>, transform_indices = @transform_5, window_bounds = array<i64: 1, 128>}, {transform_indices = @transform_6, window_bounds = array<i64: 2, 64, 128>}]} {
    %c0 = arith.constant 0 : index
    %c0_0 = arith.constant 0 : index
    %c0_1 = arith.constant 0 : index
    %0 = vector.load %arg1[%c0, %c0_0, %c0_1] : memref<2x256x96xbf16, #tpu.memory_space<vmem>>, vector<2x256x96xbf16>
    %1 = vector.shape_cast %0 : vector<2x256x96xbf16> to vector<512x96xbf16>
    %c0_2 = arith.constant 0 : index
    %c0_3 = arith.constant 0 : index
    %2 = vector.load %arg3[%c0_2, %c0_3] : memref<96x128xbf16, #tpu.memory_space<vmem>>, vector<96x128xbf16>
    %cst = arith.constant dense<0.000000e+00> : vector<512x128xf32>
    %3 = tpu.matmul %1, %2, %cst {dimension_numbers = #tpu.dot_dimension_numbers<[1], [0], [0], [1], [0, 0, 1, 1], [], []>} : vector<512x96xbf16>, vector<96x128xbf16>, vector<512x128xf32> -> vector<512x128xf32>
    %c0_4 = arith.constant 0 : index
    %c0_5 = arith.constant 0 : index
    %c0_6 = arith.constant 0 : index
    %4 = vector.load %arg2[%c0_4, %c0_5, %c0_6] : memref<2x256x64xbf16, #tpu.memory_space<vmem>>, vector<2x256x64xbf16>
    %5 = vector.shape_cast %4 : vector<2x256x64xbf16> to vector<512x64xbf16>
    %c0_7 = arith.constant 0 : index
    %c0_8 = arith.constant 0 : index
    %6 = vector.load %arg4[%c0_7, %c0_8] : memref<64x128xbf16, #tpu.memory_space<vmem>>, vector<64x128xbf16>
    %cst_9 = arith.constant dense<0.000000e+00> : vector<512x128xf32>
    %7 = tpu.matmul %5, %6, %cst_9 {dimension_numbers = #tpu.dot_dimension_numbers<[1], [0], [0], [1], [0, 0, 1, 1], [], []>} : vector<512x64xbf16>, vector<64x128xbf16>, vector<512x128xf32> -> vector<512x128xf32>
    %8 = arith.addf %3, %7 : vector<512x128xf32>
    %c0_10 = arith.constant 0 : index
    %c0_11 = arith.constant 0 : index
    %9 = vector.load %arg5[%c0_10, %c0_11] : memref<1x128xf32, #tpu.memory_space<vmem>>, vector<1x128xf32>
    %10 = vector.broadcast %9 : vector<1x128xf32> to vector<512x128xf32>
    %11 = arith.mulf %8, %10 : vector<512x128xf32>
    %c0_12 = arith.constant 0 : index
    %c0_13 = arith.constant 0 : index
    %12 = vector.load %arg6[%c0_12, %c0_13] : memref<1x128xf32, #tpu.memory_space<vmem>>, vector<1x128xf32>
    %13 = vector.broadcast %12 : vector<1x128xf32> to vector<512x128xf32>
    %14 = arith.addf %11, %13 : vector<512x128xf32>
    %cst_14 = arith.constant 0.000000e+00 : f32
    %15 = vector.broadcast %cst_14 : f32 to vector<512x128xf32>
    %16 = arith.maximumf %14, %15 : vector<512x128xf32>
    %17 = vector.shape_cast %16 : vector<512x128xf32> to vector<16x4x8x128xf32>
    %18 = vector.extract_strided_slice %17 {offsets = [0, 0, 0, 0], sizes = [16, 1, 8, 128], strides = [1, 1, 1, 1]} : vector<16x4x8x128xf32> to vector<16x1x8x128xf32>
    %19 = vector.shape_cast %18 : vector<16x1x8x128xf32> to vector<16x8x128xf32>
    %20 = vector.extract_strided_slice %17 {offsets = [0, 1, 0, 0], sizes = [16, 1, 8, 128], strides = [1, 1, 1, 1]} : vector<16x4x8x128xf32> to vector<16x1x8x128xf32>
    %21 = vector.shape_cast %20 : vector<16x1x8x128xf32> to vector<16x8x128xf32>
    %22 = arith.maximumf %19, %21 : vector<16x8x128xf32>
    %23 = vector.extract_strided_slice %17 {offsets = [0, 2, 0, 0], sizes = [16, 1, 8, 128], strides = [1, 1, 1, 1]} : vector<16x4x8x128xf32> to vector<16x1x8x128xf32>
    %24 = vector.shape_cast %23 : vector<16x1x8x128xf32> to vector<16x8x128xf32>
    %25 = vector.extract_strided_slice %17 {offsets = [0, 3, 0, 0], sizes = [16, 1, 8, 128], strides = [1, 1, 1, 1]} : vector<16x4x8x128xf32> to vector<16x1x8x128xf32>
    %26 = vector.shape_cast %25 : vector<16x1x8x128xf32> to vector<16x8x128xf32>
    %27 = arith.maximumf %24, %26 : vector<16x8x128xf32>
    %28 = arith.maximumf %22, %27 : vector<16x8x128xf32>
    %29 = vector.shape_cast %28 : vector<16x8x128xf32> to vector<2x64x128xf32>
    %30 = arith.truncf %29 : vector<2x64x128xf32> to vector<2x64x128xbf16>
    %c0_15 = arith.constant 0 : index
    %c0_16 = arith.constant 0 : index
    %c0_17 = arith.constant 0 : index
    %31 = vector.load %arg7[%c0_15, %c0_16, %c0_17] : memref<2x64x128xbf16, #tpu.memory_space<vmem>>, vector<2x64x128xbf16>
    tpu.vector_store %arg7[%c0_15, %c0_16, %c0_17], %30 {strides = array<i32>} : memref<2x64x128xbf16, #tpu.memory_space<vmem>>, vector<2x64x128xbf16>,
    return
  }
  func.func @transform_0(%arg0: i32) -> (i32, i32, i32) {
    %c0_i32 = arith.constant 0 : i32
    %c0_i32_0 = arith.constant 0 : i32
    %c0_i32_1 = arith.constant 0 : i32
    return %arg0, %c0_i32, %c0_i32_0 : i32, i32, i32
  }
  func.func @transform_1(%arg0: i32) -> (i32, i32, i32) {
    %c0_i32 = arith.constant 0 : i32
    %c0_i32_0 = arith.constant 0 : i32
    %c0_i32_1 = arith.constant 0 : i32
    return %arg0, %c0_i32, %c0_i32_0 : i32, i32, i32
  }
  func.func @transform_2(%arg0: i32) -> (i32, i32) {
    %c0_i32 = arith.constant 0 : i32
    %c0_i32_0 = arith.constant 0 : i32
    %c0_i32_1 = arith.constant 0 : i32
    return %c0_i32, %c0_i32_0 : i32, i32
  }
  func.func @transform_3(%arg0: i32) -> (i32, i32) {
    %c0_i32 = arith.constant 0 : i32
    %c0_i32_0 = arith.constant 0 : i32
    %c0_i32_1 = arith.constant 0 : i32
    return %c0_i32, %c0_i32_0 : i32, i32
  }
  func.func @transform_4(%arg0: i32) -> (i32, i32) {
    %c0_i32 = arith.constant 0 : i32
    %c0_i32_0 = arith.constant 0 : i32
    %c0_i32_1 = arith.constant 0 : i32
    return %c0_i32, %c0_i32_0 : i32, i32
  }
  func.func @transform_5(%arg0: i32) -> (i32, i32) {
    %c0_i32 = arith.constant 0 : i32
    %c0_i32_0 = arith.constant 0 : i32
    %c0_i32_1 = arith.constant 0 : i32
    return %c0_i32, %c0_i32_0 : i32, i32
  }
  func.func @transform_6(%arg0: i32) -> (i32, i32, i32) {
    %c0_i32 = arith.constant 0 : i32
    %c0_i32_0 = arith.constant 0 : i32
    %c0_i32_1 = arith.constant 0 : i32
    return %arg0, %c0_i32, %c0_i32_0 : i32, i32, i32
  }
}

module attributes {stable_mosaic.version = 11 : i64} {
  func.func @_conv_bn_relu_pool_kernel(%arg0: i32, %arg1: memref<2x64x96xbf16, #tpu.memory_space<vmem>>, %arg2: memref<2x64x48xbf16, #tpu.memory_space<vmem>>, %arg3: memref<96x128xbf16, #tpu.memory_space<vmem>>, %arg4: memref<48x128xbf16, #tpu.memory_space<vmem>>, %arg5: memref<1x128xf32, #tpu.memory_space<vmem>>, %arg6: memref<1x128xf32, #tpu.memory_space<vmem>>, %arg7: memref<2x64x128xbf16, #tpu.memory_space<vmem>>) attributes {dimension_semantics = [#tpu.dimension_semantics<parallel>], iteration_bounds = array<i64: 1>, scalar_prefetch = 0 : i64, scratch_operands = 0 : i64, tpu.core_type = #tpu.core_type<tc>, window_params = [{transform_indices = @transform_0, window_bounds = array<i64: 2, 64, 96>}, {transform_indices = @transform_1, window_bounds = array<i64: 2, 64, 48>}, {pipeline_mode = #tpu.pipeline_mode<synchronous>, transform_indices = @transform_2, window_bounds = array<i64: 96, 128>}, {pipeline_mode = #tpu.pipeline_mode<synchronous>, transform_indices = @transform_3, window_bounds = array<i64: 48, 128>}, {pipeline_mode = #tpu.pipeline_mode<synchronous>, transform_indices = @transform_4, window_bounds = array<i64: 1, 128>}, {pipeline_mode = #tpu.pipeline_mode<synchronous>, transform_indices = @transform_5, window_bounds = array<i64: 1, 128>}, {transform_indices = @transform_6, window_bounds = array<i64: 2, 64, 128>}]} {
    %c0 = arith.constant 0 : index
    %c0_0 = arith.constant 0 : index
    %c0_1 = arith.constant 0 : index
    %0 = vector.load %arg1[%c0, %c0_0, %c0_1] : memref<2x64x96xbf16, #tpu.memory_space<vmem>>, vector<2x64x96xbf16>
    %1 = vector.shape_cast %0 : vector<2x64x96xbf16> to vector<128x96xbf16>
    %c0_2 = arith.constant 0 : index
    %c0_3 = arith.constant 0 : index
    %2 = vector.load %arg3[%c0_2, %c0_3] : memref<96x128xbf16, #tpu.memory_space<vmem>>, vector<96x128xbf16>
    %cst = arith.constant dense<0.000000e+00> : vector<128x128xf32>
    %3 = tpu.matmul %1, %2, %cst {dimension_numbers = #tpu.dot_dimension_numbers<[1], [0], [0], [1], [0, 0, 1, 1], [], []>} : vector<128x96xbf16>, vector<96x128xbf16>, vector<128x128xf32> -> vector<128x128xf32>
    %c0_4 = arith.constant 0 : index
    %c0_5 = arith.constant 0 : index
    %c0_6 = arith.constant 0 : index
    %4 = vector.load %arg2[%c0_4, %c0_5, %c0_6] : memref<2x64x48xbf16, #tpu.memory_space<vmem>>, vector<2x64x48xbf16>
    %5 = vector.shape_cast %4 : vector<2x64x48xbf16> to vector<128x48xbf16>
    %c0_7 = arith.constant 0 : index
    %c0_8 = arith.constant 0 : index
    %6 = vector.load %arg4[%c0_7, %c0_8] : memref<48x128xbf16, #tpu.memory_space<vmem>>, vector<48x128xbf16>
    %cst_9 = arith.constant dense<0.000000e+00> : vector<128x128xf32>
    %7 = tpu.matmul %5, %6, %cst_9 {dimension_numbers = #tpu.dot_dimension_numbers<[1], [0], [0], [1], [0, 0, 1, 1], [], []>} : vector<128x48xbf16>, vector<48x128xbf16>, vector<128x128xf32> -> vector<128x128xf32>
    %8 = arith.addf %3, %7 : vector<128x128xf32>
    %c0_10 = arith.constant 0 : index
    %c0_11 = arith.constant 0 : index
    %9 = vector.load %arg5[%c0_10, %c0_11] : memref<1x128xf32, #tpu.memory_space<vmem>>, vector<1x128xf32>
    %10 = vector.broadcast %9 : vector<1x128xf32> to vector<128x128xf32>
    %11 = arith.mulf %8, %10 : vector<128x128xf32>
    %c0_12 = arith.constant 0 : index
    %c0_13 = arith.constant 0 : index
    %12 = vector.load %arg6[%c0_12, %c0_13] : memref<1x128xf32, #tpu.memory_space<vmem>>, vector<1x128xf32>
    %13 = vector.broadcast %12 : vector<1x128xf32> to vector<128x128xf32>
    %14 = arith.addf %11, %13 : vector<128x128xf32>
    %cst_14 = arith.constant 0.000000e+00 : f32
    %15 = vector.broadcast %cst_14 : f32 to vector<128x128xf32>
    %16 = arith.maximumf %14, %15 : vector<128x128xf32>
    %17 = vector.shape_cast %16 : vector<128x128xf32> to vector<2x64x128xf32>
    %18 = arith.truncf %17 : vector<2x64x128xf32> to vector<2x64x128xbf16>
    %c0_15 = arith.constant 0 : index
    %c0_16 = arith.constant 0 : index
    %c0_17 = arith.constant 0 : index
    %19 = vector.load %arg7[%c0_15, %c0_16, %c0_17] : memref<2x64x128xbf16, #tpu.memory_space<vmem>>, vector<2x64x128xbf16>
    tpu.vector_store %arg7[%c0_15, %c0_16, %c0_17], %18 {strides = array<i32>} : memref<2x64x128xbf16, #tpu.memory_space<vmem>>, vector<2x64x128xbf16>,
    return
  }
  func.func @transform_0(%arg0: i32) -> (i32, i32, i32) {
    %c0_i32 = arith.constant 0 : i32
    %c0_i32_0 = arith.constant 0 : i32
    %c0_i32_1 = arith.constant 0 : i32
    return %arg0, %c0_i32, %c0_i32_0 : i32, i32, i32
  }
  func.func @transform_1(%arg0: i32) -> (i32, i32, i32) {
    %c0_i32 = arith.constant 0 : i32
    %c0_i32_0 = arith.constant 0 : i32
    %c0_i32_1 = arith.constant 0 : i32
    return %arg0, %c0_i32, %c0_i32_0 : i32, i32, i32
  }
  func.func @transform_2(%arg0: i32) -> (i32, i32) {
    %c0_i32 = arith.constant 0 : i32
    %c0_i32_0 = arith.constant 0 : i32
    %c0_i32_1 = arith.constant 0 : i32
    return %c0_i32, %c0_i32_0 : i32, i32
  }
  func.func @transform_3(%arg0: i32) -> (i32, i32) {
    %c0_i32 = arith.constant 0 : i32
    %c0_i32_0 = arith.constant 0 : i32
    %c0_i32_1 = arith.constant 0 : i32
    return %c0_i32, %c0_i32_0 : i32, i32
  }
  func.func @transform_4(%arg0: i32) -> (i32, i32) {
    %c0_i32 = arith.constant 0 : i32
    %c0_i32_0 = arith.constant 0 : i32
    %c0_i32_1 = arith.constant 0 : i32
    return %c0_i32, %c0_i32_0 : i32, i32
  }
  func.func @transform_5(%arg0: i32) -> (i32, i32) {
    %c0_i32 = arith.constant 0 : i32
    %c0_i32_0 = arith.constant 0 : i32
    %c0_i32_1 = arith.constant 0 : i32
    return %c0_i32, %c0_i32_0 : i32, i32
  }
  func.func @transform_6(%arg0: i32) -> (i32, i32, i32) {
    %c0_i32 = arith.constant 0 : i32
    %c0_i32_0 = arith.constant 0 : i32
    %c0_i32_1 = arith.constant 0 : i32
    return %arg0, %c0_i32, %c0_i32_0 : i32, i32, i32
  }
}

module attributes {stable_mosaic.version = 11 : i64} {
  func.func @_mlp_kernel(%arg0: i32, %arg1: memref<2x8192xbf16, #tpu.memory_space<vmem>>, %arg2: memref<8192x128xbf16, #tpu.memory_space<vmem>>, %arg3: memref<1x128xf32, #tpu.memory_space<vmem>>, %arg4: memref<128x128xbf16, #tpu.memory_space<vmem>>, %arg5: memref<1x128xf32, #tpu.memory_space<vmem>>, %arg6: memref<2x128xf32, #tpu.memory_space<vmem>>) attributes {dimension_semantics = [#tpu.dimension_semantics<parallel>], iteration_bounds = array<i64: 1>, scalar_prefetch = 0 : i64, scratch_operands = 0 : i64, tpu.core_type = #tpu.core_type<tc>, window_params = [{transform_indices = @transform_0, window_bounds = array<i64: 2, 8192>}, {pipeline_mode = #tpu.pipeline_mode<synchronous>, transform_indices = @transform_1, window_bounds = array<i64: 8192, 128>}, {pipeline_mode = #tpu.pipeline_mode<synchronous>, transform_indices = @transform_2, window_bounds = array<i64: 1, 128>}, {pipeline_mode = #tpu.pipeline_mode<synchronous>, transform_indices = @transform_3, window_bounds = array<i64: 128, 128>}, {pipeline_mode = #tpu.pipeline_mode<synchronous>, transform_indices = @transform_4, window_bounds = array<i64: 1, 128>}, {transform_indices = @transform_5, window_bounds = array<i64: 2, 128>}]} {
    %c0 = arith.constant 0 : index
    %c0_0 = arith.constant 0 : index
    %0 = vector.load %arg1[%c0, %c0_0] : memref<2x8192xbf16, #tpu.memory_space<vmem>>, vector<2x8192xbf16>
    %c0_1 = arith.constant 0 : index
    %c0_2 = arith.constant 0 : index
    %1 = vector.load %arg2[%c0_1, %c0_2] : memref<8192x128xbf16, #tpu.memory_space<vmem>>, vector<8192x128xbf16>
    %cst = arith.constant dense<0.000000e+00> : vector<2x128xf32>
    %2 = tpu.matmul %0, %1, %cst {dimension_numbers = #tpu.dot_dimension_numbers<[1], [0], [0], [1], [0, 0, 1, 1], [], []>} : vector<2x8192xbf16>, vector<8192x128xbf16>, vector<2x128xf32> -> vector<2x128xf32>
    %c0_3 = arith.constant 0 : index
    %c0_4 = arith.constant 0 : index
    %3 = vector.load %arg3[%c0_3, %c0_4] : memref<1x128xf32, #tpu.memory_space<vmem>>, vector<1x128xf32>
    %4 = vector.broadcast %3 : vector<1x128xf32> to vector<2x128xf32>
    %5 = arith.addf %2, %4 : vector<2x128xf32>
    %cst_5 = arith.constant 0.000000e+00 : f32
    %6 = vector.broadcast %cst_5 : f32 to vector<2x128xf32>
    %7 = arith.maximumf %5, %6 : vector<2x128xf32>
    %8 = arith.truncf %7 : vector<2x128xf32> to vector<2x128xbf16>
    %c0_6 = arith.constant 0 : index
    %c0_7 = arith.constant 0 : index
    %9 = vector.load %arg4[%c0_6, %c0_7] : memref<128x128xbf16, #tpu.memory_space<vmem>>, vector<128x128xbf16>
    %cst_8 = arith.constant dense<0.000000e+00> : vector<2x128xf32>
    %10 = tpu.matmul %8, %9, %cst_8 {dimension_numbers = #tpu.dot_dimension_numbers<[1], [0], [0], [1], [0, 0, 1, 1], [], []>} : vector<2x128xbf16>, vector<128x128xbf16>, vector<2x128xf32> -> vector<2x128xf32>
    %c0_9 = arith.constant 0 : index
    %c0_10 = arith.constant 0 : index
    %11 = vector.load %arg5[%c0_9, %c0_10] : memref<1x128xf32, #tpu.memory_space<vmem>>, vector<1x128xf32>
    %12 = vector.broadcast %11 : vector<1x128xf32> to vector<2x128xf32>
    %13 = arith.addf %10, %12 : vector<2x128xf32>
    %c0_11 = arith.constant 0 : index
    %c0_12 = arith.constant 0 : index
    %14 = vector.load %arg6[%c0_11, %c0_12] : memref<2x128xf32, #tpu.memory_space<vmem>>, vector<2x128xf32>
    tpu.vector_store %arg6[%c0_11, %c0_12], %13 {strides = array<i32>} : memref<2x128xf32, #tpu.memory_space<vmem>>, vector<2x128xf32>,
    return
  }
  func.func @transform_0(%arg0: i32) -> (i32, i32) {
    %c0_i32 = arith.constant 0 : i32
    %c0_i32_0 = arith.constant 0 : i32
    return %arg0, %c0_i32 : i32, i32
  }
  func.func @transform_1(%arg0: i32) -> (i32, i32) {
    %c0_i32 = arith.constant 0 : i32
    %c0_i32_0 = arith.constant 0 : i32
    %c0_i32_1 = arith.constant 0 : i32
    return %c0_i32, %c0_i32_0 : i32, i32
  }
  func.func @transform_2(%arg0: i32) -> (i32, i32) {
    %c0_i32 = arith.constant 0 : i32
    %c0_i32_0 = arith.constant 0 : i32
    %c0_i32_1 = arith.constant 0 : i32
    return %c0_i32, %c0_i32_0 : i32, i32
  }
  func.func @transform_3(%arg0: i32) -> (i32, i32) {
    %c0_i32 = arith.constant 0 : i32
    %c0_i32_0 = arith.constant 0 : i32
    %c0_i32_1 = arith.constant 0 : i32
    return %c0_i32, %c0_i32_0 : i32, i32
  }
  func.func @transform_4(%arg0: i32) -> (i32, i32) {
    %c0_i32 = arith.constant 0 : i32
    %c0_i32_0 = arith.constant 0 : i32
    %c0_i32_1 = arith.constant 0 : i32
    return %c0_i32, %c0_i32_0 : i32, i32
  }
  func.func @transform_5(%arg0: i32) -> (i32, i32) {
    %c0_i32 = arith.constant 0 : i32
    %c0_i32_0 = arith.constant 0 : i32
    return %arg0, %c0_i32 : i32, i32
  }
}

</mosaic_0001>

<bundles_post_ra>
// kernel: lenet5_modified_forward.4
= control target key start
LH: loop header
LB: loop body
LE: loop exit
PB: predicated region body
PF: predicated region fallthrough
CT: control target
= control target key end

     0   :  { %vm930_vm0 = vcmask 261120   ;;  %s6060_s1 = inlined_call_operand.vmem [shape: bf16[32,128], index: 1, kind: input, shape index: {}]   ;;  %s6061_s0 = inlined_call_operand.vmem [shape: bf16[2,1024,32], index: 0, kind: input, shape index: {}]   ;;  %s6062_s2 = inlined_call_operand.vmem [shape: f32[1,128], index: 2, kind: input, shape index: {}]   ;;  %s6063_s3 = inlined_call_operand.vmem [shape: f32[1,128], index: 3, kind: input, shape index: {}]   ;;  %s6064_s4 = inlined_call_operand.vmem [shape: bf16[2,256,128], index: 4, kind: output, shape index: {}]  }
   0x1   :  { %v4643_v0 = vld [vmem:[%s6060_s1] sm:$0xff]   ;;  %v4644_v1 = vld [vmem:[%s6060_s1 + $0x8] sm:$0xff]   ;;  %v4649_v6 = vld [vmem:[%s6061_s0 + $0x10] sm:$0xff]  }
   0x2   :  { %4379 = vmatprep.subr.bf16.mxu0 %v4643_v0  ;;  %4639 = vmatprep.subr.bf16.mxu1 %v4643_v0  ;;  %v4645_v2 = vld [vmem:[%s6061_s0] sm:$0xff]   ;;  %v4647_v4 = vld [vmem:[%s6061_s0 + $0x8] sm:$0xff]   ;;  %v4650_v7 = vld [vmem:[%s6061_s0 + $0x210] sm:$0xff]  }
   0x3   :  { %4380 = vmatpush3.bf16.msra.mxu0 %v4643_v0  ;;  %4641 = vmatpush3.bf16.msra.mxu1 %v4643_v0  ;;  %v4646_v3 = vld [vmem:[%s6061_s0 + $0x200] sm:$0xff]   ;;  %v4648_v5 = vld [vmem:[%s6061_s0 + $0x208] sm:$0xff]   ;;  %v4651_v8 = vld [vmem:[%s6061_s0 + $0x18] sm:$0xff]  }
   0x4   :  { %4381 = vmatprep.subr.bf16.mxu0 %v4644_v1  ;;  %4640 = vmatprep.subr.bf16.mxu1 %v4644_v1  ;;  %v4652_v9 = vld [vmem:[%s6061_s0 + $0x218] sm:$0xff]   ;;  %v4653_v10 = vld [vmem:[%s6061_s0 + $0x20] sm:$0xff]   ;;  %v4655_v12 = vld [vmem:[%s6061_s0 + $0x28] sm:$0xff]  }
   0x5   :  { %4383 = vmatprep.mubr.msk.bf16.mxu0 %vm930_vm0, %v4645_v2  ;;  %4511 = vmatprep.mubr.msk.bf16.mxu1 %vm930_vm0, %v4646_v3  ;;  %v4654_v11 = vld [vmem:[%s6061_s0 + $0x220] sm:$0xff]   ;;  %v4656_v13 = vld [vmem:[%s6061_s0 + $0x228] sm:$0xff]   ;;  %v4657_v14 = vld [vmem:[%s6061_s0 + $0x30] sm:$0xff]  }
   0x6   :  { %v4658_v15 = vld [vmem:[%s6061_s0 + $0x230] sm:$0xff]   ;;  %v4659_v16 = vld [vmem:[%s6061_s0 + $0x38] sm:$0xff]   ;;  %v4661_v18 = vld [vmem:[%s6061_s0 + $0x40] sm:$0xff]  }
   0x7   :  { %4382 = vmatpush3.bf16.msra.mxu0 %v4644_v1  ;;  %4642 = vmatpush3.bf16.msra.mxu1 %v4644_v1  ;;  %v4660_v17 = vld [vmem:[%s6061_s0 + $0x238] sm:$0xff]   ;;  %v4662_v19 = vld [vmem:[%s6061_s0 + $0x240] sm:$0xff]   ;;  %v4663_v20 = vld [vmem:[%s6061_s0 + $0x48] sm:$0xff]  }
   0x8   :  { %v4664_v21 = vld [vmem:[%s6061_s0 + $0x248] sm:$0xff]   ;;  %v4665_v22 = vld [vmem:[%s6061_s0 + $0x50] sm:$0xff]   ;;  %v4667_v24 = vld [vmem:[%s6061_s0 + $0x58] sm:$0xff]  }
   0x9   :  { %v4666_v23 = vld [vmem:[%s6061_s0 + $0x250] sm:$0xff]   ;;  %v4668_v25 = vld [vmem:[%s6061_s0 + $0x258] sm:$0xff]   ;;  %v4669_v26 = vld [vmem:[%s6061_s0 + $0x60] sm:$0xff]  }
   0xa   :  { %4384 = vmatmul.mubr.msk.bf16.vlgmr.msra.gmra.mrb[0].mxu0 %vm930_vm0, %v4647_v4  ;;  %4512 = vmatmul.mubr.msk.bf16.vlgmr.msra.gmra.mrb[0].mxu1 %vm930_vm0, %v4648_v5  ;;  %v4670_v27 = vld [vmem:[%s6061_s0 + $0x260] sm:$0xff]   ;;  %v4671_v28 = vld [vmem:[%s6061_s0 + $0x68] sm:$0xff]   ;;  %v4673_v30 = vld [vmem:[%s6061_s0 + $0x70] sm:$0xff]  }
   0xb   :  { %4387 = vmatprep.mubr.msk.bf16.mxu0 %vm930_vm0, %v4649_v6  ;;  %4515 = vmatprep.mubr.msk.bf16.mxu1 %vm930_vm0, %v4650_v7  ;;  %v4672_v29 = vld [vmem:[%s6061_s0 + $0x268] sm:$0xff]   ;;  %v4674_v31 = vld [vmem:[%s6061_s0 + $0x270] sm:$0xff]   ;;  %v4675_v32 = vld [vmem:[%s6061_s0 + $0x78] sm:$0xff]  }
   0xc   :  { %v4676_v33 = vld [vmem:[%s6061_s0 + $0x278] sm:$0xff]   ;;  %v4677_v34 = vld [vmem:[%s6061_s0 + $0x80] sm:$0xff]   ;;  %v4679_v36 = vld [vmem:[%s6061_s0 + $0x88] sm:$0xff]  }
   0xd   :  { %v4678_v35 = vld [vmem:[%s6061_s0 + $0x280] sm:$0xff]   ;;  %v4680_v37 = vld [vmem:[%s6061_s0 + $0x288] sm:$0xff]   ;;  %v4681_v38 = vld [vmem:[%s6061_s0 + $0x90] sm:$0xff]  }
   0xe   :  { %v4682_v39 = vld [vmem:[%s6061_s0 + $0x290] sm:$0xff]   ;;  %v4683_v40 = vld [vmem:[%s6061_s0 + $0x98] sm:$0xff]   ;;  %v4685_v42 = vld [vmem:[%s6061_s0 + $0xa0] sm:$0xff]  }
   0xf   :  { %v4684_v41 = vld [vmem:[%s6061_s0 + $0x298] sm:$0xff]   ;;  %v4686_v43 = vld [vmem:[%s6061_s0 + $0x2a0] sm:$0xff]   ;;  %v4687_v44 = vld [vmem:[%s6061_s0 + $0xa8] sm:$0xff]  }
  0x10   :  { %v4688_v45 = vld [vmem:[%s6061_s0 + $0x2a8] sm:$0xff]   ;;  %v4689_v46 = vld [vmem:[%s6061_s0 + $0xb0] sm:$0xff]   ;;  %v4691_v48 = vld [vmem:[%s6061_s0 + $0xb8] sm:$0xff]  }
  0x11   :  { %v4690_v47 = vld [vmem:[%s6061_s0 + $0x2b0] sm:$0xff]   ;;  %v4692_v49 = vld [vmem:[%s6061_s0 + $0x2b8] sm:$0xff]   ;;  %v4693_v50 = vld [vmem:[%s6061_s0 + $0xc0] sm:$0xff]  }
  0x12   :  { %4388 = vmatmul.mubr.msk.bf16.gmra.mrb[4].mxu0 %vm930_vm0, %v4651_v8  ;;  %4516 = vmatmul.mubr.msk.bf16.gmra.mrb[4].mxu1 %vm930_vm0, %v4652_v9  ;;  %v4694_v51 = vld [vmem:[%s6061_s0 + $0x2c0] sm:$0xff]   ;;  %v4695_v52 = vld [vmem:[%s6061_s0 + $0xc8] sm:$0xff]   ;;  %v4697_v54 = vld [vmem:[%s6061_s0 + $0xd0] sm:$0xff]  }
  0x13   :  { %4391 = vmatprep.mubr.msk.bf16.mxu0 %vm930_vm0, %v4653_v10  ;;  %4519 = vmatprep.mubr.msk.bf16.mxu1 %vm930_vm0, %v4654_v11  ;;  %v4696_v53 = vld [vmem:[%s6061_s0 + $0x2c8] sm:$0xff]   ;;  %v4698_v55 = vld [vmem:[%s6061_s0 + $0x2d0] sm:$0xff]   ;;  %v4699_v56 = vld [vmem:[%s6061_s0 + $0xd8] sm:$0xff]  }
  0x14   :  { %v4700_v57 = vld [vmem:[%s6061_s0 + $0x2d8] sm:$0xff]   ;;  %v4701_v58 = vld [vmem:[%s6061_s0 + $0xe0] sm:$0xff]   ;;  %v4703_v60 = vld [vmem:[%s6061_s0 + $0xe8] sm:$0xff]  }
  0x15   :  { %v4702_v59 = vld [vmem:[%s6061_s0 + $0x2e0] sm:$0xff]   ;;  %v4704_v61 = vld [vmem:[%s6061_s0 + $0x2e8] sm:$0xff]   ;;  %v4705_v62 = vld [vmem:[%s6061_s0 + $0xf0] sm:$0xff]  }
  0x16   :  { %v4706_v63 = vld [vmem:[%s6061_s0 + $0x2f0] sm:$0xff]   ;;  %v4707_v0 = vld [vmem:[%s6061_s0 + $0xf8] sm:$0xff]   ;;  %v4709_v2 = vld [vmem:[%s6061_s0 + $0x100] sm:$0xff]  }
  0x17   :  { %v4708_v1 = vld [vmem:[%s6061_s0 + $0x2f8] sm:$0xff]   ;;  %v4710_v3 = vld [vmem:[%s6061_s0 + $0x300] sm:$0xff]   ;;  %v4711_v4 = vld [vmem:[%s6061_s0 + $0x108] sm:$0xff]  }
  0x18   :  { %v4712_v5 = vld [vmem:[%s6061_s0 + $0x308] sm:$0xff]   ;;  %v4713_v6 = vld [vmem:[%s6061_s0 + $0x110] sm:$0xff]   ;;  %v4715_v8 = vld [vmem:[%s6061_s0 + $0x118] sm:$0xff]  }
  0x19   :  { %v4714_v7 = vld [vmem:[%s6061_s0 + $0x310] sm:$0xff]   ;;  %v4716_v9 = vld [vmem:[%s6061_s0 + $0x318] sm:$0xff]   ;;  %v4717_v10 = vld [vmem:[%s6061_s0 + $0x120] sm:$0xff]  }
  0x1a   :  { %4392 = vmatmul.mubr.msk.bf16.gmra.mrb[8].mxu0 %vm930_vm0, %v4655_v12  ;;  %4520 = vmatmul.mubr.msk.bf16.gmra.mrb[8].mxu1 %vm930_vm0, %v4656_v13  ;;  %v4718_v11 = vld [vmem:[%s6061_s0 + $0x320] sm:$0xff]   ;;  %v4719_v12 = vld [vmem:[%s6061_s0 + $0x128] sm:$0xff]  }
  0x1b   :  { %4395 = vmatprep.mubr.msk.bf16.mxu0 %vm930_vm0, %v4657_v14  ;;  %4523 = vmatprep.mubr.msk.bf16.mxu1 %vm930_vm0, %v4658_v15  ;;  %v4720_v13 = vld [vmem:[%s6061_s0 + $0x328] sm:$0xff]   ;;  %v4721_v14 = vld [vmem:[%s6061_s0 + $0x130] sm:$0xff]  }
  0x1c   :  { %v4722_v15 = vld [vmem:[%s6061_s0 + $0x330] sm:$0xff]  }
  0x22   :  { %4396 = vmatmul.mubr.msk.bf16.gmra.mrb[12].mxu0 %vm930_vm0, %v4659_v16  ;;  %4524 = vmatmul.mubr.msk.bf16.gmra.mrb[12].mxu1 %vm930_vm0, %v4660_v17  ;;  %v4723_v16 = vld [vmem:[%s6061_s0 + $0x138] sm:$0xff]  }
  0x23   :  { %4399 = vmatprep.mubr.msk.bf16.mxu0 %vm930_vm0, %v4661_v18  ;;  %4527 = vmatprep.mubr.msk.bf16.mxu1 %vm930_vm0, %v4662_v19  ;;  %v4724_v17 = vld [vmem:[%s6061_s0 + $0x338] sm:$0xff]   ;;  %v4725_v18 = vld [vmem:[%s6061_s0 + $0x140] sm:$0xff]  }
  0x24   :  { %v4726_v19 = vld [vmem:[%s6061_s0 + $0x340] sm:$0xff]  }
  0x2a   :  { %4400 = vmatmul.mubr.msk.bf16.gmra.mrb[16].mxu0 %vm930_vm0, %v4663_v20  ;;  %4528 = vmatmul.mubr.msk.bf16.gmra.mrb[16].mxu1 %vm930_vm0, %v4664_v21  ;;  %v4727_v20 = vld [vmem:[%s6061_s0 + $0x148] sm:$0xff]  }
  0x2b   :  { %4403 = vmatprep.mubr.msk.bf16.mxu0 %vm930_vm0, %v4665_v22  ;;  %4531 = vmatprep.mubr.msk.bf16.mxu1 %vm930_vm0, %v4666_v23  ;;  %v4728_v21 = vld [vmem:[%s6061_s0 + $0x348] sm:$0xff]   ;;  %v4729_v22 = vld [vmem:[%s6061_s0 + $0x150] sm:$0xff]  }
  0x2c   :  { %v4730_v23 = vld [vmem:[%s6061_s0 + $0x350] sm:$0xff]  }
  0x32   :  { %4404 = vmatmul.mubr.msk.bf16.gmra.mrb[20].mxu0 %vm930_vm0, %v4667_v24  ;;  %4532 = vmatmul.mubr.msk.bf16.gmra.mrb[20].mxu1 %vm930_vm0, %v4668_v25  ;;  %v4731_v24 = vld [vmem:[%s6061_s0 + $0x158] sm:$0xff]  }
  0x33   :  { %4407 = vmatprep.mubr.msk.bf16.mxu0 %vm930_vm0, %v4669_v26  ;;  %4535 = vmatprep.mubr.msk.bf16.mxu1 %vm930_vm0, %v4670_v27  ;;  %v4732_v25 = vld [vmem:[%s6061_s0 + $0x358] sm:$0xff]   ;;  %v4733_v26 = vld [vmem:[%s6061_s0 + $0x160] sm:$0xff]  }
  0x34   :  { %v4734_v27 = vld [vmem:[%s6061_s0 + $0x360] sm:$0xff]  }
  0x3a   :  { %4408 = vmatmul.mubr.msk.bf16.gmra.mrb[24].mxu0 %vm930_vm0, %v4671_v28  ;;  %4536 = vmatmul.mubr.msk.bf16.gmra.mrb[24].mxu1 %vm930_vm0, %v4672_v29  ;;  %v4735_v28 = vld [vmem:[%s6061_s0 + $0x168] sm:$0xff]  }
  0x3b   :  { %4411 = vmatprep.mubr.msk.bf16.mxu0 %vm930_vm0, %v4673_v30  ;;  %4539 = vmatprep.mubr.msk.bf16.mxu1 %vm930_vm0, %v4674_v31  ;;  %v4736_v29 = vld [vmem:[%s6061_s0 + $0x368] sm:$0xff]   ;;  %v4737_v30 = vld [vmem:[%s6061_s0 + $0x170] sm:$0xff]  }
  0x3c   :  { %v4738_v31 = vld [vmem:[%s6061_s0 + $0x370] sm:$0xff]  }
  0x42   :  { %4412 = vmatmul.mubr.msk.bf16.gmra.mrb[28].mxu0 %vm930_vm0, %v4675_v32  ;;  %4540 = vmatmul.mubr.msk.bf16.gmra.mrb[28].mxu1 %vm930_vm0, %v4676_v33  ;;  %v4739_v32 = vld [vmem:[%s6061_s0 + $0x178] sm:$0xff]  }
  0x43   :  { %4415 = vmatprep.mubr.msk.bf16.mxu0 %vm930_vm0, %v4677_v34  ;;  %4543 = vmatprep.mubr.msk.bf16.mxu1 %vm930_vm0, %v4678_v35  ;;  %v4740_v33 = vld [vmem:[%s6061_s0 + $0x378] sm:$0xff]   ;;  %v4741_v34 = vld [vmem:[%s6061_s0 + $0x180] sm:$0xff]  }
  0x44   :  { %v4742_v35 = vld [vmem:[%s6061_s0 + $0x380] sm:$0xff]  }
  0x4a   :  { %4416 = vmatmul.mubr.msk.bf16.gmra.mrb[32].mxu0 %vm930_vm0, %v4679_v36  ;;  %4544 = vmatmul.mubr.msk.bf16.gmra.mrb[32].mxu1 %vm930_vm0, %v4680_v37  ;;  %v4743_v36 = vld [vmem:[%s6061_s0 + $0x188] sm:$0xff]  }
  0x4b   :  { %4419 = vmatprep.mubr.msk.bf16.mxu0 %vm930_vm0, %v4681_v38  ;;  %4547 = vmatprep.mubr.msk.bf16.mxu1 %vm930_vm0, %v4682_v39  ;;  %v4744_v37 = vld [vmem:[%s6061_s0 + $0x388] sm:$0xff]   ;;  %v4745_v38 = vld [vmem:[%s6061_s0 + $0x190] sm:$0xff]  }
  0x4c   :  { %v4746_v39 = vld [vmem:[%s6061_s0 + $0x390] sm:$0xff]  }
  0x52   :  { %4420 = vmatmul.mubr.msk.bf16.gmra.mrb[36].mxu0 %vm930_vm0, %v4683_v40  ;;  %4548 = vmatmul.mubr.msk.bf16.gmra.mrb[36].mxu1 %vm930_vm0, %v4684_v41  ;;  %v4747_v40 = vld [vmem:[%s6061_s0 + $0x198] sm:$0xff]  }
  0x53   :  { %4423 = vmatprep.mubr.msk.bf16.mxu0 %vm930_vm0, %v4685_v42  ;;  %4551 = vmatprep.mubr.msk.bf16.mxu1 %vm930_vm0, %v4686_v43  ;;  %v4748_v41 = vld [vmem:[%s6061_s0 + $0x398] sm:$0xff]   ;;  %v4749_v42 = vld [vmem:[%s6061_s0 + $0x1a0] sm:$0xff]  }
  0x54   :  { %v4750_v43 = vld [vmem:[%s6061_s0 + $0x3a0] sm:$0xff]  }
  0x5a   :  { %4424 = vmatmul.mubr.msk.bf16.gmra.mrb[40].mxu0 %vm930_vm0, %v4687_v44  ;;  %4552 = vmatmul.mubr.msk.bf16.gmra.mrb[40].mxu1 %vm930_vm0, %v4688_v45  ;;  %v4751_v44 = vld [vmem:[%s6061_s0 + $0x1a8] sm:$0xff]  }
  0x5b   :  { %4427 = vmatprep.mubr.msk.bf16.mxu0 %vm930_vm0, %v4689_v46  ;;  %4555 = vmatprep.mubr.msk.bf16.mxu1 %vm930_vm0, %v4690_v47  ;;  %v4752_v45 = vld [vmem:[%s6061_s0 + $0x3a8] sm:$0xff]   ;;  %v4753_v46 = vld [vmem:[%s6061_s0 + $0x1b0] sm:$0xff]  }
  0x5c   :  { %v4754_v47 = vld [vmem:[%s6061_s0 + $0x3b0] sm:$0xff]  }
  0x62   :  { %4428 = vmatmul.mubr.msk.bf16.gmra.mrb[44].mxu0 %vm930_vm0, %v4691_v48  ;;  %4556 = vmatmul.mubr.msk.bf16.gmra.mrb[44].mxu1 %vm930_vm0, %v4692_v49  ;;  %v5249_v48 = vld [vmem:[%s6062_s2] ss:$0 sm:$0xff] }
  0x63   :  { %4431 = vmatprep.mubr.msk.bf16.mxu0 %vm930_vm0, %v4693_v50  ;;  %4559 = vmatprep.mubr.msk.bf16.mxu1 %vm930_vm0, %v4694_v51  ;;  %v5256_v50 = vld [vmem:[%s6063_s3] ss:$0 sm:$0xff] }
  0x6a   :  { %4432 = vmatmul.mubr.msk.bf16.gmra.mrb[48].mxu0 %vm930_vm0, %v4695_v52  ;;  %4560 = vmatmul.mubr.msk.bf16.gmra.mrb[48].mxu1 %vm930_vm0, %v4696_v53 }
  0x6b   :  { %4435 = vmatprep.mubr.msk.bf16.mxu0 %vm930_vm0, %v4697_v54  ;;  %4563 = vmatprep.mubr.msk.bf16.mxu1 %vm930_vm0, %v4698_v55 }
  0x72   :  { %4436 = vmatmul.mubr.msk.bf16.gmra.mrb[52].mxu0 %vm930_vm0, %v4699_v56  ;;  %4564 = vmatmul.mubr.msk.bf16.gmra.mrb[52].mxu1 %vm930_vm0, %v4700_v57  ;;  %v4755_v56 = vld [vmem:[%s6061_s0 + $0x1b8] sm:$0xff]  }
  0x73   :  { %4439 = vmatprep.mubr.msk.bf16.mxu0 %vm930_vm0, %v4701_v58  ;;  %4567 = vmatprep.mubr.msk.bf16.mxu1 %vm930_vm0, %v4702_v59  ;;  %v4756_v57 = vld [vmem:[%s6061_s0 + $0x3b8] sm:$0xff]  }
  0x7a   :  { %4440 = vmatmul.mubr.msk.bf16.gmra.mrb[56].mxu0 %vm930_vm0, %v4703_v60  ;;  %4568 = vmatmul.mubr.msk.bf16.gmra.mrb[56].mxu1 %vm930_vm0, %v4704_v61 }
  0x7b   :  { %4443 = vmatprep.mubr.msk.bf16.mxu0 %vm930_vm0, %v4705_v62  ;;  %4571 = vmatprep.mubr.msk.bf16.mxu1 %vm930_vm0, %v4706_v63  ;;  %v4757_v62 = vld [vmem:[%s6061_s0 + $0x1c0] sm:$0xff]  }
  0x7c   :  { %v4758_v63 = vld [vmem:[%s6061_s0 + $0x3c0] sm:$0xff]  }
  0x82   :  { %4444 = vmatmul.mubr.msk.bf16.gmra.mrb[60].mxu0 %vm930_vm0, %v4707_v0  ;;  %4572 = vmatmul.mubr.msk.bf16.gmra.mrb[60].mxu1 %vm930_vm0, %v4708_v1 }
  0x83   :  { %4447 = vmatprep.mubr.msk.bf16.mxu0 %vm930_vm0, %v4709_v2  ;;  %4575 = vmatprep.mubr.msk.bf16.mxu1 %vm930_vm0, %v4710_v3 }
  0x8a   :  { %4448 = vmatmul.mubr.msk.bf16.gmra.mrb[64].mxu0 %vm930_vm0, %v4711_v4  ;;  %4576 = vmatmul.mubr.msk.bf16.gmra.mrb[64].mxu1 %vm930_vm0, %v4712_v5 }
  0x8b   :  { %4451 = vmatprep.mubr.msk.bf16.mxu0 %vm930_vm0, %v4713_v6  ;;  %4579 = vmatprep.mubr.msk.bf16.mxu1 %vm930_vm0, %v4714_v7 }
  0x92   :  { %4452 = vmatmul.mubr.msk.bf16.gmra.mrb[68].mxu0 %vm930_vm0, %v4715_v8  ;;  %4580 = vmatmul.mubr.msk.bf16.gmra.mrb[68].mxu1 %vm930_vm0, %v4716_v9 }
  0x93   :  { %4455 = vmatprep.mubr.msk.bf16.mxu0 %vm930_vm0, %v4717_v10  ;;  %4583 = vmatprep.mubr.msk.bf16.mxu1 %vm930_vm0, %v4718_v11 }
  0x9a   :  { %4456 = vmatmul.mubr.msk.bf16.gmra.mrb[72].mxu0 %vm930_vm0, %v4719_v12  ;;  %4584 = vmatmul.mubr.msk.bf16.gmra.mrb[72].mxu1 %vm930_vm0, %v4720_v13 }
  0x9b   :  { %4459 = vmatprep.mubr.msk.bf16.mxu0 %vm930_vm0, %v4721_v14  ;;  %4587 = vmatprep.mubr.msk.bf16.mxu1 %vm930_vm0, %v4722_v15 }
  0xa2   :  { %4460 = vmatmul.mubr.msk.bf16.gmra.mrb[76].mxu0 %vm930_vm0, %v4723_v16  ;;  %4588 = vmatmul.mubr.msk.bf16.gmra.mrb[76].mxu1 %vm930_vm0, %v4724_v17 }
  0xa3   :  { %4463 = vmatprep.mubr.msk.bf16.mxu0 %vm930_vm0, %v4725_v18  ;;  %4591 = vmatprep.mubr.msk.bf16.mxu1 %vm930_vm0, %v4726_v19 }
  0xaa   :  { %4464 = vmatmul.mubr.msk.bf16.gmra.mrb[80].mxu0 %vm930_vm0, %v4727_v20  ;;  %4592 = vmatmul.mubr.msk.bf16.gmra.mrb[80].mxu1 %vm930_vm0, %v4728_v21 }
  0xab   :  { %4467 = vmatprep.mubr.msk.bf16.mxu0 %vm930_vm0, %v4729_v22  ;;  %4595 = vmatprep.mubr.msk.bf16.mxu1 %vm930_vm0, %v4730_v23 }
  0xb2   :  { %4468 = vmatmul.mubr.msk.bf16.gmra.mrb[84].mxu0 %vm930_vm0, %v4731_v24  ;;  %4596 = vmatmul.mubr.msk.bf16.gmra.mrb[84].mxu1 %vm930_vm0, %v4732_v25 }
  0xb3   :  { %4471 = vmatprep.mubr.msk.bf16.mxu0 %vm930_vm0, %v4733_v26  ;;  %4599 = vmatprep.mubr.msk.bf16.mxu1 %vm930_vm0, %v4734_v27 }
  0xba   :  { %4472 = vmatmul.mubr.msk.bf16.gmra.mrb[88].mxu0 %vm930_vm0, %v4735_v28  ;;  %4600 = vmatmul.mubr.msk.bf16.gmra.mrb[88].mxu1 %vm930_vm0, %v4736_v29 }
  0xbb   :  { %4475 = vmatprep.mubr.msk.bf16.mxu0 %vm930_vm0, %v4737_v30  ;;  %4603 = vmatprep.mubr.msk.bf16.mxu1 %vm930_vm0, %v4738_v31  ;;  %v4759_v30 = vld [vmem:[%s6061_s0 + $0x1c8] sm:$0xff]  }
  0xbc   :  { %v4760_v31 = vld [vmem:[%s6061_s0 + $0x3c8] sm:$0xff]  }
  0xc2   :  { %4476 = vmatmul.mubr.msk.bf16.gmra.mrb[92].mxu0 %vm930_vm0, %v4739_v32  ;;  %4604 = vmatmul.mubr.msk.bf16.gmra.mrb[92].mxu1 %vm930_vm0, %v4740_v33 }
  0xc3   :  { %4479 = vmatprep.mubr.msk.bf16.mxu0 %vm930_vm0, %v4741_v34  ;;  %4607 = vmatprep.mubr.msk.bf16.mxu1 %vm930_vm0, %v4742_v35 }
  0xca   :  { %4480 = vmatmul.mubr.msk.bf16.gmra.mrb[96].mxu0 %vm930_vm0, %v4743_v36  ;;  %4608 = vmatmul.mubr.msk.bf16.gmra.mrb[96].mxu1 %vm930_vm0, %v4744_v37 }
  0xcb   :  { %4483 = vmatprep.mubr.msk.bf16.mxu0 %vm930_vm0, %v4745_v38  ;;  %4611 = vmatprep.mubr.msk.bf16.mxu1 %vm930_vm0, %v4746_v39  ;;  %v4761_v38 = vld [vmem:[%s6061_s0 + $0x1d0] sm:$0xff]  }
  0xcc   :  { %v4762_v39 = vld [vmem:[%s6061_s0 + $0x3d0] sm:$0xff]  }
  0xd2   :  { %4484 = vmatmul.mubr.msk.bf16.gmra.mrb[100].mxu0 %vm930_vm0, %v4747_v40  ;;  %4612 = vmatmul.mubr.msk.bf16.gmra.mrb[100].mxu1 %vm930_vm0, %v4748_v41 }
  0xd3   :  { %4487 = vmatprep.mubr.msk.bf16.mxu0 %vm930_vm0, %v4749_v42  ;;  %4615 = vmatprep.mubr.msk.bf16.mxu1 %vm930_vm0, %v4750_v43 }
  0xda   :  { %4488 = vmatmul.mubr.msk.bf16.gmra.mrb[104].mxu0 %vm930_vm0, %v4751_v44  ;;  %4616 = vmatmul.mubr.msk.bf16.gmra.mrb[104].mxu1 %vm930_vm0, %v4752_v45 }
  0xdb   :  { %4491 = vmatprep.mubr.msk.bf16.mxu0 %vm930_vm0, %v4753_v46  ;;  %4619 = vmatprep.mubr.msk.bf16.mxu1 %vm930_vm0, %v4754_v47 }
  0xdd   :  { %v4385_v49 = vpop.f32.mrb[0].mxu0  ;;  %v4513_v51 = vpop.f32.mrb[0].mxu1 }
  0xde   :  { %v2381_v52 = vmul.f32 %v4385_v49, %v5249_v48  ;;  %v2509_v53 = vmul.f32 %v4513_v51, %v5249_v48  ;;  %v1349_v54 = vpop.f32.mrb[1].mxu0  ;;  %v1861_v55 = vpop.f32.mrb[1].mxu1 }
  0xdf   :  { %v2379_v58 = vmul.f32 %v5249_v48, %v1349_v54  ;;  %v2507_v59 = vmul.f32 %v5249_v48, %v1861_v55  ;;  %v4386_v60 = vpop.f32.mrb[2].mxu0  ;;  %v4514_v61 = vpop.f32.mrb[2].mxu1 }
  0xe0   :  { %v2644_v0 = vadd.f32 %v5256_v50, %v2381_v52  ;;  %v2772_v1 = vadd.f32 %v5256_v50, %v2509_v53  ;;  %v2382_v2 = vmul.f32 %v4386_v60, %v5249_v48  ;;  %v2510_v3 = vmul.f32 %v4514_v61, %v5249_v48  ;;  %v1352_v4 = vpop.f32.mrb[3].mxu0  ;;  %v1864_v5 = vpop.f32.mrb[3].mxu1 }
  0xe1   :  { %v2642_v6 = vadd.f32 %v5256_v50, %v2379_v58  ;;  %v2770_v7 = vadd.f32 %v5256_v50, %v2507_v59  ;;  %v2380_v8 = vmul.f32 %v5249_v48, %v1352_v4  ;;  %v2508_v9 = vmul.f32 %v5249_v48, %v1864_v5 }
  0xe2   :  { %v2900_v10 = vmax.f32 %v2644_v0, 0.0  ;;  %v3028_v11 = vmax.f32 %v2772_v1, 0.0  ;;  %v2645_v12 = vadd.f32 %v5256_v50, %v2382_v2  ;;  %v2773_v13 = vadd.f32 %v5256_v50, %v2510_v3  ;;  %4492 = vmatmul.mubr.msk.bf16.gmra.mrb[108].mxu0 %vm930_vm0, %v4755_v56  ;;  %4620 = vmatmul.mubr.msk.bf16.gmra.mrb[108].mxu1 %vm930_vm0, %v4756_v57 }
  0xe3   :  { %v2898_v14 = vmax.f32 %v2642_v6, 0.0  ;;  %v3026_v15 = vmax.f32 %v2770_v7, 0.0  ;;  %v2643_v16 = vadd.f32 %v5256_v50, %v2380_v8  ;;  %v2771_v17 = vadd.f32 %v5256_v50, %v2508_v9  ;;  %4495 = vmatprep.mubr.msk.bf16.mxu0 %vm930_vm0, %v4757_v62  ;;  %4623 = vmatprep.mubr.msk.bf16.mxu1 %vm930_vm0, %v4758_v63  ;;  %v4763_v8 = vld [vmem:[%s6061_s0 + $0x1d8] sm:$0xff]  }
  0xe4   :  { %v2901_v18 = vmax.f32 %v2645_v12, 0.0  ;;  %v3029_v19 = vmax.f32 %v2773_v13, 0.0  ;;  %v4764_v9 = vld [vmem:[%s6061_s0 + $0x3d8] sm:$0xff]  }
  0xe5   :  { %v5290_v20 = vmax.f32 %v2898_v14, %v2900_v10  ;;  %v5292_v21 = vmax.f32 %v3026_v15, %v3028_v11  ;;  %v2899_v22 = vmax.f32 %v2643_v16, 0.0  ;;  %v3027_v23 = vmax.f32 %v2771_v17, 0.0  ;;  %v4389_v24 = vpop.f32.mrb[4].mxu0  ;;  %v4517_v25 = vpop.f32.mrb[4].mxu1  ;;  %v4765_v16 = vld [vmem:[%s6061_s0 + $0x1e0] sm:$0xff]  }
  0xe6   :  { %v2385_v26 = vmul.f32 %v4389_v24, %v5249_v48  ;;  %v2513_v27 = vmul.f32 %v4517_v25, %v5249_v48  ;;  %v1365_v28 = vpop.f32.mrb[5].mxu0  ;;  %v1877_v29 = vpop.f32.mrb[5].mxu1 }
  0xe7   :  { %v5302_v32 = vmax.f32 %v2899_v22, %v2901_v18  ;;  %v5304_v33 = vmax.f32 %v3027_v23, %v3029_v19  ;;  %v2383_v34 = vmul.f32 %v5249_v48, %v1365_v28  ;;  %v2511_v35 = vmul.f32 %v5249_v48, %v1877_v29  ;;  %v4390_v36 = vpop.f32.mrb[6].mxu0  ;;  %v4518_v37 = vpop.f32.mrb[6].mxu1 }
  0xe8   :  { %v2648_v40 = vadd.f32 %v5256_v50, %v2385_v26  ;;  %v2776_v41 = vadd.f32 %v5256_v50, %v2513_v27  ;;  %v2386_v42 = vmul.f32 %v4390_v36, %v5249_v48  ;;  %v2514_v43 = vmul.f32 %v4518_v37, %v5249_v48  ;;  %v1368_v44 = vpop.f32.mrb[7].mxu0  ;;  %v1880_v45 = vpop.f32.mrb[7].mxu1 }
  0xe9   :  { %v2646_v46 = vadd.f32 %v5256_v50, %v2383_v34  ;;  %v2774_v47 = vadd.f32 %v5256_v50, %v2511_v35  ;;  %v2384_v49 = vmul.f32 %v5249_v48, %v1368_v44  ;;  %v2512_v51 = vmul.f32 %v5249_v48, %v1880_v45 }
  0xea   :  { %v2904_v52 = vmax.f32 %v2648_v40, 0.0  ;;  %v3032_v53 = vmax.f32 %v2776_v41, 0.0  ;;  %v2649_v54 = vadd.f32 %v5256_v50, %v2386_v42  ;;  %v2777_v55 = vadd.f32 %v5256_v50, %v2514_v43  ;;  %4496 = vmatmul.mubr.msk.bf16.gmra.mrb[112].mxu0 %vm930_vm0, %v4759_v30  ;;  %4624 = vmatmul.mubr.msk.bf16.gmra.mrb[112].mxu1 %vm930_vm0, %v4760_v31 }
  0xeb   :  { %v2902_v56 = vmax.f32 %v2646_v46, 0.0  ;;  %v3030_v57 = vmax.f32 %v2774_v47, 0.0  ;;  %v2647_v58 = vadd.f32 %v5256_v50, %v2384_v49  ;;  %v2775_v59 = vadd.f32 %v5256_v50, %v2512_v51  ;;  %4499 = vmatprep.mubr.msk.bf16.mxu0 %vm930_vm0, %v4761_v38  ;;  %4627 = vmatprep.mubr.msk.bf16.mxu1 %vm930_vm0, %v4762_v39 }
  0xec   :  { %v2905_v60 = vmax.f32 %v2649_v54, 0.0  ;;  %v3033_v61 = vmax.f32 %v2777_v55, 0.0 }
  0xed   :  { %v3218_v62 = vmax.f32 %v2902_v56, %v2904_v52  ;;  %v3250_v63 = vmax.f32 %v3030_v57, %v3032_v53  ;;  %v2903_v0 = vmax.f32 %v2647_v58, 0.0  ;;  %v3031_v1 = vmax.f32 %v2775_v59, 0.0  ;;  %v4393_v2 = vpop.f32.mrb[8].mxu0  ;;  %v4521_v3 = vpop.f32.mrb[8].mxu1  ;;  %v4767_v52 = vld [vmem:[%s6061_s0 + $0x1e8] sm:$0xff]  }
  0xee   :  { %v2389_v4 = vmul.f32 %v4393_v2, %v5249_v48  ;;  %v2517_v5 = vmul.f32 %v4521_v3, %v5249_v48  ;;  %v1381_v6 = vpop.f32.mrb[9].mxu0  ;;  %v1893_v7 = vpop.f32.mrb[9].mxu1  ;;  %v4768_v59 = vld [vmem:[%s6061_s0 + $0x3e8] sm:$0xff]   ;;  %v4770_v3 = vld [vmem:[%s6061_s0 + $0x3f0] sm:$0xff]  }
  0xef   :  { %v3282_v10 = vmax.f32 %v5290_v20, %v3218_v62  ;;  %v3314_v11 = vmax.f32 %v5292_v21, %v3250_v63  ;;  %v3219_v12 = vmax.f32 %v2903_v0, %v2905_v60  ;;  %v3251_v13 = vmax.f32 %v3031_v1, %v3033_v61  ;;  %v4394_v14 = vpop.f32.mrb[10].mxu0  ;;  %v4522_v15 = vpop.f32.mrb[10].mxu1  ;;  %v4766_v21 = vld [vmem:[%s6061_s0 + $0x3e0] sm:$0xff]   ;;  %v4769_v60 = vld [vmem:[%s6061_s0 + $0x1f0] sm:$0xff]  }
  0xf0   :  { %v2652_v17 = vadd.f32 %v5256_v50, %v2389_v4  ;;  %v2780_v18 = vadd.f32 %v5256_v50, %v2517_v5  ;;  %v2387_v19 = vmul.f32 %v5249_v48, %v1381_v6  ;;  %v2515_v22 = vmul.f32 %v5249_v48, %v1893_v7  ;;  %v1384_v23 = vpop.f32.mrb[11].mxu0  ;;  %v1896_v20 = vpop.f32.mrb[11].mxu1 }
  0xf1   :  { %v3283_v24 = vmax.f32 %v5302_v32, %v3219_v12  ;;  %v3315_v25 = vmax.f32 %v5304_v33, %v3251_v13  ;;  %v2390_v26 = vmul.f32 %v4394_v14, %v5249_v48  ;;  %v2518_v27 = vmul.f32 %v4522_v15, %v5249_v48 }
  0xf2   :  { %v2908_v28 = vmax.f32 %v2652_v17, 0.0  ;;  %v3036_v29 = vmax.f32 %v2780_v18, 0.0  ;;  %v2650_v30 = vadd.f32 %v5256_v50, %v2387_v19  ;;  %v2778_v31 = vadd.f32 %v5256_v50, %v2515_v22  ;;  %4500 = vmatmul.mubr.msk.bf16.gmra.mrb[116].mxu0 %vm930_vm0, %v4763_v8  ;;  %4628 = vmatmul.mubr.msk.bf16.gmra.mrb[116].mxu1 %vm930_vm0, %v4764_v9 }
  0xf3   :  { %v4061_v34 = vpack.c.bf16 %v3283_v24, %v3282_v10  ;;  %v4141_v35 = vpack.c.bf16 %v3315_v25, %v3314_v11  ;;  %v2653_v32 = vadd.f32 %v5256_v50, %v2390_v26  ;;  %v2781_v33 = vadd.f32 %v5256_v50, %v2518_v27  ;;  %4503 = vmatprep.mubr.msk.bf16.mxu0 %vm930_vm0, %v4765_v16 }
  0xf4   :  { %v2906_v36 = vmax.f32 %v2650_v30, 0.0  ;;  %v3034_v37 = vmax.f32 %v2778_v31, 0.0  ;;  %v2388_v38 = vmul.f32 %v5249_v48, %v1384_v23  ;;  %v2516_v39 = vmul.f32 %v5249_v48, %v1896_v20  ;;  %4631 = vmatprep.mubr.msk.bf16.mxu1 %vm930_vm0, %v4766_v21  ;;  %v4771_v30 = vld [vmem:[%s6061_s0 + $0x1f8] sm:$0xff]  }
  0xf5   :  { %4062 = vst [vmem:[%s6064_s4] sm:$0xff] %v4061_v34   ;;  %4233 = vst [vmem:[%s6064_s4 + $0x80] sm:$0xff] %v4141_v35   ;;  %v2909_v40 = vmax.f32 %v2653_v32, 0.0  ;;  %v3037_v41 = vmax.f32 %v2781_v33, 0.0  ;;  %v4397_v42 = vpop.f32.mrb[12].mxu0  ;;  %v4525_v43 = vpop.f32.mrb[12].mxu1 }
  0xf6   :  { %v5370_v44 = vmax.f32 %v2906_v36, %v2908_v28  ;;  %v5372_v45 = vmax.f32 %v3034_v37, %v3036_v29  ;;  %v2651_v46 = vadd.f32 %v5256_v50, %v2388_v38  ;;  %v2779_v47 = vadd.f32 %v5256_v50, %v2516_v39  ;;  %v1397_v49 = vpop.f32.mrb[13].mxu0  ;;  %v1909_v51 = vpop.f32.mrb[13].mxu1  ;;  %v4772_v37 = vld [vmem:[%s6061_s0 + $0x3f8] sm:$0xff]  }
  0xf7   :  { %v2393_v53 = vmul.f32 %v4397_v42, %v5249_v48  ;;  %v2521_v54 = vmul.f32 %v4525_v43, %v5249_v48  ;;  %v2391_v55 = vmul.f32 %v5249_v48, %v1397_v49  ;;  %v2519_v56 = vmul.f32 %v5249_v48, %v1909_v51  ;;  %v4398_v57 = vpop.f32.mrb[14].mxu0  ;;  %v4526_v58 = vpop.f32.mrb[14].mxu1 }
  0xf8   :  { %v2907_v61 = vmax.f32 %v2651_v46, 0.0  ;;  %v3035_v62 = vmax.f32 %v2779_v47, 0.0  ;;  %v2394_v63 = vmul.f32 %v4398_v57, %v5249_v48  ;;  %v2522_v0 = vmul.f32 %v4526_v58, %v5249_v48  ;;  %v1400_v1 = vpop.f32.mrb[15].mxu0  ;;  %v1912_v2 = vpop.f32.mrb[15].mxu1 }
  0xf9   :  { %v2656_v4 = vadd.f32 %v5256_v50, %v2393_v53  ;;  %v2784_v5 = vadd.f32 %v5256_v50, %v2521_v54  ;;  %v2654_v6 = vadd.f32 %v5256_v50, %v2391_v55  ;;  %v2782_v7 = vadd.f32 %v5256_v50, %v2519_v56 }
  0xfa   :  { %v5398_v8 = vmax.f32 %v2907_v61, %v2909_v40  ;;  %v5400_v9 = vmax.f32 %v3035_v62, %v3037_v41  ;;  %v2657_v10 = vadd.f32 %v5256_v50, %v2394_v63  ;;  %v2785_v11 = vadd.f32 %v5256_v50, %v2522_v0  ;;  %4504 = vmatmul.mubr.msk.bf16.gmra.mrb[120].mxu0 %vm930_vm0, %v4767_v52 }
  0xfb   :  { %v2912_v12 = vmax.f32 %v2656_v4, 0.0  ;;  %v3040_v13 = vmax.f32 %v2784_v5, 0.0  ;;  %v2910_v14 = vmax.f32 %v2654_v6, 0.0  ;;  %v3038_v15 = vmax.f32 %v2782_v7, 0.0  ;;  %4632 = vmatmul.mubr.msk.bf16.gmra.mrb[120].mxu1 %vm930_vm0, %v4768_v59  ;;  %4507 = vmatprep.mubr.msk.bf16.mxu0 %vm930_vm0, %v4769_v60 }
  0xfc   :  { %v2392_v16 = vmul.f32 %v5249_v48, %v1400_v1  ;;  %v2520_v17 = vmul.f32 %v5249_v48, %v1912_v2  ;;  %4635 = vmatprep.mubr.msk.bf16.mxu1 %vm930_vm0, %v4770_v3  ;;  %v2913_v22 = vmax.f32 %v2657_v10, 0.0  ;;  %v3041_v23 = vmax.f32 %v2785_v11, 0.0 }
  0xfd   :  { %v3220_v18 = vmax.f32 %v2910_v14, %v2912_v12  ;;  %v3252_v19 = vmax.f32 %v3038_v15, %v3040_v13  ;;  %v4401_v20 = vpop.f32.mrb[16].mxu0  ;;  %v4529_v21 = vpop.f32.mrb[16].mxu1 }
  0xfe   :  { %v2655_v24 = vadd.f32 %v5256_v50, %v2392_v16  ;;  %v2783_v25 = vadd.f32 %v5256_v50, %v2520_v17  ;;  %v2397_v26 = vmul.f32 %v4401_v20, %v5249_v48  ;;  %v2525_v27 = vmul.f32 %v4529_v21, %v5249_v48  ;;  %v1413_v28 = vpop.f32.mrb[17].mxu0  ;;  %v1925_v29 = vpop.f32.mrb[17].mxu1 }
  0xff   :  { %v3284_v31 = vmax.f32 %v5370_v44, %v3220_v18  ;;  %v3316_v34 = vmax.f32 %v5372_v45, %v3252_v19  ;;  %v2395_v35 = vmul.f32 %v5249_v48, %v1413_v28  ;;  %v2523_v32 = vmul.f32 %v5249_v48, %v1925_v29  ;;  %v4402_v33 = vpop.f32.mrb[18].mxu0  ;;  %v4530_v36 = vpop.f32.mrb[18].mxu1 }
 0x100   :  { %v2911_v38 = vmax.f32 %v2655_v24, 0.0  ;;  %v3039_v39 = vmax.f32 %v2783_v25, 0.0  ;;  %v2660_v40 = vadd.f32 %v5256_v50, %v2397_v26  ;;  %v2788_v41 = vadd.f32 %v5256_v50, %v2525_v27  ;;  %v1416_v42 = vpop.f32.mrb[19].mxu0  ;;  %v1928_v43 = vpop.f32.mrb[19].mxu1 }
 0x101   :  { %v2658_v44 = vadd.f32 %v5256_v50, %v2395_v35  ;;  %v2786_v45 = vadd.f32 %v5256_v50, %v2523_v32  ;;  %v2398_v46 = vmul.f32 %v4402_v33, %v5249_v48  ;;  %v2526_v47 = vmul.f32 %v4530_v36, %v5249_v48 }
 0x102   :  { %v3221_v49 = vmax.f32 %v2911_v38, %v2913_v22  ;;  %v3253_v51 = vmax.f32 %v3039_v39, %v3041_v23  ;;  %v2916_v52 = vmax.f32 %v2660_v40, 0.0  ;;  %v3044_v53 = vmax.f32 %v2788_v41, 0.0  ;;  %4508 = vmatmul.mubr.msk.bf16.gmra.mrb[124].mxu0 %vm930_vm0, %v4771_v30 }
 0x103   :  { %v2914_v54 = vmax.f32 %v2658_v44, 0.0  ;;  %v3042_v55 = vmax.f32 %v2786_v45, 0.0  ;;  %v2661_v56 = vadd.f32 %v5256_v50, %v2398_v46  ;;  %v2789_v57 = vadd.f32 %v5256_v50, %v2526_v47  ;;  %4636 = vmatmul.mubr.msk.bf16.gmra.mrb[124].mxu1 %vm930_vm0, %v4772_v37 }
 0x104   :  { %v3285_v58 = vmax.f32 %v5398_v8, %v3221_v49  ;;  %v3317_v59 = vmax.f32 %v5400_v9, %v3253_v51  ;;  %v2396_v60 = vmul.f32 %v5249_v48, %v1416_v42  ;;  %v2524_v61 = vmul.f32 %v5249_v48, %v1928_v43 }
 0x105   :  { %v5438_v62 = vmax.f32 %v2914_v54, %v2916_v52  ;;  %v5440_v63 = vmax.f32 %v3042_v55, %v3044_v53  ;;  %v2917_v0 = vmax.f32 %v2661_v56, 0.0  ;;  %v3045_v1 = vmax.f32 %v2789_v57, 0.0  ;;  %v4405_v2 = vpop.f32.mrb[20].mxu0  ;;  %v4533_v3 = vpop.f32.mrb[20].mxu1 }
 0x106   :  { %v4066_v4 = vpack.c.bf16 %v3285_v58, %v3284_v31  ;;  %v4146_v5 = vpack.c.bf16 %v3317_v59, %v3316_v34  ;;  %v2659_v6 = vadd.f32 %v5256_v50, %v2396_v60  ;;  %v2787_v7 = vadd.f32 %v5256_v50, %v2524_v61  ;;  %v1429_v8 = vpop.f32.mrb[21].mxu0  ;;  %v1941_v9 = vpop.f32.mrb[21].mxu1 }
 0x107   :  { %v2401_v10 = vmul.f32 %v4405_v2, %v5249_v48  ;;  %v2529_v11 = vmul.f32 %v4533_v3, %v5249_v48  ;;  %v2399_v12 = vmul.f32 %v5249_v48, %v1429_v8  ;;  %v2527_v13 = vmul.f32 %v5249_v48, %v1941_v9  ;;  %v4406_v14 = vpop.f32.mrb[22].mxu0  ;;  %v4534_v15 = vpop.f32.mrb[22].mxu1 }
 0x108   :  { %4218 = vst [vmem:[%s6064_s4 + $0x8] sm:$0xff] %v4066_v4   ;;  %4234 = vst [vmem:[%s6064_s4 + $0x88] sm:$0xff] %v4146_v5   ;;  %v2915_v16 = vmax.f32 %v2659_v6, 0.0  ;;  %v3043_v17 = vmax.f32 %v2787_v7, 0.0  ;;  %v2402_v18 = vmul.f32 %v4406_v14, %v5249_v48  ;;  %v2530_v19 = vmul.f32 %v4534_v15, %v5249_v48  ;;  %v1432_v22 = vpop.f32.mrb[23].mxu0  ;;  %v1944_v23 = vpop.f32.mrb[23].mxu1 }
 0x109   :  { %v2664_v20 = vadd.f32 %v5256_v50, %v2401_v10  ;;  %v2792_v21 = vadd.f32 %v5256_v50, %v2529_v11  ;;  %v2662_v24 = vadd.f32 %v5256_v50, %v2399_v12  ;;  %v2790_v25 = vadd.f32 %v5256_v50, %v2527_v13 }
 0x10a   :  { %v3159_v26 = vmax.f32 %v2915_v16, %v2917_v0  ;;  %v3191_v27 = vmax.f32 %v3043_v17, %v3045_v1  ;;  %v2665_v28 = vadd.f32 %v5256_v50, %v2402_v18  ;;  %v2793_v29 = vadd.f32 %v5256_v50, %v2530_v19 }
 0x10b   :  { %v2920_v30 = vmax.f32 %v2664_v20, 0.0  ;;  %v3048_v31 = vmax.f32 %v2792_v21, 0.0  ;;  %v2918_v34 = vmax.f32 %v2662_v24, 0.0  ;;  %v3046_v35 = vmax.f32 %v2790_v25, 0.0 }
 0x10c   :  { %v2400_v32 = vmul.f32 %v5249_v48, %v1432_v22  ;;  %v2528_v33 = vmul.f32 %v5249_v48, %v1944_v23  ;;  %v2921_v38 = vmax.f32 %v2665_v28, 0.0  ;;  %v3049_v39 = vmax.f32 %v2793_v29, 0.0 }
 0x10d   :  { %v3222_v36 = vmax.f32 %v2918_v34, %v2920_v30  ;;  %v3254_v37 = vmax.f32 %v3046_v35, %v3048_v31  ;;  %v4409_v40 = vpop.f32.mrb[24].mxu0  ;;  %v4537_v41 = vpop.f32.mrb[24].mxu1 }
 0x10e   :  { %v2663_v42 = vadd.f32 %v5256_v50, %v2400_v32  ;;  %v2791_v43 = vadd.f32 %v5256_v50, %v2528_v33  ;;  %v2405_v44 = vmul.f32 %v4409_v40, %v5249_v48  ;;  %v2533_v45 = vmul.f32 %v4537_v41, %v5249_v48  ;;  %v1445_v46 = vpop.f32.mrb[25].mxu0  ;;  %v1957_v47 = vpop.f32.mrb[25].mxu1 }
 0x10f   :  { %v3286_v49 = vmax.f32 %v5438_v62, %v3222_v36  ;;  %v3318_v51 = vmax.f32 %v5440_v63, %v3254_v37  ;;  %v2403_v52 = vmul.f32 %v5249_v48, %v1445_v46  ;;  %v2531_v53 = vmul.f32 %v5249_v48, %v1957_v47  ;;  %v4410_v54 = vpop.f32.mrb[26].mxu0  ;;  %v4538_v55 = vpop.f32.mrb[26].mxu1 }
 0x110   :  { %v2919_v56 = vmax.f32 %v2663_v42, 0.0  ;;  %v3047_v57 = vmax.f32 %v2791_v43, 0.0  ;;  %v2668_v58 = vadd.f32 %v5256_v50, %v2405_v44  ;;  %v2796_v59 = vadd.f32 %v5256_v50, %v2533_v45  ;;  %v1448_v60 = vpop.f32.mrb[27].mxu0  ;;  %v1960_v61 = vpop.f32.mrb[27].mxu1 }
 0x111   :  { %v2666_v0 = vadd.f32 %v5256_v50, %v2403_v52  ;;  %v2794_v62 = vadd.f32 %v5256_v50, %v2531_v53  ;;  %v2406_v63 = vmul.f32 %v4410_v54, %v5249_v48  ;;  %v2534_v1 = vmul.f32 %v4538_v55, %v5249_v48 }
 0x112   :  { %v3223_v2 = vmax.f32 %v2919_v56, %v2921_v38  ;;  %v3255_v3 = vmax.f32 %v3047_v57, %v3049_v39  ;;  %v2924_v4 = vmax.f32 %v2668_v58, 0.0  ;;  %v3052_v5 = vmax.f32 %v2796_v59, 0.0 }
 0x113   :  { %v2922_v6 = vmax.f32 %v2666_v0, 0.0  ;;  %v3050_v7 = vmax.f32 %v2794_v62, 0.0  ;;  %v2669_v8 = vadd.f32 %v5256_v50, %v2406_v63  ;;  %v2797_v9 = vadd.f32 %v5256_v50, %v2534_v1 }
 0x114   :  { %v3287_v10 = vmax.f32 %v3159_v26, %v3223_v2  ;;  %v3319_v11 = vmax.f32 %v3191_v27, %v3255_v3  ;;  %v2404_v12 = vmul.f32 %v5249_v48, %v1448_v60  ;;  %v2532_v13 = vmul.f32 %v5249_v48, %v1960_v61 }
 0x115   :  { %v5482_v14 = vmax.f32 %v2922_v6, %v2924_v4  ;;  %v5484_v15 = vmax.f32 %v3050_v7, %v3052_v5  ;;  %v2925_v16 = vmax.f32 %v2669_v8, 0.0  ;;  %v3053_v17 = vmax.f32 %v2797_v9, 0.0  ;;  %v4413_v18 = vpop.f32.mrb[28].mxu0  ;;  %v4541_v19 = vpop.f32.mrb[28].mxu1 }
 0x116   :  { %v4071_v22 = vpack.c.bf16 %v3287_v10, %v3286_v49  ;;  %v4151_v23 = vpack.c.bf16 %v3319_v11, %v3318_v51  ;;  %v2667_v20 = vadd.f32 %v5256_v50, %v2404_v12  ;;  %v2795_v21 = vadd.f32 %v5256_v50, %v2532_v13  ;;  %v1461_v24 = vpop.f32.mrb[29].mxu0  ;;  %v1973_v25 = vpop.f32.mrb[29].mxu1 }
 0x117   :  { %v2409_v26 = vmul.f32 %v4413_v18, %v5249_v48  ;;  %v2537_v27 = vmul.f32 %v4541_v19, %v5249_v48  ;;  %v2407_v28 = vmul.f32 %v5249_v48, %v1461_v24  ;;  %v2535_v29 = vmul.f32 %v5249_v48, %v1973_v25  ;;  %v4414_v30 = vpop.f32.mrb[30].mxu0  ;;  %v4542_v31 = vpop.f32.mrb[30].mxu1 }
 0x118   :  { %4219 = vst [vmem:[%s6064_s4 + $0x10] sm:$0xff] %v4071_v22   ;;  %4235 = vst [vmem:[%s6064_s4 + $0x90] sm:$0xff] %v4151_v23   ;;  %v2923_v34 = vmax.f32 %v2667_v20, 0.0  ;;  %v3051_v35 = vmax.f32 %v2795_v21, 0.0  ;;  %v2410_v32 = vmul.f32 %v4414_v30, %v5249_v48  ;;  %v2538_v33 = vmul.f32 %v4542_v31, %v5249_v48  ;;  %v1464_v36 = vpop.f32.mrb[31].mxu0  ;;  %v1976_v37 = vpop.f32.mrb[31].mxu1 }
 0x119   :  { %v2672_v38 = vadd.f32 %v5256_v50, %v2409_v26  ;;  %v2800_v39 = vadd.f32 %v5256_v50, %v2537_v27  ;;  %v2670_v40 = vadd.f32 %v5256_v50, %v2407_v28  ;;  %v2798_v41 = vadd.f32 %v5256_v50, %v2535_v29 }
 0x11a   :  { %v3161_v42 = vmax.f32 %v2923_v34, %v2925_v16  ;;  %v3193_v43 = vmax.f32 %v3051_v35, %v3053_v17  ;;  %v2673_v44 = vadd.f32 %v5256_v50, %v2410_v32  ;;  %v2801_v45 = vadd.f32 %v5256_v50, %v2538_v33 }
 0x11b   :  { %v2928_v46 = vmax.f32 %v2672_v38, 0.0  ;;  %v3056_v47 = vmax.f32 %v2800_v39, 0.0  ;;  %v2926_v49 = vmax.f32 %v2670_v40, 0.0  ;;  %v3054_v51 = vmax.f32 %v2798_v41, 0.0 }
 0x11c   :  { %v2408_v52 = vmul.f32 %v5249_v48, %v1464_v36  ;;  %v2536_v53 = vmul.f32 %v5249_v48, %v1976_v37  ;;  %v2929_v56 = vmax.f32 %v2673_v44, 0.0  ;;  %v3057_v57 = vmax.f32 %v2801_v45, 0.0 }
 0x11d   :  { %v3224_v54 = vmax.f32 %v2926_v49, %v2928_v46  ;;  %v3256_v55 = vmax.f32 %v3054_v51, %v3056_v47  ;;  %v4417_v58 = vpop.f32.mrb[32].mxu0  ;;  %v4545_v59 = vpop.f32.mrb[32].mxu1 }
 0x11e   :  { %v2671_v60 = vadd.f32 %v5256_v50, %v2408_v52  ;;  %v2799_v61 = vadd.f32 %v5256_v50, %v2536_v53  ;;  %v2413_v0 = vmul.f32 %v4417_v58, %v5249_v48  ;;  %v2541_v62 = vmul.f32 %v4545_v59, %v5249_v48  ;;  %v1477_v63 = vpop.f32.mrb[33].mxu0  ;;  %v1989_v1 = vpop.f32.mrb[33].mxu1 }
 0x11f   :  { %v3288_v2 = vmax.f32 %v5482_v14, %v3224_v54  ;;  %v3320_v3 = vmax.f32 %v5484_v15, %v3256_v55  ;;  %v2411_v4 = vmul.f32 %v5249_v48, %v1477_v63  ;;  %v2539_v5 = vmul.f32 %v5249_v48, %v1989_v1  ;;  %v4418_v6 = vpop.f32.mrb[34].mxu0  ;;  %v4546_v7 = vpop.f32.mrb[34].mxu1 }
 0x120   :  { %v2927_v8 = vmax.f32 %v2671_v60, 0.0  ;;  %v3055_v9 = vmax.f32 %v2799_v61, 0.0  ;;  %v2676_v10 = vadd.f32 %v5256_v50, %v2413_v0  ;;  %v2804_v11 = vadd.f32 %v5256_v50, %v2541_v62  ;;  %v1480_v12 = vpop.f32.mrb[35].mxu0  ;;  %v1992_v13 = vpop.f32.mrb[35].mxu1 }
 0x121   :  { %v2674_v16 = vadd.f32 %v5256_v50, %v2411_v4  ;;  %v2802_v14 = vadd.f32 %v5256_v50, %v2539_v5  ;;  %v2414_v15 = vmul.f32 %v4418_v6, %v5249_v48  ;;  %v2542_v17 = vmul.f32 %v4546_v7, %v5249_v48 }
 0x122   :  { %v3225_v18 = vmax.f32 %v2927_v8, %v2929_v56  ;;  %v3257_v19 = vmax.f32 %v3055_v9, %v3057_v57  ;;  %v2932_v22 = vmax.f32 %v2676_v10, 0.0  ;;  %v3060_v23 = vmax.f32 %v2804_v11, 0.0 }
 0x123   :  { %v2930_v20 = vmax.f32 %v2674_v16, 0.0  ;;  %v3058_v21 = vmax.f32 %v2802_v14, 0.0  ;;  %v2677_v24 = vadd.f32 %v5256_v50, %v2414_v15  ;;  %v2805_v25 = vadd.f32 %v5256_v50, %v2542_v17 }
 0x124   :  { %v3289_v26 = vmax.f32 %v3161_v42, %v3225_v18  ;;  %v3321_v27 = vmax.f32 %v3193_v43, %v3257_v19  ;;  %v2412_v28 = vmul.f32 %v5249_v48, %v1480_v12  ;;  %v2540_v29 = vmul.f32 %v5249_v48, %v1992_v13 }
 0x125   :  { %v5526_v30 = vmax.f32 %v2930_v20, %v2932_v22  ;;  %v5528_v31 = vmax.f32 %v3058_v21, %v3060_v23  ;;  %v2933_v34 = vmax.f32 %v2677_v24, 0.0  ;;  %v3061_v35 = vmax.f32 %v2805_v25, 0.0  ;;  %v4421_v32 = vpop.f32.mrb[36].mxu0  ;;  %v4549_v33 = vpop.f32.mrb[36].mxu1 }
 0x126   :  { %v4076_v36 = vpack.c.bf16 %v3289_v26, %v3288_v2  ;;  %v4156_v37 = vpack.c.bf16 %v3321_v27, %v3320_v3  ;;  %v2675_v38 = vadd.f32 %v5256_v50, %v2412_v28  ;;  %v2803_v39 = vadd.f32 %v5256_v50, %v2540_v29  ;;  %v1493_v40 = vpop.f32.mrb[37].mxu0  ;;  %v2005_v41 = vpop.f32.mrb[37].mxu1 }
 0x127   :  { %v2417_v42 = vmul.f32 %v4421_v32, %v5249_v48  ;;  %v2545_v43 = vmul.f32 %v4549_v33, %v5249_v48  ;;  %v2415_v44 = vmul.f32 %v5249_v48, %v1493_v40  ;;  %v2543_v45 = vmul.f32 %v5249_v48, %v2005_v41  ;;  %v4422_v46 = vpop.f32.mrb[38].mxu0  ;;  %v4550_v47 = vpop.f32.mrb[38].mxu1 }
 0x128   :  { %4220 = vst [vmem:[%s6064_s4 + $0x18] sm:$0xff] %v4076_v36   ;;  %4236 = vst [vmem:[%s6064_s4 + $0x98] sm:$0xff] %v4156_v37   ;;  %v2931_v49 = vmax.f32 %v2675_v38, 0.0  ;;  %v3059_v51 = vmax.f32 %v2803_v39, 0.0  ;;  %v2418_v52 = vmul.f32 %v4422_v46, %v5249_v48  ;;  %v2546_v53 = vmul.f32 %v4550_v47, %v5249_v48  ;;  %v1496_v54 = vpop.f32.mrb[39].mxu0  ;;  %v2008_v55 = vpop.f32.mrb[39].mxu1 }
 0x129   :  { %v2680_v56 = vadd.f32 %v5256_v50, %v2417_v42  ;;  %v2808_v57 = vadd.f32 %v5256_v50, %v2545_v43  ;;  %v2678_v58 = vadd.f32 %v5256_v50, %v2415_v44  ;;  %v2806_v59 = vadd.f32 %v5256_v50, %v2543_v45 }
 0x12a   :  { %v3163_v60 = vmax.f32 %v2931_v49, %v2933_v34  ;;  %v3195_v61 = vmax.f32 %v3059_v51, %v3061_v35  ;;  %v2681_v0 = vadd.f32 %v5256_v50, %v2418_v52  ;;  %v2809_v62 = vadd.f32 %v5256_v50, %v2546_v53 }
 0x12b   :  { %v2936_v63 = vmax.f32 %v2680_v56, 0.0  ;;  %v3064_v1 = vmax.f32 %v2808_v57, 0.0  ;;  %v2934_v2 = vmax.f32 %v2678_v58, 0.0  ;;  %v3062_v3 = vmax.f32 %v2806_v59, 0.0 }
 0x12c   :  { %v2416_v4 = vmul.f32 %v5249_v48, %v1496_v54  ;;  %v2544_v5 = vmul.f32 %v5249_v48, %v2008_v55  ;;  %v2937_v8 = vmax.f32 %v2681_v0, 0.0  ;;  %v3065_v9 = vmax.f32 %v2809_v62, 0.0 }
 0x12d   :  { %v3226_v6 = vmax.f32 %v2934_v2, %v2936_v63  ;;  %v3258_v7 = vmax.f32 %v3062_v3, %v3064_v1  ;;  %v4425_v10 = vpop.f32.mrb[40].mxu0  ;;  %v4553_v11 = vpop.f32.mrb[40].mxu1 }
 0x12e   :  { %v2679_v12 = vadd.f32 %v5256_v50, %v2416_v4  ;;  %v2807_v13 = vadd.f32 %v5256_v50, %v2544_v5  ;;  %v2421_v16 = vmul.f32 %v4425_v10, %v5249_v48  ;;  %v2549_v14 = vmul.f32 %v4553_v11, %v5249_v48  ;;  %v1509_v15 = vpop.f32.mrb[41].mxu0  ;;  %v2021_v17 = vpop.f32.mrb[41].mxu1 }
 0x12f   :  { %v3290_v18 = vmax.f32 %v5526_v30, %v3226_v6  ;;  %v3322_v19 = vmax.f32 %v5528_v31, %v3258_v7  ;;  %v2419_v22 = vmul.f32 %v5249_v48, %v1509_v15  ;;  %v2547_v23 = vmul.f32 %v5249_v48, %v2021_v17  ;;  %v4426_v20 = vpop.f32.mrb[42].mxu0  ;;  %v4554_v21 = vpop.f32.mrb[42].mxu1 }
 0x130   :  { %v2935_v24 = vmax.f32 %v2679_v12, 0.0  ;;  %v3063_v25 = vmax.f32 %v2807_v13, 0.0  ;;  %v2684_v26 = vadd.f32 %v5256_v50, %v2421_v16  ;;  %v2812_v27 = vadd.f32 %v5256_v50, %v2549_v14  ;;  %v1512_v28 = vpop.f32.mrb[43].mxu0  ;;  %v2024_v29 = vpop.f32.mrb[43].mxu1 }
 0x131   :  { %v2682_v34 = vadd.f32 %v5256_v50, %v2419_v22  ;;  %v2810_v30 = vadd.f32 %v5256_v50, %v2547_v23  ;;  %v2422_v31 = vmul.f32 %v4426_v20, %v5249_v48  ;;  %v2550_v35 = vmul.f32 %v4554_v21, %v5249_v48 }
 0x132   :  { %v3227_v32 = vmax.f32 %v2935_v24, %v2937_v8  ;;  %v3259_v33 = vmax.f32 %v3063_v25, %v3065_v9  ;;  %v2940_v36 = vmax.f32 %v2684_v26, 0.0  ;;  %v3068_v37 = vmax.f32 %v2812_v27, 0.0 }
 0x133   :  { %v2938_v38 = vmax.f32 %v2682_v34, 0.0  ;;  %v3066_v39 = vmax.f32 %v2810_v30, 0.0  ;;  %v2685_v40 = vadd.f32 %v5256_v50, %v2422_v31  ;;  %v2813_v41 = vadd.f32 %v5256_v50, %v2550_v35  ;;  %v5602_v30 = vld [vmem:[%s6062_s2] ss:$0 sm:$0xff] }
 0x134   :  { %v3291_v42 = vmax.f32 %v3163_v60, %v3227_v32  ;;  %v3323_v43 = vmax.f32 %v3195_v61, %v3259_v33  ;;  %v2420_v44 = vmul.f32 %v5249_v48, %v1512_v28  ;;  %v2548_v45 = vmul.f32 %v5249_v48, %v2024_v29 }
 0x135   :  { %v5570_v46 = vmax.f32 %v2938_v38, %v2940_v36  ;;  %v5572_v47 = vmax.f32 %v3066_v39, %v3068_v37  ;;  %v2941_v49 = vmax.f32 %v2685_v40, 0.0  ;;  %v3069_v51 = vmax.f32 %v2813_v41, 0.0  ;;  %v4429_v52 = vpop.f32.mrb[44].mxu0  ;;  %v4557_v53 = vpop.f32.mrb[44].mxu1  ;;  %v5612_v41 = vld [vmem:[%s6063_s3] ss:$0 sm:$0xff] }
 0x136   :  { %v4081_v54 = vpack.c.bf16 %v3291_v42, %v3290_v18  ;;  %v4161_v55 = vpack.c.bf16 %v3323_v43, %v3322_v19  ;;  %v2683_v56 = vadd.f32 %v5256_v50, %v2420_v44  ;;  %v2811_v57 = vadd.f32 %v5256_v50, %v2548_v45  ;;  %v1525_v58 = vpop.f32.mrb[45].mxu0  ;;  %v2037_v59 = vpop.f32.mrb[45].mxu1 }
 0x137   :  { %v2425_v60 = vmul.f32 %v4429_v52, %v5249_v48  ;;  %v2553_v61 = vmul.f32 %v4557_v53, %v5249_v48  ;;  %v2423_v0 = vmul.f32 %v5249_v48, %v1525_v58  ;;  %v2551_v62 = vmul.f32 %v5249_v48, %v2037_v59  ;;  %v4430_v63 = vpop.f32.mrb[46].mxu0  ;;  %v4558_v1 = vpop.f32.mrb[46].mxu1 }
 0x138   :  { %4221 = vst [vmem:[%s6064_s4 + $0x20] sm:$0xff] %v4081_v54   ;;  %4237 = vst [vmem:[%s6064_s4 + $0xa0] sm:$0xff] %v4161_v55   ;;  %v2939_v2 = vmax.f32 %v2683_v56, 0.0  ;;  %v3067_v3 = vmax.f32 %v2811_v57, 0.0  ;;  %v2426_v4 = vmul.f32 %v4430_v63, %v5249_v48  ;;  %v2554_v5 = vmul.f32 %v4558_v1, %v5249_v48  ;;  %v1528_v6 = vpop.f32.mrb[47].mxu0  ;;  %v2040_v7 = vpop.f32.mrb[47].mxu1 }
 0x139   :  { %v2688_v8 = vadd.f32 %v5256_v50, %v2425_v60  ;;  %v2816_v9 = vadd.f32 %v5256_v50, %v2553_v61  ;;  %v2686_v10 = vadd.f32 %v5256_v50, %v2423_v0  ;;  %v2814_v11 = vadd.f32 %v5256_v50, %v2551_v62 }
 0x13a   :  { %v3165_v12 = vmax.f32 %v2939_v2, %v2941_v49  ;;  %v3197_v13 = vmax.f32 %v3067_v3, %v3069_v51  ;;  %v2689_v16 = vadd.f32 %v5256_v50, %v2426_v4  ;;  %v2817_v14 = vadd.f32 %v5256_v50, %v2554_v5 }
 0x13b   :  { %v2944_v15 = vmax.f32 %v2688_v8, 0.0  ;;  %v3072_v17 = vmax.f32 %v2816_v9, 0.0  ;;  %v2942_v18 = vmax.f32 %v2686_v10, 0.0  ;;  %v3070_v19 = vmax.f32 %v2814_v11, 0.0 }
 0x13c   :  { %v2424_v22 = vmul.f32 %v5249_v48, %v1528_v6  ;;  %v2552_v23 = vmul.f32 %v5249_v48, %v2040_v7  ;;  %v2945_v24 = vmax.f32 %v2689_v16, 0.0  ;;  %v3073_v25 = vmax.f32 %v2817_v14, 0.0 }
 0x13d   :  { %v3228_v20 = vmax.f32 %v2942_v18, %v2944_v15  ;;  %v3260_v21 = vmax.f32 %v3070_v19, %v3072_v17  ;;  %v4433_v26 = vpop.f32.mrb[48].mxu0  ;;  %v4561_v27 = vpop.f32.mrb[48].mxu1 }
 0x13e   :  { %v2687_v28 = vadd.f32 %v5256_v50, %v2424_v22  ;;  %v2815_v29 = vadd.f32 %v5256_v50, %v2552_v23  ;;  %v2429_v34 = vmul.f32 %v4433_v26, %v5249_v48  ;;  %v2557_v31 = vmul.f32 %v5602_v30, %v4561_v27  ;;  %v1541_v35 = vpop.f32.mrb[49].mxu0  ;;  %v2053_v32 = vpop.f32.mrb[49].mxu1 }
 0x13f   :  { %v3292_v33 = vmax.f32 %v5570_v46, %v3228_v20  ;;  %v3324_v36 = vmax.f32 %v5572_v47, %v3260_v21  ;;  %v2427_v37 = vmul.f32 %v5602_v30, %v1541_v35  ;;  %v2555_v38 = vmul.f32 %v5602_v30, %v2053_v32  ;;  %v4434_v50 = vpop.f32.mrb[50].mxu0  ;;  %v4562_v39 = vpop.f32.mrb[50].mxu1 }
 0x140   :  { %v2943_v48 = vmax.f32 %v2687_v28, 0.0  ;;  %v3071_v40 = vmax.f32 %v2815_v29, 0.0  ;;  %v2692_v42 = vadd.f32 %v5612_v41, %v2429_v34  ;;  %v2820_v43 = vadd.f32 %v5612_v41, %v2557_v31  ;;  %v1544_v44 = vpop.f32.mrb[51].mxu0  ;;  %v2056_v45 = vpop.f32.mrb[51].mxu1 }
 0x141   :  { %v2690_v46 = vadd.f32 %v5612_v41, %v2427_v37  ;;  %v2818_v47 = vadd.f32 %v5612_v41, %v2555_v38  ;;  %v2430_v49 = vmul.f32 %v5602_v30, %v4434_v50  ;;  %v2558_v51 = vmul.f32 %v5602_v30, %v4562_v39 }
 0x142   :  { %v3229_v52 = vmax.f32 %v2943_v48, %v2945_v24  ;;  %v3261_v53 = vmax.f32 %v3071_v40, %v3073_v25  ;;  %v2948_v54 = vmax.f32 %v2692_v42, 0.0  ;;  %v3076_v55 = vmax.f32 %v2820_v43, 0.0 }
 0x143   :  { %v2946_v56 = vmax.f32 %v2690_v46, 0.0  ;;  %v3074_v57 = vmax.f32 %v2818_v47, 0.0  ;;  %v2693_v58 = vadd.f32 %v5612_v41, %v2430_v49  ;;  %v2821_v59 = vadd.f32 %v5612_v41, %v2558_v51 }
 0x144   :  { %v3293_v60 = vmax.f32 %v3165_v12, %v3229_v52  ;;  %v3325_v61 = vmax.f32 %v3197_v13, %v3261_v53  ;;  %v2428_v0 = vmul.f32 %v5602_v30, %v1544_v44  ;;  %v2556_v62 = vmul.f32 %v5602_v30, %v2056_v45 }
 0x145   :  { %v5624_v63 = vmax.f32 %v2946_v56, %v2948_v54  ;;  %v5626_v1 = vmax.f32 %v3074_v57, %v3076_v55  ;;  %v2949_v2 = vmax.f32 %v2693_v58, 0.0  ;;  %v3077_v3 = vmax.f32 %v2821_v59, 0.0  ;;  %v4437_v4 = vpop.f32.mrb[52].mxu0  ;;  %v4565_v5 = vpop.f32.mrb[52].mxu1 }
 0x146   :  { %v4086_v6 = vpack.c.bf16 %v3293_v60, %v3292_v33  ;;  %v4166_v7 = vpack.c.bf16 %v3325_v61, %v3324_v36  ;;  %v2691_v8 = vadd.f32 %v5612_v41, %v2428_v0  ;;  %v2819_v9 = vadd.f32 %v5612_v41, %v2556_v62  ;;  %v1557_v10 = vpop.f32.mrb[53].mxu0  ;;  %v2069_v11 = vpop.f32.mrb[53].mxu1 }
 0x147   :  { %v2433_v12 = vmul.f32 %v5602_v30, %v4437_v4  ;;  %v2561_v13 = vmul.f32 %v5602_v30, %v4565_v5  ;;  %v2431_v16 = vmul.f32 %v5602_v30, %v1557_v10  ;;  %v2559_v14 = vmul.f32 %v5602_v30, %v2069_v11  ;;  %v4438_v15 = vpop.f32.mrb[54].mxu0  ;;  %v4566_v17 = vpop.f32.mrb[54].mxu1 }
 0x148   :  { %4222 = vst [vmem:[%s6064_s4 + $0x28] sm:$0xff] %v4086_v6   ;;  %4238 = vst [vmem:[%s6064_s4 + $0xa8] sm:$0xff] %v4166_v7   ;;  %v2947_v18 = vmax.f32 %v2691_v8, 0.0  ;;  %v3075_v19 = vmax.f32 %v2819_v9, 0.0  ;;  %v2434_v22 = vmul.f32 %v5602_v30, %v4438_v15  ;;  %v2562_v23 = vmul.f32 %v5602_v30, %v4566_v17  ;;  %v1560_v20 = vpop.f32.mrb[55].mxu0  ;;  %v2072_v21 = vpop.f32.mrb[55].mxu1 }
 0x149   :  { %v2696_v24 = vadd.f32 %v5612_v41, %v2433_v12  ;;  %v2824_v25 = vadd.f32 %v5612_v41, %v2561_v13  ;;  %v2694_v26 = vadd.f32 %v5612_v41, %v2431_v16  ;;  %v2822_v27 = vadd.f32 %v5612_v41, %v2559_v14 }
 0x14a   :  { %v3167_v28 = vmax.f32 %v2947_v18, %v2949_v2  ;;  %v3199_v29 = vmax.f32 %v3075_v19, %v3077_v3  ;;  %v2697_v34 = vadd.f32 %v5612_v41, %v2434_v22  ;;  %v2825_v31 = vadd.f32 %v5612_v41, %v2562_v23 }
 0x14b   :  { %v2952_v35 = vmax.f32 %v2696_v24, 0.0  ;;  %v3080_v32 = vmax.f32 %v2824_v25, 0.0  ;;  %v2950_v33 = vmax.f32 %v2694_v26, 0.0  ;;  %v3078_v36 = vmax.f32 %v2822_v27, 0.0 }
 0x14c   :  { %v2432_v37 = vmul.f32 %v5602_v30, %v1560_v20  ;;  %v2560_v38 = vmul.f32 %v5602_v30, %v2072_v21  ;;  %v2953_v48 = vmax.f32 %v2697_v34, 0.0  ;;  %v3081_v40 = vmax.f32 %v2825_v31, 0.0 }
 0x14d   :  { %v3230_v50 = vmax.f32 %v2950_v33, %v2952_v35  ;;  %v3262_v39 = vmax.f32 %v3078_v36, %v3080_v32  ;;  %v4441_v42 = vpop.f32.mrb[56].mxu0  ;;  %v4569_v43 = vpop.f32.mrb[56].mxu1 }
 0x14e   :  { %v2695_v44 = vadd.f32 %v5612_v41, %v2432_v37  ;;  %v2823_v45 = vadd.f32 %v5612_v41, %v2560_v38  ;;  %v2437_v46 = vmul.f32 %v5602_v30, %v4441_v42  ;;  %v2565_v47 = vmul.f32 %v5602_v30, %v4569_v43  ;;  %v1573_v49 = vpop.f32.mrb[57].mxu0  ;;  %v2085_v51 = vpop.f32.mrb[57].mxu1 }
 0x14f   :  { %v3294_v52 = vmax.f32 %v5624_v63, %v3230_v50  ;;  %v3326_v53 = vmax.f32 %v5626_v1, %v3262_v39  ;;  %v2435_v54 = vmul.f32 %v5602_v30, %v1573_v49  ;;  %v2563_v55 = vmul.f32 %v5602_v30, %v2085_v51  ;;  %v4442_v56 = vpop.f32.mrb[58].mxu0  ;;  %v4570_v57 = vpop.f32.mrb[58].mxu1 }
 0x150   :  { %v2951_v58 = vmax.f32 %v2695_v44, 0.0  ;;  %v3079_v59 = vmax.f32 %v2823_v45, 0.0  ;;  %v2700_v60 = vadd.f32 %v5612_v41, %v2437_v46  ;;  %v2828_v61 = vadd.f32 %v5612_v41, %v2565_v47  ;;  %v1576_v0 = vpop.f32.mrb[59].mxu0  ;;  %v2088_v62 = vpop.f32.mrb[59].mxu1 }
 0x151   :  { %v2698_v2 = vadd.f32 %v5612_v41, %v2435_v54  ;;  %v2826_v63 = vadd.f32 %v5612_v41, %v2563_v55  ;;  %v2438_v1 = vmul.f32 %v5602_v30, %v4442_v56  ;;  %v2566_v3 = vmul.f32 %v5602_v30, %v4570_v57 }
 0x152   :  { %v3231_v4 = vmax.f32 %v2951_v58, %v2953_v48  ;;  %v3263_v5 = vmax.f32 %v3079_v59, %v3081_v40  ;;  %v2956_v6 = vmax.f32 %v2700_v60, 0.0  ;;  %v3084_v7 = vmax.f32 %v2828_v61, 0.0 }
 0x153   :  { %v2954_v8 = vmax.f32 %v2698_v2, 0.0  ;;  %v3082_v9 = vmax.f32 %v2826_v63, 0.0  ;;  %v2701_v10 = vadd.f32 %v5612_v41, %v2438_v1  ;;  %v2829_v11 = vadd.f32 %v5612_v41, %v2566_v3 }
 0x154   :  { %v3295_v12 = vmax.f32 %v3167_v28, %v3231_v4  ;;  %v3327_v13 = vmax.f32 %v3199_v29, %v3263_v5  ;;  %v2436_v16 = vmul.f32 %v5602_v30, %v1576_v0  ;;  %v2564_v14 = vmul.f32 %v5602_v30, %v2088_v62 }
 0x155   :  { %v5668_v15 = vmax.f32 %v2954_v8, %v2956_v6  ;;  %v5670_v17 = vmax.f32 %v3082_v9, %v3084_v7  ;;  %v2957_v18 = vmax.f32 %v2701_v10, 0.0  ;;  %v3085_v19 = vmax.f32 %v2829_v11, 0.0  ;;  %v4445_v22 = vpop.f32.mrb[60].mxu0  ;;  %v4573_v23 = vpop.f32.mrb[60].mxu1 }
 0x156   :  { %v4091_v20 = vpack.c.bf16 %v3295_v12, %v3294_v52  ;;  %v4171_v21 = vpack.c.bf16 %v3327_v13, %v3326_v53  ;;  %v2699_v24 = vadd.f32 %v5612_v41, %v2436_v16  ;;  %v2827_v25 = vadd.f32 %v5612_v41, %v2564_v14  ;;  %v1589_v26 = vpop.f32.mrb[61].mxu0  ;;  %v2101_v27 = vpop.f32.mrb[61].mxu1 }
 0x157   :  { %v2441_v28 = vmul.f32 %v5602_v30, %v4445_v22  ;;  %v2569_v29 = vmul.f32 %v5602_v30, %v4573_v23  ;;  %v2439_v34 = vmul.f32 %v5602_v30, %v1589_v26  ;;  %v2567_v31 = vmul.f32 %v5602_v30, %v2101_v27  ;;  %v4446_v35 = vpop.f32.mrb[62].mxu0  ;;  %v4574_v32 = vpop.f32.mrb[62].mxu1 }
 0x158   :  { %4223 = vst [vmem:[%s6064_s4 + $0x30] sm:$0xff] %v4091_v20   ;;  %4239 = vst [vmem:[%s6064_s4 + $0xb0] sm:$0xff] %v4171_v21   ;;  %v2955_v33 = vmax.f32 %v2699_v24, 0.0  ;;  %v3083_v36 = vmax.f32 %v2827_v25, 0.0  ;;  %v2442_v37 = vmul.f32 %v5602_v30, %v4446_v35  ;;  %v2570_v38 = vmul.f32 %v5602_v30, %v4574_v32  ;;  %v1592_v50 = vpop.f32.mrb[63].mxu0  ;;  %v2104_v39 = vpop.f32.mrb[63].mxu1 }
 0x159   :  { %v2704_v48 = vadd.f32 %v5612_v41, %v2441_v28  ;;  %v2832_v40 = vadd.f32 %v5612_v41, %v2569_v29  ;;  %v2702_v42 = vadd.f32 %v5612_v41, %v2439_v34  ;;  %v2830_v43 = vadd.f32 %v5612_v41, %v2567_v31 }
 0x15a   :  { %v3169_v44 = vmax.f32 %v2955_v33, %v2957_v18  ;;  %v3201_v45 = vmax.f32 %v3083_v36, %v3085_v19  ;;  %v2705_v46 = vadd.f32 %v5612_v41, %v2442_v37  ;;  %v2833_v47 = vadd.f32 %v5612_v41, %v2570_v38 }
 0x15b   :  { %v2960_v49 = vmax.f32 %v2704_v48, 0.0  ;;  %v3088_v51 = vmax.f32 %v2832_v40, 0.0  ;;  %v2958_v52 = vmax.f32 %v2702_v42, 0.0  ;;  %v3086_v53 = vmax.f32 %v2830_v43, 0.0 }
 0x15c   :  { %v2440_v54 = vmul.f32 %v5602_v30, %v1592_v50  ;;  %v2568_v55 = vmul.f32 %v5602_v30, %v2104_v39  ;;  %v2961_v58 = vmax.f32 %v2705_v46, 0.0  ;;  %v3089_v59 = vmax.f32 %v2833_v47, 0.0 }
 0x15d   :  { %v3232_v56 = vmax.f32 %v2958_v52, %v2960_v49  ;;  %v3264_v57 = vmax.f32 %v3086_v53, %v3088_v51  ;;  %v4449_v60 = vpop.f32.mrb[64].mxu0  ;;  %v4577_v61 = vpop.f32.mrb[64].mxu1 }
 0x15e   :  { %v2703_v0 = vadd.f32 %v5612_v41, %v2440_v54  ;;  %v2831_v62 = vadd.f32 %v5612_v41, %v2568_v55  ;;  %v2445_v2 = vmul.f32 %v5602_v30, %v4449_v60  ;;  %v2573_v63 = vmul.f32 %v5602_v30, %v4577_v61  ;;  %v1605_v1 = vpop.f32.mrb[65].mxu0  ;;  %v2117_v3 = vpop.f32.mrb[65].mxu1 }
 0x15f   :  { %v3296_v4 = vmax.f32 %v5668_v15, %v3232_v56  ;;  %v3328_v5 = vmax.f32 %v5670_v17, %v3264_v57  ;;  %v2443_v6 = vmul.f32 %v5602_v30, %v1605_v1  ;;  %v2571_v7 = vmul.f32 %v5602_v30, %v2117_v3  ;;  %v4450_v8 = vpop.f32.mrb[66].mxu0  ;;  %v4578_v9 = vpop.f32.mrb[66].mxu1 }
 0x160   :  { %v2959_v10 = vmax.f32 %v2703_v0, 0.0  ;;  %v3087_v11 = vmax.f32 %v2831_v62, 0.0  ;;  %v2708_v12 = vadd.f32 %v5612_v41, %v2445_v2  ;;  %v2836_v13 = vadd.f32 %v5612_v41, %v2573_v63  ;;  %v1608_v16 = vpop.f32.mrb[67].mxu0  ;;  %v2120_v14 = vpop.f32.mrb[67].mxu1 }
 0x161   :  { %v2706_v18 = vadd.f32 %v5612_v41, %v2443_v6  ;;  %v2834_v15 = vadd.f32 %v5612_v41, %v2571_v7  ;;  %v2446_v17 = vmul.f32 %v5602_v30, %v4450_v8  ;;  %v2574_v19 = vmul.f32 %v5602_v30, %v4578_v9 }
 0x162   :  { %v3233_v22 = vmax.f32 %v2959_v10, %v2961_v58  ;;  %v3265_v23 = vmax.f32 %v3087_v11, %v3089_v59  ;;  %v2964_v20 = vmax.f32 %v2708_v12, 0.0  ;;  %v3092_v21 = vmax.f32 %v2836_v13, 0.0 }
 0x163   :  { %v2962_v24 = vmax.f32 %v2706_v18, 0.0  ;;  %v3090_v25 = vmax.f32 %v2834_v15, 0.0  ;;  %v2709_v26 = vadd.f32 %v5612_v41, %v2446_v17  ;;  %v2837_v27 = vadd.f32 %v5612_v41, %v2574_v19 }
 0x164   :  { %v3297_v28 = vmax.f32 %v3169_v44, %v3233_v22  ;;  %v3329_v29 = vmax.f32 %v3201_v45, %v3265_v23  ;;  %v2444_v34 = vmul.f32 %v5602_v30, %v1608_v16  ;;  %v2572_v31 = vmul.f32 %v5602_v30, %v2120_v14 }
 0x165   :  { %v5712_v35 = vmax.f32 %v2962_v24, %v2964_v20  ;;  %v5714_v32 = vmax.f32 %v3090_v25, %v3092_v21  ;;  %v2965_v33 = vmax.f32 %v2709_v26, 0.0  ;;  %v3093_v36 = vmax.f32 %v2837_v27, 0.0  ;;  %v4453_v37 = vpop.f32.mrb[68].mxu0  ;;  %v4581_v38 = vpop.f32.mrb[68].mxu1 }
 0x166   :  { %v4096_v50 = vpack.c.bf16 %v3297_v28, %v3296_v4  ;;  %v4176_v39 = vpack.c.bf16 %v3329_v29, %v3328_v5  ;;  %v2707_v48 = vadd.f32 %v5612_v41, %v2444_v34  ;;  %v2835_v40 = vadd.f32 %v5612_v41, %v2572_v31  ;;  %v1621_v42 = vpop.f32.mrb[69].mxu0  ;;  %v2133_v43 = vpop.f32.mrb[69].mxu1 }
 0x167   :  { %v2449_v44 = vmul.f32 %v5602_v30, %v4453_v37  ;;  %v2577_v45 = vmul.f32 %v5602_v30, %v4581_v38  ;;  %v2447_v46 = vmul.f32 %v5602_v30, %v1621_v42  ;;  %v2575_v47 = vmul.f32 %v5602_v30, %v2133_v43  ;;  %v4454_v49 = vpop.f32.mrb[70].mxu0  ;;  %v4582_v51 = vpop.f32.mrb[70].mxu1 }
 0x168   :  { %4224 = vst [vmem:[%s6064_s4 + $0x38] sm:$0xff] %v4096_v50   ;;  %4240 = vst [vmem:[%s6064_s4 + $0xb8] sm:$0xff] %v4176_v39   ;;  %v2963_v52 = vmax.f32 %v2707_v48, 0.0  ;;  %v3091_v53 = vmax.f32 %v2835_v40, 0.0  ;;  %v2450_v54 = vmul.f32 %v5602_v30, %v4454_v49  ;;  %v2578_v55 = vmul.f32 %v5602_v30, %v4582_v51  ;;  %v1624_v56 = vpop.f32.mrb[71].mxu0  ;;  %v2136_v57 = vpop.f32.mrb[71].mxu1 }
 0x169   :  { %v2712_v58 = vadd.f32 %v5612_v41, %v2449_v44  ;;  %v2840_v59 = vadd.f32 %v5612_v41, %v2577_v45  ;;  %v2710_v60 = vadd.f32 %v5612_v41, %v2447_v46  ;;  %v2838_v61 = vadd.f32 %v5612_v41, %v2575_v47 }
 0x16a   :  { %v3171_v0 = vmax.f32 %v2963_v52, %v2965_v33  ;;  %v3203_v62 = vmax.f32 %v3091_v53, %v3093_v36  ;;  %v2713_v2 = vadd.f32 %v5612_v41, %v2450_v54  ;;  %v2841_v63 = vadd.f32 %v5612_v41, %v2578_v55 }
 0x16b   :  { %v2968_v1 = vmax.f32 %v2712_v58, 0.0  ;;  %v3096_v3 = vmax.f32 %v2840_v59, 0.0  ;;  %v2966_v4 = vmax.f32 %v2710_v60, 0.0  ;;  %v3094_v5 = vmax.f32 %v2838_v61, 0.0 }
 0x16c   :  { %v2448_v6 = vmul.f32 %v5602_v30, %v1624_v56  ;;  %v2576_v7 = vmul.f32 %v5602_v30, %v2136_v57  ;;  %v2969_v10 = vmax.f32 %v2713_v2, 0.0  ;;  %v3097_v11 = vmax.f32 %v2841_v63, 0.0 }
 0x16d   :  { %v3234_v8 = vmax.f32 %v2966_v4, %v2968_v1  ;;  %v3266_v9 = vmax.f32 %v3094_v5, %v3096_v3  ;;  %v4457_v12 = vpop.f32.mrb[72].mxu0  ;;  %v4585_v13 = vpop.f32.mrb[72].mxu1 }
 0x16e   :  { %v2711_v16 = vadd.f32 %v5612_v41, %v2448_v6  ;;  %v2839_v14 = vadd.f32 %v5612_v41, %v2576_v7  ;;  %v2453_v18 = vmul.f32 %v5602_v30, %v4457_v12  ;;  %v2581_v15 = vmul.f32 %v5602_v30, %v4585_v13  ;;  %v1637_v17 = vpop.f32.mrb[73].mxu0  ;;  %v2149_v19 = vpop.f32.mrb[73].mxu1 }
 0x16f   :  { %v3298_v22 = vmax.f32 %v5712_v35, %v3234_v8  ;;  %v3330_v23 = vmax.f32 %v5714_v32, %v3266_v9  ;;  %v2451_v20 = vmul.f32 %v5602_v30, %v1637_v17  ;;  %v2579_v21 = vmul.f32 %v5602_v30, %v2149_v19  ;;  %v4458_v24 = vpop.f32.mrb[74].mxu0  ;;  %v4586_v25 = vpop.f32.mrb[74].mxu1 }
 0x170   :  { %v2967_v26 = vmax.f32 %v2711_v16, 0.0  ;;  %v3095_v27 = vmax.f32 %v2839_v14, 0.0  ;;  %v2716_v28 = vadd.f32 %v5612_v41, %v2453_v18  ;;  %v2844_v29 = vadd.f32 %v5612_v41, %v2581_v15  ;;  %v1640_v34 = vpop.f32.mrb[75].mxu0  ;;  %v2152_v31 = vpop.f32.mrb[75].mxu1 }
 0x171   :  { %v2714_v33 = vadd.f32 %v5612_v41, %v2451_v20  ;;  %v2842_v35 = vadd.f32 %v5612_v41, %v2579_v21  ;;  %v2454_v32 = vmul.f32 %v5602_v30, %v4458_v24  ;;  %v2582_v36 = vmul.f32 %v5602_v30, %v4586_v25 }
 0x172   :  { %v3235_v37 = vmax.f32 %v2967_v26, %v2969_v10  ;;  %v3267_v38 = vmax.f32 %v3095_v27, %v3097_v11  ;;  %v2972_v50 = vmax.f32 %v2716_v28, 0.0  ;;  %v3100_v39 = vmax.f32 %v2844_v29, 0.0 }
 0x173   :  { %v2970_v48 = vmax.f32 %v2714_v33, 0.0  ;;  %v3098_v40 = vmax.f32 %v2842_v35, 0.0  ;;  %v2717_v42 = vadd.f32 %v5612_v41, %v2454_v32  ;;  %v2845_v43 = vadd.f32 %v5612_v41, %v2582_v36 }
 0x174   :  { %v3299_v44 = vmax.f32 %v3171_v0, %v3235_v37  ;;  %v3331_v45 = vmax.f32 %v3203_v62, %v3267_v38  ;;  %v2452_v46 = vmul.f32 %v5602_v30, %v1640_v34  ;;  %v2580_v47 = vmul.f32 %v5602_v30, %v2152_v31 }
 0x175   :  { %v5756_v49 = vmax.f32 %v2970_v48, %v2972_v50  ;;  %v5758_v51 = vmax.f32 %v3098_v40, %v3100_v39  ;;  %v2973_v52 = vmax.f32 %v2717_v42, 0.0  ;;  %v3101_v53 = vmax.f32 %v2845_v43, 0.0  ;;  %v4461_v54 = vpop.f32.mrb[76].mxu0  ;;  %v4589_v55 = vpop.f32.mrb[76].mxu1 }
 0x176   :  { %v4101_v56 = vpack.c.bf16 %v3299_v44, %v3298_v22  ;;  %v4181_v57 = vpack.c.bf16 %v3331_v45, %v3330_v23  ;;  %v2715_v58 = vadd.f32 %v5612_v41, %v2452_v46  ;;  %v2843_v59 = vadd.f32 %v5612_v41, %v2580_v47  ;;  %v1653_v60 = vpop.f32.mrb[77].mxu0  ;;  %v2165_v61 = vpop.f32.mrb[77].mxu1 }
 0x177   :  { %v2457_v0 = vmul.f32 %v5602_v30, %v4461_v54  ;;  %v2585_v62 = vmul.f32 %v5602_v30, %v4589_v55  ;;  %v2455_v2 = vmul.f32 %v5602_v30, %v1653_v60  ;;  %v2583_v63 = vmul.f32 %v5602_v30, %v2165_v61  ;;  %v4462_v1 = vpop.f32.mrb[78].mxu0  ;;  %v4590_v3 = vpop.f32.mrb[78].mxu1 }
 0x178   :  { %4225 = vst [vmem:[%s6064_s4 + $0x40] sm:$0xff] %v4101_v56   ;;  %4241 = vst [vmem:[%s6064_s4 + $0xc0] sm:$0xff] %v4181_v57   ;;  %v2971_v4 = vmax.f32 %v2715_v58, 0.0  ;;  %v3099_v5 = vmax.f32 %v2843_v59, 0.0  ;;  %v2458_v6 = vmul.f32 %v5602_v30, %v4462_v1  ;;  %v2586_v7 = vmul.f32 %v5602_v30, %v4590_v3  ;;  %v1656_v8 = vpop.f32.mrb[79].mxu0  ;;  %v2168_v9 = vpop.f32.mrb[79].mxu1 }
 0x179   :  { %v2720_v10 = vadd.f32 %v5612_v41, %v2457_v0  ;;  %v2848_v11 = vadd.f32 %v5612_v41, %v2585_v62  ;;  %v2718_v12 = vadd.f32 %v5612_v41, %v2455_v2  ;;  %v2846_v13 = vadd.f32 %v5612_v41, %v2583_v63 }
 0x17a   :  { %v3173_v16 = vmax.f32 %v2971_v4, %v2973_v52  ;;  %v3205_v14 = vmax.f32 %v3099_v5, %v3101_v53  ;;  %v2721_v18 = vadd.f32 %v5612_v41, %v2458_v6  ;;  %v2849_v15 = vadd.f32 %v5612_v41, %v2586_v7 }
 0x17b   :  { %v2976_v17 = vmax.f32 %v2720_v10, 0.0  ;;  %v3104_v19 = vmax.f32 %v2848_v11, 0.0  ;;  %v2974_v22 = vmax.f32 %v2718_v12, 0.0  ;;  %v3102_v23 = vmax.f32 %v2846_v13, 0.0 }
 0x17c   :  { %v2456_v20 = vmul.f32 %v5602_v30, %v1656_v8  ;;  %v2584_v21 = vmul.f32 %v5602_v30, %v2168_v9  ;;  %v2977_v26 = vmax.f32 %v2721_v18, 0.0  ;;  %v3105_v27 = vmax.f32 %v2849_v15, 0.0 }
 0x17d   :  { %v3236_v24 = vmax.f32 %v2974_v22, %v2976_v17  ;;  %v3268_v25 = vmax.f32 %v3102_v23, %v3104_v19  ;;  %v4465_v28 = vpop.f32.mrb[80].mxu0  ;;  %v4593_v29 = vpop.f32.mrb[80].mxu1 }
 0x17e   :  { %v2719_v34 = vadd.f32 %v5612_v41, %v2456_v20  ;;  %v2847_v31 = vadd.f32 %v5612_v41, %v2584_v21  ;;  %v2461_v33 = vmul.f32 %v5602_v30, %v4465_v28  ;;  %v2589_v35 = vmul.f32 %v5602_v30, %v4593_v29  ;;  %v1669_v32 = vpop.f32.mrb[81].mxu0  ;;  %v2181_v36 = vpop.f32.mrb[81].mxu1 }
 0x17f   :  { %v3300_v37 = vmax.f32 %v5756_v49, %v3236_v24  ;;  %v3332_v38 = vmax.f32 %v5758_v51, %v3268_v25  ;;  %v2459_v50 = vmul.f32 %v5602_v30, %v1669_v32  ;;  %v2587_v39 = vmul.f32 %v5602_v30, %v2181_v36  ;;  %v4466_v48 = vpop.f32.mrb[82].mxu0  ;;  %v4594_v40 = vpop.f32.mrb[82].mxu1 }
 0x180   :  { %v2975_v42 = vmax.f32 %v2719_v34, 0.0  ;;  %v3103_v43 = vmax.f32 %v2847_v31, 0.0  ;;  %v2724_v44 = vadd.f32 %v5612_v41, %v2461_v33  ;;  %v2852_v45 = vadd.f32 %v5612_v41, %v2589_v35  ;;  %v1672_v46 = vpop.f32.mrb[83].mxu0  ;;  %v2184_v47 = vpop.f32.mrb[83].mxu1 }
 0x181   :  { %v2722_v52 = vadd.f32 %v5612_v41, %v2459_v50  ;;  %v2850_v49 = vadd.f32 %v5612_v41, %v2587_v39  ;;  %v2462_v51 = vmul.f32 %v5602_v30, %v4466_v48  ;;  %v2590_v53 = vmul.f32 %v5602_v30, %v4594_v40 }
 0x182   :  { %v3237_v54 = vmax.f32 %v2975_v42, %v2977_v26  ;;  %v3269_v55 = vmax.f32 %v3103_v43, %v3105_v27  ;;  %v2980_v56 = vmax.f32 %v2724_v44, 0.0  ;;  %v3108_v57 = vmax.f32 %v2852_v45, 0.0 }
 0x183   :  { %v2978_v58 = vmax.f32 %v2722_v52, 0.0  ;;  %v3106_v59 = vmax.f32 %v2850_v49, 0.0  ;;  %v2725_v60 = vadd.f32 %v5612_v41, %v2462_v51  ;;  %v2853_v61 = vadd.f32 %v5612_v41, %v2590_v53 }
 0x184   :  { %v3301_v0 = vmax.f32 %v3173_v16, %v3237_v54  ;;  %v3333_v62 = vmax.f32 %v3205_v14, %v3269_v55  ;;  %v2460_v2 = vmul.f32 %v5602_v30, %v1672_v46  ;;  %v2588_v63 = vmul.f32 %v5602_v30, %v2184_v47 }
 0x185   :  { %v5800_v1 = vmax.f32 %v2978_v58, %v2980_v56  ;;  %v5802_v3 = vmax.f32 %v3106_v59, %v3108_v57  ;;  %v2981_v4 = vmax.f32 %v2725_v60, 0.0  ;;  %v3109_v5 = vmax.f32 %v2853_v61, 0.0  ;;  %v4469_v6 = vpop.f32.mrb[84].mxu0  ;;  %v4597_v7 = vpop.f32.mrb[84].mxu1 }
 0x186   :  { %v4106_v8 = vpack.c.bf16 %v3301_v0, %v3300_v37  ;;  %v4186_v9 = vpack.c.bf16 %v3333_v62, %v3332_v38  ;;  %v2723_v10 = vadd.f32 %v5612_v41, %v2460_v2  ;;  %v2851_v11 = vadd.f32 %v5612_v41, %v2588_v63  ;;  %v1685_v12 = vpop.f32.mrb[85].mxu0  ;;  %v2197_v13 = vpop.f32.mrb[85].mxu1 }
 0x187   :  { %v2465_v16 = vmul.f32 %v5602_v30, %v4469_v6  ;;  %v2593_v14 = vmul.f32 %v5602_v30, %v4597_v7  ;;  %v2463_v18 = vmul.f32 %v5602_v30, %v1685_v12  ;;  %v2591_v15 = vmul.f32 %v5602_v30, %v2197_v13  ;;  %v4470_v17 = vpop.f32.mrb[86].mxu0  ;;  %v4598_v19 = vpop.f32.mrb[86].mxu1 }
 0x188   :  { %4226 = vst [vmem:[%s6064_s4 + $0x48] sm:$0xff] %v4106_v8   ;;  %4242 = vst [vmem:[%s6064_s4 + $0xc8] sm:$0xff] %v4186_v9   ;;  %v2979_v22 = vmax.f32 %v2723_v10, 0.0  ;;  %v3107_v23 = vmax.f32 %v2851_v11, 0.0  ;;  %v2466_v20 = vmul.f32 %v5602_v30, %v4470_v17  ;;  %v2594_v21 = vmul.f32 %v5602_v30, %v4598_v19  ;;  %v1688_v24 = vpop.f32.mrb[87].mxu0  ;;  %v2200_v25 = vpop.f32.mrb[87].mxu1 }
 0x189   :  { %v2728_v26 = vadd.f32 %v5612_v41, %v2465_v16  ;;  %v2856_v27 = vadd.f32 %v5612_v41, %v2593_v14  ;;  %v2726_v28 = vadd.f32 %v5612_v41, %v2463_v18  ;;  %v2854_v29 = vadd.f32 %v5612_v41, %v2591_v15 }
 0x18a   :  { %v3175_v34 = vmax.f32 %v2979_v22, %v2981_v4  ;;  %v3207_v31 = vmax.f32 %v3107_v23, %v3109_v5  ;;  %v2729_v33 = vadd.f32 %v5612_v41, %v2466_v20  ;;  %v2857_v35 = vadd.f32 %v5612_v41, %v2594_v21 }
 0x18b   :  { %v2984_v32 = vmax.f32 %v2728_v26, 0.0  ;;  %v3112_v36 = vmax.f32 %v2856_v27, 0.0  ;;  %v2982_v37 = vmax.f32 %v2726_v28, 0.0  ;;  %v3110_v38 = vmax.f32 %v2854_v29, 0.0 }
 0x18c   :  { %v2464_v50 = vmul.f32 %v5602_v30, %v1688_v24  ;;  %v2592_v39 = vmul.f32 %v5602_v30, %v2200_v25  ;;  %v2985_v42 = vmax.f32 %v2729_v33, 0.0  ;;  %v3113_v43 = vmax.f32 %v2857_v35, 0.0 }
 0x18d   :  { %v3238_v48 = vmax.f32 %v2982_v37, %v2984_v32  ;;  %v3270_v40 = vmax.f32 %v3110_v38, %v3112_v36  ;;  %v4473_v44 = vpop.f32.mrb[88].mxu0  ;;  %v4601_v45 = vpop.f32.mrb[88].mxu1 }
 0x18e   :  { %v2727_v46 = vadd.f32 %v5612_v41, %v2464_v50  ;;  %v2855_v47 = vadd.f32 %v5612_v41, %v2592_v39  ;;  %v2469_v52 = vmul.f32 %v5602_v30, %v4473_v44  ;;  %v2597_v49 = vmul.f32 %v5602_v30, %v4601_v45  ;;  %v1701_v51 = vpop.f32.mrb[89].mxu0  ;;  %v2213_v53 = vpop.f32.mrb[89].mxu1 }
 0x18f   :  { %v3302_v54 = vmax.f32 %v5800_v1, %v3238_v48  ;;  %v3334_v55 = vmax.f32 %v5802_v3, %v3270_v40  ;;  %v2467_v56 = vmul.f32 %v5602_v30, %v1701_v51  ;;  %v2595_v57 = vmul.f32 %v5602_v30, %v2213_v53  ;;  %v4474_v58 = vpop.f32.mrb[90].mxu0  ;;  %v4602_v59 = vpop.f32.mrb[90].mxu1 }
 0x190   :  { %v2983_v60 = vmax.f32 %v2727_v46, 0.0  ;;  %v3111_v61 = vmax.f32 %v2855_v47, 0.0  ;;  %v2732_v0 = vadd.f32 %v5612_v41, %v2469_v52  ;;  %v2860_v62 = vadd.f32 %v5612_v41, %v2597_v49  ;;  %v1704_v2 = vpop.f32.mrb[91].mxu0  ;;  %v2216_v63 = vpop.f32.mrb[91].mxu1 }
 0x191   :  { %v2730_v4 = vadd.f32 %v5612_v41, %v2467_v56  ;;  %v2858_v1 = vadd.f32 %v5612_v41, %v2595_v57  ;;  %v2470_v3 = vmul.f32 %v5602_v30, %v4474_v58  ;;  %v2598_v5 = vmul.f32 %v5602_v30, %v4602_v59 }
 0x192   :  { %v3239_v6 = vmax.f32 %v2983_v60, %v2985_v42  ;;  %v3271_v7 = vmax.f32 %v3111_v61, %v3113_v43  ;;  %v2988_v8 = vmax.f32 %v2732_v0, 0.0  ;;  %v3116_v9 = vmax.f32 %v2860_v62, 0.0 }
 0x193   :  { %v2986_v10 = vmax.f32 %v2730_v4, 0.0  ;;  %v3114_v11 = vmax.f32 %v2858_v1, 0.0  ;;  %v2733_v12 = vadd.f32 %v5612_v41, %v2470_v3  ;;  %v2861_v13 = vadd.f32 %v5612_v41, %v2598_v5 }
 0x194   :  { %v3303_v16 = vmax.f32 %v3175_v34, %v3239_v6  ;;  %v3335_v14 = vmax.f32 %v3207_v31, %v3271_v7  ;;  %v2468_v18 = vmul.f32 %v5602_v30, %v1704_v2  ;;  %v2596_v15 = vmul.f32 %v5602_v30, %v2216_v63 }
 0x195   :  { %v5844_v17 = vmax.f32 %v2986_v10, %v2988_v8  ;;  %v5846_v19 = vmax.f32 %v3114_v11, %v3116_v9  ;;  %v2989_v22 = vmax.f32 %v2733_v12, 0.0  ;;  %v3117_v23 = vmax.f32 %v2861_v13, 0.0  ;;  %v4477_v20 = vpop.f32.mrb[92].mxu0  ;;  %v4605_v21 = vpop.f32.mrb[92].mxu1 }
 0x196   :  { %v4111_v24 = vpack.c.bf16 %v3303_v16, %v3302_v54  ;;  %v4191_v25 = vpack.c.bf16 %v3335_v14, %v3334_v55  ;;  %v2731_v26 = vadd.f32 %v5612_v41, %v2468_v18  ;;  %v2859_v27 = vadd.f32 %v5612_v41, %v2596_v15  ;;  %v1717_v28 = vpop.f32.mrb[93].mxu0  ;;  %v2229_v29 = vpop.f32.mrb[93].mxu1 }
 0x197   :  { %v2473_v34 = vmul.f32 %v5602_v30, %v4477_v20  ;;  %v2601_v31 = vmul.f32 %v5602_v30, %v4605_v21  ;;  %v2471_v33 = vmul.f32 %v5602_v30, %v1717_v28  ;;  %v2599_v35 = vmul.f32 %v5602_v30, %v2229_v29  ;;  %v4478_v32 = vpop.f32.mrb[94].mxu0  ;;  %v4606_v36 = vpop.f32.mrb[94].mxu1 }
 0x198   :  { %4227 = vst [vmem:[%s6064_s4 + $0x50] sm:$0xff] %v4111_v24   ;;  %4243 = vst [vmem:[%s6064_s4 + $0xd0] sm:$0xff] %v4191_v25   ;;  %v2987_v37 = vmax.f32 %v2731_v26, 0.0  ;;  %v3115_v38 = vmax.f32 %v2859_v27, 0.0  ;;  %v2474_v50 = vmul.f32 %v5602_v30, %v4478_v32  ;;  %v2602_v39 = vmul.f32 %v5602_v30, %v4606_v36  ;;  %v1720_v48 = vpop.f32.mrb[95].mxu0  ;;  %v2232_v40 = vpop.f32.mrb[95].mxu1 }
 0x199   :  { %v2736_v42 = vadd.f32 %v5612_v41, %v2473_v34  ;;  %v2864_v43 = vadd.f32 %v5612_v41, %v2601_v31  ;;  %v2734_v44 = vadd.f32 %v5612_v41, %v2471_v33  ;;  %v2862_v45 = vadd.f32 %v5612_v41, %v2599_v35 }
 0x19a   :  { %v3177_v46 = vmax.f32 %v2987_v37, %v2989_v22  ;;  %v3209_v47 = vmax.f32 %v3115_v38, %v3117_v23  ;;  %v2737_v52 = vadd.f32 %v5612_v41, %v2474_v50  ;;  %v2865_v49 = vadd.f32 %v5612_v41, %v2602_v39 }
 0x19b   :  { %v2992_v51 = vmax.f32 %v2736_v42, 0.0  ;;  %v3120_v53 = vmax.f32 %v2864_v43, 0.0  ;;  %v2990_v54 = vmax.f32 %v2734_v44, 0.0  ;;  %v3118_v55 = vmax.f32 %v2862_v45, 0.0 }
 0x19c   :  { %v2472_v56 = vmul.f32 %v5602_v30, %v1720_v48  ;;  %v2600_v57 = vmul.f32 %v5602_v30, %v2232_v40  ;;  %v2993_v60 = vmax.f32 %v2737_v52, 0.0  ;;  %v3121_v61 = vmax.f32 %v2865_v49, 0.0 }
 0x19d   :  { %v3240_v58 = vmax.f32 %v2990_v54, %v2992_v51  ;;  %v3272_v59 = vmax.f32 %v3118_v55, %v3120_v53  ;;  %v4481_v0 = vpop.f32.mrb[96].mxu0  ;;  %v4609_v62 = vpop.f32.mrb[96].mxu1 }
 0x19e   :  { %v2735_v2 = vadd.f32 %v5612_v41, %v2472_v56  ;;  %v2863_v63 = vadd.f32 %v5612_v41, %v2600_v57  ;;  %v2477_v4 = vmul.f32 %v5602_v30, %v4481_v0  ;;  %v2605_v1 = vmul.f32 %v5602_v30, %v4609_v62  ;;  %v1733_v3 = vpop.f32.mrb[97].mxu0  ;;  %v2245_v5 = vpop.f32.mrb[97].mxu1 }
 0x19f   :  { %v3304_v6 = vmax.f32 %v5844_v17, %v3240_v58  ;;  %v3336_v7 = vmax.f32 %v5846_v19, %v3272_v59  ;;  %v2475_v8 = vmul.f32 %v5602_v30, %v1733_v3  ;;  %v2603_v9 = vmul.f32 %v5602_v30, %v2245_v5  ;;  %v4482_v10 = vpop.f32.mrb[98].mxu0  ;;  %v4610_v11 = vpop.f32.mrb[98].mxu1  ;;  %v5914_v59 = vld [vmem:[%s6063_s3] ss:$0 sm:$0xff] }
 0x1a0   :  { %v2991_v12 = vmax.f32 %v2735_v2, 0.0  ;;  %v3119_v13 = vmax.f32 %v2863_v63, 0.0  ;;  %v2740_v16 = vadd.f32 %v5612_v41, %v2477_v4  ;;  %v2868_v14 = vadd.f32 %v5612_v41, %v2605_v1  ;;  %v1736_v18 = vpop.f32.mrb[99].mxu0  ;;  %v2248_v15 = vpop.f32.mrb[99].mxu1 }
 0x1a1   :  { %v2738_v22 = vadd.f32 %v5612_v41, %v2475_v8  ;;  %v2866_v17 = vadd.f32 %v5612_v41, %v2603_v9  ;;  %v2478_v19 = vmul.f32 %v5602_v30, %v4482_v10  ;;  %v2606_v23 = vmul.f32 %v5602_v30, %v4610_v11 }
 0x1a2   :  { %v3241_v20 = vmax.f32 %v2991_v12, %v2993_v60  ;;  %v3273_v21 = vmax.f32 %v3119_v13, %v3121_v61  ;;  %v2996_v24 = vmax.f32 %v2740_v16, 0.0  ;;  %v3124_v25 = vmax.f32 %v2868_v14, 0.0 }
 0x1a3   :  { %v2994_v26 = vmax.f32 %v2738_v22, 0.0  ;;  %v3122_v27 = vmax.f32 %v2866_v17, 0.0  ;;  %v2741_v28 = vadd.f32 %v5612_v41, %v2478_v19  ;;  %v2869_v29 = vadd.f32 %v5612_v41, %v2606_v23 }
 0x1a4   :  { %v3305_v34 = vmax.f32 %v3177_v46, %v3241_v20  ;;  %v3337_v31 = vmax.f32 %v3209_v47, %v3273_v21  ;;  %v2476_v33 = vmul.f32 %v5602_v30, %v1736_v18  ;;  %v2604_v35 = vmul.f32 %v5602_v30, %v2248_v15  ;;  %v5897_v30 = vld [vmem:[%s6062_s2] ss:$0 sm:$0xff] }
 0x1a5   :  { %v5888_v32 = vmax.f32 %v2994_v26, %v2996_v24  ;;  %v5890_v36 = vmax.f32 %v3122_v27, %v3124_v25  ;;  %v2997_v37 = vmax.f32 %v2741_v28, 0.0  ;;  %v3125_v38 = vmax.f32 %v2869_v29, 0.0  ;;  %v4485_v50 = vpop.f32.mrb[100].mxu0  ;;  %v4613_v39 = vpop.f32.mrb[100].mxu1 }
 0x1a6   :  { %v4116_v48 = vpack.c.bf16 %v3305_v34, %v3304_v6  ;;  %v4196_v40 = vpack.c.bf16 %v3337_v31, %v3336_v7  ;;  %v2739_v42 = vadd.f32 %v5612_v41, %v2476_v33  ;;  %v2867_v43 = vadd.f32 %v5612_v41, %v2604_v35  ;;  %v1749_v44 = vpop.f32.mrb[101].mxu0  ;;  %v2261_v45 = vpop.f32.mrb[101].mxu1 }
 0x1a7   :  { %v2481_v46 = vmul.f32 %v5897_v30, %v4485_v50  ;;  %v2609_v47 = vmul.f32 %v5897_v30, %v4613_v39  ;;  %v2479_v52 = vmul.f32 %v5897_v30, %v1749_v44  ;;  %v2607_v49 = vmul.f32 %v5897_v30, %v2261_v45  ;;  %v4486_v51 = vpop.f32.mrb[102].mxu0  ;;  %v4614_v53 = vpop.f32.mrb[102].mxu1 }
 0x1a8   :  { %4228 = vst [vmem:[%s6064_s4 + $0x58] sm:$0xff] %v4116_v48   ;;  %4244 = vst [vmem:[%s6064_s4 + $0xd8] sm:$0xff] %v4196_v40   ;;  %v2995_v41 = vmax.f32 %v2739_v42, 0.0  ;;  %v3123_v54 = vmax.f32 %v2867_v43, 0.0  ;;  %v2482_v55 = vmul.f32 %v5897_v30, %v4486_v51  ;;  %v2610_v56 = vmul.f32 %v5897_v30, %v4614_v53  ;;  %v1752_v57 = vpop.f32.mrb[103].mxu0  ;;  %v2264_v58 = vpop.f32.mrb[103].mxu1 }
 0x1a9   :  { %v2744_v60 = vadd.f32 %v5914_v59, %v2481_v46  ;;  %v2872_v61 = vadd.f32 %v5914_v59, %v2609_v47  ;;  %v2742_v0 = vadd.f32 %v5914_v59, %v2479_v52  ;;  %v2870_v62 = vadd.f32 %v5914_v59, %v2607_v49 }
 0x1aa   :  { %v3179_v2 = vmax.f32 %v2995_v41, %v2997_v37  ;;  %v3211_v63 = vmax.f32 %v3123_v54, %v3125_v38  ;;  %v2745_v4 = vadd.f32 %v5914_v59, %v2482_v55  ;;  %v2873_v1 = vadd.f32 %v5914_v59, %v2610_v56 }
 0x1ab   :  { %v3000_v3 = vmax.f32 %v2744_v60, 0.0  ;;  %v3128_v5 = vmax.f32 %v2872_v61, 0.0  ;;  %v2998_v6 = vmax.f32 %v2742_v0, 0.0  ;;  %v3126_v7 = vmax.f32 %v2870_v62, 0.0 }
 0x1ac   :  { %v2480_v8 = vmul.f32 %v5897_v30, %v1752_v57  ;;  %v2608_v9 = vmul.f32 %v5897_v30, %v2264_v58  ;;  %v3001_v12 = vmax.f32 %v2745_v4, 0.0  ;;  %v3129_v13 = vmax.f32 %v2873_v1, 0.0 }
 0x1ad   :  { %v3242_v10 = vmax.f32 %v2998_v6, %v3000_v3  ;;  %v3274_v11 = vmax.f32 %v3126_v7, %v3128_v5  ;;  %v4489_v16 = vpop.f32.mrb[104].mxu0  ;;  %v4617_v14 = vpop.f32.mrb[104].mxu1 }
 0x1ae   :  { %v2743_v18 = vadd.f32 %v5914_v59, %v2480_v8  ;;  %v2871_v15 = vadd.f32 %v5914_v59, %v2608_v9  ;;  %v2485_v22 = vmul.f32 %v5897_v30, %v4489_v16  ;;  %v2613_v17 = vmul.f32 %v5897_v30, %v4617_v14  ;;  %v1765_v19 = vpop.f32.mrb[105].mxu0  ;;  %v2277_v23 = vpop.f32.mrb[105].mxu1 }
 0x1af   :  { %v3306_v20 = vmax.f32 %v5888_v32, %v3242_v10  ;;  %v3338_v21 = vmax.f32 %v5890_v36, %v3274_v11  ;;  %v2483_v24 = vmul.f32 %v5897_v30, %v1765_v19  ;;  %v2611_v25 = vmul.f32 %v5897_v30, %v2277_v23  ;;  %v4490_v26 = vpop.f32.mrb[106].mxu0  ;;  %v4618_v27 = vpop.f32.mrb[106].mxu1 }
 0x1b0   :  { %v2999_v28 = vmax.f32 %v2743_v18, 0.0  ;;  %v3127_v29 = vmax.f32 %v2871_v15, 0.0  ;;  %v2748_v34 = vadd.f32 %v5914_v59, %v2485_v22  ;;  %v2876_v31 = vadd.f32 %v5914_v59, %v2613_v17  ;;  %v1768_v33 = vpop.f32.mrb[107].mxu0  ;;  %v2280_v35 = vpop.f32.mrb[107].mxu1 }
 0x1b1   :  { %v2746_v37 = vadd.f32 %v5914_v59, %v2483_v24  ;;  %v2874_v32 = vadd.f32 %v5914_v59, %v2611_v25  ;;  %v2486_v36 = vmul.f32 %v5897_v30, %v4490_v26  ;;  %v2614_v38 = vmul.f32 %v5897_v30, %v4618_v27 }
 0x1b2   :  { %v3243_v50 = vmax.f32 %v2999_v28, %v3001_v12  ;;  %v3275_v39 = vmax.f32 %v3127_v29, %v3129_v13  ;;  %v3004_v48 = vmax.f32 %v2748_v34, 0.0  ;;  %v3132_v40 = vmax.f32 %v2876_v31, 0.0 }
 0x1b3   :  { %v3002_v42 = vmax.f32 %v2746_v37, 0.0  ;;  %v3130_v43 = vmax.f32 %v2874_v32, 0.0  ;;  %v2749_v44 = vadd.f32 %v5914_v59, %v2486_v36  ;;  %v2877_v45 = vadd.f32 %v5914_v59, %v2614_v38 }
 0x1b4   :  { %v3307_v46 = vmax.f32 %v3179_v2, %v3243_v50  ;;  %v3339_v47 = vmax.f32 %v3211_v63, %v3275_v39  ;;  %v2484_v52 = vmul.f32 %v5897_v30, %v1768_v33  ;;  %v2612_v49 = vmul.f32 %v5897_v30, %v2280_v35 }
 0x1b5   :  { %v5942_v51 = vmax.f32 %v3002_v42, %v3004_v48  ;;  %v5944_v53 = vmax.f32 %v3130_v43, %v3132_v40  ;;  %v3005_v41 = vmax.f32 %v2749_v44, 0.0  ;;  %v3133_v54 = vmax.f32 %v2877_v45, 0.0  ;;  %v4493_v55 = vpop.f32.mrb[108].mxu0  ;;  %v4621_v56 = vpop.f32.mrb[108].mxu1 }
 0x1b6   :  { %v4121_v57 = vpack.c.bf16 %v3307_v46, %v3306_v20  ;;  %v4201_v58 = vpack.c.bf16 %v3339_v47, %v3338_v21  ;;  %v2747_v60 = vadd.f32 %v5914_v59, %v2484_v52  ;;  %v2875_v61 = vadd.f32 %v5914_v59, %v2612_v49  ;;  %v1781_v0 = vpop.f32.mrb[109].mxu0  ;;  %v2293_v62 = vpop.f32.mrb[109].mxu1 }
 0x1b7   :  { %v2489_v2 = vmul.f32 %v5897_v30, %v4493_v55  ;;  %v2617_v63 = vmul.f32 %v5897_v30, %v4621_v56  ;;  %v2487_v4 = vmul.f32 %v5897_v30, %v1781_v0  ;;  %v2615_v1 = vmul.f32 %v5897_v30, %v2293_v62  ;;  %v4494_v3 = vpop.f32.mrb[110].mxu0  ;;  %v4622_v5 = vpop.f32.mrb[110].mxu1 }
 0x1b8   :  { %4229 = vst [vmem:[%s6064_s4 + $0x60] sm:$0xff] %v4121_v57   ;;  %4245 = vst [vmem:[%s6064_s4 + $0xe0] sm:$0xff] %v4201_v58   ;;  %v3003_v6 = vmax.f32 %v2747_v60, 0.0  ;;  %v3131_v7 = vmax.f32 %v2875_v61, 0.0  ;;  %v2490_v8 = vmul.f32 %v5897_v30, %v4494_v3  ;;  %v2618_v9 = vmul.f32 %v5897_v30, %v4622_v5  ;;  %v1784_v10 = vpop.f32.mrb[111].mxu0  ;;  %v2296_v11 = vpop.f32.mrb[111].mxu1 }
 0x1b9   :  { %v2752_v12 = vadd.f32 %v5914_v59, %v2489_v2  ;;  %v2880_v13 = vadd.f32 %v5914_v59, %v2617_v63  ;;  %v2750_v16 = vadd.f32 %v5914_v59, %v2487_v4  ;;  %v2878_v14 = vadd.f32 %v5914_v59, %v2615_v1 }
 0x1ba   :  { %v3181_v18 = vmax.f32 %v3003_v6, %v3005_v41  ;;  %v3213_v15 = vmax.f32 %v3131_v7, %v3133_v54  ;;  %v2753_v22 = vadd.f32 %v5914_v59, %v2490_v8  ;;  %v2881_v17 = vadd.f32 %v5914_v59, %v2618_v9 }
 0x1bb   :  { %v3008_v19 = vmax.f32 %v2752_v12, 0.0  ;;  %v3136_v23 = vmax.f32 %v2880_v13, 0.0  ;;  %v3006_v20 = vmax.f32 %v2750_v16, 0.0  ;;  %v3134_v21 = vmax.f32 %v2878_v14, 0.0 }
 0x1bc   :  { %v2488_v24 = vmul.f32 %v5897_v30, %v1784_v10  ;;  %v2616_v25 = vmul.f32 %v5897_v30, %v2296_v11  ;;  %v3009_v28 = vmax.f32 %v2753_v22, 0.0  ;;  %v3137_v29 = vmax.f32 %v2881_v17, 0.0 }
 0x1bd   :  { %v3244_v26 = vmax.f32 %v3006_v20, %v3008_v19  ;;  %v3276_v27 = vmax.f32 %v3134_v21, %v3136_v23  ;;  %v4497_v34 = vpop.f32.mrb[112].mxu0  ;;  %v4625_v31 = vpop.f32.mrb[112].mxu1 }
 0x1be   :  { %v2751_v33 = vadd.f32 %v5914_v59, %v2488_v24  ;;  %v2879_v35 = vadd.f32 %v5914_v59, %v2616_v25  ;;  %v2493_v37 = vmul.f32 %v5897_v30, %v4497_v34  ;;  %v2621_v32 = vmul.f32 %v5897_v30, %v4625_v31  ;;  %v1797_v36 = vpop.f32.mrb[113].mxu0  ;;  %v2309_v38 = vpop.f32.mrb[113].mxu1 }
 0x1bf   :  { %v3308_v50 = vmax.f32 %v5942_v51, %v3244_v26  ;;  %v3340_v39 = vmax.f32 %v5944_v53, %v3276_v27  ;;  %v2491_v48 = vmul.f32 %v5897_v30, %v1797_v36  ;;  %v2619_v40 = vmul.f32 %v5897_v30, %v2309_v38  ;;  %v4498_v42 = vpop.f32.mrb[114].mxu0  ;;  %v4626_v43 = vpop.f32.mrb[114].mxu1 }
 0x1c0   :  { %v3007_v44 = vmax.f32 %v2751_v33, 0.0  ;;  %v3135_v45 = vmax.f32 %v2879_v35, 0.0  ;;  %v2756_v46 = vadd.f32 %v5914_v59, %v2493_v37  ;;  %v2884_v47 = vadd.f32 %v5914_v59, %v2621_v32  ;;  %v1800_v52 = vpop.f32.mrb[115].mxu0  ;;  %v2312_v49 = vpop.f32.mrb[115].mxu1 }
 0x1c1   :  { %v2754_v41 = vadd.f32 %v5914_v59, %v2491_v48  ;;  %v2882_v51 = vadd.f32 %v5914_v59, %v2619_v40  ;;  %v2494_v53 = vmul.f32 %v5897_v30, %v4498_v42  ;;  %v2622_v54 = vmul.f32 %v5897_v30, %v4626_v43 }
 0x1c2   :  { %v3245_v55 = vmax.f32 %v3007_v44, %v3009_v28  ;;  %v3277_v56 = vmax.f32 %v3135_v45, %v3137_v29  ;;  %v3012_v57 = vmax.f32 %v2756_v46, 0.0  ;;  %v3140_v58 = vmax.f32 %v2884_v47, 0.0 }
 0x1c3   :  { %v3010_v60 = vmax.f32 %v2754_v41, 0.0  ;;  %v3138_v61 = vmax.f32 %v2882_v51, 0.0  ;;  %v2757_v0 = vadd.f32 %v5914_v59, %v2494_v53  ;;  %v2885_v62 = vadd.f32 %v5914_v59, %v2622_v54 }
 0x1c4   :  { %v3309_v2 = vmax.f32 %v3181_v18, %v3245_v55  ;;  %v3341_v63 = vmax.f32 %v3213_v15, %v3277_v56  ;;  %v2492_v4 = vmul.f32 %v5897_v30, %v1800_v52  ;;  %v2620_v1 = vmul.f32 %v5897_v30, %v2312_v49 }
 0x1c5   :  { %v5986_v3 = vmax.f32 %v3010_v60, %v3012_v57  ;;  %v5988_v5 = vmax.f32 %v3138_v61, %v3140_v58  ;;  %v3013_v6 = vmax.f32 %v2757_v0, 0.0  ;;  %v3141_v7 = vmax.f32 %v2885_v62, 0.0  ;;  %v4501_v8 = vpop.f32.mrb[116].mxu0  ;;  %v4629_v9 = vpop.f32.mrb[116].mxu1 }
 0x1c6   :  { %v4126_v10 = vpack.c.bf16 %v3309_v2, %v3308_v50  ;;  %v4206_v11 = vpack.c.bf16 %v3341_v63, %v3340_v39  ;;  %v2755_v12 = vadd.f32 %v5914_v59, %v2492_v4  ;;  %v2883_v13 = vadd.f32 %v5914_v59, %v2620_v1  ;;  %v1813_v16 = vpop.f32.mrb[117].mxu0  ;;  %v2325_v14 = vpop.f32.mrb[117].mxu1 }
 0x1c7   :  { %v2497_v18 = vmul.f32 %v5897_v30, %v4501_v8  ;;  %v2625_v15 = vmul.f32 %v5897_v30, %v4629_v9  ;;  %v2495_v22 = vmul.f32 %v5897_v30, %v1813_v16  ;;  %v2623_v17 = vmul.f32 %v5897_v30, %v2325_v14  ;;  %v4502_v19 = vpop.f32.mrb[118].mxu0  ;;  %v4630_v23 = vpop.f32.mrb[118].mxu1 }
 0x1c8   :  { %4230 = vst [vmem:[%s6064_s4 + $0x68] sm:$0xff] %v4126_v10   ;;  %4246 = vst [vmem:[%s6064_s4 + $0xe8] sm:$0xff] %v4206_v11   ;;  %v3011_v20 = vmax.f32 %v2755_v12, 0.0  ;;  %v3139_v21 = vmax.f32 %v2883_v13, 0.0  ;;  %v2498_v24 = vmul.f32 %v5897_v30, %v4502_v19  ;;  %v2626_v25 = vmul.f32 %v5897_v30, %v4630_v23  ;;  %v1816_v26 = vpop.f32.mrb[119].mxu0  ;;  %v2328_v27 = vpop.f32.mrb[119].mxu1 }
 0x1c9   :  { %v2760_v28 = vadd.f32 %v5914_v59, %v2497_v18  ;;  %v2888_v29 = vadd.f32 %v5914_v59, %v2625_v15  ;;  %v2758_v34 = vadd.f32 %v5914_v59, %v2495_v22  ;;  %v2886_v31 = vadd.f32 %v5914_v59, %v2623_v17 }
 0x1ca   :  { %v3183_v33 = vmax.f32 %v3011_v20, %v3013_v6  ;;  %v3215_v35 = vmax.f32 %v3139_v21, %v3141_v7  ;;  %v2761_v37 = vadd.f32 %v5914_v59, %v2498_v24  ;;  %v2889_v32 = vadd.f32 %v5914_v59, %v2626_v25 }
 0x1cb   :  { %v3016_v36 = vmax.f32 %v2760_v28, 0.0  ;;  %v3144_v38 = vmax.f32 %v2888_v29, 0.0  ;;  %v3014_v50 = vmax.f32 %v2758_v34, 0.0  ;;  %v3142_v39 = vmax.f32 %v2886_v31, 0.0 }
 0x1cc   :  { %v2496_v48 = vmul.f32 %v5897_v30, %v1816_v26  ;;  %v2624_v40 = vmul.f32 %v5897_v30, %v2328_v27  ;;  %v3017_v44 = vmax.f32 %v2761_v37, 0.0  ;;  %v3145_v46 = vmax.f32 %v2889_v32, 0.0 }
 0x1cd   :  { %v3246_v42 = vmax.f32 %v3014_v50, %v3016_v36  ;;  %v3278_v43 = vmax.f32 %v3142_v39, %v3144_v38  ;;  %v4505_v45 = vpop.f32.mrb[120].mxu0 }
 0x1ce   :  { %v2759_v47 = vadd.f32 %v5914_v59, %v2496_v48  ;;  %v2887_v52 = vadd.f32 %v5914_v59, %v2624_v40  ;;  %v2501_v49 = vmul.f32 %v5897_v30, %v4505_v45  ;;  %v4633_v41 = vpop.f32.mrb[120].mxu1  ;;  %v1829_v51 = vpop.f32.mrb[121].mxu0 }
 0x1cf   :  { %v3310_v53 = vmax.f32 %v5986_v3, %v3246_v42  ;;  %v3342_v54 = vmax.f32 %v5988_v5, %v3278_v43  ;;  %v2629_v55 = vmul.f32 %v5897_v30, %v4633_v41  ;;  %v2499_v56 = vmul.f32 %v5897_v30, %v1829_v51  ;;  %v2341_v57 = vpop.f32.mrb[121].mxu1  ;;  %v4506_v58 = vpop.f32.mrb[122].mxu0 }
 0x1d0   :  { %v3015_v60 = vmax.f32 %v2759_v47, 0.0  ;;  %v3143_v61 = vmax.f32 %v2887_v52, 0.0  ;;  %v2764_v0 = vadd.f32 %v5914_v59, %v2501_v49  ;;  %v2627_v62 = vmul.f32 %v5897_v30, %v2341_v57  ;;  %v4634_v2 = vpop.f32.mrb[122].mxu1  ;;  %v1832_v63 = vpop.f32.mrb[123].mxu0 }
 0x1d1   :  { %v2892_v4 = vadd.f32 %v5914_v59, %v2629_v55  ;;  %v2762_v1 = vadd.f32 %v5914_v59, %v2499_v56  ;;  %v2502_v3 = vmul.f32 %v5897_v30, %v4506_v58  ;;  %v2630_v5 = vmul.f32 %v5897_v30, %v4634_v2  ;;  %v2344_v6 = vpop.f32.mrb[123].mxu1 }
 0x1d2   :  { %v3247_v7 = vmax.f32 %v3015_v60, %v3017_v44  ;;  %v3279_v8 = vmax.f32 %v3143_v61, %v3145_v46  ;;  %v3020_v9 = vmax.f32 %v2764_v0, 0.0  ;;  %v2890_v10 = vadd.f32 %v5914_v59, %v2627_v62 }
 0x1d3   :  { %v3148_v11 = vmax.f32 %v2892_v4, 0.0  ;;  %v3018_v12 = vmax.f32 %v2762_v1, 0.0  ;;  %v2765_v13 = vadd.f32 %v5914_v59, %v2502_v3  ;;  %v2893_v16 = vadd.f32 %v5914_v59, %v2630_v5 }
 0x1d4   :  { %v3311_v14 = vmax.f32 %v3183_v33, %v3247_v7  ;;  %v3343_v18 = vmax.f32 %v3215_v35, %v3279_v8  ;;  %v3146_v15 = vmax.f32 %v2890_v10, 0.0  ;;  %v2500_v22 = vmul.f32 %v5897_v30, %v1832_v63 }
 0x1d5   :  { %v3184_v17 = vmax.f32 %v3018_v12, %v3020_v9  ;;  %v3021_v19 = vmax.f32 %v2765_v13, 0.0  ;;  %v3149_v23 = vmax.f32 %v2893_v16, 0.0  ;;  %v2628_v20 = vmul.f32 %v5897_v30, %v2344_v6  ;;  %v4509_v21 = vpop.f32.mrb[124].mxu0 }
 0x1d6   :  { %v4131_v24 = vpack.c.bf16 %v3311_v14, %v3310_v53  ;;  %v4211_v25 = vpack.c.bf16 %v3343_v18, %v3342_v54  ;;  %v3216_v26 = vmax.f32 %v3146_v15, %v3148_v11  ;;  %v2763_v27 = vadd.f32 %v5914_v59, %v2500_v22  ;;  %v4637_v28 = vpop.f32.mrb[124].mxu1  ;;  %v1845_v29 = vpop.f32.mrb[125].mxu0 }
 0x1d7   :  { %v2891_v34 = vadd.f32 %v5914_v59, %v2628_v20  ;;  %v2505_v31 = vmul.f32 %v5897_v30, %v4509_v21  ;;  %v2633_v33 = vmul.f32 %v5897_v30, %v4637_v28  ;;  %v2503_v35 = vmul.f32 %v5897_v30, %v1845_v29  ;;  %v2357_v37 = vpop.f32.mrb[125].mxu1  ;;  %v4510_v32 = vpop.f32.mrb[126].mxu0 }
 0x1d8   :  { %4231 = vst [vmem:[%s6064_s4 + $0x70] sm:$0xff] %v4131_v24   ;;  %4247 = vst [vmem:[%s6064_s4 + $0xf0] sm:$0xff] %v4211_v25   ;;  %v3019_v36 = vmax.f32 %v2763_v27, 0.0  ;;  %v2631_v38 = vmul.f32 %v5897_v30, %v2357_v37  ;;  %v2506_v50 = vmul.f32 %v5897_v30, %v4510_v32  ;;  %v4638_v39 = vpop.f32.mrb[126].mxu1  ;;  %v1848_v48 = vpop.f32.mrb[127].mxu0 }
 0x1d9   :  { %v3147_v40 = vmax.f32 %v2891_v34, 0.0  ;;  %v2768_v42 = vadd.f32 %v5914_v59, %v2505_v31  ;;  %v2896_v43 = vadd.f32 %v5914_v59, %v2633_v33  ;;  %v2766_v44 = vadd.f32 %v5914_v59, %v2503_v35  ;;  %v2360_v45 = vpop.f32.mrb[127].mxu1 }
 0x1da   :  { %v3185_v46 = vmax.f32 %v3019_v36, %v3021_v19  ;;  %v2894_v47 = vadd.f32 %v5914_v59, %v2631_v38  ;;  %v2769_v52 = vadd.f32 %v5914_v59, %v2506_v50  ;;  %v2634_v49 = vmul.f32 %v5897_v30, %v4638_v39 }
 0x1db   :  { %v3217_v41 = vmax.f32 %v3147_v40, %v3149_v23  ;;  %v3024_v51 = vmax.f32 %v2768_v42, 0.0  ;;  %v3152_v53 = vmax.f32 %v2896_v43, 0.0  ;;  %v3022_v54 = vmax.f32 %v2766_v44, 0.0 }
 0x1dc   :  { %v3150_v55 = vmax.f32 %v2894_v47, 0.0  ;;  %v2897_v56 = vadd.f32 %v5914_v59, %v2634_v49  ;;  %v2504_v57 = vmul.f32 %v5897_v30, %v1848_v48  ;;  %v2632_v60 = vmul.f32 %v5897_v30, %v2360_v45 }
 0x1dd   :  { %v3248_v58 = vmax.f32 %v3022_v54, %v3024_v51  ;;  %v3025_v0 = vmax.f32 %v2769_v52, 0.0 }
 0x1de   :  { %v3280_v61 = vmax.f32 %v3150_v55, %v3152_v53  ;;  %v2767_v62 = vadd.f32 %v5914_v59, %v2504_v57  ;;  %v3153_v63 = vmax.f32 %v2897_v56, 0.0  ;;  %v2895_v4 = vadd.f32 %v5914_v59, %v2632_v60 }
 0x1df   :  { %v3312_v2 = vmax.f32 %v3184_v17, %v3248_v58 }
 0x1e0   :  { %v3344_v1 = vmax.f32 %v3216_v26, %v3280_v61  ;;  %v3023_v3 = vmax.f32 %v2767_v62, 0.0  ;;  %v3151_v5 = vmax.f32 %v2895_v4, 0.0 }
 0x1e2   :  { %v3249_v6 = vmax.f32 %v3023_v3, %v3025_v0  ;;  %v3281_v7 = vmax.f32 %v3151_v5, %v3153_v63 }
 0x1e4   :  { %v3313_v8 = vmax.f32 %v3185_v46, %v3249_v6  ;;  %v3345_v9 = vmax.f32 %v3217_v41, %v3281_v7 }
 0x1e6   :  { %v4136_v10 = vpack.c.bf16 %v3313_v8, %v3312_v2  ;;  %v4216_v11 = vpack.c.bf16 %v3345_v9, %v3344_v1 }
 0x1e8   :  { %4232 = vst [vmem:[%s6064_s4 + $0x78] sm:$0xff] %v4136_v10   ;;  %4248 = vst [vmem:[%s6064_s4 + $0xf8] sm:$0xff] %v4216_v11  }

// kernel: lenet5_modified_forward.5
= control target key start
LH: loop header
LB: loop body
LE: loop exit
PB: predicated region body
PF: predicated region fallthrough
CT: control target
= control target key end

     0   :  { %vm356_vm0 = vcmask 523264   ;;  %vm938_vm1 = vcmask 785408   ;;  %s2724_s2 = inlined_call_operand.vmem [shape: bf16[96,128], index: 2, kind: input, shape index: {}]   ;;  %s2725_s3 = inlined_call_operand.vmem [shape: bf16[64,128], index: 3, kind: input, shape index: {}]   ;;  %s2726_s1 = inlined_call_operand.vmem [shape: bf16[2,256,64], index: 1, kind: input, shape index: {}]   ;;  %s2727_s0 = inlined_call_operand.vmem [shape: bf16[2,256,96], index: 0, kind: input, shape index: {}]   ;;  %s2728_s4 = inlined_call_operand.vmem [shape: f32[1,128], index: 4, kind: input, shape index: {}]   ;;  %s2729_s5 = inlined_call_operand.vmem [shape: f32[1,128], index: 5, kind: input, shape index: {}]   ;;  %s2730_s6 = inlined_call_operand.vmem [shape: bf16[2,64,128], index: 6, kind: output, shape index: {}]  }
   0x1   :  { %v2167_v0 = vld [vmem:[%s2724_s2] sm:$0xff]   ;;  %v2168_v1 = vld [vmem:[%s2724_s2 + $0x8] sm:$0xff]   ;;  %v2170_v3 = vld [vmem:[%s2724_s2 + $0x10] sm:$0xff]  }
   0x2   :  { %2027 = vmatprep.subr.bf16.mxu0 %v2167_v0  ;;  %v2169_v2 = vld [vmem:[%s2725_s3] sm:$0xff]   ;;  %v2171_v4 = vld [vmem:[%s2725_s3 + $0x8] sm:$0xff]   ;;  %v2173_v5 = vld [vmem:[%s2725_s3 + $0x10] sm:$0xff]  }
   0x3   :  { %2028 = vmatpush3.bf16.msra.mxu0 %v2167_v0  ;;  %1955 = vmatprep.subr.bf16.mxu1 %v2169_v2  ;;  %v2172_v6 = vld [vmem:[%s2724_s2 + $0x18] sm:$0xff]   ;;  %v2176_v7 = vld [vmem:[%s2726_s1] sm:$0xff]   ;;  %v2177_v11 = vld [vmem:[%s2724_s2 + $0x28] sm:$0xff]  }
   0x4   :  { %2029 = vmatprep.subr.bf16.mxu0 %v2168_v1  ;;  %1956 = vmatpush3.bf16.msra.mxu1 %v2169_v2  ;;  %v2175_v8 = vld [vmem:[%s2725_s3 + $0x18] sm:$0xff]   ;;  %v2174_v9 = vld [vmem:[%s2724_s2 + $0x20] sm:$0xff]   ;;  %v2178_v12 = vld [vmem:[%s2726_s1 + $0x8] sm:$0xff]  }
   0x5   :  { %1957 = vmatprep.subr.bf16.mxu1 %v2171_v4  ;;  %1963 = vmatprep.mubr.msk.bf16.mxu1 %vm356_vm0, %v2176_v7  ;;  %v2179_v10 = vld [vmem:[%s2727_s0] sm:$0xff]   ;;  %v2181_v13 = vld [vmem:[%s2726_s1 + $0x10] sm:$0xff]   ;;  %v2180_v14 = vld [vmem:[%s2727_s0 + $0x8] sm:$0xff]  }
   0x6   :  { %2039 = vmatprep.mubr.msk.bf16.mxu0 %vm938_vm1, %v2179_v10  ;;  %v2183_v15 = vld [vmem:[%s2727_s0 + $0x10] sm:$0xff]   ;;  %v2182_v16 = vld [vmem:[%s2726_s1 + $0x18] sm:$0xff]   ;;  %v2185_v17 = vld [vmem:[%s2726_s1 + $0x20] sm:$0xff]  }
   0x7   :  { %2030 = vmatpush3.bf16.msra.mxu0 %v2168_v1  ;;  %v2184_v18 = vld [vmem:[%s2727_s0 + $0x18] sm:$0xff]   ;;  %v2187_v19 = vld [vmem:[%s2727_s0 + $0x20] sm:$0xff]   ;;  %v2186_v20 = vld [vmem:[%s2726_s1 + $0x28] sm:$0xff]  }
   0x8   :  { %2031 = vmatprep.subr.bf16.mxu0 %v2170_v3  ;;  %1958 = vmatpush3.bf16.msra.mxu1 %v2171_v4  ;;  %v2189_v21 = vld [vmem:[%s2726_s1 + $0x30] sm:$0xff]   ;;  %v2188_v22 = vld [vmem:[%s2727_s0 + $0x28] sm:$0xff]   ;;  %v2190_v24 = vld [vmem:[%s2726_s1 + $0x38] sm:$0xff]  }
   0x9   :  { %1959 = vmatprep.subr.bf16.mxu1 %v2173_v5  ;;  %v2191_v23 = vld [vmem:[%s2727_s0 + $0x30] sm:$0xff]   ;;  %v2193_v25 = vld [vmem:[%s2726_s1 + $0x40] sm:$0xff]   ;;  %v2192_v26 = vld [vmem:[%s2727_s0 + $0x38] sm:$0xff]  }
   0xa   :  { %v2195_v27 = vld [vmem:[%s2727_s0 + $0x40] sm:$0xff]   ;;  %v2194_v28 = vld [vmem:[%s2726_s1 + $0x48] sm:$0xff]   ;;  %v2197_v29 = vld [vmem:[%s2726_s1 + $0x50] sm:$0xff]  }
   0xb   :  { %2032 = vmatpush3.bf16.msra.mxu0 %v2170_v3  ;;  %v2196_v30 = vld [vmem:[%s2727_s0 + $0x48] sm:$0xff]   ;;  %v2199_v31 = vld [vmem:[%s2727_s0 + $0x50] sm:$0xff]   ;;  %v2198_v32 = vld [vmem:[%s2726_s1 + $0x58] sm:$0xff]  }
   0xc   :  { %2033 = vmatprep.subr.bf16.mxu0 %v2172_v6  ;;  %1960 = vmatpush3.bf16.msra.mxu1 %v2173_v5  ;;  %v2201_v33 = vld [vmem:[%s2726_s1 + $0x60] sm:$0xff]   ;;  %v2200_v34 = vld [vmem:[%s2727_s0 + $0x58] sm:$0xff]   ;;  %v2202_v36 = vld [vmem:[%s2726_s1 + $0x68] sm:$0xff]  }
   0xd   :  { %1961 = vmatprep.subr.bf16.mxu1 %v2175_v8  ;;  %v2203_v35 = vld [vmem:[%s2727_s0 + $0x60] sm:$0xff]   ;;  %v2205_v37 = vld [vmem:[%s2726_s1 + $0x70] sm:$0xff]   ;;  %v2204_v38 = vld [vmem:[%s2727_s0 + $0x68] sm:$0xff]  }
   0xe   :  { %v2207_v39 = vld [vmem:[%s2727_s0 + $0x70] sm:$0xff]   ;;  %v2206_v40 = vld [vmem:[%s2726_s1 + $0x78] sm:$0xff]   ;;  %v2209_v41 = vld [vmem:[%s2726_s1 + $0x80] sm:$0xff]  }
   0xf   :  { %2034 = vmatpush3.bf16.msra.mxu0 %v2172_v6  ;;  %v2208_v42 = vld [vmem:[%s2727_s0 + $0x78] sm:$0xff]   ;;  %v2211_v43 = vld [vmem:[%s2727_s0 + $0x80] sm:$0xff]   ;;  %v2210_v44 = vld [vmem:[%s2726_s1 + $0x88] sm:$0xff]  }
  0x10   :  { %2035 = vmatprep.subr.bf16.mxu0 %v2174_v9  ;;  %1962 = vmatpush3.bf16.msra.mxu1 %v2175_v8  ;;  %v2213_v45 = vld [vmem:[%s2726_s1 + $0x90] sm:$0xff]   ;;  %v2212_v46 = vld [vmem:[%s2727_s0 + $0x88] sm:$0xff]   ;;  %v2214_v48 = vld [vmem:[%s2726_s1 + $0x98] sm:$0xff]  }
  0x11   :  { %v2215_v47 = vld [vmem:[%s2727_s0 + $0x90] sm:$0xff]   ;;  %v2217_v49 = vld [vmem:[%s2726_s1 + $0xa0] sm:$0xff]   ;;  %v2216_v50 = vld [vmem:[%s2727_s0 + $0x98] sm:$0xff]  }
  0x12   :  { %v2219_v51 = vld [vmem:[%s2727_s0 + $0xa0] sm:$0xff]   ;;  %v2218_v52 = vld [vmem:[%s2726_s1 + $0xa8] sm:$0xff]   ;;  %v2221_v53 = vld [vmem:[%s2726_s1 + $0xb0] sm:$0xff]  }
  0x13   :  { %2036 = vmatpush3.bf16.msra.mxu0 %v2174_v9  ;;  %1964 = vmatmul.mubr.msk.bf16.vlgmr.msra.gmra.mrb[0].mxu1 %vm356_vm0, %v2178_v12  ;;  %v2220_v54 = vld [vmem:[%s2727_s0 + $0xa8] sm:$0xff]   ;;  %v2223_v55 = vld [vmem:[%s2727_s0 + $0xb0] sm:$0xff]   ;;  %v2222_v56 = vld [vmem:[%s2726_s1 + $0xb8] sm:$0xff]  }
  0x14   :  { %2037 = vmatprep.subr.bf16.mxu0 %v2177_v11  ;;  %1967 = vmatprep.mubr.msk.bf16.mxu1 %vm356_vm0, %v2181_v13  ;;  %v2225_v57 = vld [vmem:[%s2726_s1 + $0xc0] sm:$0xff]   ;;  %v2224_v58 = vld [vmem:[%s2727_s0 + $0xb8] sm:$0xff]   ;;  %v2226_v60 = vld [vmem:[%s2726_s1 + $0xc8] sm:$0xff]  }
  0x15   :  { %v2227_v59 = vld [vmem:[%s2727_s0 + $0xc0] sm:$0xff]   ;;  %v2229_v61 = vld [vmem:[%s2726_s1 + $0xd0] sm:$0xff]   ;;  %v2228_v62 = vld [vmem:[%s2727_s0 + $0xc8] sm:$0xff]  }
  0x16   :  { %v2231_v63 = vld [vmem:[%s2727_s0 + $0xd0] sm:$0xff]   ;;  %v2230_v0 = vld [vmem:[%s2726_s1 + $0xd8] sm:$0xff]   ;;  %v2233_v1 = vld [vmem:[%s2726_s1 + $0xe0] sm:$0xff]  }
  0x17   :  { %2038 = vmatpush3.bf16.msra.mxu0 %v2177_v11  ;;  %v2232_v2 = vld [vmem:[%s2727_s0 + $0xd8] sm:$0xff]   ;;  %v2235_v3 = vld [vmem:[%s2727_s0 + $0xe0] sm:$0xff]   ;;  %v2234_v4 = vld [vmem:[%s2726_s1 + $0xe8] sm:$0xff]  }
  0x18   :  { %v2237_v5 = vld [vmem:[%s2726_s1 + $0xf0] sm:$0xff]   ;;  %v2236_v6 = vld [vmem:[%s2727_s0 + $0xe8] sm:$0xff]   ;;  %v2238_v8 = vld [vmem:[%s2726_s1 + $0xf8] sm:$0xff]  }
  0x19   :  { %v2239_v7 = vld [vmem:[%s2727_s0 + $0xf0] sm:$0xff]   ;;  %v2240_v9 = vld [vmem:[%s2727_s0 + $0xf8] sm:$0xff]  }
  0x1a   :  { %2040 = vmatmul.mubr.msk.bf16.vlgmr.msra.gmra.mrb[0].mxu0 %vm938_vm1, %v2180_v14 }
  0x1b   :  { %2043 = vmatprep.mubr.msk.bf16.mxu0 %vm938_vm1, %v2183_v15  ;;  %1968 = vmatmul.mubr.msk.bf16.gmra.mrb[4].mxu1 %vm356_vm0, %v2182_v16  ;;  %v2565_v15 = vld [vmem:[%s2728_s4] ss:$0 sm:$0xff] }
  0x1c   :  { %1971 = vmatprep.mubr.msk.bf16.mxu1 %vm356_vm0, %v2185_v17 }
  0x22   :  { %2044 = vmatmul.mubr.msk.bf16.gmra.mrb[4].mxu0 %vm938_vm1, %v2184_v18  ;;  %v2570_v18 = vld [vmem:[%s2729_s5] ss:$0 sm:$0xff] }
  0x23   :  { %2047 = vmatprep.mubr.msk.bf16.mxu0 %vm938_vm1, %v2187_v19  ;;  %1972 = vmatmul.mubr.msk.bf16.gmra.mrb[8].mxu1 %vm356_vm0, %v2186_v20 }
  0x24   :  { %1975 = vmatprep.mubr.msk.bf16.mxu1 %vm356_vm0, %v2189_v21 }
  0x2a   :  { %2048 = vmatmul.mubr.msk.bf16.gmra.mrb[8].mxu0 %vm938_vm1, %v2188_v22 }
  0x2b   :  { %2051 = vmatprep.mubr.msk.bf16.mxu0 %vm938_vm1, %v2191_v23  ;;  %1976 = vmatmul.mubr.msk.bf16.gmra.mrb[12].mxu1 %vm356_vm0, %v2190_v24 }
  0x2c   :  { %1979 = vmatprep.mubr.msk.bf16.mxu1 %vm356_vm0, %v2193_v25 }
  0x32   :  { %2052 = vmatmul.mubr.msk.bf16.gmra.mrb[12].mxu0 %vm938_vm1, %v2192_v26 }
  0x33   :  { %2055 = vmatprep.mubr.msk.bf16.mxu0 %vm938_vm1, %v2195_v27  ;;  %1980 = vmatmul.mubr.msk.bf16.gmra.mrb[16].mxu1 %vm356_vm0, %v2194_v28 }
  0x34   :  { %1983 = vmatprep.mubr.msk.bf16.mxu1 %vm356_vm0, %v2197_v29 }
  0x3a   :  { %2056 = vmatmul.mubr.msk.bf16.gmra.mrb[16].mxu0 %vm938_vm1, %v2196_v30 }
  0x3b   :  { %2059 = vmatprep.mubr.msk.bf16.mxu0 %vm938_vm1, %v2199_v31  ;;  %1984 = vmatmul.mubr.msk.bf16.gmra.mrb[20].mxu1 %vm356_vm0, %v2198_v32 }
  0x3c   :  { %1987 = vmatprep.mubr.msk.bf16.mxu1 %vm356_vm0, %v2201_v33 }
  0x42   :  { %2060 = vmatmul.mubr.msk.bf16.gmra.mrb[20].mxu0 %vm938_vm1, %v2200_v34 }
  0x43   :  { %2063 = vmatprep.mubr.msk.bf16.mxu0 %vm938_vm1, %v2203_v35  ;;  %1988 = vmatmul.mubr.msk.bf16.gmra.mrb[24].mxu1 %vm356_vm0, %v2202_v36 }
  0x44   :  { %1991 = vmatprep.mubr.msk.bf16.mxu1 %vm356_vm0, %v2205_v37 }
  0x4a   :  { %2064 = vmatmul.mubr.msk.bf16.gmra.mrb[24].mxu0 %vm938_vm1, %v2204_v38 }
  0x4b   :  { %2067 = vmatprep.mubr.msk.bf16.mxu0 %vm938_vm1, %v2207_v39  ;;  %1992 = vmatmul.mubr.msk.bf16.gmra.mrb[28].mxu1 %vm356_vm0, %v2206_v40 }
  0x4c   :  { %1995 = vmatprep.mubr.msk.bf16.mxu1 %vm356_vm0, %v2209_v41 }
  0x52   :  { %2068 = vmatmul.mubr.msk.bf16.gmra.mrb[28].mxu0 %vm938_vm1, %v2208_v42 }
  0x53   :  { %2071 = vmatprep.mubr.msk.bf16.mxu0 %vm938_vm1, %v2211_v43  ;;  %1996 = vmatmul.mubr.msk.bf16.gmra.mrb[32].mxu1 %vm356_vm0, %v2210_v44 }
  0x54   :  { %1999 = vmatprep.mubr.msk.bf16.mxu1 %vm356_vm0, %v2213_v45 }
  0x5a   :  { %2072 = vmatmul.mubr.msk.bf16.gmra.mrb[32].mxu0 %vm938_vm1, %v2212_v46 }
  0x5b   :  { %2075 = vmatprep.mubr.msk.bf16.mxu0 %vm938_vm1, %v2215_v47  ;;  %2000 = vmatmul.mubr.msk.bf16.gmra.mrb[36].mxu1 %vm356_vm0, %v2214_v48 }
  0x5c   :  { %2003 = vmatprep.mubr.msk.bf16.mxu1 %vm356_vm0, %v2217_v49 }
  0x62   :  { %2076 = vmatmul.mubr.msk.bf16.gmra.mrb[36].mxu0 %vm938_vm1, %v2216_v50 }
  0x63   :  { %2079 = vmatprep.mubr.msk.bf16.mxu0 %vm938_vm1, %v2219_v51  ;;  %2004 = vmatmul.mubr.msk.bf16.gmra.mrb[40].mxu1 %vm356_vm0, %v2218_v52 }
  0x64   :  { %2007 = vmatprep.mubr.msk.bf16.mxu1 %vm356_vm0, %v2221_v53 }
  0x6a   :  { %2080 = vmatmul.mubr.msk.bf16.gmra.mrb[40].mxu0 %vm938_vm1, %v2220_v54 }
  0x6b   :  { %2083 = vmatprep.mubr.msk.bf16.mxu0 %vm938_vm1, %v2223_v55  ;;  %2008 = vmatmul.mubr.msk.bf16.gmra.mrb[44].mxu1 %vm356_vm0, %v2222_v56 }
  0x6c   :  { %2011 = vmatprep.mubr.msk.bf16.mxu1 %vm356_vm0, %v2225_v57 }
  0x72   :  { %2084 = vmatmul.mubr.msk.bf16.gmra.mrb[44].mxu0 %vm938_vm1, %v2224_v58 }
  0x73   :  { %2087 = vmatprep.mubr.msk.bf16.mxu0 %vm938_vm1, %v2227_v59  ;;  %2012 = vmatmul.mubr.msk.bf16.gmra.mrb[48].mxu1 %vm356_vm0, %v2226_v60 }
  0x74   :  { %2015 = vmatprep.mubr.msk.bf16.mxu1 %vm356_vm0, %v2229_v61 }
  0x7a   :  { %2088 = vmatmul.mubr.msk.bf16.gmra.mrb[48].mxu0 %vm938_vm1, %v2228_v62 }
  0x7b   :  { %2091 = vmatprep.mubr.msk.bf16.mxu0 %vm938_vm1, %v2231_v63  ;;  %2016 = vmatmul.mubr.msk.bf16.gmra.mrb[52].mxu1 %vm356_vm0, %v2230_v0 }
  0x7c   :  { %2019 = vmatprep.mubr.msk.bf16.mxu1 %vm356_vm0, %v2233_v1 }
  0x82   :  { %2092 = vmatmul.mubr.msk.bf16.gmra.mrb[52].mxu0 %vm938_vm1, %v2232_v2 }
  0x83   :  { %2095 = vmatprep.mubr.msk.bf16.mxu0 %vm938_vm1, %v2235_v3  ;;  %2020 = vmatmul.mubr.msk.bf16.gmra.mrb[56].mxu1 %vm356_vm0, %v2234_v4 }
  0x84   :  { %2023 = vmatprep.mubr.msk.bf16.mxu1 %vm356_vm0, %v2237_v5 }
  0x8a   :  { %2096 = vmatmul.mubr.msk.bf16.gmra.mrb[56].mxu0 %vm938_vm1, %v2236_v6 }
  0x8b   :  { %2099 = vmatprep.mubr.msk.bf16.mxu0 %vm938_vm1, %v2239_v7  ;;  %2024 = vmatmul.mubr.msk.bf16.gmra.mrb[60].mxu1 %vm356_vm0, %v2238_v8 }
  0x92   :  { %2100 = vmatmul.mubr.msk.bf16.gmra.mrb[60].mxu0 %vm938_vm1, %v2240_v9 }
  0xe6   :  { %v1965_v10 = vpop.f32.mrb[0].mxu1 }
  0xe7   :  { %v487_v11 = vpop.f32.mrb[1].mxu1 }
  0xe8   :  { %v1966_v12 = vpop.f32.mrb[2].mxu1 }
  0xe9   :  { %v490_v13 = vpop.f32.mrb[3].mxu1 }
  0xed   :  { %v2041_v14 = vpop.f32.mrb[0].mxu0 }
  0xee   :  { %v1078_v16 = vadd.f32 %v2041_v14, %v1965_v10  ;;  %v1069_v17 = vpop.f32.mrb[1].mxu0  ;;  %v1969_v21 = vpop.f32.mrb[4].mxu1 }
  0xef   :  { %v1070_v19 = vadd.f32 %v1069_v17, %v487_v11  ;;  %v2042_v20 = vpop.f32.mrb[2].mxu0  ;;  %v503_v25 = vpop.f32.mrb[5].mxu1 }
  0xf0   :  { %v1333_v22 = vmul.f32 %v2565_v15, %v1078_v16  ;;  %v1081_v23 = vadd.f32 %v2042_v20, %v1966_v12  ;;  %v1072_v24 = vpop.f32.mrb[3].mxu0  ;;  %v1970_v28 = vpop.f32.mrb[6].mxu1 }
  0xf1   :  { %v1331_v26 = vmul.f32 %v2565_v15, %v1070_v19  ;;  %v1073_v27 = vadd.f32 %v1072_v24, %v490_v13  ;;  %v506_v31 = vpop.f32.mrb[7].mxu1 }
  0xf2   :  { %v1404_v29 = vadd.f32 %v2570_v18, %v1333_v22  ;;  %v1334_v30 = vmul.f32 %v2565_v15, %v1081_v23 }
  0xf3   :  { %v1402_v32 = vadd.f32 %v2570_v18, %v1331_v26  ;;  %v1332_v33 = vmul.f32 %v2565_v15, %v1073_v27 }
  0xf4   :  { %v1405_v34 = vadd.f32 %v2570_v18, %v1334_v30  ;;  %v1468_v37 = vmax.f32 %v1404_v29, 0.0 }
  0xf5   :  { %v1403_v35 = vadd.f32 %v2570_v18, %v1332_v33  ;;  %v2045_v36 = vpop.f32.mrb[4].mxu0  ;;  %v1466_v41 = vmax.f32 %v1402_v32, 0.0 }
  0xf6   :  { %v1469_v38 = vmax.f32 %v1405_v34, 0.0  ;;  %v1094_v39 = vadd.f32 %v2045_v36, %v1969_v21  ;;  %v1085_v40 = vpop.f32.mrb[5].mxu0  ;;  %v1973_v45 = vpop.f32.mrb[8].mxu1 }
  0xf7   :  { %v1467_v42 = vmax.f32 %v1403_v35, 0.0  ;;  %v1086_v43 = vadd.f32 %v1085_v40, %v503_v25  ;;  %v2046_v44 = vpop.f32.mrb[6].mxu0  ;;  %v519_v50 = vpop.f32.mrb[9].mxu1 }
  0xf8   :  { %v1546_v46 = vmax.f32 %v1468_v37, %v1469_v38  ;;  %v1337_v47 = vmul.f32 %v2565_v15, %v1094_v39  ;;  %v1097_v48 = vadd.f32 %v2046_v44, %v1970_v28  ;;  %v1088_v49 = vpop.f32.mrb[7].mxu0  ;;  %v1974_v54 = vpop.f32.mrb[10].mxu1 }
  0xf9   :  { %v1530_v51 = vmax.f32 %v1466_v41, %v1467_v42  ;;  %v1335_v52 = vmul.f32 %v2565_v15, %v1086_v43  ;;  %v1089_v53 = vadd.f32 %v1088_v49, %v506_v31  ;;  %v522_v57 = vpop.f32.mrb[11].mxu1 }
  0xfa   :  { %v1408_v55 = vadd.f32 %v2570_v18, %v1337_v47  ;;  %v1338_v56 = vmul.f32 %v2565_v15, %v1097_v48 }
  0xfb   :  { %v1562_v58 = vmax.f32 %v1530_v51, %v1546_v46  ;;  %v1406_v59 = vadd.f32 %v2570_v18, %v1335_v52  ;;  %v1336_v60 = vmul.f32 %v2565_v15, %v1089_v53 }
  0xfc   :  { %v1409_v61 = vadd.f32 %v2570_v18, %v1338_v56  ;;  %v1472_v0 = vmax.f32 %v1408_v55, 0.0 }
  0xfd   :  { %v1407_v62 = vadd.f32 %v2570_v18, %v1336_v60  ;;  %v2049_v63 = vpop.f32.mrb[8].mxu0  ;;  %v1470_v4 = vmax.f32 %v1406_v59, 0.0 }
  0xfe   :  { %v1473_v1 = vmax.f32 %v1409_v61, 0.0  ;;  %v1110_v2 = vadd.f32 %v2049_v63, %v1973_v45  ;;  %v1101_v3 = vpop.f32.mrb[9].mxu0  ;;  %v1977_v8 = vpop.f32.mrb[12].mxu1 }
  0xff   :  { %v1471_v5 = vmax.f32 %v1407_v62, 0.0  ;;  %v1102_v6 = vadd.f32 %v1101_v3, %v519_v50  ;;  %v2050_v7 = vpop.f32.mrb[10].mxu0  ;;  %v535_v13 = vpop.f32.mrb[13].mxu1 }
 0x100   :  { %v1547_v9 = vmax.f32 %v1472_v0, %v1473_v1  ;;  %v1341_v10 = vmul.f32 %v2565_v15, %v1110_v2  ;;  %v1113_v11 = vadd.f32 %v2050_v7, %v1974_v54  ;;  %v1104_v12 = vpop.f32.mrb[11].mxu0  ;;  %v1978_v19 = vpop.f32.mrb[14].mxu1 }
 0x101   :  { %v1531_v14 = vmax.f32 %v1470_v4, %v1471_v5  ;;  %v1339_v16 = vmul.f32 %v2565_v15, %v1102_v6  ;;  %v1105_v17 = vadd.f32 %v1104_v12, %v522_v57  ;;  %v538_v22 = vpop.f32.mrb[15].mxu1 }
 0x102   :  { %v1412_v20 = vadd.f32 %v2570_v18, %v1341_v10  ;;  %v1342_v21 = vmul.f32 %v2565_v15, %v1113_v11 }
 0x103   :  { %v1563_v23 = vmax.f32 %v1531_v14, %v1547_v9  ;;  %v1410_v24 = vadd.f32 %v2570_v18, %v1339_v16  ;;  %v1340_v25 = vmul.f32 %v2565_v15, %v1105_v17 }
 0x104   :  { %v1413_v26 = vadd.f32 %v2570_v18, %v1342_v21  ;;  %v1476_v30 = vmax.f32 %v1412_v20, 0.0 }
 0x105   :  { %v1837_v27 = vpack.c.bf16 %v1563_v23, %v1562_v58  ;;  %v1411_v28 = vadd.f32 %v2570_v18, %v1340_v25  ;;  %v2053_v29 = vpop.f32.mrb[12].mxu0  ;;  %v1474_v34 = vmax.f32 %v1410_v24, 0.0 }
 0x106   :  { %v1477_v31 = vmax.f32 %v1413_v26, 0.0  ;;  %v1126_v32 = vadd.f32 %v2053_v29, %v1977_v8  ;;  %v1117_v33 = vpop.f32.mrb[13].mxu0  ;;  %v1981_v38 = vpop.f32.mrb[16].mxu1 }
 0x107   :  { %1838 = vst [vmem:[%s2730_s6] sm:$0xff] %v1837_v27   ;;  %v1475_v35 = vmax.f32 %v1411_v28, 0.0  ;;  %v1118_v36 = vadd.f32 %v1117_v33, %v535_v13  ;;  %v2054_v37 = vpop.f32.mrb[14].mxu0  ;;  %v551_v43 = vpop.f32.mrb[17].mxu1 }
 0x108   :  { %v1548_v39 = vmax.f32 %v1476_v30, %v1477_v31  ;;  %v1345_v40 = vmul.f32 %v2565_v15, %v1126_v32  ;;  %v1129_v41 = vadd.f32 %v2054_v37, %v1978_v19  ;;  %v1120_v42 = vpop.f32.mrb[15].mxu0  ;;  %v1982_v47 = vpop.f32.mrb[18].mxu1 }
 0x109   :  { %v1532_v44 = vmax.f32 %v1474_v34, %v1475_v35  ;;  %v1343_v45 = vmul.f32 %v2565_v15, %v1118_v36  ;;  %v1121_v46 = vadd.f32 %v1120_v42, %v538_v22  ;;  %v554_v50 = vpop.f32.mrb[19].mxu1 }
 0x10a   :  { %v1416_v48 = vadd.f32 %v2570_v18, %v1345_v40  ;;  %v1346_v49 = vmul.f32 %v2565_v15, %v1129_v41 }
 0x10b   :  { %v1564_v51 = vmax.f32 %v1532_v44, %v1548_v39  ;;  %v1414_v52 = vadd.f32 %v2570_v18, %v1343_v45  ;;  %v1344_v53 = vmul.f32 %v2565_v15, %v1121_v46 }
 0x10c   :  { %v1417_v54 = vadd.f32 %v2570_v18, %v1346_v49  ;;  %v1480_v57 = vmax.f32 %v1416_v48, 0.0 }
 0x10d   :  { %v1415_v55 = vadd.f32 %v2570_v18, %v1344_v53  ;;  %v2057_v56 = vpop.f32.mrb[16].mxu0  ;;  %v1478_v61 = vmax.f32 %v1414_v52, 0.0 }
 0x10e   :  { %v1481_v58 = vmax.f32 %v1417_v54, 0.0  ;;  %v1142_v59 = vadd.f32 %v2057_v56, %v1981_v38  ;;  %v1133_v60 = vpop.f32.mrb[17].mxu0  ;;  %v1985_v1 = vpop.f32.mrb[20].mxu1 }
 0x10f   :  { %v1479_v62 = vmax.f32 %v1415_v55, 0.0  ;;  %v1134_v63 = vadd.f32 %v1133_v60, %v551_v43  ;;  %v2058_v0 = vpop.f32.mrb[18].mxu0  ;;  %v567_v6 = vpop.f32.mrb[21].mxu1 }
 0x110   :  { %v1549_v2 = vmax.f32 %v1480_v57, %v1481_v58  ;;  %v1349_v3 = vmul.f32 %v2565_v15, %v1142_v59  ;;  %v1145_v4 = vadd.f32 %v2058_v0, %v1982_v47  ;;  %v1136_v5 = vpop.f32.mrb[19].mxu0  ;;  %v1986_v10 = vpop.f32.mrb[22].mxu1 }
 0x111   :  { %v1533_v7 = vmax.f32 %v1478_v61, %v1479_v62  ;;  %v1347_v8 = vmul.f32 %v2565_v15, %v1134_v63  ;;  %v1137_v9 = vadd.f32 %v1136_v5, %v554_v50  ;;  %v570_v13 = vpop.f32.mrb[23].mxu1 }
 0x112   :  { %v1420_v11 = vadd.f32 %v2570_v18, %v1349_v3  ;;  %v1350_v12 = vmul.f32 %v2565_v15, %v1145_v4 }
 0x113   :  { %v1565_v14 = vmax.f32 %v1533_v7, %v1549_v2  ;;  %v1418_v16 = vadd.f32 %v2570_v18, %v1347_v8  ;;  %v1348_v17 = vmul.f32 %v2565_v15, %v1137_v9 }
 0x114   :  { %v1421_v19 = vadd.f32 %v2570_v18, %v1350_v12  ;;  %v1484_v23 = vmax.f32 %v1420_v11, 0.0 }
 0x115   :  { %v1842_v20 = vpack.c.bf16 %v1565_v14, %v1564_v51  ;;  %v1419_v21 = vadd.f32 %v2570_v18, %v1348_v17  ;;  %v2061_v22 = vpop.f32.mrb[20].mxu0  ;;  %v1482_v27 = vmax.f32 %v1418_v16, 0.0 }
 0x116   :  { %v1485_v24 = vmax.f32 %v1421_v19, 0.0  ;;  %v1158_v25 = vadd.f32 %v2061_v22, %v1985_v1  ;;  %v1149_v26 = vpop.f32.mrb[21].mxu0  ;;  %v1989_v31 = vpop.f32.mrb[24].mxu1 }
 0x117   :  { %1874 = vst [vmem:[%s2730_s6 + $0x8] sm:$0xff] %v1842_v20   ;;  %v1483_v28 = vmax.f32 %v1419_v21, 0.0  ;;  %v1150_v29 = vadd.f32 %v1149_v26, %v567_v6  ;;  %v2062_v30 = vpop.f32.mrb[22].mxu0  ;;  %v583_v36 = vpop.f32.mrb[25].mxu1 }
 0x118   :  { %v1550_v32 = vmax.f32 %v1484_v23, %v1485_v24  ;;  %v1353_v33 = vmul.f32 %v2565_v15, %v1158_v25  ;;  %v1161_v34 = vadd.f32 %v2062_v30, %v1986_v10  ;;  %v1152_v35 = vpop.f32.mrb[23].mxu0  ;;  %v1990_v40 = vpop.f32.mrb[26].mxu1 }
 0x119   :  { %v1534_v37 = vmax.f32 %v1482_v27, %v1483_v28  ;;  %v1351_v38 = vmul.f32 %v2565_v15, %v1150_v29  ;;  %v1153_v39 = vadd.f32 %v1152_v35, %v570_v13  ;;  %v586_v43 = vpop.f32.mrb[27].mxu1 }
 0x11a   :  { %v1424_v41 = vadd.f32 %v2570_v18, %v1353_v33  ;;  %v1354_v42 = vmul.f32 %v2565_v15, %v1161_v34 }
 0x11b   :  { %v1566_v44 = vmax.f32 %v1534_v37, %v1550_v32  ;;  %v1422_v45 = vadd.f32 %v2570_v18, %v1351_v38  ;;  %v1352_v46 = vmul.f32 %v2565_v15, %v1153_v39 }
 0x11c   :  { %v1425_v47 = vadd.f32 %v2570_v18, %v1354_v42  ;;  %v1488_v50 = vmax.f32 %v1424_v41, 0.0 }
 0x11d   :  { %v1423_v48 = vadd.f32 %v2570_v18, %v1352_v46  ;;  %v2065_v49 = vpop.f32.mrb[24].mxu0  ;;  %v1486_v54 = vmax.f32 %v1422_v45, 0.0 }
 0x11e   :  { %v1489_v51 = vmax.f32 %v1425_v47, 0.0  ;;  %v1174_v52 = vadd.f32 %v2065_v49, %v1989_v31  ;;  %v1165_v53 = vpop.f32.mrb[25].mxu0  ;;  %v1993_v58 = vpop.f32.mrb[28].mxu1 }
 0x11f   :  { %v1487_v55 = vmax.f32 %v1423_v48, 0.0  ;;  %v1166_v56 = vadd.f32 %v1165_v53, %v583_v36  ;;  %v2066_v57 = vpop.f32.mrb[26].mxu0  ;;  %v599_v63 = vpop.f32.mrb[29].mxu1 }
 0x120   :  { %v1551_v59 = vmax.f32 %v1488_v50, %v1489_v51  ;;  %v1357_v60 = vmul.f32 %v2565_v15, %v1174_v52  ;;  %v1177_v61 = vadd.f32 %v2066_v57, %v1990_v40  ;;  %v1168_v62 = vpop.f32.mrb[27].mxu0  ;;  %v1994_v3 = vpop.f32.mrb[30].mxu1 }
 0x121   :  { %v1535_v0 = vmax.f32 %v1486_v54, %v1487_v55  ;;  %v1355_v1 = vmul.f32 %v2565_v15, %v1166_v56  ;;  %v1169_v2 = vadd.f32 %v1168_v62, %v586_v43  ;;  %v602_v6 = vpop.f32.mrb[31].mxu1 }
 0x122   :  { %v1428_v4 = vadd.f32 %v2570_v18, %v1357_v60  ;;  %v1358_v5 = vmul.f32 %v2565_v15, %v1177_v61 }
 0x123   :  { %v1567_v7 = vmax.f32 %v1535_v0, %v1551_v59  ;;  %v1426_v8 = vadd.f32 %v2570_v18, %v1355_v1  ;;  %v1356_v9 = vmul.f32 %v2565_v15, %v1169_v2 }
 0x124   :  { %v1429_v10 = vadd.f32 %v2570_v18, %v1358_v5  ;;  %v1492_v14 = vmax.f32 %v1428_v4, 0.0 }
 0x125   :  { %v1847_v11 = vpack.c.bf16 %v1567_v7, %v1566_v44  ;;  %v1427_v12 = vadd.f32 %v2570_v18, %v1356_v9  ;;  %v2069_v13 = vpop.f32.mrb[28].mxu0  ;;  %v1490_v20 = vmax.f32 %v1426_v8, 0.0 }
 0x126   :  { %v1493_v16 = vmax.f32 %v1429_v10, 0.0  ;;  %v1190_v17 = vadd.f32 %v2069_v13, %v1993_v58  ;;  %v1181_v19 = vpop.f32.mrb[29].mxu0  ;;  %v1997_v24 = vpop.f32.mrb[32].mxu1 }
 0x127   :  { %1875 = vst [vmem:[%s2730_s6 + $0x10] sm:$0xff] %v1847_v11   ;;  %v1491_v21 = vmax.f32 %v1427_v12, 0.0  ;;  %v1182_v22 = vadd.f32 %v1181_v19, %v599_v63  ;;  %v2070_v23 = vpop.f32.mrb[30].mxu0  ;;  %v615_v29 = vpop.f32.mrb[33].mxu1 }
 0x128   :  { %v1552_v25 = vmax.f32 %v1492_v14, %v1493_v16  ;;  %v1361_v26 = vmul.f32 %v2565_v15, %v1190_v17  ;;  %v1193_v27 = vadd.f32 %v2070_v23, %v1994_v3  ;;  %v1184_v28 = vpop.f32.mrb[31].mxu0  ;;  %v1998_v33 = vpop.f32.mrb[34].mxu1 }
 0x129   :  { %v1536_v30 = vmax.f32 %v1490_v20, %v1491_v21  ;;  %v1359_v31 = vmul.f32 %v2565_v15, %v1182_v22  ;;  %v1185_v32 = vadd.f32 %v1184_v28, %v602_v6  ;;  %v618_v36 = vpop.f32.mrb[35].mxu1 }
 0x12a   :  { %v1432_v34 = vadd.f32 %v2570_v18, %v1361_v26  ;;  %v1362_v35 = vmul.f32 %v2565_v15, %v1193_v27 }
 0x12b   :  { %v1568_v37 = vmax.f32 %v1536_v30, %v1552_v25  ;;  %v1430_v38 = vadd.f32 %v2570_v18, %v1359_v31  ;;  %v1360_v39 = vmul.f32 %v2565_v15, %v1185_v32 }
 0x12c   :  { %v1433_v40 = vadd.f32 %v2570_v18, %v1362_v35  ;;  %v1496_v43 = vmax.f32 %v1432_v34, 0.0 }
 0x12d   :  { %v1431_v41 = vadd.f32 %v2570_v18, %v1360_v39  ;;  %v2073_v42 = vpop.f32.mrb[32].mxu0  ;;  %v1494_v47 = vmax.f32 %v1430_v38, 0.0 }
 0x12e   :  { %v1497_v44 = vmax.f32 %v1433_v40, 0.0  ;;  %v1206_v45 = vadd.f32 %v2073_v42, %v1997_v24  ;;  %v1197_v46 = vpop.f32.mrb[33].mxu0  ;;  %v2001_v51 = vpop.f32.mrb[36].mxu1 }
 0x12f   :  { %v1495_v48 = vmax.f32 %v1431_v41, 0.0  ;;  %v1198_v49 = vadd.f32 %v1197_v46, %v615_v29  ;;  %v2074_v50 = vpop.f32.mrb[34].mxu0  ;;  %v631_v56 = vpop.f32.mrb[37].mxu1 }
 0x130   :  { %v1553_v52 = vmax.f32 %v1496_v43, %v1497_v44  ;;  %v1365_v53 = vmul.f32 %v2565_v15, %v1206_v45  ;;  %v1209_v54 = vadd.f32 %v2074_v50, %v1998_v33  ;;  %v1200_v55 = vpop.f32.mrb[35].mxu0  ;;  %v2002_v60 = vpop.f32.mrb[38].mxu1 }
 0x131   :  { %v1537_v57 = vmax.f32 %v1494_v47, %v1495_v48  ;;  %v1363_v58 = vmul.f32 %v2565_v15, %v1198_v49  ;;  %v1201_v59 = vadd.f32 %v1200_v55, %v618_v36  ;;  %v634_v63 = vpop.f32.mrb[39].mxu1 }
 0x132   :  { %v1436_v61 = vadd.f32 %v2570_v18, %v1365_v53  ;;  %v1366_v62 = vmul.f32 %v2565_v15, %v1209_v54 }
 0x133   :  { %v1569_v0 = vmax.f32 %v1537_v57, %v1553_v52  ;;  %v1434_v1 = vadd.f32 %v2570_v18, %v1363_v58  ;;  %v1364_v2 = vmul.f32 %v2565_v15, %v1201_v59 }
 0x134   :  { %v1437_v3 = vadd.f32 %v2570_v18, %v1366_v62  ;;  %v1500_v7 = vmax.f32 %v1436_v61, 0.0 }
 0x135   :  { %v1852_v4 = vpack.c.bf16 %v1569_v0, %v1568_v37  ;;  %v1435_v5 = vadd.f32 %v2570_v18, %v1364_v2  ;;  %v2077_v6 = vpop.f32.mrb[36].mxu0  ;;  %v1498_v11 = vmax.f32 %v1434_v1, 0.0 }
 0x136   :  { %v1501_v8 = vmax.f32 %v1437_v3, 0.0  ;;  %v1222_v9 = vadd.f32 %v2077_v6, %v2001_v51  ;;  %v1213_v10 = vpop.f32.mrb[37].mxu0  ;;  %v2005_v16 = vpop.f32.mrb[40].mxu1 }
 0x137   :  { %1876 = vst [vmem:[%s2730_s6 + $0x18] sm:$0xff] %v1852_v4   ;;  %v1499_v12 = vmax.f32 %v1435_v5, 0.0  ;;  %v1214_v13 = vadd.f32 %v1213_v10, %v631_v56  ;;  %v2078_v14 = vpop.f32.mrb[38].mxu0  ;;  %v647_v22 = vpop.f32.mrb[41].mxu1 }
 0x138   :  { %v1554_v17 = vmax.f32 %v1500_v7, %v1501_v8  ;;  %v1369_v19 = vmul.f32 %v2565_v15, %v1222_v9  ;;  %v1225_v20 = vadd.f32 %v2078_v14, %v2002_v60  ;;  %v1216_v21 = vpop.f32.mrb[39].mxu0  ;;  %v2006_v26 = vpop.f32.mrb[42].mxu1 }
 0x139   :  { %v1538_v23 = vmax.f32 %v1498_v11, %v1499_v12  ;;  %v1367_v24 = vmul.f32 %v2565_v15, %v1214_v13  ;;  %v1217_v25 = vadd.f32 %v1216_v21, %v634_v63  ;;  %v650_v29 = vpop.f32.mrb[43].mxu1 }
 0x13a   :  { %v1440_v27 = vadd.f32 %v2570_v18, %v1369_v19  ;;  %v1370_v28 = vmul.f32 %v2565_v15, %v1225_v20 }
 0x13b   :  { %v1570_v30 = vmax.f32 %v1538_v23, %v1554_v17  ;;  %v1438_v31 = vadd.f32 %v2570_v18, %v1367_v24  ;;  %v1368_v32 = vmul.f32 %v2565_v15, %v1217_v25 }
 0x13c   :  { %v1441_v33 = vadd.f32 %v2570_v18, %v1370_v28  ;;  %v1504_v36 = vmax.f32 %v1440_v27, 0.0 }
 0x13d   :  { %v1439_v34 = vadd.f32 %v2570_v18, %v1368_v32  ;;  %v2081_v35 = vpop.f32.mrb[40].mxu0  ;;  %v1502_v40 = vmax.f32 %v1438_v31, 0.0 }
 0x13e   :  { %v1505_v37 = vmax.f32 %v1441_v33, 0.0  ;;  %v1238_v38 = vadd.f32 %v2081_v35, %v2005_v16  ;;  %v1229_v39 = vpop.f32.mrb[41].mxu0  ;;  %v2009_v44 = vpop.f32.mrb[44].mxu1 }
 0x13f   :  { %v1503_v41 = vmax.f32 %v1439_v34, 0.0  ;;  %v1230_v42 = vadd.f32 %v1229_v39, %v647_v22  ;;  %v2082_v43 = vpop.f32.mrb[42].mxu0  ;;  %v663_v49 = vpop.f32.mrb[45].mxu1 }
 0x140   :  { %v1555_v45 = vmax.f32 %v1504_v36, %v1505_v37  ;;  %v1373_v46 = vmul.f32 %v2565_v15, %v1238_v38  ;;  %v1241_v47 = vadd.f32 %v2082_v43, %v2006_v26  ;;  %v1232_v48 = vpop.f32.mrb[43].mxu0  ;;  %v2010_v53 = vpop.f32.mrb[46].mxu1 }
 0x141   :  { %v1539_v50 = vmax.f32 %v1502_v40, %v1503_v41  ;;  %v1371_v51 = vmul.f32 %v2565_v15, %v1230_v42  ;;  %v1233_v52 = vadd.f32 %v1232_v48, %v650_v29  ;;  %v666_v56 = vpop.f32.mrb[47].mxu1 }
 0x142   :  { %v1444_v54 = vadd.f32 %v2570_v18, %v1373_v46  ;;  %v1374_v55 = vmul.f32 %v2565_v15, %v1241_v47 }
 0x143   :  { %v1571_v57 = vmax.f32 %v1539_v50, %v1555_v45  ;;  %v1442_v58 = vadd.f32 %v2570_v18, %v1371_v51  ;;  %v1372_v59 = vmul.f32 %v2565_v15, %v1233_v52 }
 0x144   :  { %v1445_v60 = vadd.f32 %v2570_v18, %v1374_v55  ;;  %v1508_v0 = vmax.f32 %v1444_v54, 0.0 }
 0x145   :  { %v1857_v61 = vpack.c.bf16 %v1571_v57, %v1570_v30  ;;  %v1443_v62 = vadd.f32 %v2570_v18, %v1372_v59  ;;  %v2085_v63 = vpop.f32.mrb[44].mxu0  ;;  %v1506_v4 = vmax.f32 %v1442_v58, 0.0 }
 0x146   :  { %v1509_v1 = vmax.f32 %v1445_v60, 0.0  ;;  %v1254_v2 = vadd.f32 %v2085_v63, %v2009_v44  ;;  %v1245_v3 = vpop.f32.mrb[45].mxu0  ;;  %v2013_v8 = vpop.f32.mrb[48].mxu1 }
 0x147   :  { %1877 = vst [vmem:[%s2730_s6 + $0x20] sm:$0xff] %v1857_v61   ;;  %v1507_v5 = vmax.f32 %v1443_v62, 0.0  ;;  %v1246_v6 = vadd.f32 %v1245_v3, %v663_v49  ;;  %v2086_v7 = vpop.f32.mrb[46].mxu0  ;;  %v679_v13 = vpop.f32.mrb[49].mxu1 }
 0x148   :  { %v1556_v9 = vmax.f32 %v1508_v0, %v1509_v1  ;;  %v1377_v10 = vmul.f32 %v2565_v15, %v1254_v2  ;;  %v1257_v11 = vadd.f32 %v2086_v7, %v2010_v53  ;;  %v1248_v12 = vpop.f32.mrb[47].mxu0  ;;  %v2014_v19 = vpop.f32.mrb[50].mxu1 }
 0x149   :  { %v1540_v14 = vmax.f32 %v1506_v4, %v1507_v5  ;;  %v1375_v16 = vmul.f32 %v2565_v15, %v1246_v6  ;;  %v1249_v17 = vadd.f32 %v1248_v12, %v666_v56  ;;  %v682_v22 = vpop.f32.mrb[51].mxu1 }
 0x14a   :  { %v1448_v20 = vadd.f32 %v2570_v18, %v1377_v10  ;;  %v1378_v21 = vmul.f32 %v2565_v15, %v1257_v11 }
 0x14b   :  { %v1572_v23 = vmax.f32 %v1540_v14, %v1556_v9  ;;  %v1446_v24 = vadd.f32 %v2570_v18, %v1375_v16  ;;  %v1376_v25 = vmul.f32 %v2565_v15, %v1249_v17 }
 0x14c   :  { %v1449_v26 = vadd.f32 %v2570_v18, %v1378_v21  ;;  %v1512_v29 = vmax.f32 %v1448_v20, 0.0 }
 0x14d   :  { %v1447_v27 = vadd.f32 %v2570_v18, %v1376_v25  ;;  %v2089_v28 = vpop.f32.mrb[48].mxu0  ;;  %v1510_v33 = vmax.f32 %v1446_v24, 0.0 }
 0x14e   :  { %v1513_v30 = vmax.f32 %v1449_v26, 0.0  ;;  %v1270_v31 = vadd.f32 %v2089_v28, %v2013_v8  ;;  %v1261_v32 = vpop.f32.mrb[49].mxu0  ;;  %v2017_v37 = vpop.f32.mrb[52].mxu1 }
 0x14f   :  { %v1511_v34 = vmax.f32 %v1447_v27, 0.0  ;;  %v1262_v35 = vadd.f32 %v1261_v32, %v679_v13  ;;  %v2090_v36 = vpop.f32.mrb[50].mxu0  ;;  %v695_v42 = vpop.f32.mrb[53].mxu1 }
 0x150   :  { %v1557_v38 = vmax.f32 %v1512_v29, %v1513_v30  ;;  %v1381_v39 = vmul.f32 %v2565_v15, %v1270_v31  ;;  %v1273_v40 = vadd.f32 %v2090_v36, %v2014_v19  ;;  %v1264_v41 = vpop.f32.mrb[51].mxu0  ;;  %v2018_v46 = vpop.f32.mrb[54].mxu1 }
 0x151   :  { %v1541_v43 = vmax.f32 %v1510_v33, %v1511_v34  ;;  %v1379_v44 = vmul.f32 %v2565_v15, %v1262_v35  ;;  %v1265_v45 = vadd.f32 %v1264_v41, %v682_v22  ;;  %v698_v49 = vpop.f32.mrb[55].mxu1 }
 0x152   :  { %v1452_v47 = vadd.f32 %v2570_v18, %v1381_v39  ;;  %v1382_v48 = vmul.f32 %v2565_v15, %v1273_v40 }
 0x153   :  { %v1573_v50 = vmax.f32 %v1541_v43, %v1557_v38  ;;  %v1450_v51 = vadd.f32 %v2570_v18, %v1379_v44  ;;  %v1380_v52 = vmul.f32 %v2565_v15, %v1265_v45 }
 0x154   :  { %v1453_v53 = vadd.f32 %v2570_v18, %v1382_v48  ;;  %v1516_v57 = vmax.f32 %v1452_v47, 0.0 }
 0x155   :  { %v1862_v54 = vpack.c.bf16 %v1573_v50, %v1572_v23  ;;  %v1451_v55 = vadd.f32 %v2570_v18, %v1380_v52  ;;  %v2093_v56 = vpop.f32.mrb[52].mxu0  ;;  %v1514_v61 = vmax.f32 %v1450_v51, 0.0 }
 0x156   :  { %v1517_v58 = vmax.f32 %v1453_v53, 0.0  ;;  %v1286_v59 = vadd.f32 %v2093_v56, %v2017_v37  ;;  %v1277_v60 = vpop.f32.mrb[53].mxu0  ;;  %v2021_v1 = vpop.f32.mrb[56].mxu1 }
 0x157   :  { %1878 = vst [vmem:[%s2730_s6 + $0x28] sm:$0xff] %v1862_v54   ;;  %v1515_v62 = vmax.f32 %v1451_v55, 0.0  ;;  %v1278_v63 = vadd.f32 %v1277_v60, %v695_v42  ;;  %v2094_v0 = vpop.f32.mrb[54].mxu0  ;;  %v711_v6 = vpop.f32.mrb[57].mxu1 }
 0x158   :  { %v1558_v2 = vmax.f32 %v1516_v57, %v1517_v58  ;;  %v1385_v3 = vmul.f32 %v2565_v15, %v1286_v59  ;;  %v1289_v4 = vadd.f32 %v2094_v0, %v2018_v46  ;;  %v1280_v5 = vpop.f32.mrb[55].mxu0  ;;  %v2022_v10 = vpop.f32.mrb[58].mxu1 }
 0x159   :  { %v1542_v7 = vmax.f32 %v1514_v61, %v1515_v62  ;;  %v1383_v8 = vmul.f32 %v2565_v15, %v1278_v63  ;;  %v1281_v9 = vadd.f32 %v1280_v5, %v698_v49  ;;  %v714_v13 = vpop.f32.mrb[59].mxu1 }
 0x15a   :  { %v1456_v11 = vadd.f32 %v2570_v18, %v1385_v3  ;;  %v1386_v12 = vmul.f32 %v2565_v15, %v1289_v4 }
 0x15b   :  { %v1574_v14 = vmax.f32 %v1542_v7, %v1558_v2  ;;  %v1454_v16 = vadd.f32 %v2570_v18, %v1383_v8  ;;  %v1384_v17 = vmul.f32 %v2565_v15, %v1281_v9 }
 0x15c   :  { %v1457_v19 = vadd.f32 %v2570_v18, %v1386_v12  ;;  %v1520_v22 = vmax.f32 %v1456_v11, 0.0 }
 0x15d   :  { %v1455_v20 = vadd.f32 %v2570_v18, %v1384_v17  ;;  %v2097_v21 = vpop.f32.mrb[56].mxu0  ;;  %v1518_v26 = vmax.f32 %v1454_v16, 0.0 }
 0x15e   :  { %v1521_v23 = vmax.f32 %v1457_v19, 0.0  ;;  %v1302_v24 = vadd.f32 %v2097_v21, %v2021_v1  ;;  %v1293_v25 = vpop.f32.mrb[57].mxu0  ;;  %v2025_v30 = vpop.f32.mrb[60].mxu1 }
 0x15f   :  { %v1519_v27 = vmax.f32 %v1455_v20, 0.0  ;;  %v1294_v28 = vadd.f32 %v1293_v25, %v711_v6  ;;  %v2098_v29 = vpop.f32.mrb[58].mxu0  ;;  %v727_v35 = vpop.f32.mrb[61].mxu1 }
 0x160   :  { %v1559_v31 = vmax.f32 %v1520_v22, %v1521_v23  ;;  %v1389_v32 = vmul.f32 %v2565_v15, %v1302_v24  ;;  %v1305_v33 = vadd.f32 %v2098_v29, %v2022_v10  ;;  %v1296_v34 = vpop.f32.mrb[59].mxu0  ;;  %v2026_v39 = vpop.f32.mrb[62].mxu1 }
 0x161   :  { %v1543_v36 = vmax.f32 %v1518_v26, %v1519_v27  ;;  %v1387_v37 = vmul.f32 %v2565_v15, %v1294_v28  ;;  %v1297_v38 = vadd.f32 %v1296_v34, %v714_v13  ;;  %v730_v42 = vpop.f32.mrb[63].mxu1 }
 0x162   :  { %v1460_v40 = vadd.f32 %v2570_v18, %v1389_v32  ;;  %v1390_v41 = vmul.f32 %v2565_v15, %v1305_v33 }
 0x163   :  { %v1575_v43 = vmax.f32 %v1543_v36, %v1559_v31  ;;  %v1458_v44 = vadd.f32 %v2570_v18, %v1387_v37  ;;  %v1388_v45 = vmul.f32 %v2565_v15, %v1297_v38 }
 0x164   :  { %v1461_v46 = vadd.f32 %v2570_v18, %v1390_v41  ;;  %v1524_v50 = vmax.f32 %v1460_v40, 0.0 }
 0x165   :  { %v1867_v47 = vpack.c.bf16 %v1575_v43, %v1574_v14  ;;  %v1459_v48 = vadd.f32 %v2570_v18, %v1388_v45  ;;  %v2101_v49 = vpop.f32.mrb[60].mxu0  ;;  %v1522_v54 = vmax.f32 %v1458_v44, 0.0 }
 0x166   :  { %v1525_v51 = vmax.f32 %v1461_v46, 0.0  ;;  %v1318_v52 = vadd.f32 %v2101_v49, %v2025_v30  ;;  %v1309_v53 = vpop.f32.mrb[61].mxu0 }
 0x167   :  { %1879 = vst [vmem:[%s2730_s6 + $0x30] sm:$0xff] %v1867_v47   ;;  %v1523_v55 = vmax.f32 %v1459_v48, 0.0  ;;  %v1310_v56 = vadd.f32 %v1309_v53, %v727_v35  ;;  %v2102_v57 = vpop.f32.mrb[62].mxu0 }
 0x168   :  { %v1560_v58 = vmax.f32 %v1524_v50, %v1525_v51  ;;  %v1393_v59 = vmul.f32 %v2565_v15, %v1318_v52  ;;  %v1321_v60 = vadd.f32 %v2102_v57, %v2026_v39  ;;  %v1312_v61 = vpop.f32.mrb[63].mxu0 }
 0x169   :  { %v1544_v62 = vmax.f32 %v1522_v54, %v1523_v55  ;;  %v1391_v63 = vmul.f32 %v2565_v15, %v1310_v56  ;;  %v1313_v0 = vadd.f32 %v1312_v61, %v730_v42 }
 0x16a   :  { %v1464_v1 = vadd.f32 %v2570_v18, %v1393_v59  ;;  %v1394_v2 = vmul.f32 %v2565_v15, %v1321_v60 }
 0x16b   :  { %v1576_v3 = vmax.f32 %v1544_v62, %v1560_v58  ;;  %v1462_v4 = vadd.f32 %v2570_v18, %v1391_v63  ;;  %v1392_v5 = vmul.f32 %v2565_v15, %v1313_v0 }
 0x16c   :  { %v1465_v6 = vadd.f32 %v2570_v18, %v1394_v2  ;;  %v1528_v8 = vmax.f32 %v1464_v1, 0.0 }
 0x16d   :  { %v1463_v7 = vadd.f32 %v2570_v18, %v1392_v5  ;;  %v1526_v10 = vmax.f32 %v1462_v4, 0.0 }
 0x16e   :  { %v1529_v9 = vmax.f32 %v1465_v6, 0.0 }
 0x16f   :  { %v1527_v11 = vmax.f32 %v1463_v7, 0.0 }
 0x170   :  { %v1561_v12 = vmax.f32 %v1528_v8, %v1529_v9 }
 0x171   :  { %v1545_v13 = vmax.f32 %v1526_v10, %v1527_v11 }
 0x173   :  { %v1577_v14 = vmax.f32 %v1545_v13, %v1561_v12 }
 0x175   :  { %v1872_v16 = vpack.c.bf16 %v1577_v14, %v1576_v3 }
 0x177   :  { %1880 = vst [vmem:[%s2730_s6 + $0x38] sm:$0xff] %v1872_v16  }

// kernel: lenet5_modified_forward.6
= control target key start
LH: loop header
LB: loop body
LE: loop exit
PB: predicated region body
PF: predicated region fallthrough
CT: control target
= control target key end

     0   :  { %vm132_vm0 = vcmask 392192   ;;  %vm330_vm1 = vcmask 785408   ;;  %s1040_s3 = inlined_call_operand.vmem [shape: bf16[48,128], index: 3, kind: input, shape index: {}]   ;;  %s1041_s2 = inlined_call_operand.vmem [shape: bf16[96,128], index: 2, kind: input, shape index: {}]   ;;  %s1042_s1 = inlined_call_operand.vmem [shape: bf16[2,64,48], index: 1, kind: input, shape index: {}]   ;;  %s1043_s0 = inlined_call_operand.vmem [shape: bf16[2,64,96], index: 0, kind: input, shape index: {}]   ;;  %s1044_s4 = inlined_call_operand.vmem [shape: f32[1,128], index: 4, kind: input, shape index: {}]   ;;  %s1045_s5 = inlined_call_operand.vmem [shape: f32[1,128], index: 5, kind: input, shape index: {}]   ;;  %s1046_s6 = inlined_call_operand.vmem [shape: bf16[2,64,128], index: 6, kind: output, shape index: {}]  }
   0x1   :  { %v823_v0 = vld [vmem:[%s1040_s3] sm:$0xff]   ;;  %v825_v2 = vld [vmem:[%s1040_s3 + $0x8] sm:$0xff]   ;;  %v827_v4 = vld [vmem:[%s1040_s3 + $0x10] sm:$0xff]  }
   0x2   :  { %v824_v1 = vld [vmem:[%s1041_s2] sm:$0xff]   ;;  %745 = vmatprep.subr.bf16.mxu0 %v823_v0  ;;  %v826_v3 = vld [vmem:[%s1041_s2 + $0x8] sm:$0xff]   ;;  %v828_v5 = vld [vmem:[%s1041_s2 + $0x10] sm:$0xff]  }
   0x3   :  { %795 = vmatprep.subr.bf16.mxu1 %v824_v1  ;;  %746 = vmatpush3.bf16.msra.mxu0 %v823_v0  ;;  %v829_v6 = vld [vmem:[%s1042_s1] sm:$0xff]   ;;  %v831_v7 = vld [vmem:[%s1041_s2 + $0x18] sm:$0xff]   ;;  %v830_v8 = vld [vmem:[%s1042_s1 + $0x8] sm:$0xff]  }
   0x4   :  { %801 = vmatpush3.bf16.msra.mxu1 %v824_v1  ;;  %747 = vmatprep.subr.bf16.mxu0 %v825_v2  ;;  %v833_v9 = vld [vmem:[%s1042_s1 + $0x10] sm:$0xff]   ;;  %v832_v10 = vld [vmem:[%s1041_s2 + $0x20] sm:$0xff]   ;;  %v835_v12 = vld [vmem:[%s1041_s2 + $0x28] sm:$0xff]  }
   0x5   :  { %796 = vmatprep.subr.bf16.mxu1 %v826_v3  ;;  %751 = vmatprep.mubr.msk.bf16.mxu0 %vm132_vm0, %v829_v6  ;;  %v836_v11 = vld [vmem:[%s1043_s0 + $0x10] sm:$0xff]   ;;  %v834_v13 = vld [vmem:[%s1042_s1 + $0x18] sm:$0xff]   ;;  %v838_v14 = vld [vmem:[%s1042_s1 + $0x20] sm:$0xff]  }
   0x6   :  { %783 = vmatprep.mubr.msk.bf16.mxu1 %vm330_vm1, %v836_v11  ;;  %v837_v15 = vld [vmem:[%s1043_s0 + $0x18] sm:$0xff]   ;;  %v840_v16 = vld [vmem:[%s1043_s0 + $0x20] sm:$0xff]   ;;  %v839_v17 = vld [vmem:[%s1042_s1 + $0x28] sm:$0xff]  }
   0x7   :  { %748 = vmatpush3.bf16.msra.mxu0 %v825_v2  ;;  %v842_v18 = vld [vmem:[%s1042_s1 + $0x30] sm:$0xff]   ;;  %v841_v19 = vld [vmem:[%s1043_s0 + $0x28] sm:$0xff]   ;;  %v843_v21 = vld [vmem:[%s1042_s1 + $0x38] sm:$0xff]  }
   0x8   :  { %802 = vmatpush3.bf16.msra.mxu1 %v826_v3  ;;  %749 = vmatprep.subr.bf16.mxu0 %v827_v4  ;;  %v844_v20 = vld [vmem:[%s1043_s0 + $0x30] sm:$0xff]   ;;  %v846_v22 = vld [vmem:[%s1043_s0] sm:$0xff]   ;;  %v845_v23 = vld [vmem:[%s1043_s0 + $0x38] sm:$0xff]  }
   0x9   :  { %797 = vmatprep.subr.bf16.mxu1 %v828_v5  ;;  %v847_v24 = vld [vmem:[%s1043_s0 + $0x8] sm:$0xff]   ;;  %v977_v30 = vld [vmem:[%s1044_s4] ss:$0 sm:$0xff] }
   0xa   :  { %v982_v33 = vld [vmem:[%s1045_s5] ss:$0 sm:$0xff] }
   0xb   :  { %750 = vmatpush3.bf16.msra.mxu0 %v827_v4 }
   0xc   :  { %803 = vmatpush3.bf16.msra.mxu1 %v828_v5  ;;  %767 = vmatprep.subr.bf16.mxu0 %v824_v1 }
   0xd   :  { %798 = vmatprep.subr.bf16.mxu1 %v831_v7 }
   0xe   :  { %752 = vmatmul.mubr.msk.bf16.vlgmr.msra.gmra.mrb[0].mxu0 %vm132_vm0, %v830_v8 }
   0xf   :  { %768 = vmatpush3.bf16.msra.mxu0 %v824_v1  ;;  %755 = vmatprep.mubr.msk.bf16.mxu0 %vm132_vm0, %v833_v9 }
  0x10   :  { %804 = vmatpush3.bf16.msra.mxu1 %v831_v7  ;;  %769 = vmatprep.subr.bf16.mxu0 %v826_v3 }
  0x11   :  { %799 = vmatprep.subr.bf16.mxu1 %v832_v10 }
  0x13   :  { %770 = vmatpush3.bf16.msra.mxu0 %v826_v3 }
  0x14   :  { %805 = vmatpush3.bf16.msra.mxu1 %v832_v10  ;;  %771 = vmatprep.subr.bf16.mxu0 %v828_v5 }
  0x15   :  { %800 = vmatprep.subr.bf16.mxu1 %v835_v12 }
  0x16   :  { %756 = vmatmul.mubr.msk.bf16.gmra.mrb[4].mxu0 %vm132_vm0, %v834_v13 }
  0x17   :  { %772 = vmatpush3.bf16.msra.mxu0 %v828_v5  ;;  %759 = vmatprep.mubr.msk.bf16.mxu0 %vm132_vm0, %v838_v14 }
  0x18   :  { %806 = vmatpush3.bf16.msra.mxu1 %v835_v12  ;;  %773 = vmatprep.subr.bf16.mxu0 %v831_v7 }
  0x1b   :  { %784 = vmatmul.mubr.msk.bf16.vlgmr.msra.gmra.mrb[0].mxu1 %vm330_vm1, %v837_v15  ;;  %774 = vmatpush3.bf16.msra.mxu0 %v831_v7 }
  0x1c   :  { %787 = vmatprep.mubr.msk.bf16.mxu1 %vm330_vm1, %v840_v16  ;;  %775 = vmatprep.subr.bf16.mxu0 %v832_v10 }
  0x1e   :  { %760 = vmatmul.mubr.msk.bf16.gmra.mrb[8].mxu0 %vm132_vm0, %v839_v17 }
  0x1f   :  { %763 = vmatprep.mubr.msk.bf16.mxu0 %vm132_vm0, %v842_v18  ;;  %776 = vmatpush3.bf16.msra.mxu0 %v832_v10 }
  0x20   :  { %777 = vmatprep.subr.bf16.mxu0 %v835_v12 }
  0x23   :  { %788 = vmatmul.mubr.msk.bf16.gmra.mrb[4].mxu1 %vm330_vm1, %v841_v19  ;;  %778 = vmatpush3.bf16.msra.mxu0 %v835_v12 }
  0x24   :  { %791 = vmatprep.mubr.msk.bf16.mxu1 %vm330_vm1, %v844_v20 }
  0x26   :  { %764 = vmatmul.mubr.msk.bf16.gmra.mrb[12].mxu0 %vm132_vm0, %v843_v21 }
  0x27   :  { %779 = vmatprep.mubr.msk.bf16.mxu0 %vm330_vm1, %v846_v22 }
  0x2b   :  { %792 = vmatmul.mubr.msk.bf16.gmra.mrb[8].mxu1 %vm330_vm1, %v845_v23 }
  0x2e   :  { %780 = vmatmul.mubr.msk.bf16.vlgmr.msra.gmra.mrb[0].mxu0 %vm330_vm1, %v847_v24 }
  0xe9   :  { %v757_v25 = vpop.f32.mrb[4].mxu0 }
  0xea   :  { %v207_v26 = vpop.f32.mrb[5].mxu0 }
  0xeb   :  { %v758_v27 = vpop.f32.mrb[6].mxu0 }
  0xec   :  { %v210_v28 = vpop.f32.mrb[7].mxu0 }
  0xee   :  { %v785_v29 = vpop.f32.mrb[0].mxu1 }
  0xef   :  { %v414_v31 = vadd.f32 %v785_v29, %v757_v25  ;;  %v405_v32 = vpop.f32.mrb[1].mxu1 }
  0xf0   :  { %v406_v34 = vadd.f32 %v405_v32, %v207_v26  ;;  %v786_v35 = vpop.f32.mrb[2].mxu1 }
  0xf1   :  { %v465_v36 = vmul.f32 %v977_v30, %v414_v31  ;;  %v417_v37 = vadd.f32 %v786_v35, %v758_v27  ;;  %v408_v38 = vpop.f32.mrb[3].mxu1  ;;  %v761_v39 = vpop.f32.mrb[8].mxu0 }
  0xf2   :  { %v463_v40 = vmul.f32 %v977_v30, %v406_v34  ;;  %v409_v41 = vadd.f32 %v408_v38, %v210_v28  ;;  %v223_v42 = vpop.f32.mrb[9].mxu0 }
  0xf3   :  { %v488_v43 = vadd.f32 %v982_v33, %v465_v36  ;;  %v466_v44 = vmul.f32 %v977_v30, %v417_v37  ;;  %v762_v45 = vpop.f32.mrb[10].mxu0 }
  0xf4   :  { %v486_v46 = vadd.f32 %v982_v33, %v463_v40  ;;  %v464_v47 = vmul.f32 %v977_v30, %v409_v41  ;;  %v226_v48 = vpop.f32.mrb[11].mxu0 }
  0xf5   :  { %v489_v49 = vadd.f32 %v982_v33, %v466_v44  ;;  %v504_v52 = vmax.f32 %v488_v43, 0.0 }
  0xf6   :  { %v487_v50 = vadd.f32 %v982_v33, %v464_v47  ;;  %v789_v51 = vpop.f32.mrb[4].mxu1  ;;  %v502_v56 = vmax.f32 %v486_v46, 0.0 }
  0xf7   :  { %v505_v53 = vmax.f32 %v489_v49, 0.0  ;;  %v430_v54 = vadd.f32 %v789_v51, %v761_v39  ;;  %v421_v55 = vpop.f32.mrb[5].mxu1 }
  0xf8   :  { %v503_v57 = vmax.f32 %v487_v50, 0.0  ;;  %v422_v58 = vadd.f32 %v421_v55, %v223_v42  ;;  %v790_v59 = vpop.f32.mrb[6].mxu1 }
  0xf9   :  { %v691_v60 = vpack.c.bf16 %v505_v53, %v504_v52  ;;  %v469_v61 = vmul.f32 %v977_v30, %v430_v54  ;;  %v433_v62 = vadd.f32 %v790_v59, %v762_v45  ;;  %v424_v63 = vpop.f32.mrb[7].mxu1  ;;  %v765_v0 = vpop.f32.mrb[12].mxu0 }
  0xfa   :  { %v686_v1 = vpack.c.bf16 %v503_v57, %v502_v56  ;;  %v467_v2 = vmul.f32 %v977_v30, %v422_v58  ;;  %v425_v3 = vadd.f32 %v424_v63, %v226_v48  ;;  %v239_v4 = vpop.f32.mrb[13].mxu0 }
  0xfb   :  { %715 = vst [vmem:[%s1046_s6 + $0x18] sm:$0xff] %v691_v60   ;;  %v492_v5 = vadd.f32 %v982_v33, %v469_v61  ;;  %v470_v6 = vmul.f32 %v977_v30, %v433_v62  ;;  %v766_v7 = vpop.f32.mrb[14].mxu0 }
  0xfc   :  { %714 = vst [vmem:[%s1046_s6 + $0x10] sm:$0xff] %v686_v1   ;;  %v490_v8 = vadd.f32 %v982_v33, %v467_v2  ;;  %v468_v9 = vmul.f32 %v977_v30, %v425_v3  ;;  %v242_v10 = vpop.f32.mrb[15].mxu0 }
  0xfd   :  { %v493_v11 = vadd.f32 %v982_v33, %v470_v6  ;;  %v508_v14 = vmax.f32 %v492_v5, 0.0 }
  0xfe   :  { %v491_v12 = vadd.f32 %v982_v33, %v468_v9  ;;  %v793_v13 = vpop.f32.mrb[8].mxu1  ;;  %v506_v18 = vmax.f32 %v490_v8, 0.0 }
  0xff   :  { %v509_v15 = vmax.f32 %v493_v11, 0.0  ;;  %v446_v16 = vadd.f32 %v793_v13, %v765_v0  ;;  %v437_v17 = vpop.f32.mrb[9].mxu1 }
 0x100   :  { %v507_v19 = vmax.f32 %v491_v12, 0.0  ;;  %v438_v20 = vadd.f32 %v437_v17, %v239_v4  ;;  %v794_v21 = vpop.f32.mrb[10].mxu1 }
 0x101   :  { %v701_v22 = vpack.c.bf16 %v509_v15, %v508_v14  ;;  %v473_v23 = vmul.f32 %v977_v30, %v446_v16  ;;  %v449_v24 = vadd.f32 %v794_v21, %v766_v7  ;;  %v440_v25 = vpop.f32.mrb[11].mxu1  ;;  %v781_v26 = vpop.f32.mrb[0].mxu0 }
 0x102   :  { %v696_v27 = vpack.c.bf16 %v507_v19, %v506_v18  ;;  %v471_v28 = vmul.f32 %v977_v30, %v438_v20  ;;  %v441_v29 = vadd.f32 %v440_v25, %v242_v10  ;;  %v461_v31 = vmul.f32 %v781_v26, %v977_v30  ;;  %v389_v32 = vpop.f32.mrb[1].mxu0 }
 0x103   :  { %717 = vst [vmem:[%s1046_s6 + $0x28] sm:$0xff] %v701_v22   ;;  %v496_v34 = vadd.f32 %v982_v33, %v473_v23  ;;  %v474_v35 = vmul.f32 %v977_v30, %v449_v24  ;;  %v459_v36 = vmul.f32 %v977_v30, %v389_v32  ;;  %v782_v37 = vpop.f32.mrb[2].mxu0 }
 0x104   :  { %716 = vst [vmem:[%s1046_s6 + $0x20] sm:$0xff] %v696_v27   ;;  %v494_v38 = vadd.f32 %v982_v33, %v471_v28  ;;  %v472_v39 = vmul.f32 %v977_v30, %v441_v29  ;;  %v484_v40 = vadd.f32 %v982_v33, %v461_v31  ;;  %v462_v41 = vmul.f32 %v782_v37, %v977_v30  ;;  %v392_v42 = vpop.f32.mrb[3].mxu0 }
 0x105   :  { %v497_v43 = vadd.f32 %v982_v33, %v474_v35  ;;  %v482_v44 = vadd.f32 %v982_v33, %v459_v36  ;;  %v460_v45 = vmul.f32 %v977_v30, %v392_v42  ;;  %v512_v48 = vmax.f32 %v496_v34, 0.0 }
 0x106   :  { %v495_v46 = vadd.f32 %v982_v33, %v472_v39  ;;  %v485_v47 = vadd.f32 %v982_v33, %v462_v41  ;;  %v510_v51 = vmax.f32 %v494_v38, 0.0  ;;  %v500_v53 = vmax.f32 %v484_v40, 0.0 }
 0x107   :  { %v513_v49 = vmax.f32 %v497_v43, 0.0  ;;  %v483_v50 = vadd.f32 %v982_v33, %v460_v45  ;;  %v498_v56 = vmax.f32 %v482_v44, 0.0 }
 0x108   :  { %v511_v52 = vmax.f32 %v495_v46, 0.0  ;;  %v501_v54 = vmax.f32 %v485_v47, 0.0 }
 0x109   :  { %v711_v55 = vpack.c.bf16 %v513_v49, %v512_v48  ;;  %v499_v57 = vmax.f32 %v483_v50, 0.0 }
 0x10a   :  { %v706_v58 = vpack.c.bf16 %v511_v52, %v510_v51  ;;  %v681_v59 = vpack.c.bf16 %v501_v54, %v500_v53 }
 0x10b   :  { %719 = vst [vmem:[%s1046_s6 + $0x38] sm:$0xff] %v711_v55   ;;  %v676_v30 = vpack.c.bf16 %v499_v57, %v498_v56 }
 0x10c   :  { %718 = vst [vmem:[%s1046_s6 + $0x30] sm:$0xff] %v706_v58   ;;  %713 = vst [vmem:[%s1046_s6 + $0x8] sm:$0xff] %v681_v59  }
 0x10d   :  { %677 = vst [vmem:[%s1046_s6] sm:$0xff] %v676_v30  }

// kernel: lenet5_modified_forward.7
= control target key start
LH: loop header
LB: loop body
LE: loop exit
PB: predicated region body
PF: predicated region fallthrough
CT: control target
= control target key end

     0   :  { %v1073_v28 = vlaneseq  ;;  %v7816_v36 = vmov 1966171168   ;;  %s9566_s0 = inlined_call_operand.vmem [shape: bf16[2,8192], index: 0, kind: input, shape index: {}]   ;;  %s9567_s1 = inlined_call_operand.vmem [shape: bf16[8192,128], index: 1, kind: input, shape index: {}]   ;;  %s9568_s2 = inlined_call_operand.vmem [shape: f32[1,128], index: 2, kind: input, shape index: {}]   ;;  %s9569_s3 = inlined_call_operand.vmem [shape: bf16[128,128], index: 3, kind: input, shape index: {}]   ;;  %s9570_s4 = inlined_call_operand.vmem [shape: f32[1,128], index: 4, kind: input, shape index: {}]   ;;  %s9571_s5 = inlined_call_operand.hbm [shape: f32[2,128], index: 5, kind: output, shape index: {}]  }
   0x1   :  { %v7264_v0 = vld [vmem:[%s9567_s1 + $0x40] sm:$0xff]   ;;  %v7268_v4 = vld [vmem:[%s9567_s1 + $0x48] sm:$0xff]   ;;  %v7272_v8 = vld [vmem:[%s9567_s1 + $0x50] sm:$0xff]   ;;  %v1071_v37 = vunpack.c.l.s4 %v7816_v36 }
   0x2   :  { %v7265_v1 = vld [vmem:[%s9567_s1 + $0xc0] sm:$0xff]   ;;  %6527 = vmatprep.subr.bf16.mxu0 %v7264_v0  ;;  %v7269_v5 = vld [vmem:[%s9567_s1 + $0xc8] sm:$0xff]   ;;  %v7273_v9 = vld [vmem:[%s9567_s1 + $0xd0] sm:$0xff]   ;;  %v1074_v33 = vshrl.u32 %v1073_v28, 7 }
   0x3   :  { %v7266_v2 = vld [vmem:[%s9567_s1] sm:$0xff]   ;;  %6549 = vmatprep.subr.bf16.mxu1 %v7265_v1  ;;  %v7270_v6 = vld [vmem:[%s9567_s1 + $0x8] sm:$0xff]   ;;  %v7274_v10 = vld [vmem:[%s9567_s1 + $0x10] sm:$0xff]   ;;  %v1072_v40 = vunpack.c.0.s8 %v1071_v37 }
   0x4   :  { %v7267_v3 = vld [vmem:[%s9567_s1 + $0x80] sm:$0xff]   ;;  %6528 = vmatpush3.bf16.msra.mxu0 %v7266_v2  ;;  %v7271_v7 = vld [vmem:[%s9567_s1 + $0x88] sm:$0xff]   ;;  %v7275_v11 = vld [vmem:[%s9567_s1 + $0x90] sm:$0xff]  }
   0x5   :  { %6550 = vmatpush3.bf16.msra.mxu1 %v7267_v3  ;;  %6529 = vmatprep.subr.bf16.mxu0 %v7268_v4  ;;  %v7276_v12 = vld [vmem:[%s9567_s1 + $0x58] sm:$0xff]   ;;  %v7280_v16 = vld [vmem:[%s9567_s1 + $0x60] sm:$0xff]   ;;  %v7284_v20 = vld [vmem:[%s9567_s1 + $0x68] sm:$0xff]   ;;  %v7955_v41 = vsub.s32 %v1072_v40, %v1074_v33 }
   0x6   :  { %6551 = vmatprep.subr.bf16.mxu1 %v7269_v5  ;;  %v7277_v13 = vld [vmem:[%s9567_s1 + $0xd8] sm:$0xff]   ;;  %v7281_v17 = vld [vmem:[%s9567_s1 + $0xe0] sm:$0xff]   ;;  %v7285_v21 = vld [vmem:[%s9567_s1 + $0xe8] sm:$0xff]  }
   0x7   :  { %v7278_v14 = vld [vmem:[%s9567_s1 + $0x18] sm:$0xff]   ;;  %v7282_v18 = vld [vmem:[%s9567_s1 + $0x20] sm:$0xff]   ;;  %v7286_v22 = vld [vmem:[%s9567_s1 + $0x28] sm:$0xff]  }
   0x8   :  { %6530 = vmatpush3.bf16.msra.mxu0 %v7270_v6  ;;  %v7279_v15 = vld [vmem:[%s9567_s1 + $0x98] sm:$0xff]   ;;  %v7283_v19 = vld [vmem:[%s9567_s1 + $0xa0] sm:$0xff]   ;;  %v7287_v23 = vld [vmem:[%s9567_s1 + $0xa8] sm:$0xff]  }
   0x9   :  { %6552 = vmatpush3.bf16.msra.mxu1 %v7271_v7  ;;  %6531 = vmatprep.subr.bf16.mxu0 %v7272_v8  ;;  %v7288_v24 = vld [vmem:[%s9567_s1 + $0x70] sm:$0xff]   ;;  %v7292_v29 = vld [vmem:[%s9567_s1 + $0x78] sm:$0xff]   ;;  %v22_v34 = vld [vmem:[%s9566_s0] sm:$0xff] }
   0xa   :  { %6553 = vmatprep.subr.bf16.mxu1 %v7273_v9  ;;  %v7289_v25 = vld [vmem:[%s9567_s1 + $0xf0] sm:$0xff]   ;;  %v7293_v30 = vld [vmem:[%s9567_s1 + $0xf8] sm:$0xff]   ;;  %v7297_v35 = vld [vmem:[%s9567_s1 + $0x140] sm:$0xff]   ;;  %v1069_v39 = vcombine.high %v22_v34, %v22_v34  ;;  %v1076_v42 = vrot.slane %v22_v34, %v7955_v41 }
   0xb   :  { %v7290_v26 = vld [vmem:[%s9567_s1 + $0x30] sm:$0xff]   ;;  %v7294_v31 = vld [vmem:[%s9567_s1 + $0x38] sm:$0xff]   ;;  %v7298_v38 = vld [vmem:[%s9567_s1 + $0x1c0] sm:$0xff]  }
   0xc   :  { %6532 = vmatpush3.bf16.msra.mxu0 %v7274_v10  ;;  %v7291_v27 = vld [vmem:[%s9567_s1 + $0xb0] sm:$0xff]   ;;  %v7295_v32 = vld [vmem:[%s9567_s1 + $0xb8] sm:$0xff]   ;;  %v7959_v43 = vrot.slane %v1069_v39, %v7955_v41  ;;  %v1084_v44 = vcombine.high %v1076_v42, %v1076_v42  ;;  %v1092_v45 = vrot.slane %v1076_v42, %v7955_v41  ;;  %v7299_v47 = vld [vmem:[%s9567_s1 + $0x100] sm:$0xff]  }
   0xd   :  { %6554 = vmatpush3.bf16.msra.mxu1 %v7275_v11  ;;  %6533 = vmatprep.subr.bf16.mxu0 %v7276_v12  ;;  %v7300_v49 = vld [vmem:[%s9567_s1 + $0x180] sm:$0xff]   ;;  %v7301_v52 = vld [vmem:[%s9567_s1 + $0x148] sm:$0xff]   ;;  %v7305_v58 = vld [vmem:[%s9567_s1 + $0x150] sm:$0xff]  }
   0xe   :  { %6555 = vmatprep.subr.bf16.mxu1 %v7277_v13  ;;  %v1085_v46 = vcombine.high %v7959_v43, %v7959_v43  ;;  %v1106_v48 = vrot.slane %v1084_v44, %v7955_v41  ;;  %v1114_v51 = vcombine.high %v1092_v45, %v1092_v45  ;;  %v7302_v54 = vld [vmem:[%s9567_s1 + $0x1c8] sm:$0xff]   ;;  %v7306_v59 = vld [vmem:[%s9567_s1 + $0x1d0] sm:$0xff]   ;;  %v7309_v62 = vld [vmem:[%s9567_s1 + $0x158] sm:$0xff]  }
   0xf   :  { %v7303_v55 = vld [vmem:[%s9567_s1 + $0x108] sm:$0xff]   ;;  %v7307_v60 = vld [vmem:[%s9567_s1 + $0x110] sm:$0xff]   ;;  %v7310_v63 = vld [vmem:[%s9567_s1 + $0x1d8] sm:$0xff]  }
  0x10   :  { %6534 = vmatpush3.bf16.msra.mxu0 %v7278_v14  ;;  %v1113_v50 = vrot.slane %v1085_v46, %v7955_v41  ;;  %4629 = vmatprep.mubr.bf16.mxu0 %v1106_v48  ;;  %v1116_v53 = vcombine.high %v1106_v48, %v1106_v48  ;;  %v7304_v57 = vld [vmem:[%s9567_s1 + $0x188] sm:$0xff]   ;;  %v7308_v61 = vld [vmem:[%s9567_s1 + $0x190] sm:$0xff]   ;;  %v7311_v0 = vld [vmem:[%s9567_s1 + $0x118] sm:$0xff]  }
  0x11   :  { %6556 = vmatpush3.bf16.msra.mxu1 %v7279_v15  ;;  %6535 = vmatprep.subr.bf16.mxu0 %v7280_v16  ;;  %v7312_v1 = vld [vmem:[%s9567_s1 + $0x198] sm:$0xff]   ;;  %v7313_v2 = vld [vmem:[%s9567_s1 + $0x160] sm:$0xff]   ;;  %v7317_v6 = vld [vmem:[%s9567_s1 + $0x168] sm:$0xff]  }
  0x12   :  { %6557 = vmatprep.subr.bf16.mxu1 %v7281_v17  ;;  %v1117_v56 = vcombine.high %v1113_v50, %v1113_v50  ;;  %4669 = vmatprep.mubr.bf16.mxu1 %v1116_v53  ;;  %v7314_v3 = vld [vmem:[%s9567_s1 + $0x1e0] sm:$0xff]   ;;  %v7318_v7 = vld [vmem:[%s9567_s1 + $0x1e8] sm:$0xff]   ;;  %v7321_v10 = vld [vmem:[%s9567_s1 + $0x170] sm:$0xff]  }
  0x13   :  { %v7315_v4 = vld [vmem:[%s9567_s1 + $0x120] sm:$0xff]   ;;  %v7319_v8 = vld [vmem:[%s9567_s1 + $0x128] sm:$0xff]   ;;  %v7322_v11 = vld [vmem:[%s9567_s1 + $0x1f0] sm:$0xff]  }
  0x14   :  { %6536 = vmatpush3.bf16.msra.mxu0 %v7282_v18  ;;  %v7316_v5 = vld [vmem:[%s9567_s1 + $0x1a0] sm:$0xff]   ;;  %v7320_v9 = vld [vmem:[%s9567_s1 + $0x1a8] sm:$0xff]   ;;  %v7323_v12 = vld [vmem:[%s9567_s1 + $0x130] sm:$0xff]   ;;  %v1099_v18 = vrot.slane %v7959_v43, %v7955_v41 }
  0x15   :  { %6558 = vmatpush3.bf16.msra.mxu1 %v7283_v19  ;;  %6537 = vmatprep.subr.bf16.mxu0 %v7284_v20  ;;  %v7324_v13 = vld [vmem:[%s9567_s1 + $0x1b0] sm:$0xff]   ;;  %v7325_v14 = vld [vmem:[%s9567_s1 + $0x178] sm:$0xff]   ;;  %v7329_v19 = vld [vmem:[%s9567_s1 + $0x240] sm:$0xff]  }
  0x16   :  { %6559 = vmatprep.subr.bf16.mxu1 %v7285_v21  ;;  %v7326_v15 = vld [vmem:[%s9567_s1 + $0x1f8] sm:$0xff]   ;;  %v7330_v20 = vld [vmem:[%s9567_s1 + $0x2c0] sm:$0xff]   ;;  %v7337_v28 = vld [vmem:[%s9567_s1 + $0x250] sm:$0xff]  }
  0x17   :  { %v7327_v16 = vld [vmem:[%s9567_s1 + $0x138] sm:$0xff]   ;;  %v7331_v21 = vld [vmem:[%s9567_s1 + $0x200] sm:$0xff]   ;;  %v7349_v40 = vld [vmem:[%s9567_s1 + $0x268] sm:$0xff]  }
  0x18   :  { %6538 = vmatpush3.bf16.msra.mxu0 %v7286_v22  ;;  %v7328_v17 = vld [vmem:[%s9567_s1 + $0x1b8] sm:$0xff]   ;;  %v7332_v22 = vld [vmem:[%s9567_s1 + $0x280] sm:$0xff]   ;;  %v7350_v42 = vld [vmem:[%s9567_s1 + $0x2e8] sm:$0xff]  }
  0x19   :  { %6560 = vmatpush3.bf16.msra.mxu1 %v7287_v23  ;;  %6539 = vmatprep.subr.bf16.mxu0 %v7288_v24  ;;  %v1115_v23 = vcombine.high %v1099_v18, %v1099_v18  ;;  %v7333_v24 = vld [vmem:[%s9567_s1 + $0x248] sm:$0xff]   ;;  %v7342_v33 = vld [vmem:[%s9567_s1 + $0x2d8] sm:$0xff]   ;;  %v7345_v36 = vld [vmem:[%s9567_s1 + $0x260] sm:$0xff]  }
  0x1a   :  { %6561 = vmatprep.subr.bf16.mxu1 %v7289_v25  ;;  %v7334_v25 = vld [vmem:[%s9567_s1 + $0x2c8] sm:$0xff]   ;;  %v7343_v34 = vld [vmem:[%s9567_s1 + $0x218] sm:$0xff]   ;;  %v7346_v37 = vld [vmem:[%s9567_s1 + $0x2e0] sm:$0xff]  }
  0x1b   :  { %v7348_v39 = vld [vmem:[%s9567_s1 + $0x2a0] sm:$0xff]   ;;  %v7351_v43 = vld [vmem:[%s9567_s1 + $0x228] sm:$0xff]  }
  0x1c   :  { %6540 = vmatpush3.bf16.msra.mxu0 %v7290_v26  ;;  %v7335_v26 = vld [vmem:[%s9567_s1 + $0x208] sm:$0xff]  }
  0x1d   :  { %6562 = vmatpush3.bf16.msra.mxu1 %v7291_v27  ;;  %6541 = vmatprep.subr.bf16.mxu0 %v7292_v29  ;;  %v7336_v27 = vld [vmem:[%s9567_s1 + $0x288] sm:$0xff]   ;;  %v7338_v29 = vld [vmem:[%s9567_s1 + $0x2d0] sm:$0xff]  }
  0x1e   :  { %6563 = vmatprep.subr.bf16.mxu1 %v7293_v30  ;;  %v7339_v30 = vld [vmem:[%s9567_s1 + $0x210] sm:$0xff]   ;;  %v7352_v44 = vld [vmem:[%s9567_s1 + $0x2a8] sm:$0xff]  }
  0x1f   :  { %v23_v46 = vld [vmem:[%s9566_s0 + $0x8] sm:$0xff] }
  0x20   :  { %6542 = vmatpush3.bf16.msra.mxu0 %v7294_v31  ;;  %v7340_v31 = vld [vmem:[%s9567_s1 + $0x290] sm:$0xff]   ;;  %v1125_v48 = vrot.slane %v23_v46, %v7955_v41 }
  0x21   :  { %6564 = vmatpush3.bf16.msra.mxu1 %v7295_v32  ;;  %6571 = vmatprep.subr.bf16.mxu0 %v7297_v35  ;;  %v7341_v32 = vld [vmem:[%s9567_s1 + $0x258] sm:$0xff]  }
  0x22   :  { %6593 = vmatprep.subr.bf16.mxu1 %v7298_v38  ;;  %v7344_v35 = vld [vmem:[%s9567_s1 + $0x298] sm:$0xff]   ;;  %v7347_v38 = vld [vmem:[%s9567_s1 + $0x220] sm:$0xff]  }
  0x23   :  { %4630 = vmatmul.mubr.bf16.vlgmr.msra.gmra.mrb[0].mxu0 %v1092_v45  ;;  %v7353_v45 = vld [vmem:[%s9567_s1 + $0x270] sm:$0xff]  }
  0x24   :  { %6572 = vmatpush3.bf16.msra.mxu0 %v7299_v47  ;;  %4670 = vmatmul.mubr.bf16.vlgmr.msra.gmra.mrb[0].mxu1 %v1114_v51  ;;  %v7354_v47 = vld [vmem:[%s9567_s1 + $0x2f0] sm:$0xff]  }
  0x25   :  { %6573 = vmatprep.subr.bf16.mxu0 %v7301_v52  ;;  %6594 = vmatpush3.bf16.msra.mxu1 %v7300_v49  ;;  %v1118_v49 = vcombine.high %v23_v46, %v23_v46  ;;  %v7356_v51 = vld [vmem:[%s9567_s1 + $0x2b0] sm:$0xff]   ;;  %v1133_v52 = vcombine.high %v1125_v48, %v1125_v48 }
  0x26   :  { %4709 = vmatprep.mubr.bf16.mxu0 %v1113_v50  ;;  %6595 = vmatprep.subr.bf16.mxu1 %v7302_v54  ;;  %v7355_v50 = vld [vmem:[%s9567_s1 + $0x230] sm:$0xff]   ;;  %v7357_v54 = vld [vmem:[%s9567_s1 + $0x278] sm:$0xff]  }
  0x27   :  { %4749 = vmatprep.mubr.bf16.mxu1 %v1117_v56  ;;  %v8147_v53 = vrot.slane %v1118_v49, %v7955_v41  ;;  %v1155_v56 = vrot.slane %v1133_v52, %v7955_v41  ;;  %v7404_v46 = vld [vmem:[%s9567_s1 + $0x410] sm:$0xff]   ;;  %v7407_v49 = vld [vmem:[%s9567_s1 + $0x4d8] sm:$0xff]   ;;  %v7410_v52 = vld [vmem:[%s9567_s1 + $0x460] sm:$0xff]  }
  0x28   :  { %6574 = vmatpush3.bf16.msra.mxu0 %v7303_v55  ;;  %v7358_v55 = vld [vmem:[%s9567_s1 + $0x2f8] sm:$0xff]  }
  0x29   :  { %6575 = vmatprep.subr.bf16.mxu0 %v7305_v58  ;;  %6596 = vmatpush3.bf16.msra.mxu1 %v7304_v57  ;;  %v1134_v57 = vcombine.high %v8147_v53, %v8147_v53  ;;  %v7359_v58 = vld [vmem:[%s9567_s1 + $0x238] sm:$0xff]  }
  0x2a   :  { %6597 = vmatprep.subr.bf16.mxu1 %v7306_v59  ;;  %v7360_v59 = vld [vmem:[%s9567_s1 + $0x2b8] sm:$0xff]  }
  0x2c   :  { %6576 = vmatpush3.bf16.msra.mxu0 %v7307_v60  ;;  %v1165_v60 = vcombine.high %v1155_v56, %v1155_v56 }
  0x2d   :  { %6577 = vmatprep.subr.bf16.mxu0 %v7309_v62  ;;  %6598 = vmatpush3.bf16.msra.mxu1 %v7308_v61  ;;  %v1141_v61 = vrot.slane %v1125_v48, %v7955_v41  ;;  %v7361_v62 = vld [vmem:[%s9567_s1 + $0x340] sm:$0xff]   ;;  %v7406_v48 = vld [vmem:[%s9567_s1 + $0x458] sm:$0xff]  }
  0x2e   :  { %6599 = vmatprep.subr.bf16.mxu1 %v7310_v63  ;;  %v7362_v63 = vld [vmem:[%s9567_s1 + $0x3c0] sm:$0xff]  }
  0x30   :  { %6578 = vmatpush3.bf16.msra.mxu0 %v7311_v0  ;;  %v1162_v0 = vrot.slane %v1134_v57, %v7955_v41  ;;  %v7415_v57 = vld [vmem:[%s9567_s1 + $0x4e8] sm:$0xff]  }
  0x31   :  { %6579 = vmatprep.subr.bf16.mxu0 %v7313_v2  ;;  %6600 = vmatpush3.bf16.msra.mxu1 %v7312_v1  ;;  %v7363_v1 = vld [vmem:[%s9567_s1 + $0x300] sm:$0xff]  }
  0x32   :  { %6601 = vmatprep.subr.bf16.mxu1 %v7314_v3  ;;  %v7364_v2 = vld [vmem:[%s9567_s1 + $0x380] sm:$0xff]   ;;  %v1163_v3 = vcombine.high %v1141_v61, %v1141_v61 }
  0x34   :  { %6580 = vmatpush3.bf16.msra.mxu0 %v7315_v4  ;;  %v7365_v4 = vld [vmem:[%s9567_s1 + $0x348] sm:$0xff]  }
  0x35   :  { %6581 = vmatprep.subr.bf16.mxu0 %v7317_v6  ;;  %6602 = vmatpush3.bf16.msra.mxu1 %v7316_v5  ;;  %v7366_v5 = vld [vmem:[%s9567_s1 + $0x3c8] sm:$0xff]   ;;  %v1166_v6 = vcombine.high %v1162_v0, %v1162_v0 }
  0x36   :  { %6603 = vmatprep.subr.bf16.mxu1 %v7318_v7  ;;  %v7367_v7 = vld [vmem:[%s9567_s1 + $0x308] sm:$0xff]  }
  0x38   :  { %6582 = vmatpush3.bf16.msra.mxu0 %v7319_v8  ;;  %v7368_v8 = vld [vmem:[%s9567_s1 + $0x388] sm:$0xff]  }
  0x39   :  { %6583 = vmatprep.subr.bf16.mxu0 %v7321_v10  ;;  %6604 = vmatpush3.bf16.msra.mxu1 %v7320_v9  ;;  %v7369_v9 = vld [vmem:[%s9567_s1 + $0x350] sm:$0xff]  }
  0x3a   :  { %6605 = vmatprep.subr.bf16.mxu1 %v7322_v11  ;;  %v7370_v10 = vld [vmem:[%s9567_s1 + $0x3d0] sm:$0xff]  }
  0x3b   :  { %v7371_v11 = vld [vmem:[%s9567_s1 + $0x310] sm:$0xff]  }
  0x3c   :  { %6584 = vmatpush3.bf16.msra.mxu0 %v7323_v12  ;;  %v7372_v12 = vld [vmem:[%s9567_s1 + $0x390] sm:$0xff]  }
  0x3d   :  { %6585 = vmatprep.subr.bf16.mxu0 %v7325_v14  ;;  %6606 = vmatpush3.bf16.msra.mxu1 %v7324_v13  ;;  %v7373_v13 = vld [vmem:[%s9567_s1 + $0x358] sm:$0xff]  }
  0x3e   :  { %6607 = vmatprep.subr.bf16.mxu1 %v7326_v15  ;;  %v7374_v14 = vld [vmem:[%s9567_s1 + $0x3d8] sm:$0xff]  }
  0x3f   :  { %v7375_v15 = vld [vmem:[%s9567_s1 + $0x318] sm:$0xff]  }
  0x40   :  { %6586 = vmatpush3.bf16.msra.mxu0 %v7327_v16  ;;  %v7376_v16 = vld [vmem:[%s9567_s1 + $0x398] sm:$0xff]  }
  0x41   :  { %6615 = vmatprep.subr.bf16.mxu0 %v7329_v19  ;;  %6608 = vmatpush3.bf16.msra.mxu1 %v7328_v17  ;;  %v7377_v17 = vld [vmem:[%s9567_s1 + $0x360] sm:$0xff]  }
  0x42   :  { %6637 = vmatprep.subr.bf16.mxu1 %v7330_v20  ;;  %v7379_v19 = vld [vmem:[%s9567_s1 + $0x320] sm:$0xff]  }
  0x43   :  { %4710 = vmatmul.mubr.bf16.vlgmr.msra.gmra.mrb[4].mxu0 %v1099_v18  ;;  %v7378_v18 = vld [vmem:[%s9567_s1 + $0x3e0] sm:$0xff]  }
  0x44   :  { %6616 = vmatpush3.bf16.msra.mxu0 %v7331_v21  ;;  %4750 = vmatmul.mubr.bf16.vlgmr.msra.gmra.mrb[4].mxu1 %v1115_v23  ;;  %v7380_v20 = vld [vmem:[%s9567_s1 + $0x3a0] sm:$0xff]   ;;  %v7381_v21 = vld [vmem:[%s9567_s1 + $0x368] sm:$0xff]  }
  0x45   :  { %6617 = vmatprep.subr.bf16.mxu0 %v7333_v24  ;;  %6638 = vmatpush3.bf16.msra.mxu1 %v7332_v22  ;;  %v7382_v22 = vld [vmem:[%s9567_s1 + $0x3e8] sm:$0xff]  }
  0x46   :  { %6639 = vmatprep.subr.bf16.mxu1 %v7334_v25  ;;  %4789 = vmatprep.mubr.bf16.mxu0 %v1155_v56  ;;  %v7383_v23 = vld [vmem:[%s9567_s1 + $0x328] sm:$0xff]   ;;  %v7385_v25 = vld [vmem:[%s9567_s1 + $0x370] sm:$0xff]  }
  0x47   :  { %4829 = vmatprep.mubr.bf16.mxu1 %v1165_v60  ;;  %v7384_v24 = vld [vmem:[%s9567_s1 + $0x3a8] sm:$0xff]   ;;  %v7418_v60 = vld [vmem:[%s9567_s1 + $0x470] sm:$0xff]  }
  0x48   :  { %6618 = vmatpush3.bf16.msra.mxu0 %v7335_v26  ;;  %v7386_v26 = vld [vmem:[%s9567_s1 + $0x3f0] sm:$0xff]   ;;  %v7414_v56 = vld [vmem:[%s9567_s1 + $0x468] sm:$0xff]  }
  0x49   :  { %6619 = vmatprep.subr.bf16.mxu0 %v7337_v28  ;;  %6640 = vmatpush3.bf16.msra.mxu1 %v7336_v27  ;;  %v7387_v27 = vld [vmem:[%s9567_s1 + $0x330] sm:$0xff]  }
  0x4a   :  { %6641 = vmatprep.subr.bf16.mxu1 %v7338_v29  ;;  %v7388_v28 = vld [vmem:[%s9567_s1 + $0x3b0] sm:$0xff]   ;;  %v7389_v29 = vld [vmem:[%s9567_s1 + $0x378] sm:$0xff]  }
  0x4c   :  { %6620 = vmatpush3.bf16.msra.mxu0 %v7339_v30  ;;  %v7390_v30 = vld [vmem:[%s9567_s1 + $0x3f8] sm:$0xff]  }
  0x4d   :  { %6621 = vmatprep.subr.bf16.mxu0 %v7341_v32  ;;  %6642 = vmatpush3.bf16.msra.mxu1 %v7340_v31  ;;  %v7391_v31 = vld [vmem:[%s9567_s1 + $0x338] sm:$0xff]  }
  0x4e   :  { %6643 = vmatprep.subr.bf16.mxu1 %v7342_v33  ;;  %v7392_v32 = vld [vmem:[%s9567_s1 + $0x3b8] sm:$0xff]   ;;  %v1148_v33 = vrot.slane %v8147_v53, %v7955_v41  ;;  %v7411_v53 = vld [vmem:[%s9567_s1 + $0x4e0] sm:$0xff]  }
  0x50   :  { %6622 = vmatpush3.bf16.msra.mxu0 %v7343_v34  ;;  %v7394_v34 = vld [vmem:[%s9567_s1 + $0x440] sm:$0xff]  }
  0x51   :  { %6623 = vmatprep.subr.bf16.mxu0 %v7345_v36  ;;  %6644 = vmatpush3.bf16.msra.mxu1 %v7344_v35  ;;  %v7395_v35 = vld [vmem:[%s9567_s1 + $0x4c0] sm:$0xff]  }
  0x52   :  { %6645 = vmatprep.subr.bf16.mxu1 %v7346_v37  ;;  %v7396_v36 = vld [vmem:[%s9567_s1 + $0x400] sm:$0xff]  }
  0x53   :  { %v7397_v37 = vld [vmem:[%s9567_s1 + $0x480] sm:$0xff]  }
  0x54   :  { %6624 = vmatpush3.bf16.msra.mxu0 %v7347_v38  ;;  %v1164_v38 = vcombine.high %v1148_v33, %v1148_v33 }
  0x55   :  { %6625 = vmatprep.subr.bf16.mxu0 %v7349_v40  ;;  %6646 = vmatpush3.bf16.msra.mxu1 %v7348_v39  ;;  %v7398_v39 = vld [vmem:[%s9567_s1 + $0x448] sm:$0xff]  }
  0x56   :  { %6647 = vmatprep.subr.bf16.mxu1 %v7350_v42  ;;  %v7399_v40 = vld [vmem:[%s9567_s1 + $0x4c8] sm:$0xff]  }
  0x57   :  { %v7400_v42 = vld [vmem:[%s9567_s1 + $0x408] sm:$0xff]  }
  0x58   :  { %6626 = vmatpush3.bf16.msra.mxu0 %v7351_v43  ;;  %v7401_v43 = vld [vmem:[%s9567_s1 + $0x488] sm:$0xff]  }
  0x59   :  { %6627 = vmatprep.subr.bf16.mxu0 %v7353_v45  ;;  %6648 = vmatpush3.bf16.msra.mxu1 %v7352_v44  ;;  %v7402_v44 = vld [vmem:[%s9567_s1 + $0x450] sm:$0xff]  }
  0x5a   :  { %6649 = vmatprep.subr.bf16.mxu1 %v7354_v47  ;;  %v7403_v45 = vld [vmem:[%s9567_s1 + $0x4d0] sm:$0xff]  }
  0x5b   :  { %v7405_v47 = vld [vmem:[%s9567_s1 + $0x490] sm:$0xff]  }
  0x5c   :  { %6628 = vmatpush3.bf16.msra.mxu0 %v7355_v50  ;;  %v7408_v50 = vld [vmem:[%s9567_s1 + $0x418] sm:$0xff]  }
  0x5d   :  { %6629 = vmatprep.subr.bf16.mxu0 %v7357_v54  ;;  %6650 = vmatpush3.bf16.msra.mxu1 %v7356_v51  ;;  %v7409_v51 = vld [vmem:[%s9567_s1 + $0x498] sm:$0xff]   ;;  %v7412_v54 = vld [vmem:[%s9567_s1 + $0x420] sm:$0xff]  }
  0x5e   :  { %6651 = vmatprep.subr.bf16.mxu1 %v7358_v55  ;;  %v7413_v55 = vld [vmem:[%s9567_s1 + $0x4a0] sm:$0xff]  }
  0x60   :  { %6630 = vmatpush3.bf16.msra.mxu0 %v7359_v58  ;;  %v7416_v58 = vld [vmem:[%s9567_s1 + $0x428] sm:$0xff]  }
  0x61   :  { %6659 = vmatprep.subr.bf16.mxu0 %v7361_v62  ;;  %6652 = vmatpush3.bf16.msra.mxu1 %v7360_v59  ;;  %v7417_v59 = vld [vmem:[%s9567_s1 + $0x4a8] sm:$0xff]   ;;  %v7419_v62 = vld [vmem:[%s9567_s1 + $0x4f0] sm:$0xff]  }
  0x62   :  { %6681 = vmatprep.subr.bf16.mxu1 %v7362_v63 }
  0x63   :  { %4790 = vmatmul.mubr.bf16.vlgmr.msra.gmra.mrb[8].mxu0 %v1141_v61  ;;  %v24_v61 = vld [vmem:[%s9566_s0 + $0x10] sm:$0xff] }
  0x64   :  { %6660 = vmatpush3.bf16.msra.mxu0 %v7363_v1  ;;  %4869 = vmatprep.mubr.bf16.mxu0 %v1162_v0  ;;  %v1174_v63 = vrot.slane %v24_v61, %v7955_v41  ;;  %v1167_v0 = vcombine.high %v24_v61, %v24_v61  ;;  %v7420_v1 = vld [vmem:[%s9567_s1 + $0x430] sm:$0xff]  }
  0x65   :  { %4830 = vmatmul.mubr.bf16.vlgmr.msra.gmra.mrb[8].mxu1 %v1163_v3  ;;  %6661 = vmatprep.subr.bf16.mxu0 %v7365_v4  ;;  %v7469_v61 = vld [vmem:[%s9567_s1 + $0x610] sm:$0xff]  }
  0x66   :  { %6682 = vmatpush3.bf16.msra.mxu1 %v7364_v2  ;;  %4909 = vmatprep.mubr.bf16.mxu1 %v1166_v6  ;;  %v7421_v2 = vld [vmem:[%s9567_s1 + $0x4b0] sm:$0xff]   ;;  %v1182_v3 = vcombine.high %v1174_v63, %v1174_v63  ;;  %v8353_v4 = vrot.slane %v1167_v0, %v7955_v41  ;;  %v7423_v6 = vld [vmem:[%s9567_s1 + $0x4f8] sm:$0xff]  }
  0x67   :  { %6683 = vmatprep.subr.bf16.mxu1 %v7366_v5  ;;  %v7422_v5 = vld [vmem:[%s9567_s1 + $0x478] sm:$0xff]  }
  0x68   :  { %6662 = vmatpush3.bf16.msra.mxu0 %v7367_v7  ;;  %v1204_v7 = vrot.slane %v1182_v3, %v7955_v41  ;;  %v7472_v0 = vld [vmem:[%s9567_s1 + $0x6d8] sm:$0xff]   ;;  %v7475_v3 = vld [vmem:[%s9567_s1 + $0x660] sm:$0xff]  }
  0x69   :  { %6663 = vmatprep.subr.bf16.mxu0 %v7369_v9  ;;  %v7424_v9 = vld [vmem:[%s9567_s1 + $0x438] sm:$0xff]  }
  0x6a   :  { %6684 = vmatpush3.bf16.msra.mxu1 %v7368_v8  ;;  %v1183_v8 = vcombine.high %v8353_v4, %v8353_v4 }
  0x6b   :  { %6685 = vmatprep.subr.bf16.mxu1 %v7370_v10  ;;  %v7425_v10 = vld [vmem:[%s9567_s1 + $0x4b8] sm:$0xff]  }
  0x6c   :  { %6664 = vmatpush3.bf16.msra.mxu0 %v7371_v11  ;;  %v1214_v11 = vcombine.high %v1204_v7, %v1204_v7 }
  0x6d   :  { %6665 = vmatprep.subr.bf16.mxu0 %v7373_v13  ;;  %v7426_v13 = vld [vmem:[%s9567_s1 + $0x540] sm:$0xff]  }
  0x6e   :  { %6686 = vmatpush3.bf16.msra.mxu1 %v7372_v12  ;;  %v1190_v12 = vrot.slane %v1174_v63, %v7955_v41  ;;  %v7471_v63 = vld [vmem:[%s9567_s1 + $0x658] sm:$0xff]  }
  0x6f   :  { %6687 = vmatprep.subr.bf16.mxu1 %v7374_v14  ;;  %v7427_v14 = vld [vmem:[%s9567_s1 + $0x5c0] sm:$0xff]  }
  0x70   :  { %6666 = vmatpush3.bf16.msra.mxu0 %v7375_v15  ;;  %v1211_v15 = vrot.slane %v1183_v8, %v7955_v41  ;;  %v7480_v8 = vld [vmem:[%s9567_s1 + $0x6e8] sm:$0xff]  }
  0x71   :  { %6667 = vmatprep.subr.bf16.mxu0 %v7377_v17  ;;  %v7429_v17 = vld [vmem:[%s9567_s1 + $0x580] sm:$0xff]  }
  0x72   :  { %6688 = vmatpush3.bf16.msra.mxu1 %v7376_v16  ;;  %v7428_v16 = vld [vmem:[%s9567_s1 + $0x500] sm:$0xff]  }
  0x73   :  { %6689 = vmatprep.subr.bf16.mxu1 %v7378_v18  ;;  %v1212_v18 = vcombine.high %v1190_v12, %v1190_v12 }
  0x74   :  { %6668 = vmatpush3.bf16.msra.mxu0 %v7379_v19  ;;  %v7430_v19 = vld [vmem:[%s9567_s1 + $0x548] sm:$0xff]  }
  0x75   :  { %6669 = vmatprep.subr.bf16.mxu0 %v7381_v21  ;;  %v1215_v21 = vcombine.high %v1211_v15, %v1211_v15 }
  0x76   :  { %6690 = vmatpush3.bf16.msra.mxu1 %v7380_v20  ;;  %v7431_v20 = vld [vmem:[%s9567_s1 + $0x5c8] sm:$0xff]  }
  0x77   :  { %6691 = vmatprep.subr.bf16.mxu1 %v7382_v22  ;;  %v7432_v22 = vld [vmem:[%s9567_s1 + $0x508] sm:$0xff]  }
  0x78   :  { %6670 = vmatpush3.bf16.msra.mxu0 %v7383_v23  ;;  %v7433_v23 = vld [vmem:[%s9567_s1 + $0x588] sm:$0xff]  }
  0x79   :  { %6671 = vmatprep.subr.bf16.mxu0 %v7385_v25  ;;  %v7435_v25 = vld [vmem:[%s9567_s1 + $0x5d0] sm:$0xff]  }
  0x7a   :  { %6692 = vmatpush3.bf16.msra.mxu1 %v7384_v24  ;;  %v7434_v24 = vld [vmem:[%s9567_s1 + $0x550] sm:$0xff]  }
  0x7b   :  { %6693 = vmatprep.subr.bf16.mxu1 %v7386_v26  ;;  %v7436_v26 = vld [vmem:[%s9567_s1 + $0x510] sm:$0xff]  }
  0x7c   :  { %6672 = vmatpush3.bf16.msra.mxu0 %v7387_v27  ;;  %v7437_v27 = vld [vmem:[%s9567_s1 + $0x590] sm:$0xff]  }
  0x7d   :  { %6673 = vmatprep.subr.bf16.mxu0 %v7389_v29  ;;  %v7439_v29 = vld [vmem:[%s9567_s1 + $0x5d8] sm:$0xff]  }
  0x7e   :  { %6694 = vmatpush3.bf16.msra.mxu1 %v7388_v28  ;;  %v7438_v28 = vld [vmem:[%s9567_s1 + $0x558] sm:$0xff]  }
  0x7f   :  { %6695 = vmatprep.subr.bf16.mxu1 %v7390_v30  ;;  %v7440_v30 = vld [vmem:[%s9567_s1 + $0x518] sm:$0xff]  }
  0x80   :  { %6674 = vmatpush3.bf16.msra.mxu0 %v7391_v31  ;;  %v7441_v31 = vld [vmem:[%s9567_s1 + $0x598] sm:$0xff]  }
  0x81   :  { %6703 = vmatprep.subr.bf16.mxu0 %v7394_v34  ;;  %v7444_v34 = vld [vmem:[%s9567_s1 + $0x520] sm:$0xff]  }
  0x82   :  { %6696 = vmatpush3.bf16.msra.mxu1 %v7392_v32  ;;  %v7442_v32 = vld [vmem:[%s9567_s1 + $0x560] sm:$0xff]  }
  0x83   :  { %4870 = vmatmul.mubr.bf16.vlgmr.msra.gmra.mrb[12].mxu0 %v1148_v33  ;;  %6725 = vmatprep.subr.bf16.mxu1 %v7395_v35  ;;  %v7443_v33 = vld [vmem:[%s9567_s1 + $0x5e0] sm:$0xff]  }
  0x84   :  { %6704 = vmatpush3.bf16.msra.mxu0 %v7396_v36  ;;  %4949 = vmatprep.mubr.bf16.mxu0 %v1204_v7  ;;  %v7445_v35 = vld [vmem:[%s9567_s1 + $0x5a0] sm:$0xff]   ;;  %v7446_v36 = vld [vmem:[%s9567_s1 + $0x568] sm:$0xff]  }
  0x85   :  { %4910 = vmatmul.mubr.bf16.vlgmr.msra.gmra.mrb[12].mxu1 %v1164_v38  ;;  %6705 = vmatprep.subr.bf16.mxu0 %v7398_v39  ;;  %v7448_v38 = vld [vmem:[%s9567_s1 + $0x528] sm:$0xff]  }
  0x86   :  { %6726 = vmatpush3.bf16.msra.mxu1 %v7397_v37  ;;  %4989 = vmatprep.mubr.bf16.mxu1 %v1214_v11  ;;  %v7447_v37 = vld [vmem:[%s9567_s1 + $0x5e8] sm:$0xff]   ;;  %v7483_v11 = vld [vmem:[%s9567_s1 + $0x670] sm:$0xff]  }
  0x87   :  { %6727 = vmatprep.subr.bf16.mxu1 %v7399_v40  ;;  %v7449_v39 = vld [vmem:[%s9567_s1 + $0x5a8] sm:$0xff]   ;;  %v7450_v40 = vld [vmem:[%s9567_s1 + $0x570] sm:$0xff]  }
  0x88   :  { %6706 = vmatpush3.bf16.msra.mxu0 %v7400_v42  ;;  %v7451_v42 = vld [vmem:[%s9567_s1 + $0x5f0] sm:$0xff]   ;;  %v7479_v7 = vld [vmem:[%s9567_s1 + $0x668] sm:$0xff]  }
  0x89   :  { %6707 = vmatprep.subr.bf16.mxu0 %v7402_v44  ;;  %v7453_v44 = vld [vmem:[%s9567_s1 + $0x5b0] sm:$0xff]  }
  0x8a   :  { %6728 = vmatpush3.bf16.msra.mxu1 %v7401_v43  ;;  %v7452_v43 = vld [vmem:[%s9567_s1 + $0x530] sm:$0xff]  }
  0x8b   :  { %6729 = vmatprep.subr.bf16.mxu1 %v7403_v45  ;;  %v7454_v45 = vld [vmem:[%s9567_s1 + $0x578] sm:$0xff]  }
  0x8c   :  { %6708 = vmatpush3.bf16.msra.mxu0 %v7404_v46  ;;  %v7455_v46 = vld [vmem:[%s9567_s1 + $0x5f8] sm:$0xff]  }
  0x8d   :  { %6709 = vmatprep.subr.bf16.mxu0 %v7406_v48  ;;  %v7457_v48 = vld [vmem:[%s9567_s1 + $0x5b8] sm:$0xff]  }
  0x8e   :  { %6730 = vmatpush3.bf16.msra.mxu1 %v7405_v47  ;;  %v7456_v47 = vld [vmem:[%s9567_s1 + $0x538] sm:$0xff]  }
  0x8f   :  { %6731 = vmatprep.subr.bf16.mxu1 %v7407_v49  ;;  %v1197_v49 = vrot.slane %v8353_v4, %v7955_v41  ;;  %v7476_v4 = vld [vmem:[%s9567_s1 + $0x6e0] sm:$0xff]  }
  0x90   :  { %6710 = vmatpush3.bf16.msra.mxu0 %v7408_v50  ;;  %v7459_v50 = vld [vmem:[%s9567_s1 + $0x640] sm:$0xff]  }
  0x91   :  { %6711 = vmatprep.subr.bf16.mxu0 %v7410_v52  ;;  %v7461_v52 = vld [vmem:[%s9567_s1 + $0x600] sm:$0xff]  }
  0x92   :  { %6732 = vmatpush3.bf16.msra.mxu1 %v7409_v51  ;;  %v7460_v51 = vld [vmem:[%s9567_s1 + $0x6c0] sm:$0xff]  }
  0x93   :  { %6733 = vmatprep.subr.bf16.mxu1 %v7411_v53  ;;  %v7462_v53 = vld [vmem:[%s9567_s1 + $0x680] sm:$0xff]  }
  0x94   :  { %6712 = vmatpush3.bf16.msra.mxu0 %v7412_v54  ;;  %v1213_v54 = vcombine.high %v1197_v49, %v1197_v49 }
  0x95   :  { %6713 = vmatprep.subr.bf16.mxu0 %v7414_v56  ;;  %v7464_v56 = vld [vmem:[%s9567_s1 + $0x6c8] sm:$0xff]  }
  0x96   :  { %6734 = vmatpush3.bf16.msra.mxu1 %v7413_v55  ;;  %v7463_v55 = vld [vmem:[%s9567_s1 + $0x648] sm:$0xff]  }
  0x97   :  { %6735 = vmatprep.subr.bf16.mxu1 %v7415_v57  ;;  %v7465_v57 = vld [vmem:[%s9567_s1 + $0x608] sm:$0xff]  }
  0x98   :  { %6714 = vmatpush3.bf16.msra.mxu0 %v7416_v58  ;;  %v7466_v58 = vld [vmem:[%s9567_s1 + $0x688] sm:$0xff]  }
  0x99   :  { %6715 = vmatprep.subr.bf16.mxu0 %v7418_v60  ;;  %v7468_v60 = vld [vmem:[%s9567_s1 + $0x6d0] sm:$0xff]  }
  0x9a   :  { %6736 = vmatpush3.bf16.msra.mxu1 %v7417_v59  ;;  %v7467_v59 = vld [vmem:[%s9567_s1 + $0x650] sm:$0xff]  }
  0x9b   :  { %6737 = vmatprep.subr.bf16.mxu1 %v7419_v62  ;;  %v7470_v62 = vld [vmem:[%s9567_s1 + $0x690] sm:$0xff]  }
  0x9c   :  { %6716 = vmatpush3.bf16.msra.mxu0 %v7420_v1  ;;  %v7473_v1 = vld [vmem:[%s9567_s1 + $0x618] sm:$0xff]  }
  0x9d   :  { %6717 = vmatprep.subr.bf16.mxu0 %v7422_v5  ;;  %v7477_v5 = vld [vmem:[%s9567_s1 + $0x620] sm:$0xff]  }
  0x9e   :  { %6738 = vmatpush3.bf16.msra.mxu1 %v7421_v2  ;;  %v7474_v2 = vld [vmem:[%s9567_s1 + $0x698] sm:$0xff]  }
  0x9f   :  { %6739 = vmatprep.subr.bf16.mxu1 %v7423_v6  ;;  %v7478_v6 = vld [vmem:[%s9567_s1 + $0x6a0] sm:$0xff]  }
  0xa0   :  { %6718 = vmatpush3.bf16.msra.mxu0 %v7424_v9  ;;  %v7481_v9 = vld [vmem:[%s9567_s1 + $0x628] sm:$0xff]  }
  0xa1   :  { %6747 = vmatprep.subr.bf16.mxu0 %v7426_v13  ;;  %v7484_v13 = vld [vmem:[%s9567_s1 + $0x6f0] sm:$0xff]  }
  0xa2   :  { %6740 = vmatpush3.bf16.msra.mxu1 %v7425_v10  ;;  %v7482_v10 = vld [vmem:[%s9567_s1 + $0x6a8] sm:$0xff]  }
  0xa3   :  { %4950 = vmatmul.mubr.bf16.vlgmr.msra.gmra.mrb[16].mxu0 %v1190_v12  ;;  %6769 = vmatprep.subr.bf16.mxu1 %v7427_v14  ;;  %v25_v12 = vld [vmem:[%s9566_s0 + $0x18] sm:$0xff] }
  0xa4   :  { %6748 = vmatpush3.bf16.msra.mxu0 %v7428_v16  ;;  %5029 = vmatprep.mubr.bf16.mxu0 %v1211_v15  ;;  %v1223_v14 = vrot.slane %v25_v12, %v7955_v41  ;;  %v1216_v15 = vcombine.high %v25_v12, %v25_v12  ;;  %v7485_v16 = vld [vmem:[%s9567_s1 + $0x630] sm:$0xff]   ;;  %v7522_v12 = vld [vmem:[%s9567_s1 + $0x7b8] sm:$0xff]  }
  0xa5   :  { %4990 = vmatmul.mubr.bf16.vlgmr.msra.gmra.mrb[16].mxu1 %v1212_v18  ;;  %6749 = vmatprep.subr.bf16.mxu0 %v7430_v19 }
  0xa6   :  { %6770 = vmatpush3.bf16.msra.mxu1 %v7429_v17  ;;  %5069 = vmatprep.mubr.bf16.mxu1 %v1215_v21  ;;  %v7487_v17 = vld [vmem:[%s9567_s1 + $0x678] sm:$0xff]   ;;  %v1231_v18 = vcombine.high %v1223_v14, %v1223_v14  ;;  %v8559_v19 = vrot.slane %v1216_v15, %v7955_v41  ;;  %v7525_v15 = vld [vmem:[%s9567_s1 + $0x8c0] sm:$0xff]  }
  0xa7   :  { %6771 = vmatprep.subr.bf16.mxu1 %v7431_v20  ;;  %v7486_v20 = vld [vmem:[%s9567_s1 + $0x6b0] sm:$0xff]   ;;  %v7488_v21 = vld [vmem:[%s9567_s1 + $0x6f8] sm:$0xff]  }
  0xa8   :  { %6750 = vmatpush3.bf16.msra.mxu0 %v7432_v22  ;;  %v1253_v22 = vrot.slane %v1231_v18, %v7955_v41 }
  0xa9   :  { %6751 = vmatprep.subr.bf16.mxu0 %v7434_v24  ;;  %v7489_v24 = vld [vmem:[%s9567_s1 + $0x638] sm:$0xff]  }
  0xaa   :  { %6772 = vmatpush3.bf16.msra.mxu1 %v7433_v23  ;;  %v1232_v23 = vcombine.high %v8559_v19, %v8559_v19 }
  0xab   :  { %6773 = vmatprep.subr.bf16.mxu1 %v7435_v25  ;;  %v1263_v25 = vcombine.high %v1253_v22, %v1253_v22 }
  0xac   :  { %6752 = vmatpush3.bf16.msra.mxu0 %v7436_v26  ;;  %v1239_v26 = vrot.slane %v1223_v14, %v7955_v41  ;;  %v7524_v14 = vld [vmem:[%s9567_s1 + $0x840] sm:$0xff]  }
  0xad   :  { %6753 = vmatprep.subr.bf16.mxu0 %v7438_v28  ;;  %v7490_v28 = vld [vmem:[%s9567_s1 + $0x6b8] sm:$0xff]  }
  0xae   :  { %6774 = vmatpush3.bf16.msra.mxu1 %v7437_v27  ;;  %v7491_v27 = vld [vmem:[%s9567_s1 + $0x740] sm:$0xff]  }
  0xaf   :  { %6775 = vmatprep.subr.bf16.mxu1 %v7439_v29  ;;  %v1260_v29 = vrot.slane %v1232_v23, %v7955_v41  ;;  %v7532_v23 = vld [vmem:[%s9567_s1 + $0x850] sm:$0xff]  }
  0xb0   :  { %6754 = vmatpush3.bf16.msra.mxu0 %v7440_v30  ;;  %v7492_v30 = vld [vmem:[%s9567_s1 + $0x7c0] sm:$0xff]  }
  0xb1   :  { %6755 = vmatprep.subr.bf16.mxu0 %v7442_v32  ;;  %v1261_v32 = vcombine.high %v1239_v26, %v1239_v26 }
  0xb2   :  { %6776 = vmatpush3.bf16.msra.mxu1 %v7441_v31  ;;  %v7493_v31 = vld [vmem:[%s9567_s1 + $0x700] sm:$0xff]  }
  0xb3   :  { %6777 = vmatprep.subr.bf16.mxu1 %v7443_v33  ;;  %v7495_v33 = vld [vmem:[%s9567_s1 + $0x748] sm:$0xff]  }
  0xb4   :  { %6756 = vmatpush3.bf16.msra.mxu0 %v7444_v34  ;;  %v7494_v34 = vld [vmem:[%s9567_s1 + $0x780] sm:$0xff]  }
  0xb5   :  { %6757 = vmatprep.subr.bf16.mxu0 %v7446_v36  ;;  %v7496_v36 = vld [vmem:[%s9567_s1 + $0x7c8] sm:$0xff]  }
  0xb6   :  { %6778 = vmatpush3.bf16.msra.mxu1 %v7445_v35  ;;  %v1264_v35 = vcombine.high %v1260_v29, %v1260_v29 }
  0xb7   :  { %6779 = vmatprep.subr.bf16.mxu1 %v7447_v37  ;;  %v7497_v37 = vld [vmem:[%s9567_s1 + $0x708] sm:$0xff]  }
  0xb8   :  { %6758 = vmatpush3.bf16.msra.mxu0 %v7448_v38  ;;  %v7499_v38 = vld [vmem:[%s9567_s1 + $0x750] sm:$0xff]  }
  0xb9   :  { %6759 = vmatprep.subr.bf16.mxu0 %v7450_v40  ;;  %v7500_v40 = vld [vmem:[%s9567_s1 + $0x7d0] sm:$0xff]  }
  0xba   :  { %6780 = vmatpush3.bf16.msra.mxu1 %v7449_v39  ;;  %v7498_v39 = vld [vmem:[%s9567_s1 + $0x788] sm:$0xff]  }
  0xbb   :  { %6781 = vmatprep.subr.bf16.mxu1 %v7451_v42  ;;  %v7501_v42 = vld [vmem:[%s9567_s1 + $0x710] sm:$0xff]  }
  0xbc   :  { %6760 = vmatpush3.bf16.msra.mxu0 %v7452_v43  ;;  %v7503_v43 = vld [vmem:[%s9567_s1 + $0x758] sm:$0xff]  }
  0xbd   :  { %6761 = vmatprep.subr.bf16.mxu0 %v7454_v45  ;;  %v7504_v45 = vld [vmem:[%s9567_s1 + $0x7d8] sm:$0xff]  }
  0xbe   :  { %6782 = vmatpush3.bf16.msra.mxu1 %v7453_v44  ;;  %v7502_v44 = vld [vmem:[%s9567_s1 + $0x790] sm:$0xff]  }
  0xbf   :  { %6783 = vmatprep.subr.bf16.mxu1 %v7455_v46  ;;  %v7505_v46 = vld [vmem:[%s9567_s1 + $0x718] sm:$0xff]  }
  0xc0   :  { %6762 = vmatpush3.bf16.msra.mxu0 %v7456_v47  ;;  %v7506_v47 = vld [vmem:[%s9567_s1 + $0x798] sm:$0xff]  }
  0xc1   :  { %6791 = vmatprep.subr.bf16.mxu0 %v7459_v50  ;;  %v7509_v50 = vld [vmem:[%s9567_s1 + $0x720] sm:$0xff]  }
  0xc2   :  { %6784 = vmatpush3.bf16.msra.mxu1 %v7457_v48  ;;  %v7507_v48 = vld [vmem:[%s9567_s1 + $0x760] sm:$0xff]  }
  0xc3   :  { %5030 = vmatmul.mubr.bf16.vlgmr.msra.gmra.mrb[20].mxu0 %v1197_v49  ;;  %6813 = vmatprep.subr.bf16.mxu1 %v7460_v51  ;;  %v7508_v49 = vld [vmem:[%s9567_s1 + $0x7e0] sm:$0xff]  }
  0xc4   :  { %6792 = vmatpush3.bf16.msra.mxu0 %v7461_v52  ;;  %5109 = vmatprep.mubr.bf16.mxu0 %v1253_v22  ;;  %v7510_v51 = vld [vmem:[%s9567_s1 + $0x7a0] sm:$0xff]   ;;  %v7511_v52 = vld [vmem:[%s9567_s1 + $0x768] sm:$0xff]  }
  0xc5   :  { %5070 = vmatmul.mubr.bf16.vlgmr.msra.gmra.mrb[20].mxu1 %v1213_v54  ;;  %6793 = vmatprep.subr.bf16.mxu0 %v7463_v55  ;;  %v7513_v54 = vld [vmem:[%s9567_s1 + $0x728] sm:$0xff]  }
  0xc6   :  { %6814 = vmatpush3.bf16.msra.mxu1 %v7462_v53  ;;  %5149 = vmatprep.mubr.bf16.mxu1 %v1263_v25  ;;  %v7512_v53 = vld [vmem:[%s9567_s1 + $0x7e8] sm:$0xff]   ;;  %v7534_v25 = vld [vmem:[%s9567_s1 + $0x810] sm:$0xff]  }
  0xc7   :  { %6815 = vmatprep.subr.bf16.mxu1 %v7464_v56  ;;  %v7514_v55 = vld [vmem:[%s9567_s1 + $0x7a8] sm:$0xff]   ;;  %v6005_v56 = vld [vmem:[%s9568_s2] ss:$0 sm:$0xff] }
  0xc8   :  { %6794 = vmatpush3.bf16.msra.mxu0 %v7465_v57  ;;  %v7515_v57 = vld [vmem:[%s9567_s1 + $0x770] sm:$0xff]   ;;  %v7531_v22 = vld [vmem:[%s9567_s1 + $0x888] sm:$0xff]  }
  0xc9   :  { %6795 = vmatprep.subr.bf16.mxu0 %v7467_v59  ;;  %v7516_v59 = vld [vmem:[%s9567_s1 + $0x7f0] sm:$0xff]  }
  0xca   :  { %6816 = vmatpush3.bf16.msra.mxu1 %v7466_v58 }
  0xcb   :  { %6817 = vmatprep.subr.bf16.mxu1 %v7468_v60 }
  0xcc   :  { %6796 = vmatpush3.bf16.msra.mxu0 %v7469_v61  ;;  %v7517_v61 = vld [vmem:[%s9567_s1 + $0x730] sm:$0xff]  }
  0xcd   :  { %6797 = vmatprep.subr.bf16.mxu0 %v7471_v63 }
  0xce   :  { %6818 = vmatpush3.bf16.msra.mxu1 %v7470_v62 }
  0xcf   :  { %6819 = vmatprep.subr.bf16.mxu1 %v7472_v0 }
  0xd0   :  { %6798 = vmatpush3.bf16.msra.mxu0 %v7473_v1  ;;  %v7518_v1 = vld [vmem:[%s9567_s1 + $0x7b0] sm:$0xff]  }
  0xd1   :  { %6799 = vmatprep.subr.bf16.mxu0 %v7475_v3 }
  0xd2   :  { %6820 = vmatpush3.bf16.msra.mxu1 %v7474_v2  ;;  %v7519_v2 = vld [vmem:[%s9567_s1 + $0x778] sm:$0xff]  }
  0xd3   :  { %6821 = vmatprep.subr.bf16.mxu1 %v7476_v4 }
  0xd4   :  { %6800 = vmatpush3.bf16.msra.mxu0 %v7477_v5 }
  0xd5   :  { %6801 = vmatprep.subr.bf16.mxu0 %v7479_v7 }
  0xd6   :  { %6822 = vmatpush3.bf16.msra.mxu1 %v7478_v6 }
  0xd7   :  { %6823 = vmatprep.subr.bf16.mxu1 %v7480_v8  ;;  %v7520_v8 = vld [vmem:[%s9567_s1 + $0x7f8] sm:$0xff]  }
  0xd8   :  { %6802 = vmatpush3.bf16.msra.mxu0 %v7481_v9 }
  0xd9   :  { %6803 = vmatprep.subr.bf16.mxu0 %v7483_v11 }
  0xda   :  { %6824 = vmatpush3.bf16.msra.mxu1 %v7482_v10  ;;  %v7521_v10 = vld [vmem:[%s9567_s1 + $0x738] sm:$0xff]  }
  0xdb   :  { %6825 = vmatprep.subr.bf16.mxu1 %v7484_v13  ;;  %v1246_v13 = vrot.slane %v8559_v19, %v7955_v41  ;;  %v7528_v19 = vld [vmem:[%s9567_s1 + $0x848] sm:$0xff]  }
  0xdc   :  { %6804 = vmatpush3.bf16.msra.mxu0 %v7485_v16  ;;  %v7526_v16 = vld [vmem:[%s9567_s1 + $0x800] sm:$0xff]  }
  0xdd   :  { %6805 = vmatprep.subr.bf16.mxu0 %v7487_v17  ;;  %v7527_v17 = vld [vmem:[%s9567_s1 + $0x880] sm:$0xff]   ;;  %v1262_v18 = vcombine.high %v1246_v13, %v1246_v13 }
  0xde   :  { %6826 = vmatpush3.bf16.msra.mxu1 %v7486_v20  ;;  %v7529_v20 = vld [vmem:[%s9567_s1 + $0x8c8] sm:$0xff]  }
  0xdf   :  { %6827 = vmatprep.subr.bf16.mxu1 %v7488_v21  ;;  %v7530_v21 = vld [vmem:[%s9567_s1 + $0x808] sm:$0xff]  }
  0xe0   :  { %6806 = vmatpush3.bf16.msra.mxu0 %v7489_v24  ;;  %v7533_v24 = vld [vmem:[%s9567_s1 + $0x8d0] sm:$0xff]  }
  0xe1   :  { %6835 = vmatprep.subr.bf16.mxu0 %v7491_v27  ;;  %v7536_v27 = vld [vmem:[%s9567_s1 + $0x858] sm:$0xff]  }
  0xe2   :  { %6828 = vmatpush3.bf16.msra.mxu1 %v7490_v28  ;;  %v7537_v28 = vld [vmem:[%s9567_s1 + $0x8d8] sm:$0xff]  }
  0xe3   :  { %5110 = vmatmul.mubr.bf16.vlgmr.msra.gmra.mrb[24].mxu0 %v1239_v26  ;;  %6857 = vmatprep.subr.bf16.mxu1 %v7492_v30  ;;  %v7535_v26 = vld [vmem:[%s9567_s1 + $0x890] sm:$0xff]   ;;  %v7539_v30 = vld [vmem:[%s9567_s1 + $0x898] sm:$0xff]  }
  0xe4   :  { %6836 = vmatpush3.bf16.msra.mxu0 %v7493_v31  ;;  %5189 = vmatprep.mubr.bf16.mxu0 %v1260_v29  ;;  %v7538_v29 = vld [vmem:[%s9567_s1 + $0x818] sm:$0xff]   ;;  %v7540_v31 = vld [vmem:[%s9567_s1 + $0x860] sm:$0xff]  }
  0xe5   :  { %5150 = vmatmul.mubr.bf16.vlgmr.msra.gmra.mrb[24].mxu1 %v1261_v32  ;;  %6837 = vmatprep.subr.bf16.mxu0 %v7495_v33  ;;  %v7541_v32 = vld [vmem:[%s9567_s1 + $0x8e0] sm:$0xff]  }
  0xe6   :  { %6858 = vmatpush3.bf16.msra.mxu1 %v7494_v34  ;;  %5229 = vmatprep.mubr.bf16.mxu1 %v1264_v35  ;;  %v7542_v33 = vld [vmem:[%s9567_s1 + $0x820] sm:$0xff]   ;;  %v7544_v35 = vld [vmem:[%s9567_s1 + $0x868] sm:$0xff]  }
  0xe7   :  { %6859 = vmatprep.subr.bf16.mxu1 %v7496_v36  ;;  %v7543_v34 = vld [vmem:[%s9567_s1 + $0x8a0] sm:$0xff]   ;;  %v7545_v36 = vld [vmem:[%s9567_s1 + $0x8e8] sm:$0xff]  }
  0xe8   :  { %6838 = vmatpush3.bf16.msra.mxu0 %v7497_v37  ;;  %v7546_v37 = vld [vmem:[%s9567_s1 + $0x828] sm:$0xff]  }
  0xe9   :  { %6839 = vmatprep.subr.bf16.mxu0 %v7499_v38  ;;  %v7547_v38 = vld [vmem:[%s9567_s1 + $0x8a8] sm:$0xff]  }
  0xea   :  { %6860 = vmatpush3.bf16.msra.mxu1 %v7498_v39  ;;  %v7548_v39 = vld [vmem:[%s9567_s1 + $0x870] sm:$0xff]  }
  0xeb   :  { %6861 = vmatprep.subr.bf16.mxu1 %v7500_v40  ;;  %v7549_v40 = vld [vmem:[%s9567_s1 + $0x8f0] sm:$0xff]  }
  0xec   :  { %6840 = vmatpush3.bf16.msra.mxu0 %v7501_v42 }
  0xed   :  { %6841 = vmatprep.subr.bf16.mxu0 %v7503_v43  ;;  %v7550_v43 = vld [vmem:[%s9567_s1 + $0x830] sm:$0xff]  }
  0xee   :  { %6862 = vmatpush3.bf16.msra.mxu1 %v7502_v44 }
  0xef   :  { %6863 = vmatprep.subr.bf16.mxu1 %v7504_v45  ;;  %v26_v45 = vld [vmem:[%s9566_s0 + $0x20] sm:$0xff] }
  0xf0   :  { %6842 = vmatpush3.bf16.msra.mxu0 %v7505_v46 }
  0xf1   :  { %6843 = vmatprep.subr.bf16.mxu0 %v7507_v48 }
  0xf2   :  { %6864 = vmatpush3.bf16.msra.mxu1 %v7506_v47 }
  0xf3   :  { %6865 = vmatprep.subr.bf16.mxu1 %v7508_v49  ;;  %v7551_v49 = vld [vmem:[%s9567_s1 + $0x8b0] sm:$0xff]  }
  0xf4   :  { %6844 = vmatpush3.bf16.msra.mxu0 %v7509_v50  ;;  %v7552_v50 = vld [vmem:[%s9567_s1 + $0x878] sm:$0xff]  }
  0xf5   :  { %6845 = vmatprep.subr.bf16.mxu0 %v7511_v52  ;;  %v1265_v52 = vcombine.high %v26_v45, %v26_v45 }
  0xf6   :  { %6866 = vmatpush3.bf16.msra.mxu1 %v7510_v51  ;;  %v6543_v58 = vpop.f32.mrb[0].mxu0  ;;  %v1272_v51 = vrot.slane %v26_v45, %v7955_v41 }
  0xf7   :  { %v6544_v60 = vpop.f32.mrb[1].mxu0  ;;  %6867 = vmatprep.subr.bf16.mxu1 %v7512_v53  ;;  %v6565_v62 = vpop.f32.mrb[0].mxu1 }
  0xf8   :  { %v6545_v63 = vadd.f32 %v6544_v60, %v6543_v58  ;;  %v6546_v0 = vpop.f32.mrb[2].mxu0  ;;  %6846 = vmatpush3.bf16.msra.mxu0 %v7513_v54  ;;  %v6566_v3 = vpop.f32.mrb[1].mxu1  ;;  %v7553_v58 = vld [vmem:[%s9567_s1 + $0x8f8] sm:$0xff]  }
  0xf9   :  { %v6547_v4 = vpop.f32.mrb[3].mxu0  ;;  %6847 = vmatprep.subr.bf16.mxu0 %v7515_v57  ;;  %v6567_v6 = vadd.f32 %v6566_v3, %v6565_v62  ;;  %v6568_v7 = vpop.f32.mrb[2].mxu1  ;;  %v8780_v62 = vrot.slane %v1265_v52, %v7955_v41  ;;  %v7555_v0 = vld [vmem:[%s9567_s1 + $0x8b8] sm:$0xff]   ;;  %v7556_v3 = vld [vmem:[%s9567_s1 + $0x940] sm:$0xff]  }
  0xfa   :  { %v4632_v5 = vadd.f32 %v6545_v63, %v6005_v56  ;;  %6868 = vmatpush3.bf16.msra.mxu1 %v7514_v55  ;;  %v6569_v9 = vpop.f32.mrb[3].mxu1  ;;  %v7558_v7 = vld [vmem:[%s9567_s1 + $0x900] sm:$0xff]   ;;  %v7587_v52 = vld [vmem:[%s9567_s1 + $0x9b8] sm:$0xff]  }
  0xfb   :  { %6869 = vmatprep.subr.bf16.mxu1 %v7516_v59  ;;  %v1280_v59 = vcombine.high %v1272_v51, %v1272_v51  ;;  %v1281_v4 = vcombine.high %v8780_v62, %v8780_v62  ;;  %v7559_v9 = vld [vmem:[%s9567_s1 + $0x980] sm:$0xff]  }
  0xfc   :  { %v8674_v11 = vadd.f32 %v6567_v6, %v4632_v5  ;;  %6848 = vmatpush3.bf16.msra.mxu0 %v7517_v61  ;;  %v7554_v61 = vld [vmem:[%s9567_s1 + $0x838] sm:$0xff]   ;;  %v7557_v6 = vld [vmem:[%s9567_s1 + $0x9c0] sm:$0xff]  }
  0xfd   :  { %6849 = vmatprep.subr.bf16.mxu0 %v7519_v2  ;;  %v1288_v2 = vrot.slane %v1272_v51, %v7955_v41 }
  0xfe   :  { %6870 = vmatpush3.bf16.msra.mxu1 %v7518_v1  ;;  %v1302_v1 = vrot.slane %v1280_v59, %v7955_v41  ;;  %v7593_v59 = vld [vmem:[%s9567_s1 + $0xa48] sm:$0xff]  }
  0xff   :  { %6871 = vmatprep.subr.bf16.mxu1 %v7520_v8  ;;  %v1309_v8 = vrot.slane %v1281_v4, %v7955_v41  ;;  %v7602_v4 = vld [vmem:[%s9567_s1 + $0xad8] sm:$0xff]  }
 0x100   :  { %6850 = vmatpush3.bf16.msra.mxu0 %v7521_v10  ;;  %v1312_v5 = vcombine.high %v1302_v1, %v1302_v1  ;;  %v1310_v10 = vcombine.high %v1288_v2, %v1288_v2 }
 0x101   :  { %6879 = vmatprep.subr.bf16.mxu0 %v7524_v14  ;;  %v7562_v14 = vld [vmem:[%s9567_s1 + $0x908] sm:$0xff]  }
 0x102   :  { %6872 = vmatpush3.bf16.msra.mxu1 %v7522_v12  ;;  %v7561_v12 = vld [vmem:[%s9567_s1 + $0x9c8] sm:$0xff]  }
 0x103   :  { %5190 = vmatmul.mubr.bf16.vlgmr.msra.gmra.mrb[28].mxu0 %v1246_v13  ;;  %6901 = vmatprep.subr.bf16.mxu1 %v7525_v15  ;;  %v1313_v13 = vcombine.high %v1309_v8, %v1309_v8  ;;  %v7563_v15 = vld [vmem:[%s9567_s1 + $0x988] sm:$0xff]  }
 0x104   :  { %6880 = vmatpush3.bf16.msra.mxu0 %v7526_v16  ;;  %5269 = vmatprep.mubr.bf16.mxu0 %v1302_v1  ;;  %v7564_v16 = vld [vmem:[%s9567_s1 + $0x950] sm:$0xff]  }
 0x105   :  { %5230 = vmatmul.mubr.bf16.vlgmr.msra.gmra.mrb[28].mxu1 %v1262_v18  ;;  %6881 = vmatprep.subr.bf16.mxu0 %v7528_v19  ;;  %v7566_v18 = vld [vmem:[%s9567_s1 + $0x910] sm:$0xff]  }
 0x106   :  { %6902 = vmatpush3.bf16.msra.mxu1 %v7527_v17  ;;  %5309 = vmatprep.mubr.bf16.mxu1 %v1312_v5  ;;  %v7565_v17 = vld [vmem:[%s9567_s1 + $0x9d0] sm:$0xff]   ;;  %v7603_v5 = vld [vmem:[%s9567_s1 + $0xa18] sm:$0xff]  }
 0x107   :  { %6903 = vmatprep.subr.bf16.mxu1 %v7529_v20  ;;  %v7567_v19 = vld [vmem:[%s9567_s1 + $0x990] sm:$0xff]   ;;  %v7568_v20 = vld [vmem:[%s9567_s1 + $0x958] sm:$0xff]  }
 0x108   :  { %6882 = vmatpush3.bf16.msra.mxu0 %v7530_v21  ;;  %v7569_v21 = vld [vmem:[%s9567_s1 + $0x9d8] sm:$0xff]   ;;  %v7599_v1 = vld [vmem:[%s9567_s1 + $0xa10] sm:$0xff]  }
 0x109   :  { %6883 = vmatprep.subr.bf16.mxu0 %v7532_v23  ;;  %v7571_v23 = vld [vmem:[%s9567_s1 + $0x998] sm:$0xff]  }
 0x10a   :  { %6904 = vmatpush3.bf16.msra.mxu1 %v7531_v22  ;;  %v7570_v22 = vld [vmem:[%s9567_s1 + $0x918] sm:$0xff]  }
 0x10b   :  { %6905 = vmatprep.subr.bf16.mxu1 %v7533_v24  ;;  %v7572_v24 = vld [vmem:[%s9567_s1 + $0x960] sm:$0xff]  }
 0x10c   :  { %6884 = vmatpush3.bf16.msra.mxu0 %v7534_v25  ;;  %v7573_v25 = vld [vmem:[%s9567_s1 + $0x9e0] sm:$0xff]  }
 0x10d   :  { %6885 = vmatprep.subr.bf16.mxu0 %v7536_v27  ;;  %v7575_v27 = vld [vmem:[%s9567_s1 + $0x9a0] sm:$0xff]  }
 0x10e   :  { %6906 = vmatpush3.bf16.msra.mxu1 %v7535_v26  ;;  %v7574_v26 = vld [vmem:[%s9567_s1 + $0x920] sm:$0xff]  }
 0x10f   :  { %6907 = vmatprep.subr.bf16.mxu1 %v7537_v28  ;;  %v7576_v28 = vld [vmem:[%s9567_s1 + $0x968] sm:$0xff]  }
 0x110   :  { %6886 = vmatpush3.bf16.msra.mxu0 %v7538_v29  ;;  %v7577_v29 = vld [vmem:[%s9567_s1 + $0x9e8] sm:$0xff]  }
 0x111   :  { %6887 = vmatprep.subr.bf16.mxu0 %v7540_v31  ;;  %v7579_v31 = vld [vmem:[%s9567_s1 + $0x9a8] sm:$0xff]  }
 0x112   :  { %6908 = vmatpush3.bf16.msra.mxu1 %v7539_v30  ;;  %v7578_v30 = vld [vmem:[%s9567_s1 + $0x928] sm:$0xff]  }
 0x113   :  { %6909 = vmatprep.subr.bf16.mxu1 %v7541_v32  ;;  %v7580_v32 = vld [vmem:[%s9567_s1 + $0x970] sm:$0xff]  }
 0x114   :  { %6888 = vmatpush3.bf16.msra.mxu0 %v7542_v33 }
 0x115   :  { %6889 = vmatprep.subr.bf16.mxu0 %v7544_v35 }
 0x116   :  { %6910 = vmatpush3.bf16.msra.mxu1 %v7543_v34  ;;  %v6587_v42 = vpop.f32.mrb[4].mxu0  ;;  %v7581_v34 = vld [vmem:[%s9567_s1 + $0x9f0] sm:$0xff]  }
 0x117   :  { %v6588_v44 = vpop.f32.mrb[5].mxu0  ;;  %6911 = vmatprep.subr.bf16.mxu1 %v7545_v36  ;;  %v6609_v46 = vpop.f32.mrb[4].mxu1  ;;  %v7582_v36 = vld [vmem:[%s9567_s1 + $0x930] sm:$0xff]  }
 0x118   :  { %v6589_v47 = vadd.f32 %v6588_v44, %v6587_v42  ;;  %v6590_v48 = vpop.f32.mrb[6].mxu0  ;;  %6890 = vmatpush3.bf16.msra.mxu0 %v7546_v37  ;;  %v6610_v53 = vpop.f32.mrb[5].mxu1  ;;  %v7584_v42 = vld [vmem:[%s9567_s1 + $0x978] sm:$0xff]  }
 0x119   :  { %v6591_v54 = vpop.f32.mrb[7].mxu0  ;;  %6891 = vmatprep.subr.bf16.mxu0 %v7548_v39  ;;  %v6611_v56 = vadd.f32 %v6610_v53, %v6609_v46  ;;  %v6612_v57 = vpop.f32.mrb[6].mxu1  ;;  %v7585_v48 = vld [vmem:[%s9567_s1 + $0x9f8] sm:$0xff]   ;;  %v1295_v53 = vrot.slane %v8780_v62, %v7955_v41  ;;  %v7596_v62 = vld [vmem:[%s9567_s1 + $0xa88] sm:$0xff]  }
 0x11a   :  { %v4712_v55 = vadd.f32 %v6589_v47, %v8674_v11  ;;  %6912 = vmatpush3.bf16.msra.mxu1 %v7547_v38  ;;  %v6613_v60 = vpop.f32.mrb[7].mxu1  ;;  %v7560_v11 = vld [vmem:[%s9567_s1 + $0x948] sm:$0xff]   ;;  %v7589_v54 = vld [vmem:[%s9567_s1 + $0xa40] sm:$0xff]  }
 0x11b   :  { %6913 = vmatprep.subr.bf16.mxu1 %v7549_v40  ;;  %v7583_v40 = vld [vmem:[%s9567_s1 + $0x9b0] sm:$0xff]   ;;  %v7592_v57 = vld [vmem:[%s9567_s1 + $0xa80] sm:$0xff]   ;;  %v7594_v60 = vld [vmem:[%s9567_s1 + $0xac8] sm:$0xff]  }
 0x11c   :  { %v8782_v63 = vadd.f32 %v6611_v56, %v4712_v55  ;;  %6892 = vmatpush3.bf16.msra.mxu0 %v7550_v43  ;;  %v7590_v55 = vld [vmem:[%s9567_s1 + $0xac0] sm:$0xff]  }
 0x11d   :  { %6893 = vmatprep.subr.bf16.mxu0 %v7552_v50  ;;  %v7586_v50 = vld [vmem:[%s9567_s1 + $0x938] sm:$0xff]   ;;  %v7591_v56 = vld [vmem:[%s9567_s1 + $0xa00] sm:$0xff]  }
 0x11e   :  { %6914 = vmatpush3.bf16.msra.mxu1 %v7551_v49 }
 0x11f   :  { %6915 = vmatprep.subr.bf16.mxu1 %v7553_v58  ;;  %v1311_v58 = vcombine.high %v1295_v53, %v1295_v53 }
 0x120   :  { %6894 = vmatpush3.bf16.msra.mxu0 %v7554_v61  ;;  %v7595_v61 = vld [vmem:[%s9567_s1 + $0xa08] sm:$0xff]  }
 0x121   :  { %6923 = vmatprep.subr.bf16.mxu0 %v7556_v3  ;;  %v7601_v3 = vld [vmem:[%s9567_s1 + $0xa58] sm:$0xff]  }
 0x122   :  { %6916 = vmatpush3.bf16.msra.mxu1 %v7555_v0  ;;  %v7598_v0 = vld [vmem:[%s9567_s1 + $0xad0] sm:$0xff]  }
 0x123   :  { %5270 = vmatmul.mubr.bf16.vlgmr.msra.gmra.mrb[32].mxu0 %v1288_v2  ;;  %6945 = vmatprep.subr.bf16.mxu1 %v7557_v6  ;;  %v7600_v2 = vld [vmem:[%s9567_s1 + $0xa90] sm:$0xff]   ;;  %v7604_v6 = vld [vmem:[%s9567_s1 + $0xa98] sm:$0xff]  }
 0x124   :  { %6924 = vmatpush3.bf16.msra.mxu0 %v7558_v7  ;;  %5349 = vmatprep.mubr.bf16.mxu0 %v1309_v8  ;;  %v7605_v7 = vld [vmem:[%s9567_s1 + $0xa60] sm:$0xff]  }
 0x125   :  { %5310 = vmatmul.mubr.bf16.vlgmr.msra.gmra.mrb[32].mxu1 %v1310_v10  ;;  %6925 = vmatprep.subr.bf16.mxu0 %v7560_v11  ;;  %v7606_v8 = vld [vmem:[%s9567_s1 + $0xae0] sm:$0xff]   ;;  %v7609_v11 = vld [vmem:[%s9567_s1 + $0xa68] sm:$0xff]  }
 0x126   :  { %6946 = vmatpush3.bf16.msra.mxu1 %v7559_v9  ;;  %5389 = vmatprep.mubr.bf16.mxu1 %v1313_v13  ;;  %v7607_v9 = vld [vmem:[%s9567_s1 + $0xa20] sm:$0xff]   ;;  %v7611_v13 = vld [vmem:[%s9567_s1 + $0xa28] sm:$0xff]  }
 0x127   :  { %6947 = vmatprep.subr.bf16.mxu1 %v7561_v12  ;;  %v7608_v10 = vld [vmem:[%s9567_s1 + $0xaa0] sm:$0xff]   ;;  %v7610_v12 = vld [vmem:[%s9567_s1 + $0xae8] sm:$0xff]  }
 0x128   :  { %6926 = vmatpush3.bf16.msra.mxu0 %v7562_v14  ;;  %v7612_v14 = vld [vmem:[%s9567_s1 + $0xaa8] sm:$0xff]  }
 0x129   :  { %6927 = vmatprep.subr.bf16.mxu0 %v7564_v16 }
 0x12a   :  { %6948 = vmatpush3.bf16.msra.mxu1 %v7563_v15  ;;  %v7613_v15 = vld [vmem:[%s9567_s1 + $0xa70] sm:$0xff]  }
 0x12b   :  { %6949 = vmatprep.subr.bf16.mxu1 %v7565_v17  ;;  %v7614_v17 = vld [vmem:[%s9567_s1 + $0xaf0] sm:$0xff]  }
 0x12c   :  { %6928 = vmatpush3.bf16.msra.mxu0 %v7566_v18 }
 0x12d   :  { %6929 = vmatprep.subr.bf16.mxu0 %v7568_v20 }
 0x12e   :  { %6950 = vmatpush3.bf16.msra.mxu1 %v7567_v19  ;;  %v7615_v19 = vld [vmem:[%s9567_s1 + $0xa30] sm:$0xff]  }
 0x12f   :  { %6951 = vmatprep.subr.bf16.mxu1 %v7569_v21 }
 0x130   :  { %6930 = vmatpush3.bf16.msra.mxu0 %v7570_v22 }
 0x131   :  { %6931 = vmatprep.subr.bf16.mxu0 %v7572_v24  ;;  %v7617_v24 = vld [vmem:[%s9567_s1 + $0xa78] sm:$0xff]  }
 0x132   :  { %6952 = vmatpush3.bf16.msra.mxu1 %v7571_v23  ;;  %v7616_v23 = vld [vmem:[%s9567_s1 + $0xab0] sm:$0xff]  }
 0x133   :  { %6953 = vmatprep.subr.bf16.mxu1 %v7573_v25  ;;  %v27_v25 = vld [vmem:[%s9566_s0 + $0x28] sm:$0xff] }
 0x134   :  { %6932 = vmatpush3.bf16.msra.mxu0 %v7574_v26 }
 0x135   :  { %6933 = vmatprep.subr.bf16.mxu0 %v7576_v28  ;;  %v1321_v28 = vrot.slane %v27_v25, %v7955_v41 }
 0x136   :  { %6954 = vmatpush3.bf16.msra.mxu1 %v7575_v27  ;;  %v6631_v33 = vpop.f32.mrb[8].mxu0 }
 0x137   :  { %v6632_v35 = vpop.f32.mrb[9].mxu0  ;;  %6955 = vmatprep.subr.bf16.mxu1 %v7577_v29  ;;  %v1314_v29 = vcombine.high %v27_v25, %v27_v25  ;;  %v7651_v25 = vld [vmem:[%s9567_s1 + $0xb38] sm:$0xff]  }
 0x138   :  { %v6653_v37 = vpop.f32.mrb[8].mxu1  ;;  %v6633_v38 = vadd.f32 %v6632_v35, %v6631_v33  ;;  %v6634_v39 = vpop.f32.mrb[10].mxu0  ;;  %6934 = vmatpush3.bf16.msra.mxu0 %v7578_v30  ;;  %v7618_v33 = vld [vmem:[%s9567_s1 + $0xaf8] sm:$0xff]  }
 0x139   :  { %v6654_v43 = vpop.f32.mrb[9].mxu1  ;;  %v6635_v44 = vpop.f32.mrb[11].mxu0  ;;  %6935 = vmatprep.subr.bf16.mxu0 %v7580_v32  ;;  %v7619_v35 = vld [vmem:[%s9567_s1 + $0xa38] sm:$0xff]  }
 0x13a   :  { %v4792_v45 = vadd.f32 %v6633_v38, %v8782_v63  ;;  %v6655_v46 = vadd.f32 %v6654_v43, %v6653_v37  ;;  %v6656_v47 = vpop.f32.mrb[10].mxu1  ;;  %6956 = vmatpush3.bf16.msra.mxu1 %v7579_v31  ;;  %v7597_v63 = vld [vmem:[%s9567_s1 + $0xa50] sm:$0xff]   ;;  %v8992_v37 = vrot.slane %v1314_v29, %v7955_v41  ;;  %v7620_v39 = vld [vmem:[%s9567_s1 + $0xab8] sm:$0xff]   ;;  %v7621_v43 = vld [vmem:[%s9567_s1 + $0xb40] sm:$0xff]  }
 0x13b   :  { %v6657_v49 = vpop.f32.mrb[11].mxu1  ;;  %6957 = vmatprep.subr.bf16.mxu1 %v7581_v34  ;;  %v7623_v47 = vld [vmem:[%s9567_s1 + $0xb00] sm:$0xff]  }
 0x13c   :  { %v8886_v51 = vadd.f32 %v6655_v46, %v4792_v45  ;;  %6936 = vmatpush3.bf16.msra.mxu0 %v7582_v36  ;;  %v1329_v36 = vcombine.high %v1321_v28, %v1321_v28  ;;  %v1330_v44 = vcombine.high %v8992_v37, %v8992_v37  ;;  %v7622_v45 = vld [vmem:[%s9567_s1 + $0xbc0] sm:$0xff]  }
 0x13d   :  { %6937 = vmatprep.subr.bf16.mxu0 %v7584_v42  ;;  %v1337_v42 = vrot.slane %v1321_v28, %v7955_v41  ;;  %v7624_v49 = vld [vmem:[%s9567_s1 + $0xb80] sm:$0xff]   ;;  %v1344_v28 = vrot.slane %v8992_v37, %v7955_v41  ;;  %v7661_v37 = vld [vmem:[%s9567_s1 + $0xc88] sm:$0xff]  }
 0x13e   :  { %6958 = vmatpush3.bf16.msra.mxu1 %v7583_v40  ;;  %v1351_v40 = vrot.slane %v1329_v36, %v7955_v41  ;;  %v7654_v29 = vld [vmem:[%s9567_s1 + $0xc40] sm:$0xff]   ;;  %v7660_v36 = vld [vmem:[%s9567_s1 + $0xc08] sm:$0xff]  }
 0x13f   :  { %6959 = vmatprep.subr.bf16.mxu1 %v7585_v48  ;;  %v1358_v48 = vrot.slane %v1330_v44, %v7955_v41  ;;  %v7667_v44 = vld [vmem:[%s9567_s1 + $0xcd8] sm:$0xff]  }
 0x140   :  { %6938 = vmatpush3.bf16.msra.mxu0 %v7586_v50  ;;  %v1361_v46 = vcombine.high %v1351_v40, %v1351_v40  ;;  %v1359_v50 = vcombine.high %v1337_v42, %v1337_v42 }
 0x141   :  { %6967 = vmatprep.subr.bf16.mxu0 %v7589_v54  ;;  %v7627_v54 = vld [vmem:[%s9567_s1 + $0xb08] sm:$0xff]  }
 0x142   :  { %6960 = vmatpush3.bf16.msra.mxu1 %v7587_v52  ;;  %v7626_v52 = vld [vmem:[%s9567_s1 + $0xbc8] sm:$0xff]  }
 0x143   :  { %5350 = vmatmul.mubr.bf16.vlgmr.msra.gmra.mrb[36].mxu0 %v1295_v53  ;;  %6989 = vmatprep.subr.bf16.mxu1 %v7590_v55  ;;  %v1362_v53 = vcombine.high %v1358_v48, %v1358_v48  ;;  %v7628_v55 = vld [vmem:[%s9567_s1 + $0xb88] sm:$0xff]  }
 0x144   :  { %6968 = vmatpush3.bf16.msra.mxu0 %v7591_v56  ;;  %5429 = vmatprep.mubr.bf16.mxu0 %v1351_v40  ;;  %v7629_v56 = vld [vmem:[%s9567_s1 + $0xb50] sm:$0xff]  }
 0x145   :  { %5390 = vmatmul.mubr.bf16.vlgmr.msra.gmra.mrb[36].mxu1 %v1311_v58  ;;  %6969 = vmatprep.subr.bf16.mxu0 %v7593_v59  ;;  %v7631_v58 = vld [vmem:[%s9567_s1 + $0xb10] sm:$0xff]  }
 0x146   :  { %6990 = vmatpush3.bf16.msra.mxu1 %v7592_v57  ;;  %5469 = vmatprep.mubr.bf16.mxu1 %v1361_v46  ;;  %v7630_v57 = vld [vmem:[%s9567_s1 + $0xbd0] sm:$0xff]   ;;  %v7669_v46 = vld [vmem:[%s9567_s1 + $0xc98] sm:$0xff]  }
 0x147   :  { %6991 = vmatprep.subr.bf16.mxu1 %v7594_v60  ;;  %v7632_v59 = vld [vmem:[%s9567_s1 + $0xb90] sm:$0xff]   ;;  %v7633_v60 = vld [vmem:[%s9567_s1 + $0xb58] sm:$0xff]  }
 0x148   :  { %6970 = vmatpush3.bf16.msra.mxu0 %v7595_v61  ;;  %v7634_v61 = vld [vmem:[%s9567_s1 + $0xbd8] sm:$0xff]   ;;  %v7664_v40 = vld [vmem:[%s9567_s1 + $0xc10] sm:$0xff]  }
 0x149   :  { %6971 = vmatprep.subr.bf16.mxu0 %v7597_v63  ;;  %v7636_v63 = vld [vmem:[%s9567_s1 + $0xb98] sm:$0xff]  }
 0x14a   :  { %6992 = vmatpush3.bf16.msra.mxu1 %v7596_v62  ;;  %v7635_v62 = vld [vmem:[%s9567_s1 + $0xb18] sm:$0xff]  }
 0x14b   :  { %6993 = vmatprep.subr.bf16.mxu1 %v7598_v0  ;;  %v7637_v0 = vld [vmem:[%s9567_s1 + $0xb60] sm:$0xff]  }
 0x14c   :  { %6972 = vmatpush3.bf16.msra.mxu0 %v7599_v1  ;;  %v7638_v1 = vld [vmem:[%s9567_s1 + $0xbe0] sm:$0xff]  }
 0x14d   :  { %6973 = vmatprep.subr.bf16.mxu0 %v7601_v3  ;;  %v7640_v3 = vld [vmem:[%s9567_s1 + $0xba0] sm:$0xff]  }
 0x14e   :  { %6994 = vmatpush3.bf16.msra.mxu1 %v7600_v2  ;;  %v7639_v2 = vld [vmem:[%s9567_s1 + $0xb20] sm:$0xff]  }
 0x14f   :  { %6995 = vmatprep.subr.bf16.mxu1 %v7602_v4  ;;  %v7641_v4 = vld [vmem:[%s9567_s1 + $0xb68] sm:$0xff]  }
 0x150   :  { %6974 = vmatpush3.bf16.msra.mxu0 %v7603_v5  ;;  %v7642_v5 = vld [vmem:[%s9567_s1 + $0xbe8] sm:$0xff]  }
 0x151   :  { %6975 = vmatprep.subr.bf16.mxu0 %v7605_v7  ;;  %v7644_v7 = vld [vmem:[%s9567_s1 + $0xba8] sm:$0xff]  }
 0x152   :  { %6996 = vmatpush3.bf16.msra.mxu1 %v7604_v6  ;;  %v7643_v6 = vld [vmem:[%s9567_s1 + $0xb28] sm:$0xff]  }
 0x153   :  { %6997 = vmatprep.subr.bf16.mxu1 %v7606_v8  ;;  %v7645_v8 = vld [vmem:[%s9567_s1 + $0xb70] sm:$0xff]  }
 0x154   :  { %6976 = vmatpush3.bf16.msra.mxu0 %v7607_v9 }
 0x155   :  { %6977 = vmatprep.subr.bf16.mxu0 %v7609_v11 }
 0x156   :  { %6998 = vmatpush3.bf16.msra.mxu1 %v7608_v10  ;;  %v6675_v16 = vpop.f32.mrb[12].mxu0  ;;  %v7646_v10 = vld [vmem:[%s9567_s1 + $0xbf0] sm:$0xff]  }
 0x157   :  { %v6676_v18 = vpop.f32.mrb[13].mxu0  ;;  %6999 = vmatprep.subr.bf16.mxu1 %v7610_v12  ;;  %v7647_v12 = vld [vmem:[%s9567_s1 + $0xb30] sm:$0xff]  }
 0x158   :  { %v6697_v20 = vpop.f32.mrb[12].mxu1  ;;  %v6677_v21 = vadd.f32 %v6676_v18, %v6675_v16  ;;  %v6678_v22 = vpop.f32.mrb[14].mxu0  ;;  %6978 = vmatpush3.bf16.msra.mxu0 %v7611_v13  ;;  %v7648_v16 = vld [vmem:[%s9567_s1 + $0xbb0] sm:$0xff]  }
 0x159   :  { %v6698_v26 = vpop.f32.mrb[13].mxu1  ;;  %v6679_v27 = vpop.f32.mrb[15].mxu0  ;;  %6979 = vmatprep.subr.bf16.mxu0 %v7613_v15 }
 0x15a   :  { %v4872_v30 = vadd.f32 %v6677_v21, %v8886_v51  ;;  %v6699_v31 = vadd.f32 %v6698_v26, %v6697_v20  ;;  %v6700_v32 = vpop.f32.mrb[14].mxu1  ;;  %7000 = vmatpush3.bf16.msra.mxu1 %v7612_v14  ;;  %v7625_v51 = vld [vmem:[%s9567_s1 + $0xb48] sm:$0xff]   ;;  %v7652_v27 = vld [vmem:[%s9567_s1 + $0xbb8] sm:$0xff]  }
 0x15b   :  { %v6701_v34 = vpop.f32.mrb[15].mxu1  ;;  %7001 = vmatprep.subr.bf16.mxu1 %v7614_v17  ;;  %v7649_v17 = vld [vmem:[%s9567_s1 + $0xb78] sm:$0xff]   ;;  %v7657_v32 = vld [vmem:[%s9567_s1 + $0xc80] sm:$0xff]  }
 0x15c   :  { %v8994_v38 = vadd.f32 %v6699_v31, %v4872_v30  ;;  %6980 = vmatpush3.bf16.msra.mxu0 %v7615_v19  ;;  %v7655_v30 = vld [vmem:[%s9567_s1 + $0xcc0] sm:$0xff]   ;;  %v7658_v34 = vld [vmem:[%s9567_s1 + $0xc48] sm:$0xff]  }
 0x15d   :  { %6981 = vmatprep.subr.bf16.mxu0 %v7617_v24  ;;  %v7656_v31 = vld [vmem:[%s9567_s1 + $0xc00] sm:$0xff]  }
 0x15e   :  { %7002 = vmatpush3.bf16.msra.mxu1 %v7616_v23  ;;  %v7650_v23 = vld [vmem:[%s9567_s1 + $0xbf8] sm:$0xff]  }
 0x15f   :  { %7003 = vmatprep.subr.bf16.mxu1 %v7618_v33  ;;  %v1360_v33 = vcombine.high %v1344_v28, %v1344_v28 }
 0x160   :  { %6982 = vmatpush3.bf16.msra.mxu0 %v7619_v35  ;;  %v7659_v35 = vld [vmem:[%s9567_s1 + $0xcc8] sm:$0xff]  }
 0x161   :  { %7011 = vmatprep.subr.bf16.mxu0 %v7621_v43  ;;  %v7666_v43 = vld [vmem:[%s9567_s1 + $0xc58] sm:$0xff]  }
 0x162   :  { %7004 = vmatpush3.bf16.msra.mxu1 %v7620_v39  ;;  %v7663_v39 = vld [vmem:[%s9567_s1 + $0xcd0] sm:$0xff]  }
 0x163   :  { %5430 = vmatmul.mubr.bf16.vlgmr.msra.gmra.mrb[40].mxu0 %v1337_v42  ;;  %7033 = vmatprep.subr.bf16.mxu1 %v7622_v45  ;;  %v7665_v42 = vld [vmem:[%s9567_s1 + $0xc90] sm:$0xff]   ;;  %v7668_v45 = vld [vmem:[%s9567_s1 + $0xc18] sm:$0xff]  }
 0x164   :  { %7012 = vmatpush3.bf16.msra.mxu0 %v7623_v47  ;;  %5509 = vmatprep.mubr.bf16.mxu0 %v1358_v48  ;;  %v7670_v47 = vld [vmem:[%s9567_s1 + $0xc60] sm:$0xff]  }
 0x165   :  { %5470 = vmatmul.mubr.bf16.vlgmr.msra.gmra.mrb[40].mxu1 %v1359_v50  ;;  %7013 = vmatprep.subr.bf16.mxu0 %v7625_v51  ;;  %v7671_v48 = vld [vmem:[%s9567_s1 + $0xce0] sm:$0xff]   ;;  %v7674_v51 = vld [vmem:[%s9567_s1 + $0xc68] sm:$0xff]  }
 0x166   :  { %7034 = vmatpush3.bf16.msra.mxu1 %v7624_v49  ;;  %5549 = vmatprep.mubr.bf16.mxu1 %v1362_v53  ;;  %v7672_v49 = vld [vmem:[%s9567_s1 + $0xc20] sm:$0xff]   ;;  %v7676_v53 = vld [vmem:[%s9567_s1 + $0xc28] sm:$0xff]  }
 0x167   :  { %7035 = vmatprep.subr.bf16.mxu1 %v7626_v52  ;;  %v7673_v50 = vld [vmem:[%s9567_s1 + $0xca0] sm:$0xff]   ;;  %v7675_v52 = vld [vmem:[%s9567_s1 + $0xce8] sm:$0xff]  }
 0x168   :  { %7014 = vmatpush3.bf16.msra.mxu0 %v7627_v54  ;;  %v7677_v54 = vld [vmem:[%s9567_s1 + $0xca8] sm:$0xff]  }
 0x169   :  { %7015 = vmatprep.subr.bf16.mxu0 %v7629_v56 }
 0x16a   :  { %7036 = vmatpush3.bf16.msra.mxu1 %v7628_v55  ;;  %v7678_v55 = vld [vmem:[%s9567_s1 + $0xc70] sm:$0xff]  }
 0x16b   :  { %7037 = vmatprep.subr.bf16.mxu1 %v7630_v57  ;;  %v7679_v57 = vld [vmem:[%s9567_s1 + $0xcf0] sm:$0xff]  }
 0x16c   :  { %7016 = vmatpush3.bf16.msra.mxu0 %v7631_v58 }
 0x16d   :  { %7017 = vmatprep.subr.bf16.mxu0 %v7633_v60 }
 0x16e   :  { %7038 = vmatpush3.bf16.msra.mxu1 %v7632_v59  ;;  %v7680_v59 = vld [vmem:[%s9567_s1 + $0xc30] sm:$0xff]  }
 0x16f   :  { %7039 = vmatprep.subr.bf16.mxu1 %v7634_v61 }
 0x170   :  { %7018 = vmatpush3.bf16.msra.mxu0 %v7635_v62 }
 0x171   :  { %7019 = vmatprep.subr.bf16.mxu0 %v7637_v0 }
 0x172   :  { %7040 = vmatpush3.bf16.msra.mxu1 %v7636_v63  ;;  %v7681_v63 = vld [vmem:[%s9567_s1 + $0xcb0] sm:$0xff]  }
 0x173   :  { %7041 = vmatprep.subr.bf16.mxu1 %v7638_v1 }
 0x174   :  { %7020 = vmatpush3.bf16.msra.mxu0 %v7639_v2  ;;  %v7682_v2 = vld [vmem:[%s9567_s1 + $0xc78] sm:$0xff]  }
 0x175   :  { %7021 = vmatprep.subr.bf16.mxu0 %v7641_v4 }
 0x176   :  { %7042 = vmatpush3.bf16.msra.mxu1 %v7640_v3  ;;  %v6719_v9 = vpop.f32.mrb[16].mxu0  ;;  %v28_v3 = vld [vmem:[%s9566_s0 + $0x30] sm:$0xff] }
 0x177   :  { %v6720_v11 = vpop.f32.mrb[17].mxu0  ;;  %7043 = vmatprep.subr.bf16.mxu1 %v7642_v5 }
 0x178   :  { %v6741_v13 = vpop.f32.mrb[16].mxu1  ;;  %v6721_v14 = vadd.f32 %v6720_v11, %v6719_v9  ;;  %v6722_v15 = vpop.f32.mrb[18].mxu0  ;;  %7022 = vmatpush3.bf16.msra.mxu0 %v7643_v6  ;;  %v1363_v9 = vcombine.high %v28_v3, %v28_v3  ;;  %v7684_v11 = vld [vmem:[%s9567_s1 + $0xc38] sm:$0xff]  }
 0x179   :  { %v6742_v18 = vpop.f32.mrb[17].mxu1  ;;  %v6723_v19 = vpop.f32.mrb[19].mxu0  ;;  %7023 = vmatprep.subr.bf16.mxu0 %v7645_v8  ;;  %v1370_v8 = vrot.slane %v28_v3, %v7955_v41  ;;  %v7717_v3 = vld [vmem:[%s9567_s1 + $0xdb8] sm:$0xff]  }
 0x17a   :  { %v4952_v20 = vadd.f32 %v6721_v14, %v8994_v38  ;;  %v6743_v21 = vadd.f32 %v6742_v18, %v6741_v13  ;;  %v6744_v22 = vpop.f32.mrb[18].mxu1  ;;  %7044 = vmatpush3.bf16.msra.mxu1 %v7644_v7  ;;  %v7662_v38 = vld [vmem:[%s9567_s1 + $0xc50] sm:$0xff]   ;;  %v7683_v7 = vld [vmem:[%s9567_s1 + $0xcf8] sm:$0xff]   ;;  %v9209_v15 = vrot.slane %v1363_v9, %v7955_v41  ;;  %v7687_v19 = vld [vmem:[%s9567_s1 + $0xdc0] sm:$0xff]  }
 0x17b   :  { %v6745_v24 = vpop.f32.mrb[19].mxu1  ;;  %7045 = vmatprep.subr.bf16.mxu1 %v7646_v10  ;;  %v7685_v13 = vld [vmem:[%s9567_s1 + $0xcb8] sm:$0xff]   ;;  %v1378_v14 = vcombine.high %v1370_v8, %v1370_v8 }
 0x17c   :  { %v9098_v26 = vadd.f32 %v6743_v21, %v4952_v20  ;;  %7024 = vmatpush3.bf16.msra.mxu0 %v7647_v12  ;;  %v1379_v20 = vcombine.high %v9209_v15, %v9209_v15  ;;  %v7688_v21 = vld [vmem:[%s9567_s1 + $0xd00] sm:$0xff]  }
 0x17d   :  { %7025 = vmatprep.subr.bf16.mxu0 %v7649_v17  ;;  %v7686_v17 = vld [vmem:[%s9567_s1 + $0xd40] sm:$0xff]   ;;  %v1400_v18 = vrot.slane %v1378_v14, %v7955_v41  ;;  %v7727_v14 = vld [vmem:[%s9567_s1 + $0xe50] sm:$0xff]  }
 0x17e   :  { %7046 = vmatpush3.bf16.msra.mxu1 %v7648_v16  ;;  %v1386_v16 = vrot.slane %v1370_v8, %v7955_v41  ;;  %v1407_v24 = vrot.slane %v1379_v20, %v7955_v41  ;;  %v7722_v8 = vld [vmem:[%s9567_s1 + $0xe80] sm:$0xff]   ;;  %v7733_v20 = vld [vmem:[%s9567_s1 + $0xe18] sm:$0xff]  }
 0x17f   :  { %7047 = vmatprep.subr.bf16.mxu1 %v7650_v23  ;;  %v1410_v22 = vcombine.high %v1400_v18, %v1400_v18  ;;  %v7689_v23 = vld [vmem:[%s9567_s1 + $0xd80] sm:$0xff]  }
 0x180   :  { %7026 = vmatpush3.bf16.msra.mxu0 %v7651_v25  ;;  %v1408_v25 = vcombine.high %v1386_v16, %v1386_v16 }
 0x181   :  { %7055 = vmatprep.subr.bf16.mxu0 %v7654_v29  ;;  %v7692_v29 = vld [vmem:[%s9567_s1 + $0xd08] sm:$0xff]  }
 0x182   :  { %7048 = vmatpush3.bf16.msra.mxu1 %v7652_v27  ;;  %v7691_v27 = vld [vmem:[%s9567_s1 + $0xdc8] sm:$0xff]  }
 0x183   :  { %5510 = vmatmul.mubr.bf16.vlgmr.msra.gmra.mrb[44].mxu0 %v1344_v28  ;;  %7077 = vmatprep.subr.bf16.mxu1 %v7655_v30  ;;  %v1411_v28 = vcombine.high %v1407_v24, %v1407_v24  ;;  %v7693_v30 = vld [vmem:[%s9567_s1 + $0xd88] sm:$0xff]  }
 0x184   :  { %7056 = vmatpush3.bf16.msra.mxu0 %v7656_v31  ;;  %5589 = vmatprep.mubr.bf16.mxu0 %v1400_v18  ;;  %v7694_v31 = vld [vmem:[%s9567_s1 + $0xd50] sm:$0xff]   ;;  %v7731_v18 = vld [vmem:[%s9567_s1 + $0xe58] sm:$0xff]  }
 0x185   :  { %5550 = vmatmul.mubr.bf16.vlgmr.msra.gmra.mrb[44].mxu1 %v1360_v33  ;;  %7057 = vmatprep.subr.bf16.mxu0 %v7658_v34  ;;  %v7696_v33 = vld [vmem:[%s9567_s1 + $0xd10] sm:$0xff]  }
 0x186   :  { %7078 = vmatpush3.bf16.msra.mxu1 %v7657_v32  ;;  %5629 = vmatprep.mubr.bf16.mxu1 %v1410_v22  ;;  %v7695_v32 = vld [vmem:[%s9567_s1 + $0xdd0] sm:$0xff]   ;;  %v7735_v22 = vld [vmem:[%s9567_s1 + $0xe60] sm:$0xff]  }
 0x187   :  { %7079 = vmatprep.subr.bf16.mxu1 %v7659_v35  ;;  %v7697_v34 = vld [vmem:[%s9567_s1 + $0xd90] sm:$0xff]   ;;  %v7698_v35 = vld [vmem:[%s9567_s1 + $0xd58] sm:$0xff]  }
 0x188   :  { %7058 = vmatpush3.bf16.msra.mxu0 %v7660_v36  ;;  %v7699_v36 = vld [vmem:[%s9567_s1 + $0xdd8] sm:$0xff]  }
 0x189   :  { %7059 = vmatprep.subr.bf16.mxu0 %v7662_v38  ;;  %v7701_v38 = vld [vmem:[%s9567_s1 + $0xd98] sm:$0xff]  }
 0x18a   :  { %7080 = vmatpush3.bf16.msra.mxu1 %v7661_v37  ;;  %v7700_v37 = vld [vmem:[%s9567_s1 + $0xd18] sm:$0xff]  }
 0x18b   :  { %7081 = vmatprep.subr.bf16.mxu1 %v7663_v39  ;;  %v7702_v39 = vld [vmem:[%s9567_s1 + $0xd60] sm:$0xff]  }
 0x18c   :  { %7060 = vmatpush3.bf16.msra.mxu0 %v7664_v40  ;;  %v7703_v40 = vld [vmem:[%s9567_s1 + $0xde0] sm:$0xff]  }
 0x18d   :  { %7061 = vmatprep.subr.bf16.mxu0 %v7666_v43  ;;  %v7705_v43 = vld [vmem:[%s9567_s1 + $0xda0] sm:$0xff]  }
 0x18e   :  { %7082 = vmatpush3.bf16.msra.mxu1 %v7665_v42  ;;  %v7704_v42 = vld [vmem:[%s9567_s1 + $0xd20] sm:$0xff]  }
 0x18f   :  { %7083 = vmatprep.subr.bf16.mxu1 %v7667_v44  ;;  %v7706_v44 = vld [vmem:[%s9567_s1 + $0xd68] sm:$0xff]  }
 0x190   :  { %7062 = vmatpush3.bf16.msra.mxu0 %v7668_v45  ;;  %v7707_v45 = vld [vmem:[%s9567_s1 + $0xde8] sm:$0xff]  }
 0x191   :  { %7063 = vmatprep.subr.bf16.mxu0 %v7670_v47  ;;  %v7709_v47 = vld [vmem:[%s9567_s1 + $0xda8] sm:$0xff]  }
 0x192   :  { %7084 = vmatpush3.bf16.msra.mxu1 %v7669_v46  ;;  %v7708_v46 = vld [vmem:[%s9567_s1 + $0xd28] sm:$0xff]  }
 0x193   :  { %7085 = vmatprep.subr.bf16.mxu1 %v7671_v48  ;;  %v7710_v48 = vld [vmem:[%s9567_s1 + $0xd70] sm:$0xff]  }
 0x194   :  { %7064 = vmatpush3.bf16.msra.mxu0 %v7672_v49 }
 0x195   :  { %7065 = vmatprep.subr.bf16.mxu0 %v7674_v51 }
 0x196   :  { %7086 = vmatpush3.bf16.msra.mxu1 %v7673_v50  ;;  %v6763_v56 = vpop.f32.mrb[20].mxu0  ;;  %v7711_v50 = vld [vmem:[%s9567_s1 + $0xdf0] sm:$0xff]  }
 0x197   :  { %v6764_v58 = vpop.f32.mrb[21].mxu0  ;;  %7087 = vmatprep.subr.bf16.mxu1 %v7675_v52  ;;  %v7712_v52 = vld [vmem:[%s9567_s1 + $0xd30] sm:$0xff]  }
 0x198   :  { %v6785_v60 = vpop.f32.mrb[20].mxu1  ;;  %v6765_v61 = vadd.f32 %v6764_v58, %v6763_v56  ;;  %v6766_v62 = vpop.f32.mrb[22].mxu0  ;;  %7066 = vmatpush3.bf16.msra.mxu0 %v7676_v53  ;;  %v7713_v56 = vld [vmem:[%s9567_s1 + $0xdb0] sm:$0xff]  }
 0x199   :  { %v6786_v0 = vpop.f32.mrb[21].mxu1  ;;  %v6767_v1 = vpop.f32.mrb[23].mxu0  ;;  %7067 = vmatprep.subr.bf16.mxu0 %v7678_v55 }
 0x19a   :  { %v5032_v4 = vadd.f32 %v6765_v61, %v9098_v26  ;;  %v6787_v5 = vadd.f32 %v6786_v0, %v6785_v60  ;;  %v6788_v6 = vpop.f32.mrb[22].mxu1  ;;  %7088 = vmatpush3.bf16.msra.mxu1 %v7677_v54  ;;  %v7690_v26 = vld [vmem:[%s9567_s1 + $0xd48] sm:$0xff]   ;;  %v7716_v1 = vld [vmem:[%s9567_s1 + $0xd38] sm:$0xff]  }
 0x19b   :  { %v6789_v10 = vpop.f32.mrb[23].mxu1  ;;  %7089 = vmatprep.subr.bf16.mxu1 %v7679_v57  ;;  %v7714_v57 = vld [vmem:[%s9567_s1 + $0xd78] sm:$0xff]   ;;  %v7720_v6 = vld [vmem:[%s9567_s1 + $0xec0] sm:$0xff]  }
 0x19c   :  { %v9203_v12 = vadd.f32 %v6787_v5, %v5032_v4  ;;  %7068 = vmatpush3.bf16.msra.mxu0 %v7680_v59  ;;  %v1393_v4 = vrot.slane %v9209_v15, %v7955_v41  ;;  %v7719_v5 = vld [vmem:[%s9567_s1 + $0xe40] sm:$0xff]   ;;  %v7723_v10 = vld [vmem:[%s9567_s1 + $0xe48] sm:$0xff]   ;;  %v7728_v15 = vld [vmem:[%s9567_s1 + $0xed0] sm:$0xff]  }
 0x19d   :  { %7069 = vmatprep.subr.bf16.mxu0 %v7682_v2 }
 0x19e   :  { %7090 = vmatpush3.bf16.msra.mxu1 %v7681_v63  ;;  %v7715_v63 = vld [vmem:[%s9567_s1 + $0xdf8] sm:$0xff]   ;;  %v1409_v9 = vcombine.high %v1393_v4, %v1393_v4 }
 0x19f   :  { %7091 = vmatprep.subr.bf16.mxu1 %v7683_v7  ;;  %v7721_v7 = vld [vmem:[%s9567_s1 + $0xe00] sm:$0xff]  }
 0x1a0   :  { %7070 = vmatpush3.bf16.msra.mxu0 %v7684_v11  ;;  %v7724_v11 = vld [vmem:[%s9567_s1 + $0xec8] sm:$0xff]  }
 0x1a1   :  { %7099 = vmatprep.subr.bf16.mxu0 %v7686_v17  ;;  %v7730_v17 = vld [vmem:[%s9567_s1 + $0xe90] sm:$0xff]  }
 0x1a2   :  { %7092 = vmatpush3.bf16.msra.mxu1 %v7685_v13  ;;  %v7726_v13 = vld [vmem:[%s9567_s1 + $0xe88] sm:$0xff]  }
 0x1a3   :  { %5590 = vmatmul.mubr.bf16.vlgmr.msra.gmra.mrb[48].mxu0 %v1386_v16  ;;  %7121 = vmatprep.subr.bf16.mxu1 %v7687_v19  ;;  %v7729_v16 = vld [vmem:[%s9567_s1 + $0xe10] sm:$0xff]   ;;  %v7732_v19 = vld [vmem:[%s9567_s1 + $0xed8] sm:$0xff]  }
 0x1a4   :  { %7100 = vmatpush3.bf16.msra.mxu0 %v7688_v21  ;;  %5669 = vmatprep.mubr.bf16.mxu0 %v1407_v24  ;;  %v7734_v21 = vld [vmem:[%s9567_s1 + $0xe98] sm:$0xff]   ;;  %v7737_v24 = vld [vmem:[%s9567_s1 + $0xe20] sm:$0xff]  }
 0x1a5   :  { %5630 = vmatmul.mubr.bf16.vlgmr.msra.gmra.mrb[48].mxu1 %v1408_v25  ;;  %7101 = vmatprep.subr.bf16.mxu0 %v7690_v26  ;;  %v7738_v25 = vld [vmem:[%s9567_s1 + $0xea0] sm:$0xff]   ;;  %v7739_v26 = vld [vmem:[%s9567_s1 + $0xe68] sm:$0xff]  }
 0x1a6   :  { %7122 = vmatpush3.bf16.msra.mxu1 %v7689_v23  ;;  %5709 = vmatprep.mubr.bf16.mxu1 %v1411_v28  ;;  %v7736_v23 = vld [vmem:[%s9567_s1 + $0xee0] sm:$0xff]   ;;  %v7741_v28 = vld [vmem:[%s9567_s1 + $0xe28] sm:$0xff]  }
 0x1a7   :  { %7123 = vmatprep.subr.bf16.mxu1 %v7691_v27  ;;  %v7740_v27 = vld [vmem:[%s9567_s1 + $0xee8] sm:$0xff]  }
 0x1a8   :  { %7102 = vmatpush3.bf16.msra.mxu0 %v7692_v29  ;;  %v7742_v29 = vld [vmem:[%s9567_s1 + $0xea8] sm:$0xff]  }
 0x1a9   :  { %7103 = vmatprep.subr.bf16.mxu0 %v7694_v31 }
 0x1aa   :  { %7124 = vmatpush3.bf16.msra.mxu1 %v7693_v30  ;;  %v7743_v30 = vld [vmem:[%s9567_s1 + $0xe70] sm:$0xff]  }
 0x1ab   :  { %7125 = vmatprep.subr.bf16.mxu1 %v7695_v32  ;;  %v7744_v32 = vld [vmem:[%s9567_s1 + $0xef0] sm:$0xff]  }
 0x1ac   :  { %7104 = vmatpush3.bf16.msra.mxu0 %v7696_v33 }
 0x1ad   :  { %7105 = vmatprep.subr.bf16.mxu0 %v7698_v35 }
 0x1ae   :  { %7126 = vmatpush3.bf16.msra.mxu1 %v7697_v34  ;;  %v7745_v34 = vld [vmem:[%s9567_s1 + $0xe30] sm:$0xff]  }
 0x1af   :  { %7127 = vmatprep.subr.bf16.mxu1 %v7699_v36 }
 0x1b0   :  { %7106 = vmatpush3.bf16.msra.mxu0 %v7700_v37 }
 0x1b1   :  { %7107 = vmatprep.subr.bf16.mxu0 %v7702_v39 }
 0x1b2   :  { %7128 = vmatpush3.bf16.msra.mxu1 %v7701_v38  ;;  %v7746_v38 = vld [vmem:[%s9567_s1 + $0xeb0] sm:$0xff]  }
 0x1b3   :  { %7129 = vmatprep.subr.bf16.mxu1 %v7703_v40 }
 0x1b4   :  { %7108 = vmatpush3.bf16.msra.mxu0 %v7704_v42  ;;  %v7747_v42 = vld [vmem:[%s9567_s1 + $0xe78] sm:$0xff]  }
 0x1b5   :  { %7109 = vmatprep.subr.bf16.mxu0 %v7706_v44 }
 0x1b6   :  { %7130 = vmatpush3.bf16.msra.mxu1 %v7705_v43  ;;  %v6807_v49 = vpop.f32.mrb[24].mxu0  ;;  %v7748_v43 = vld [vmem:[%s9567_s1 + $0xef8] sm:$0xff]  }
 0x1b7   :  { %v6808_v51 = vpop.f32.mrb[25].mxu0  ;;  %7131 = vmatprep.subr.bf16.mxu1 %v7707_v45 }
 0x1b8   :  { %v6829_v53 = vpop.f32.mrb[24].mxu1  ;;  %v6809_v54 = vadd.f32 %v6808_v51, %v6807_v49  ;;  %v6810_v55 = vpop.f32.mrb[26].mxu0  ;;  %7110 = vmatpush3.bf16.msra.mxu0 %v7708_v46  ;;  %v7749_v49 = vld [vmem:[%s9567_s1 + $0xe38] sm:$0xff]  }
 0x1b9   :  { %v6830_v58 = vpop.f32.mrb[25].mxu1  ;;  %v6811_v59 = vpop.f32.mrb[27].mxu0  ;;  %7111 = vmatprep.subr.bf16.mxu0 %v7710_v48 }
 0x1ba   :  { %v5112_v60 = vadd.f32 %v6809_v54, %v9203_v12  ;;  %v6831_v61 = vadd.f32 %v6830_v58, %v6829_v53  ;;  %v6832_v62 = vpop.f32.mrb[26].mxu1  ;;  %7132 = vmatpush3.bf16.msra.mxu1 %v7709_v47  ;;  %v7725_v12 = vld [vmem:[%s9567_s1 + $0xe08] sm:$0xff]   ;;  %v29_v47 = vld [vmem:[%s9566_s0 + $0x38] sm:$0xff]  ;;  %v7752_v58 = vld [vmem:[%s9567_s1 + $0xfc0] sm:$0xff]  }
 0x1bb   :  { %v6833_v0 = vpop.f32.mrb[27].mxu1  ;;  %7133 = vmatprep.subr.bf16.mxu1 %v7711_v50  ;;  %v1419_v50 = vrot.slane %v29_v47, %v7955_v41  ;;  %v1412_v51 = vcombine.high %v29_v47, %v29_v47  ;;  %v7750_v53 = vld [vmem:[%s9567_s1 + $0xeb8] sm:$0xff]   ;;  %v7754_v62 = vld [vmem:[%s9567_s1 + $0xf80] sm:$0xff]  }
 0x1bc   :  { %v9310_v2 = vadd.f32 %v6831_v61, %v5112_v60  ;;  %7112 = vmatpush3.bf16.msra.mxu0 %v7712_v52  ;;  %v7753_v60 = vld [vmem:[%s9567_s1 + $0xf00] sm:$0xff]  }
 0x1bd   :  { %7113 = vmatprep.subr.bf16.mxu0 %v7714_v57  ;;  %v1427_v54 = vcombine.high %v1419_v50, %v1419_v50  ;;  %v1435_v55 = vrot.slane %v1419_v50, %v7955_v41  ;;  %v9425_v57 = vrot.slane %v1412_v51, %v7955_v41 }
 0x1be   :  { %7134 = vmatpush3.bf16.msra.mxu1 %v7713_v56  ;;  %v7751_v56 = vld [vmem:[%s9567_s1 + $0xf40] sm:$0xff]  }
 0x1bf   :  { %7135 = vmatprep.subr.bf16.mxu1 %v7715_v63  ;;  %v1449_v59 = vrot.slane %v1427_v54, %v7955_v41  ;;  %v1428_v61 = vcombine.high %v9425_v57, %v9425_v57  ;;  %v1457_v0 = vcombine.high %v1435_v55, %v1435_v55 }
 0x1c0   :  { %7114 = vmatpush3.bf16.msra.mxu0 %v7716_v1  ;;  %v7755_v1 = vld [vmem:[%s9567_s1 + $0xf48] sm:$0xff]  }
 0x1c1   :  { %7143 = vmatprep.subr.bf16.mxu0 %v7719_v5  ;;  %v1459_v63 = vcombine.high %v1449_v59, %v1449_v59 }
 0x1c2   :  { %7136 = vmatpush3.bf16.msra.mxu1 %v7717_v3  ;;  %v7756_v3 = vld [vmem:[%s9567_s1 + $0xfc8] sm:$0xff]  }
 0x1c3   :  { %5670 = vmatmul.mubr.bf16.vlgmr.msra.gmra.mrb[52].mxu0 %v1393_v4  ;;  %7165 = vmatprep.subr.bf16.mxu1 %v7720_v6  ;;  %v7757_v4 = vld [vmem:[%s9567_s1 + $0xf08] sm:$0xff]  }
 0x1c4   :  { %7144 = vmatpush3.bf16.msra.mxu0 %v7721_v7  ;;  %5749 = vmatprep.mubr.bf16.mxu0 %v1449_v59  ;;  %v7758_v6 = vld [vmem:[%s9567_s1 + $0xf88] sm:$0xff]   ;;  %v7759_v7 = vld [vmem:[%s9567_s1 + $0xf50] sm:$0xff]  }
 0x1c5   :  { %5710 = vmatmul.mubr.bf16.vlgmr.msra.gmra.mrb[52].mxu1 %v1409_v9  ;;  %7145 = vmatprep.subr.bf16.mxu0 %v7723_v10  ;;  %v7761_v9 = vld [vmem:[%s9567_s1 + $0xf10] sm:$0xff]  }
 0x1c6   :  { %7166 = vmatpush3.bf16.msra.mxu1 %v7722_v8  ;;  %5789 = vmatprep.mubr.bf16.mxu1 %v1459_v63  ;;  %v7760_v8 = vld [vmem:[%s9567_s1 + $0xfd0] sm:$0xff]  }
 0x1c7   :  { %7167 = vmatprep.subr.bf16.mxu1 %v7724_v11  ;;  %v7762_v10 = vld [vmem:[%s9567_s1 + $0xf90] sm:$0xff]   ;;  %v7763_v11 = vld [vmem:[%s9567_s1 + $0xf58] sm:$0xff]  }
 0x1c8   :  { %7146 = vmatpush3.bf16.msra.mxu0 %v7725_v12  ;;  %v7764_v12 = vld [vmem:[%s9567_s1 + $0xfd8] sm:$0xff]  }
 0x1c9   :  { %7147 = vmatprep.subr.bf16.mxu0 %v7727_v14  ;;  %v7766_v14 = vld [vmem:[%s9567_s1 + $0xf98] sm:$0xff]  }
 0x1ca   :  { %7168 = vmatpush3.bf16.msra.mxu1 %v7726_v13  ;;  %v7765_v13 = vld [vmem:[%s9567_s1 + $0xf18] sm:$0xff]  }
 0x1cb   :  { %7169 = vmatprep.subr.bf16.mxu1 %v7728_v15  ;;  %v7767_v15 = vld [vmem:[%s9567_s1 + $0xf60] sm:$0xff]  }
 0x1cc   :  { %7148 = vmatpush3.bf16.msra.mxu0 %v7729_v16  ;;  %v7768_v16 = vld [vmem:[%s9567_s1 + $0xfe0] sm:$0xff]  }
 0x1cd   :  { %7149 = vmatprep.subr.bf16.mxu0 %v7731_v18  ;;  %v7770_v18 = vld [vmem:[%s9567_s1 + $0xfa0] sm:$0xff]  }
 0x1ce   :  { %7170 = vmatpush3.bf16.msra.mxu1 %v7730_v17  ;;  %v7769_v17 = vld [vmem:[%s9567_s1 + $0xf20] sm:$0xff]  }
 0x1cf   :  { %7171 = vmatprep.subr.bf16.mxu1 %v7732_v19  ;;  %v7771_v19 = vld [vmem:[%s9567_s1 + $0xf68] sm:$0xff]  }
 0x1d0   :  { %7150 = vmatpush3.bf16.msra.mxu0 %v7733_v20  ;;  %v7772_v20 = vld [vmem:[%s9567_s1 + $0xfe8] sm:$0xff]  }
 0x1d1   :  { %7151 = vmatprep.subr.bf16.mxu0 %v7735_v22  ;;  %v7774_v22 = vld [vmem:[%s9567_s1 + $0xfa8] sm:$0xff]  }
 0x1d2   :  { %7172 = vmatpush3.bf16.msra.mxu1 %v7734_v21  ;;  %v7773_v21 = vld [vmem:[%s9567_s1 + $0xf28] sm:$0xff]  }
 0x1d3   :  { %7173 = vmatprep.subr.bf16.mxu1 %v7736_v23  ;;  %v7775_v23 = vld [vmem:[%s9567_s1 + $0xf70] sm:$0xff]  }
 0x1d4   :  { %7152 = vmatpush3.bf16.msra.mxu0 %v7737_v24 }
 0x1d5   :  { %7153 = vmatprep.subr.bf16.mxu0 %v7739_v26 }
 0x1d6   :  { %7174 = vmatpush3.bf16.msra.mxu1 %v7738_v25  ;;  %v6851_v31 = vpop.f32.mrb[28].mxu0  ;;  %v7776_v25 = vld [vmem:[%s9567_s1 + $0xff0] sm:$0xff]  }
 0x1d7   :  { %v6852_v33 = vpop.f32.mrb[29].mxu0  ;;  %7175 = vmatprep.subr.bf16.mxu1 %v7740_v27  ;;  %v7777_v27 = vld [vmem:[%s9567_s1 + $0xf30] sm:$0xff]  }
 0x1d8   :  { %v6873_v35 = vpop.f32.mrb[28].mxu1  ;;  %v6853_v36 = vadd.f32 %v6852_v33, %v6851_v31  ;;  %v6854_v37 = vpop.f32.mrb[30].mxu0  ;;  %7154 = vmatpush3.bf16.msra.mxu0 %v7741_v28  ;;  %v7778_v31 = vld [vmem:[%s9567_s1 + $0xfb0] sm:$0xff]  }
 0x1d9   :  { %v6874_v39 = vpop.f32.mrb[29].mxu1  ;;  %v6855_v40 = vpop.f32.mrb[31].mxu0  ;;  %7155 = vmatprep.subr.bf16.mxu0 %v7743_v30 }
 0x1da   :  { %v5192_v44 = vadd.f32 %v6853_v36, %v9310_v2  ;;  %v6875_v45 = vadd.f32 %v6874_v39, %v6873_v35  ;;  %v6876_v46 = vpop.f32.mrb[30].mxu1  ;;  %7176 = vmatpush3.bf16.msra.mxu1 %v7742_v29  ;;  %v1456_v2 = vrot.slane %v1428_v61, %v7955_v41  ;;  %v7781_v40 = vld [vmem:[%s9567_s1 + $0xf38] sm:$0xff]  }
 0x1db   :  { %v6877_v48 = vpop.f32.mrb[31].mxu1  ;;  %7177 = vmatprep.subr.bf16.mxu1 %v7744_v32  ;;  %v7779_v32 = vld [vmem:[%s9567_s1 + $0xf78] sm:$0xff]  }
 0x1dc   :  { %v9415_v52 = vadd.f32 %v6875_v45, %v5192_v44  ;;  %7156 = vmatpush3.bf16.msra.mxu0 %v7745_v34  ;;  %v1460_v5 = vcombine.high %v1456_v2, %v1456_v2  ;;  %v1442_v44 = vrot.slane %v9425_v57, %v7955_v41 }
 0x1dd   :  { %7157 = vmatprep.subr.bf16.mxu0 %v7747_v42 }
 0x1de   :  { %7178 = vmatpush3.bf16.msra.mxu1 %v7746_v38  ;;  %v7780_v38 = vld [vmem:[%s9567_s1 + $0xff8] sm:$0xff]  }
 0x1df   :  { %7179 = vmatprep.subr.bf16.mxu1 %v7748_v43  ;;  %v7782_v43 = vld [vmem:[%s9567_s1 + $0xfb8] sm:$0xff]  }
 0x1e0   :  { %7158 = vmatpush3.bf16.msra.mxu0 %v7749_v49 }
 0x1e1   :  { %7187 = vmatprep.subr.bf16.mxu0 %v7751_v56 }
 0x1e2   :  { %7180 = vmatpush3.bf16.msra.mxu1 %v7750_v53 }
 0x1e3   :  { %5750 = vmatmul.mubr.bf16.vlgmr.msra.gmra.mrb[56].mxu0 %v1435_v55  ;;  %7209 = vmatprep.subr.bf16.mxu1 %v7752_v58 }
 0x1e4   :  { %7188 = vmatpush3.bf16.msra.mxu0 %v7753_v60  ;;  %5829 = vmatprep.mubr.bf16.mxu0 %v1456_v2 }
 0x1e5   :  { %5790 = vmatmul.mubr.bf16.vlgmr.msra.gmra.mrb[56].mxu1 %v1457_v0  ;;  %7189 = vmatprep.subr.bf16.mxu0 %v7755_v1 }
 0x1e6   :  { %7210 = vmatpush3.bf16.msra.mxu1 %v7754_v62  ;;  %5869 = vmatprep.mubr.bf16.mxu1 %v1460_v5 }
 0x1e7   :  { %7211 = vmatprep.subr.bf16.mxu1 %v7756_v3 }
 0x1e8   :  { %7190 = vmatpush3.bf16.msra.mxu0 %v7757_v4 }
 0x1e9   :  { %7191 = vmatprep.subr.bf16.mxu0 %v7759_v7 }
 0x1ea   :  { %7212 = vmatpush3.bf16.msra.mxu1 %v7758_v6 }
 0x1eb   :  { %7213 = vmatprep.subr.bf16.mxu1 %v7760_v8 }
 0x1ec   :  { %7192 = vmatpush3.bf16.msra.mxu0 %v7761_v9 }
 0x1ed   :  { %7193 = vmatprep.subr.bf16.mxu0 %v7763_v11 }
 0x1ee   :  { %7214 = vmatpush3.bf16.msra.mxu1 %v7762_v10 }
 0x1ef   :  { %7215 = vmatprep.subr.bf16.mxu1 %v7764_v12 }
 0x1f0   :  { %7194 = vmatpush3.bf16.msra.mxu0 %v7765_v13 }
 0x1f1   :  { %7195 = vmatprep.subr.bf16.mxu0 %v7767_v15 }
 0x1f2   :  { %7216 = vmatpush3.bf16.msra.mxu1 %v7766_v14 }
 0x1f3   :  { %7217 = vmatprep.subr.bf16.mxu1 %v7768_v16 }
 0x1f4   :  { %7196 = vmatpush3.bf16.msra.mxu0 %v7769_v17 }
 0x1f5   :  { %7197 = vmatprep.subr.bf16.mxu0 %v7771_v19 }
 0x1f6   :  { %7218 = vmatpush3.bf16.msra.mxu1 %v7770_v18  ;;  %v6895_v24 = vpop.f32.mrb[32].mxu0 }
 0x1f7   :  { %v6896_v26 = vpop.f32.mrb[33].mxu0  ;;  %7219 = vmatprep.subr.bf16.mxu1 %v7772_v20 }
 0x1f8   :  { %v6917_v28 = vpop.f32.mrb[32].mxu1  ;;  %v6897_v29 = vadd.f32 %v6896_v26, %v6895_v24  ;;  %v6898_v30 = vpop.f32.mrb[34].mxu0  ;;  %7198 = vmatpush3.bf16.msra.mxu0 %v7773_v21 }
 0x1f9   :  { %v6918_v33 = vpop.f32.mrb[33].mxu1  ;;  %v6899_v34 = vpop.f32.mrb[35].mxu0  ;;  %7199 = vmatprep.subr.bf16.mxu0 %v7775_v23 }
 0x1fa   :  { %v5272_v35 = vadd.f32 %v6897_v29, %v9415_v52  ;;  %v6919_v36 = vadd.f32 %v6918_v33, %v6917_v28  ;;  %v6920_v37 = vpop.f32.mrb[34].mxu1  ;;  %7220 = vmatpush3.bf16.msra.mxu1 %v7774_v22 }
 0x1fb   :  { %v6921_v39 = vpop.f32.mrb[35].mxu1  ;;  %7221 = vmatprep.subr.bf16.mxu1 %v7776_v25 }
 0x1fc   :  { %v5312_v42 = vadd.f32 %v6919_v36, %v5272_v35  ;;  %7200 = vmatpush3.bf16.msra.mxu0 %v7777_v27 }
 0x1fd   :  { %7201 = vmatprep.subr.bf16.mxu0 %v7779_v32 }
 0x1fe   :  { %7222 = vmatpush3.bf16.msra.mxu1 %v7778_v31 }
 0x1ff   :  { %7223 = vmatprep.subr.bf16.mxu1 %v7780_v38 }
 0x200   :  { %7202 = vmatpush3.bf16.msra.mxu0 %v7781_v40 }
 0x201   :  { %10 = vsyncpa [#allocation3], 0  ;;  %v1458_v45 = vcombine.high %v1442_v44, %v1442_v44  ;;  %v7784_v5 = vld [vmem:[%s9569_s3] sm:$0xff]   ;;  %v7817_v6 = vmov 0.0   ;;  %v7785_v7 = vld [vmem:[%s9569_s3 + $0x8] sm:$0xff]   ;;  %vm7818_vm0 = vmmov 0  }
 0x202   :  { %7224 = vmatpush3.bf16.msra.mxu1 %v7782_v43  ;;  %7240 = vmatprep.subr.bf16.mxu0 %v7817_v6  ;;  %v7786_v8 = vld [vmem:[%s9569_s3 + $0x10] sm:$0xff]   ;;  %v7787_v9 = vld [vmem:[%s9569_s3 + $0x18] sm:$0xff]   ;;  %v7788_v10 = vld [vmem:[%s9569_s3 + $0x20] sm:$0xff]   ;;  %s7819_s27 = smov [#allocation2]  }
 0x203   :  { %5830 = vmatmul.mubr.bf16.vlgmr.msra.gmra.mrb[60].mxu0 %v1442_v44  ;;  %v7789_v13 = vld [vmem:[%s9569_s3 + $0x28] sm:$0xff]   ;;  %v7790_v23 = vld [vmem:[%s9569_s3 + $0x30] sm:$0xff]   ;;  %v7791_v25 = vld [vmem:[%s9569_s3 + $0x38] sm:$0xff]   ;;  %s5997_s0 = sshll.u32 %s7819_s27, 4  ;;  %s5998_s0 = int_to_ptr.vmem [resolvable:$true] %s5997_s0 }
 0x204   :  { %7241 = vmatpush3.bf16.msra.mxu0 %v7784_v5  ;;  %7256 = vmatprep.mubr.msk.bf16.mxu0 %vm7818_vm0, %v7817_v6  ;;  %s7792_s28 = scalar_lea.vmem %s5998_s0, 32  ;;  %p7797_p1 = scmp.lt.s32.totalorder %s5998_s0, %s5998_s0 }
 0x205   :  { %5870 = vmatmul.mubr.bf16.vlgmr.msra.gmra.mrb[60].mxu1 %v1458_v45  ;;  %7242 = vmatprep.subr.bf16.mxu0 %v7817_v6  ;;  %p7793_p0 = scmp.ne.s32.totalorder %s5998_s0, %s7792_s28  ;;  %p7798_p2 = scmp.lt.s32.totalorder %s7792_s28, %s7792_s28 }
 0x207   :  { %p7799_p3 = por %p7798_p2, %p7797_p1 }
 0x208   :  { %7243 = vmatpush3.bf16.msra.mxu0 %v7785_v7 }
 0x209   :  { %7244 = vmatprep.subr.bf16.mxu0 %v7817_v6  ;;  %p7800_p4 = pnand %p7799_p3, %p7793_p0 }
 0x20c   :  { %7245 = vmatpush3.bf16.msra.mxu0 %v7786_v8 }
 0x20d   :  { %7246 = vmatprep.subr.bf16.mxu0 %v7817_v6 }
 0x210   :  { %7247 = vmatpush3.bf16.msra.mxu0 %v7787_v9 }
 0x211   :  { %7248 = vmatprep.subr.bf16.mxu0 %v7817_v6 }
 0x214   :  { %7249 = vmatpush3.bf16.msra.mxu0 %v7788_v10 }
 0x215   :  { %7250 = vmatprep.subr.bf16.mxu0 %v7817_v6 }
 0x216   :  { %v6939_v46 = vpop.f32.mrb[36].mxu0 }
 0x217   :  { %v6940_v47 = vpop.f32.mrb[37].mxu0 }
 0x218   :  { %v6961_v48 = vpop.f32.mrb[36].mxu1  ;;  %v6941_v49 = vadd.f32 %v6940_v47, %v6939_v46  ;;  %v6942_v50 = vpop.f32.mrb[38].mxu0  ;;  %7251 = vmatpush3.bf16.msra.mxu0 %v7789_v13 }
 0x219   :  { %v6962_v51 = vpop.f32.mrb[37].mxu1  ;;  %v6943_v52 = vpop.f32.mrb[39].mxu0  ;;  %7252 = vmatprep.subr.bf16.mxu0 %v7817_v6 }
 0x21a   :  { %v5352_v53 = vadd.f32 %v6941_v49, %v5312_v42  ;;  %v6963_v54 = vadd.f32 %v6962_v51, %v6961_v48  ;;  %v6964_v55 = vpop.f32.mrb[38].mxu1 }
 0x21b   :  { %v6965_v56 = vpop.f32.mrb[39].mxu1 }
 0x21c   :  { %v5392_v41 = vadd.f32 %v6963_v54, %v5352_v53  ;;  %7253 = vmatpush3.bf16.msra.mxu0 %v7790_v23 }
 0x21d   :  { %7254 = vmatprep.subr.bf16.mxu0 %v7817_v6 }
 0x220   :  { %7255 = vmatpush3.bf16.msra.mxu0 %v7791_v25 }
 0x236   :  { %v6983_v57 = vpop.f32.mrb[40].mxu0 }
 0x237   :  { %v6984_v58 = vpop.f32.mrb[41].mxu0 }
 0x238   :  { %v7005_v59 = vpop.f32.mrb[40].mxu1  ;;  %v6985_v60 = vadd.f32 %v6984_v58, %v6983_v57  ;;  %v6986_v61 = vpop.f32.mrb[42].mxu0 }
 0x239   :  { %v7006_v62 = vpop.f32.mrb[41].mxu1  ;;  %v6987_v63 = vpop.f32.mrb[43].mxu0 }
 0x23a   :  { %v5432_v0 = vadd.f32 %v6985_v60, %v5392_v41  ;;  %v7007_v1 = vadd.f32 %v7006_v62, %v7005_v59  ;;  %v7008_v2 = vpop.f32.mrb[42].mxu1 }
 0x23b   :  { %v7009_v3 = vpop.f32.mrb[43].mxu1 }
 0x23c   :  { %v5472_v4 = vadd.f32 %v7007_v1, %v5432_v0 }
 0x256   :  { %v7027_v11 = vpop.f32.mrb[44].mxu0 }
 0x257   :  { %v7028_v12 = vpop.f32.mrb[45].mxu0 }
 0x258   :  { %v7049_v14 = vpop.f32.mrb[44].mxu1  ;;  %v7029_v15 = vadd.f32 %v7028_v12, %v7027_v11  ;;  %v7030_v16 = vpop.f32.mrb[46].mxu0  ;;  %v6518_v12 = vld [vmem:[%s9570_s4] ss:$0 sm:$0xff] }
 0x259   :  { %v7050_v17 = vpop.f32.mrb[45].mxu1  ;;  %v7031_v18 = vpop.f32.mrb[47].mxu0 }
 0x25a   :  { %v5512_v19 = vadd.f32 %v7029_v15, %v5472_v4  ;;  %v7051_v20 = vadd.f32 %v7050_v17, %v7049_v14  ;;  %v7052_v21 = vpop.f32.mrb[46].mxu1 }
 0x25b   :  { %v7053_v22 = vpop.f32.mrb[47].mxu1 }
 0x25c   :  { %v5552_v24 = vadd.f32 %v7051_v20, %v5512_v19 }
 0x276   :  { %v7071_v26 = vpop.f32.mrb[48].mxu0 }
 0x277   :  { %v7072_v27 = vpop.f32.mrb[49].mxu0 }
 0x278   :  { %v7093_v28 = vpop.f32.mrb[48].mxu1  ;;  %v7073_v29 = vadd.f32 %v7072_v27, %v7071_v26  ;;  %v7074_v30 = vpop.f32.mrb[50].mxu0 }
 0x279   :  { %v7094_v31 = vpop.f32.mrb[49].mxu1  ;;  %v7075_v32 = vpop.f32.mrb[51].mxu0 }
 0x27a   :  { %v5592_v33 = vadd.f32 %v7073_v29, %v5552_v24  ;;  %v7095_v34 = vadd.f32 %v7094_v31, %v7093_v28  ;;  %v7096_v35 = vpop.f32.mrb[50].mxu1 }
 0x27b   :  { %v7097_v36 = vpop.f32.mrb[51].mxu1 }
 0x27c   :  { %v5632_v37 = vadd.f32 %v7095_v34, %v5592_v33 }
 0x296   :  { %v7115_v38 = vpop.f32.mrb[52].mxu0 }
 0x297   :  { %v7116_v39 = vpop.f32.mrb[53].mxu0 }
 0x298   :  { %v7137_v40 = vpop.f32.mrb[52].mxu1  ;;  %v7117_v42 = vadd.f32 %v7116_v39, %v7115_v38  ;;  %v7118_v43 = vpop.f32.mrb[54].mxu0 }
 0x299   :  { %v7138_v44 = vpop.f32.mrb[53].mxu1  ;;  %v7119_v45 = vpop.f32.mrb[55].mxu0 }
 0x29a   :  { %v5672_v46 = vadd.f32 %v7117_v42, %v5632_v37  ;;  %v7139_v47 = vadd.f32 %v7138_v44, %v7137_v40  ;;  %v7140_v48 = vpop.f32.mrb[54].mxu1 }
 0x29b   :  { %v7141_v49 = vpop.f32.mrb[55].mxu1 }
 0x29c   :  { %v5712_v50 = vadd.f32 %v7139_v47, %v5672_v46 }
 0x2b6   :  { %v7159_v51 = vpop.f32.mrb[56].mxu0 }
 0x2b7   :  { %v7160_v52 = vpop.f32.mrb[57].mxu0 }
 0x2b8   :  { %v7181_v53 = vpop.f32.mrb[56].mxu1  ;;  %v7161_v54 = vadd.f32 %v7160_v52, %v7159_v51  ;;  %v7162_v55 = vpop.f32.mrb[58].mxu0 }
 0x2b9   :  { %v7182_v56 = vpop.f32.mrb[57].mxu1  ;;  %v7163_v41 = vpop.f32.mrb[59].mxu0 }
 0x2ba   :  { %v5752_v57 = vadd.f32 %v7161_v54, %v5712_v50  ;;  %v7183_v58 = vadd.f32 %v7182_v56, %v7181_v53  ;;  %v7184_v59 = vpop.f32.mrb[58].mxu1 }
 0x2bb   :  { %v7185_v60 = vpop.f32.mrb[59].mxu1 }
 0x2bc   :  { %v5792_v61 = vadd.f32 %v7183_v58, %v5752_v57 }
 0x2d6   :  { %v7203_v62 = vpop.f32.mrb[60].mxu0 }
 0x2d7   :  { %v7204_v63 = vpop.f32.mrb[61].mxu0 }
 0x2d8   :  { %v7225_v0 = vpop.f32.mrb[60].mxu1  ;;  %v7205_v1 = vadd.f32 %v7204_v63, %v7203_v62  ;;  %v7206_v2 = vpop.f32.mrb[62].mxu0 }
 0x2d9   :  { %v7226_v3 = vpop.f32.mrb[61].mxu1  ;;  %v7207_v4 = vpop.f32.mrb[63].mxu0 }
 0x2da   :  { %v5832_v5 = vadd.f32 %v7205_v1, %v5792_v61  ;;  %v7227_v6 = vadd.f32 %v7226_v3, %v7225_v0  ;;  %v7228_v7 = vpop.f32.mrb[62].mxu1 }
 0x2db   :  { %v7229_v8 = vpop.f32.mrb[63].mxu1 }
 0x2dc   :  { %v5872_v9 = vadd.f32 %v7227_v6, %v5832_v5 }
 0x2de   :  { %v5877_v10 = vmax.f32 %v5872_v9, 0.0 }
 0x2e0   :  { %v5878_v11 = vpack.c.bf16 %v5877_v10, %v5877_v10 }
 0x2e2   :  { %7257 = vmatmul.mubr.bf16.vlgmr.msra.gmra.mrb[64].mxu0 %v5878_v11 }
 0x3b5   :  { %v5984_v13 = vpop.f32.mrb[64].mxu0 }
 0x3b6   :  { %v5985_v14 = vadd.f32 %v6518_v12, %v5984_v13  ;;  %v7258_v15 = vpop.f32.mrb[65].mxu0 }
 0x3b7   :  { %v5987_v16 = vpop.f32.mrb[66].mxu0 }
 0x3b8   :  { %5990 = vst [vmem:[#allocation2] sm:$0x3] %v5985_v14  ;;  %v7259_v17 = vpop.f32.mrb[67].mxu0 }
 0x3b9   :  { %7803 = shalt.err (!%p7800_p4)
}
 0x3ba   :  { %s7804_s4 = scalar_lea.hbm %s9571_s5, 32 }
 0x3bb   :  { %p7805_p5 = scmp.ne.s32.totalorder %s9571_s5, %s7804_s4  ;;  %p7808_p6 = scmp.lt.u32.totalorder %s7804_s4, %s9571_s5 }
 0x3bd   :  { %p7810_p7 = pnand %p7808_p6, %p7805_p5 }
 0x3bf   :  { %7813 = shalt.err (!%p7810_p7)
}
 0x3c0   :  { %6000 = dma.vmem_to_hbm [thread:$0]  %s5998_s0, 32, %s9571_s5, [#allocation3]  }
 0x3c1   :  { %7814 = dma.done.wait [#allocation3], 32  }
 0x3c2   :  { %7815 = vsyncadd [#allocation3], 4294967264 }
 0x3c3   :  { %6004 = vsyncpa [#allocation3], 1 }

</bundles_post_ra>
